<compile_context>
chip_gen: v7x
topology: tpu7x:2x2x1
jax: 0.10.0
libtpu: 0.0.40
codegen_flags: <defaults>
</compile_context>

<pallas_src>
import functools

import jax
import jax.numpy as jnp
from jax.experimental import pallas as pl
from jax.experimental.pallas import tpu as pltpu

NUM_ENC_POS = 6
NUM_ENC_VIEWDIR = 6
DIM_POS = 3 + 2 * 3 * NUM_ENC_POS          # 39
DIM_VIEWDIR = 3 + 2 * 3 * NUM_ENC_VIEWDIR  # 39
DPAD = 128                                 # padded lane width for pos/viewdir
H = 256
H2 = 128
TM = 512  # rows per grid step


def _relu_bf16(acc_f32, b_f32):
    """f32 bias-add + ReLU, then cast to bf16 for the next MXU operand."""
    return jnp.maximum(acc_f32 + b_f32, 0.0).astype(jnp.bfloat16)


def nerf_kernel(pos_ref, vd_ref,
                w15b, w2, w3, w4, w5a, w6, w7, w8, wA, w9, w10a, w10b, w11,
                wrgb,
                b1, b2, b3, b4, b5, b6, b7, b8, bA, b9, b10, b11, brgb,
                rgb_ref, alpha_ref):
    pos = pos_ref[...]   # (TM, DPAD) bf16 (zero padded beyond DIM_POS)
    vd = vd_ref[...]     # (TM, DPAD) bf16 (zero padded beyond DIM_VIEWDIR)

    dot = functools.partial(jnp.dot, preferred_element_type=jnp.float32)

    # Fused pos matmul: pos @ [w1 | w5b] -> (TM, 512) f32.
    t = dot(pos, w15b[...])
    skip5 = t[:, H:]                        # layer-5 skip term (pos @ w5b), f32

    out = _relu_bf16(t[:, :H], b1[...])
    out = _relu_bf16(dot(out, w2[...]), b2[...])
    out = _relu_bf16(dot(out, w3[...]), b3[...])
    out = _relu_bf16(dot(out, w4[...]), b4[...])

    # layer5(concat(out, pos)) == out @ W5a + pos @ W5b + b5
    out = _relu_bf16(dot(out, w5a[...]) + skip5, b5[...])
    out = _relu_bf16(dot(out, w6[...]), b6[...])
    out = _relu_bf16(dot(out, w7[...]), b7[...])
    out = _relu_bf16(dot(out, w8[...]), b8[...])

    alphas = dot(out, wA[...]) + bA[...]    # (TM, 1) f32

    out = _relu_bf16(dot(out, w9[...]), b9[...])

    # layer10(concat(out, viewdir)) == out @ W10a + vd @ W10b + b10
    out = _relu_bf16(dot(out, w10a[...]) + dot(vd, w10b[...]), b10[...])
    out = _relu_bf16(dot(out, w11[...]), b11[...])

    rgbs = jnp.maximum(dot(out, wrgb[...]) + brgb[...], 0.0)   # (TM, 3) f32

    rgb_ref[...] = rgbs.astype(rgb_ref.dtype)
    alpha_ref[...] = alphas.astype(alpha_ref.dtype)


def _full_spec(shape):
    # Weight / bias blocks: take the whole array, same block for every grid
    # step (held resident in VMEM across the grid).
    rank = len(shape)
    return pl.BlockSpec(shape, lambda i, _r=rank: (0,) * _r)


def pack_params(p):
    """Split skip layers, fuse the pos matmuls, pad K to 128, cast to bf16."""
    w5a = p["w5"][:H]                 # (256, 256)  -- hidden part
    w5b = p["w5"][H:]                 # (39, 256)   -- raw pos part
    w10a = p["w10"][:H]               # (256, 128)
    w10b = p["w10"][H:]               # (39, 128)

    # Fused pos weight [w1 | w5b]: (39, 512) -> zero-pad K to 128.
    w1_5b = jnp.concatenate([p["w1"], w5b], axis=1)
    w1_5b = jnp.pad(w1_5b, ((0, DPAD - DIM_POS), (0, 0)))
    w10b_p = jnp.pad(w10b, ((0, DPAD - DIM_VIEWDIR), (0, 0)))

    weights = [w1_5b, p["w2"], p["w3"], p["w4"], w5a, p["w6"], p["w7"],
               p["w8"], p["wA"], p["w9"], w10a, w10b_p, p["w11"], p["wrgb"]]
    weights = [w.astype(jnp.bfloat16) for w in weights]

    biases = [p["b1"], p["b2"], p["b3"], p["b4"], p["b5"], p["b6"], p["b7"],
              p["b8"], p["bA"], p["b9"], p["b10"], p["b11"], p["brgb"]]
    biases = [b.astype(jnp.float32) for b in biases]
    return weights, biases


def nerf_forward(pos, viewdir, params, *, tm=TM):
    """pos: [N, DIM_POS], viewdir: [N, DIM_VIEWDIR] -> [N, 4] (rgb, alpha)."""
    N = pos.shape[0]
    n_pad = pl.cdiv(N, tm) * tm

    weights, biases = pack_params(params)

    # Zero-pad rows to a multiple of TM and lanes to 128, cast to bf16.
    pos_p = jnp.pad(pos.astype(jnp.bfloat16),
                    ((0, n_pad - N), (0, DPAD - DIM_POS)))
    vd_p = jnp.pad(viewdir.astype(jnp.bfloat16),
                   ((0, n_pad - N), (0, DPAD - DIM_VIEWDIR)))

    in_specs = (
        [pl.BlockSpec((tm, DPAD), lambda i: (i, 0)),
         pl.BlockSpec((tm, DPAD), lambda i: (i, 0))]
        + [_full_spec(w.shape) for w in weights]
        + [_full_spec(b.shape) for b in biases]
    )
    out_specs = [pl.BlockSpec((tm, 3), lambda i: (i, 0)),
                 pl.BlockSpec((tm, 1), lambda i: (i, 0))]
    out_shape = (jax.ShapeDtypeStruct((n_pad, 3), jnp.float32),
                 jax.ShapeDtypeStruct((n_pad, 1), jnp.float32))

    # Advisory cost estimate so XLA schedules surrounding ops sensibly.
    macs_per_row = (DPAD * 2 * H     # fused pos matmul
                    + 8 * H * H      # layers 2,3,4,5a,6,7,8,9
                    + H * 1          # alpha
                    + H * H2         # 10a
                    + DPAD * H2      # 10b (padded viewdir)
                    + H2 * H2        # 11
                    + H2 * 3)        # rgb
    flops = 2 * n_pad * macs_per_row
    bytes_accessed = (
        sum(int(a.size) * a.dtype.itemsize for a in (weights + biases))
        + 2 * n_pad * DPAD * 2      # bf16 pos/viewdir blocks
        + n_pad * 4 * 4             # f32 rgb+alpha outputs
    )
    cost = pl.CostEstimate(flops=flops, transcendentals=0,
                           bytes_accessed=bytes_accessed)

    rgbs, alphas = pl.pallas_call(
        nerf_kernel,
        out_shape=out_shape,
        grid_spec=pltpu.PrefetchScalarGridSpec(
            num_scalar_prefetch=0,
            grid=(n_pad // tm,),
            in_specs=in_specs,
            out_specs=out_specs,
        ),
        compiler_params=pltpu.CompilerParams(
            dimension_semantics=("parallel",),
        ),
        cost_estimate=cost,
    )(pos_p, vd_p, *weights, *biases)

    return jnp.concatenate([rgbs[:N], alphas[:N]], axis=-1)


def init_params(key):
    """Deterministic synthetic init. Linear(in, out) -> W:[in,out], b:[1,out].

    Layers mirror the PyTorch module exactly (layer5 / layer10 take the
    concatenated inputs, so their first dims are 256+39).
    """
    layer_dims = {
        "1": (DIM_POS, H), "2": (H, H), "3": (H, H), "4": (H, H),
        "5": (H + DIM_POS, H),
        "6": (H, H), "7": (H, H), "8": (H, H),
        "A": (H, 1),
        "9": (H, H),
        "10": (H + DIM_VIEWDIR, H2),
        "11": (H2, H2),
        "rgb": (H2, 3),
    }
    params = {}
    keys = jax.random.split(key, 2 * len(layer_dims))
    for idx, (name, (din, dout)) in enumerate(sorted(layer_dims.items())):
        kw, kb = keys[2 * idx], keys[2 * idx + 1]
        scale = 1.0 / jnp.sqrt(jnp.float32(din))
        params[f"w{name}"] = (
            jax.random.uniform(kw, (din, dout), jnp.float32, -1.0, 1.0) * scale
        )
        params[f"b{name}"] = (
            jax.random.uniform(kb, (1, dout), jnp.float32, -1.0, 1.0) * scale
        )
    return params


def nerf_reference(pos, viewdir, p):
    """Pure-JAX reference with the same mixed precision (bf16 operands,
    f32 accumulation) and identical math, for sanity checking."""
    relu = lambda x: jnp.maximum(x, 0.0)
    bf = lambda x: x.astype(jnp.bfloat16)

    def lin(x, w, b):
        return jnp.dot(bf(x), bf(w), preferred_element_type=jnp.float32) + b

    out = relu(lin(pos, p["w1"], p["b1"]))
    out = relu(lin(out, p["w2"], p["b2"]))
    out = relu(lin(out, p["w3"], p["b3"]))
    out = relu(lin(out, p["w4"], p["b4"]))
    out = relu(lin(jnp.concatenate([out, pos], -1), p["w5"], p["b5"]))
    out = relu(lin(out, p["w6"], p["b6"]))
    out = relu(lin(out, p["w7"], p["b7"]))
    out = relu(lin(out, p["w8"], p["b8"]))
    alphas = lin(out, p["wA"], p["bA"])
    out = relu(lin(out, p["w9"], p["b9"]))
    out = relu(lin(jnp.concatenate([out, viewdir], -1), p["w10"], p["b10"]))
    out = relu(lin(out, p["w11"], p["b11"]))
    rgbs = relu(lin(out, p["wrgb"], p["brgb"]))
    return jnp.concatenate([rgbs, alphas], axis=-1)


if __name__ == "__main__":
    key = jax.random.PRNGKey(0)
    k_params, k_pos, k_vd = jax.random.split(key, 3)

    # N deliberately not a multiple of TM to exercise the padded-tail path.
    N = 1000
    params = init_params(k_params)
    pos = jax.random.normal(k_pos, (N, DIM_POS), jnp.float32)
    viewdir = jax.random.normal(k_vd, (N, DIM_VIEWDIR), jnp.float32)

    out = jax.block_until_ready(nerf_forward(pos, viewdir, params))
    ref = jax.block_until_ready(nerf_reference(pos, viewdir, params))

    assert out.shape == (N, 4), out.shape
    max_err = float(jnp.max(jnp.abs(out - ref)))
    assert jnp.allclose(out, ref, atol=1e-2, rtol=1e-2), max_err

    print("KERNEL_OK")
</pallas_src>

<mosaic_0001>
module attributes {stable_mosaic.version = 11 : i64} {
  func.func @nerf_kernel(%arg0: i32, %arg1: memref<512x128xbf16, #tpu.memory_space<vmem>>, %arg2: memref<512x128xbf16, #tpu.memory_space<vmem>>, %arg3: memref<128x512xbf16, #tpu.memory_space<vmem>>, %arg4: memref<256x256xbf16, #tpu.memory_space<vmem>>, %arg5: memref<256x256xbf16, #tpu.memory_space<vmem>>, %arg6: memref<256x256xbf16, #tpu.memory_space<vmem>>, %arg7: memref<256x256xbf16, #tpu.memory_space<vmem>>, %arg8: memref<256x256xbf16, #tpu.memory_space<vmem>>, %arg9: memref<256x256xbf16, #tpu.memory_space<vmem>>, %arg10: memref<256x256xbf16, #tpu.memory_space<vmem>>, %arg11: memref<256x1xbf16, #tpu.memory_space<vmem>>, %arg12: memref<256x256xbf16, #tpu.memory_space<vmem>>, %arg13: memref<256x128xbf16, #tpu.memory_space<vmem>>, %arg14: memref<128x128xbf16, #tpu.memory_space<vmem>>, %arg15: memref<128x128xbf16, #tpu.memory_space<vmem>>, %arg16: memref<128x3xbf16, #tpu.memory_space<vmem>>, %arg17: memref<1x256xf32, #tpu.memory_space<vmem>>, %arg18: memref<1x256xf32, #tpu.memory_space<vmem>>, %arg19: memref<1x256xf32, #tpu.memory_space<vmem>>, %arg20: memref<1x256xf32, #tpu.memory_space<vmem>>, %arg21: memref<1x256xf32, #tpu.memory_space<vmem>>, %arg22: memref<1x256xf32, #tpu.memory_space<vmem>>, %arg23: memref<1x256xf32, #tpu.memory_space<vmem>>, %arg24: memref<1x256xf32, #tpu.memory_space<vmem>>, %arg25: memref<1x1xf32, #tpu.memory_space<vmem>>, %arg26: memref<1x256xf32, #tpu.memory_space<vmem>>, %arg27: memref<1x128xf32, #tpu.memory_space<vmem>>, %arg28: memref<1x128xf32, #tpu.memory_space<vmem>>, %arg29: memref<1x3xf32, #tpu.memory_space<vmem>>, %arg30: memref<512x3xf32, #tpu.memory_space<vmem>>, %arg31: memref<512x1xf32, #tpu.memory_space<vmem>>) attributes {dimension_semantics = [#tpu.dimension_semantics<parallel>], iteration_bounds = array<i64: 2>, scalar_prefetch = 0 : i64, scratch_operands = 0 : i64, tpu.core_type = #tpu.core_type<tc>, window_params = [{transform_indices = @transform_0, window_bounds = array<i64: 512, 128>}, {transform_indices = @transform_1, window_bounds = array<i64: 512, 128>}, {pipeline_mode = #tpu.pipeline_mode<synchronous>, transform_indices = @transform_2, window_bounds = array<i64: 128, 512>}, {pipeline_mode = #tpu.pipeline_mode<synchronous>, transform_indices = @transform_3, window_bounds = array<i64: 256, 256>}, {pipeline_mode = #tpu.pipeline_mode<synchronous>, transform_indices = @transform_4, window_bounds = array<i64: 256, 256>}, {pipeline_mode = #tpu.pipeline_mode<synchronous>, transform_indices = @transform_5, window_bounds = array<i64: 256, 256>}, {pipeline_mode = #tpu.pipeline_mode<synchronous>, transform_indices = @transform_6, window_bounds = array<i64: 256, 256>}, {pipeline_mode = #tpu.pipeline_mode<synchronous>, transform_indices = @transform_7, window_bounds = array<i64: 256, 256>}, {pipeline_mode = #tpu.pipeline_mode<synchronous>, transform_indices = @transform_8, window_bounds = array<i64: 256, 256>}, {pipeline_mode = #tpu.pipeline_mode<synchronous>, transform_indices = @transform_9, window_bounds = array<i64: 256, 256>}, {pipeline_mode = #tpu.pipeline_mode<synchronous>, transform_indices = @transform_10, window_bounds = array<i64: 256, 1>}, {pipeline_mode = #tpu.pipeline_mode<synchronous>, transform_indices = @transform_11, window_bounds = array<i64: 256, 256>}, {pipeline_mode = #tpu.pipeline_mode<synchronous>, transform_indices = @transform_12, window_bounds = array<i64: 256, 128>}, {pipeline_mode = #tpu.pipeline_mode<synchronous>, transform_indices = @transform_13, window_bounds = array<i64: 128, 128>}, {pipeline_mode = #tpu.pipeline_mode<synchronous>, transform_indices = @transform_14, window_bounds = array<i64: 128, 128>}, {pipeline_mode = #tpu.pipeline_mode<synchronous>, transform_indices = @transform_15, window_bounds = array<i64: 128, 3>}, {pipeline_mode = #tpu.pipeline_mode<synchronous>, transform_indices = @transform_16, window_bounds = array<i64: 1, 256>}, {pipeline_mode = #tpu.pipeline_mode<synchronous>, transform_indices = @transform_17, window_bounds = array<i64: 1, 256>}, {pipeline_mode = #tpu.pipeline_mode<synchronous>, transform_indices = @transform_18, window_bounds = array<i64: 1, 256>}, {pipeline_mode = #tpu.pipeline_mode<synchronous>, transform_indices = @transform_19, window_bounds = array<i64: 1, 256>}, {pipeline_mode = #tpu.pipeline_mode<synchronous>, transform_indices = @transform_20, window_bounds = array<i64: 1, 256>}, {pipeline_mode = #tpu.pipeline_mode<synchronous>, transform_indices = @transform_21, window_bounds = array<i64: 1, 256>}, {pipeline_mode = #tpu.pipeline_mode<synchronous>, transform_indices = @transform_22, window_bounds = array<i64: 1, 256>}, {pipeline_mode = #tpu.pipeline_mode<synchronous>, transform_indices = @transform_23, window_bounds = array<i64: 1, 256>}, {pipeline_mode = #tpu.pipeline_mode<synchronous>, transform_indices = @transform_24, window_bounds = array<i64: 1, 1>}, {pipeline_mode = #tpu.pipeline_mode<synchronous>, transform_indices = @transform_25, window_bounds = array<i64: 1, 256>}, {pipeline_mode = #tpu.pipeline_mode<synchronous>, transform_indices = @transform_26, window_bounds = array<i64: 1, 128>}, {pipeline_mode = #tpu.pipeline_mode<synchronous>, transform_indices = @transform_27, window_bounds = array<i64: 1, 128>}, {pipeline_mode = #tpu.pipeline_mode<synchronous>, transform_indices = @transform_28, window_bounds = array<i64: 1, 3>}, {transform_indices = @transform_29, window_bounds = array<i64: 512, 3>}, {transform_indices = @transform_30, window_bounds = array<i64: 512, 1>}]} {
    %c0 = arith.constant 0 : index
    %c0_0 = arith.constant 0 : index
    %0 = vector.load %arg1[%c0, %c0_0] : memref<512x128xbf16, #tpu.memory_space<vmem>>, vector<512x128xbf16>
    %c0_1 = arith.constant 0 : index
    %c0_2 = arith.constant 0 : index
    %1 = vector.load %arg2[%c0_1, %c0_2] : memref<512x128xbf16, #tpu.memory_space<vmem>>, vector<512x128xbf16>
    %c0_3 = arith.constant 0 : index
    %c0_4 = arith.constant 0 : index
    %2 = vector.load %arg3[%c0_3, %c0_4] : memref<128x512xbf16, #tpu.memory_space<vmem>>, vector<128x512xbf16>
    %cst = arith.constant dense<0.000000e+00> : vector<512x512xf32>
    %3 = tpu.matmul %0, %2, %cst {dimension_numbers = #tpu.dot_dimension_numbers<[1], [0], [0], [1], [0, 0, 1, 1], [], []>} : vector<512x128xbf16>, vector<128x512xbf16>, vector<512x512xf32> -> vector<512x512xf32>
    %4 = vector.extract_strided_slice %3 {offsets = [0, 256], sizes = [512, 256], strides = [1, 1]} : vector<512x512xf32> to vector<512x256xf32>
    %5 = vector.extract_strided_slice %3 {offsets = [0, 0], sizes = [512, 256], strides = [1, 1]} : vector<512x512xf32> to vector<512x256xf32>
    %c0_5 = arith.constant 0 : index
    %c0_6 = arith.constant 0 : index
    %6 = vector.load %arg17[%c0_5, %c0_6] : memref<1x256xf32, #tpu.memory_space<vmem>>, vector<1x256xf32>
    %7 = vector.broadcast %6 : vector<1x256xf32> to vector<512x256xf32>
    %8 = arith.addf %5, %7 : vector<512x256xf32>
    %cst_7 = arith.constant 0.000000e+00 : f32
    %9 = vector.broadcast %cst_7 : f32 to vector<512x256xf32>
    %10 = arith.maximumf %8, %9 : vector<512x256xf32>
    %11 = arith.truncf %10 : vector<512x256xf32> to vector<512x256xbf16>
    %c0_8 = arith.constant 0 : index
    %c0_9 = arith.constant 0 : index
    %12 = vector.load %arg4[%c0_8, %c0_9] : memref<256x256xbf16, #tpu.memory_space<vmem>>, vector<256x256xbf16>
    %cst_10 = arith.constant dense<0.000000e+00> : vector<512x256xf32>
    %13 = tpu.matmul %11, %12, %cst_10 {dimension_numbers = #tpu.dot_dimension_numbers<[1], [0], [0], [1], [0, 0, 1, 1], [], []>} : vector<512x256xbf16>, vector<256x256xbf16>, vector<512x256xf32> -> vector<512x256xf32>
    %c0_11 = arith.constant 0 : index
    %c0_12 = arith.constant 0 : index
    %14 = vector.load %arg18[%c0_11, %c0_12] : memref<1x256xf32, #tpu.memory_space<vmem>>, vector<1x256xf32>
    %15 = vector.broadcast %14 : vector<1x256xf32> to vector<512x256xf32>
    %16 = arith.addf %13, %15 : vector<512x256xf32>
    %cst_13 = arith.constant 0.000000e+00 : f32
    %17 = vector.broadcast %cst_13 : f32 to vector<512x256xf32>
    %18 = arith.maximumf %16, %17 : vector<512x256xf32>
    %19 = arith.truncf %18 : vector<512x256xf32> to vector<512x256xbf16>
    %c0_14 = arith.constant 0 : index
    %c0_15 = arith.constant 0 : index
    %20 = vector.load %arg5[%c0_14, %c0_15] : memref<256x256xbf16, #tpu.memory_space<vmem>>, vector<256x256xbf16>
    %cst_16 = arith.constant dense<0.000000e+00> : vector<512x256xf32>
    %21 = tpu.matmul %19, %20, %cst_16 {dimension_numbers = #tpu.dot_dimension_numbers<[1], [0], [0], [1], [0, 0, 1, 1], [], []>} : vector<512x256xbf16>, vector<256x256xbf16>, vector<512x256xf32> -> vector<512x256xf32>
    %c0_17 = arith.constant 0 : index
    %c0_18 = arith.constant 0 : index
    %22 = vector.load %arg19[%c0_17, %c0_18] : memref<1x256xf32, #tpu.memory_space<vmem>>, vector<1x256xf32>
    %23 = vector.broadcast %22 : vector<1x256xf32> to vector<512x256xf32>
    %24 = arith.addf %21, %23 : vector<512x256xf32>
    %cst_19 = arith.constant 0.000000e+00 : f32
    %25 = vector.broadcast %cst_19 : f32 to vector<512x256xf32>
    %26 = arith.maximumf %24, %25 : vector<512x256xf32>
    %27 = arith.truncf %26 : vector<512x256xf32> to vector<512x256xbf16>
    %c0_20 = arith.constant 0 : index
    %c0_21 = arith.constant 0 : index
    %28 = vector.load %arg6[%c0_20, %c0_21] : memref<256x256xbf16, #tpu.memory_space<vmem>>, vector<256x256xbf16>
    %cst_22 = arith.constant dense<0.000000e+00> : vector<512x256xf32>
    %29 = tpu.matmul %27, %28, %cst_22 {dimension_numbers = #tpu.dot_dimension_numbers<[1], [0], [0], [1], [0, 0, 1, 1], [], []>} : vector<512x256xbf16>, vector<256x256xbf16>, vector<512x256xf32> -> vector<512x256xf32>
    %c0_23 = arith.constant 0 : index
    %c0_24 = arith.constant 0 : index
    %30 = vector.load %arg20[%c0_23, %c0_24] : memref<1x256xf32, #tpu.memory_space<vmem>>, vector<1x256xf32>
    %31 = vector.broadcast %30 : vector<1x256xf32> to vector<512x256xf32>
    %32 = arith.addf %29, %31 : vector<512x256xf32>
    %cst_25 = arith.constant 0.000000e+00 : f32
    %33 = vector.broadcast %cst_25 : f32 to vector<512x256xf32>
    %34 = arith.maximumf %32, %33 : vector<512x256xf32>
    %35 = arith.truncf %34 : vector<512x256xf32> to vector<512x256xbf16>
    %c0_26 = arith.constant 0 : index
    %c0_27 = arith.constant 0 : index
    %36 = vector.load %arg7[%c0_26, %c0_27] : memref<256x256xbf16, #tpu.memory_space<vmem>>, vector<256x256xbf16>
    %cst_28 = arith.constant dense<0.000000e+00> : vector<512x256xf32>
    %37 = tpu.matmul %35, %36, %cst_28 {dimension_numbers = #tpu.dot_dimension_numbers<[1], [0], [0], [1], [0, 0, 1, 1], [], []>} : vector<512x256xbf16>, vector<256x256xbf16>, vector<512x256xf32> -> vector<512x256xf32>
    %38 = arith.addf %37, %4 : vector<512x256xf32>
    %c0_29 = arith.constant 0 : index
    %c0_30 = arith.constant 0 : index
    %39 = vector.load %arg21[%c0_29, %c0_30] : memref<1x256xf32, #tpu.memory_space<vmem>>, vector<1x256xf32>
    %40 = vector.broadcast %39 : vector<1x256xf32> to vector<512x256xf32>
    %41 = arith.addf %38, %40 : vector<512x256xf32>
    %cst_31 = arith.constant 0.000000e+00 : f32
    %42 = vector.broadcast %cst_31 : f32 to vector<512x256xf32>
    %43 = arith.maximumf %41, %42 : vector<512x256xf32>
    %44 = arith.truncf %43 : vector<512x256xf32> to vector<512x256xbf16>
    %c0_32 = arith.constant 0 : index
    %c0_33 = arith.constant 0 : index
    %45 = vector.load %arg8[%c0_32, %c0_33] : memref<256x256xbf16, #tpu.memory_space<vmem>>, vector<256x256xbf16>
    %cst_34 = arith.constant dense<0.000000e+00> : vector<512x256xf32>
    %46 = tpu.matmul %44, %45, %cst_34 {dimension_numbers = #tpu.dot_dimension_numbers<[1], [0], [0], [1], [0, 0, 1, 1], [], []>} : vector<512x256xbf16>, vector<256x256xbf16>, vector<512x256xf32> -> vector<512x256xf32>
    %c0_35 = arith.constant 0 : index
    %c0_36 = arith.constant 0 : index
    %47 = vector.load %arg22[%c0_35, %c0_36] : memref<1x256xf32, #tpu.memory_space<vmem>>, vector<1x256xf32>
    %48 = vector.broadcast %47 : vector<1x256xf32> to vector<512x256xf32>
    %49 = arith.addf %46, %48 : vector<512x256xf32>
    %cst_37 = arith.constant 0.000000e+00 : f32
    %50 = vector.broadcast %cst_37 : f32 to vector<512x256xf32>
    %51 = arith.maximumf %49, %50 : vector<512x256xf32>
    %52 = arith.truncf %51 : vector<512x256xf32> to vector<512x256xbf16>
    %c0_38 = arith.constant 0 : index
    %c0_39 = arith.constant 0 : index
    %53 = vector.load %arg9[%c0_38, %c0_39] : memref<256x256xbf16, #tpu.memory_space<vmem>>, vector<256x256xbf16>
    %cst_40 = arith.constant dense<0.000000e+00> : vector<512x256xf32>
    %54 = tpu.matmul %52, %53, %cst_40 {dimension_numbers = #tpu.dot_dimension_numbers<[1], [0], [0], [1], [0, 0, 1, 1], [], []>} : vector<512x256xbf16>, vector<256x256xbf16>, vector<512x256xf32> -> vector<512x256xf32>
    %c0_41 = arith.constant 0 : index
    %c0_42 = arith.constant 0 : index
    %55 = vector.load %arg23[%c0_41, %c0_42] : memref<1x256xf32, #tpu.memory_space<vmem>>, vector<1x256xf32>
    %56 = vector.broadcast %55 : vector<1x256xf32> to vector<512x256xf32>
    %57 = arith.addf %54, %56 : vector<512x256xf32>
    %cst_43 = arith.constant 0.000000e+00 : f32
    %58 = vector.broadcast %cst_43 : f32 to vector<512x256xf32>
    %59 = arith.maximumf %57, %58 : vector<512x256xf32>
    %60 = arith.truncf %59 : vector<512x256xf32> to vector<512x256xbf16>
    %c0_44 = arith.constant 0 : index
    %c0_45 = arith.constant 0 : index
    %61 = vector.load %arg10[%c0_44, %c0_45] : memref<256x256xbf16, #tpu.memory_space<vmem>>, vector<256x256xbf16>
    %cst_46 = arith.constant dense<0.000000e+00> : vector<512x256xf32>
    %62 = tpu.matmul %60, %61, %cst_46 {dimension_numbers = #tpu.dot_dimension_numbers<[1], [0], [0], [1], [0, 0, 1, 1], [], []>} : vector<512x256xbf16>, vector<256x256xbf16>, vector<512x256xf32> -> vector<512x256xf32>
    %c0_47 = arith.constant 0 : index
    %c0_48 = arith.constant 0 : index
    %63 = vector.load %arg24[%c0_47, %c0_48] : memref<1x256xf32, #tpu.memory_space<vmem>>, vector<1x256xf32>
    %64 = vector.broadcast %63 : vector<1x256xf32> to vector<512x256xf32>
    %65 = arith.addf %62, %64 : vector<512x256xf32>
    %cst_49 = arith.constant 0.000000e+00 : f32
    %66 = vector.broadcast %cst_49 : f32 to vector<512x256xf32>
    %67 = arith.maximumf %65, %66 : vector<512x256xf32>
    %68 = arith.truncf %67 : vector<512x256xf32> to vector<512x256xbf16>
    %c0_50 = arith.constant 0 : index
    %c0_51 = arith.constant 0 : index
    %69 = vector.load %arg11[%c0_50, %c0_51] : memref<256x1xbf16, #tpu.memory_space<vmem>>, vector<256x1xbf16>
    %cst_52 = arith.constant dense<0.000000e+00> : vector<512x1xf32>
    %70 = tpu.matmul %68, %69, %cst_52 {dimension_numbers = #tpu.dot_dimension_numbers<[1], [0], [0], [1], [0, 0, 1, 1], [], []>} : vector<512x256xbf16>, vector<256x1xbf16>, vector<512x1xf32> -> vector<512x1xf32>
    %c0_53 = arith.constant 0 : index
    %c0_54 = arith.constant 0 : index
    %71 = vector.load %arg25[%c0_53, %c0_54] : memref<1x1xf32, #tpu.memory_space<vmem>>, vector<1x1xf32>
    %72 = vector.broadcast %71 : vector<1x1xf32> to vector<512x1xf32>
    %73 = arith.addf %70, %72 : vector<512x1xf32>
    %c0_55 = arith.constant 0 : index
    %c0_56 = arith.constant 0 : index
    %74 = vector.load %arg12[%c0_55, %c0_56] : memref<256x256xbf16, #tpu.memory_space<vmem>>, vector<256x256xbf16>
    %cst_57 = arith.constant dense<0.000000e+00> : vector<512x256xf32>
    %75 = tpu.matmul %68, %74, %cst_57 {dimension_numbers = #tpu.dot_dimension_numbers<[1], [0], [0], [1], [0, 0, 1, 1], [], []>} : vector<512x256xbf16>, vector<256x256xbf16>, vector<512x256xf32> -> vector<512x256xf32>
    %c0_58 = arith.constant 0 : index
    %c0_59 = arith.constant 0 : index
    %76 = vector.load %arg26[%c0_58, %c0_59] : memref<1x256xf32, #tpu.memory_space<vmem>>, vector<1x256xf32>
    %77 = vector.broadcast %76 : vector<1x256xf32> to vector<512x256xf32>
    %78 = arith.addf %75, %77 : vector<512x256xf32>
    %cst_60 = arith.constant 0.000000e+00 : f32
    %79 = vector.broadcast %cst_60 : f32 to vector<512x256xf32>
    %80 = arith.maximumf %78, %79 : vector<512x256xf32>
    %81 = arith.truncf %80 : vector<512x256xf32> to vector<512x256xbf16>
    %c0_61 = arith.constant 0 : index
    %c0_62 = arith.constant 0 : index
    %82 = vector.load %arg13[%c0_61, %c0_62] : memref<256x128xbf16, #tpu.memory_space<vmem>>, vector<256x128xbf16>
    %cst_63 = arith.constant dense<0.000000e+00> : vector<512x128xf32>
    %83 = tpu.matmul %81, %82, %cst_63 {dimension_numbers = #tpu.dot_dimension_numbers<[1], [0], [0], [1], [0, 0, 1, 1], [], []>} : vector<512x256xbf16>, vector<256x128xbf16>, vector<512x128xf32> -> vector<512x128xf32>
    %c0_64 = arith.constant 0 : index
    %c0_65 = arith.constant 0 : index
    %84 = vector.load %arg14[%c0_64, %c0_65] : memref<128x128xbf16, #tpu.memory_space<vmem>>, vector<128x128xbf16>
    %cst_66 = arith.constant dense<0.000000e+00> : vector<512x128xf32>
    %85 = tpu.matmul %1, %84, %cst_66 {dimension_numbers = #tpu.dot_dimension_numbers<[1], [0], [0], [1], [0, 0, 1, 1], [], []>} : vector<512x128xbf16>, vector<128x128xbf16>, vector<512x128xf32> -> vector<512x128xf32>
    %86 = arith.addf %83, %85 : vector<512x128xf32>
    %c0_67 = arith.constant 0 : index
    %c0_68 = arith.constant 0 : index
    %87 = vector.load %arg27[%c0_67, %c0_68] : memref<1x128xf32, #tpu.memory_space<vmem>>, vector<1x128xf32>
    %88 = vector.broadcast %87 : vector<1x128xf32> to vector<512x128xf32>
    %89 = arith.addf %86, %88 : vector<512x128xf32>
    %cst_69 = arith.constant 0.000000e+00 : f32
    %90 = vector.broadcast %cst_69 : f32 to vector<512x128xf32>
    %91 = arith.maximumf %89, %90 : vector<512x128xf32>
    %92 = arith.truncf %91 : vector<512x128xf32> to vector<512x128xbf16>
    %c0_70 = arith.constant 0 : index
    %c0_71 = arith.constant 0 : index
    %93 = vector.load %arg15[%c0_70, %c0_71] : memref<128x128xbf16, #tpu.memory_space<vmem>>, vector<128x128xbf16>
    %cst_72 = arith.constant dense<0.000000e+00> : vector<512x128xf32>
    %94 = tpu.matmul %92, %93, %cst_72 {dimension_numbers = #tpu.dot_dimension_numbers<[1], [0], [0], [1], [0, 0, 1, 1], [], []>} : vector<512x128xbf16>, vector<128x128xbf16>, vector<512x128xf32> -> vector<512x128xf32>
    %c0_73 = arith.constant 0 : index
    %c0_74 = arith.constant 0 : index
    %95 = vector.load %arg28[%c0_73, %c0_74] : memref<1x128xf32, #tpu.memory_space<vmem>>, vector<1x128xf32>
    %96 = vector.broadcast %95 : vector<1x128xf32> to vector<512x128xf32>
    %97 = arith.addf %94, %96 : vector<512x128xf32>
    %cst_75 = arith.constant 0.000000e+00 : f32
    %98 = vector.broadcast %cst_75 : f32 to vector<512x128xf32>
    %99 = arith.maximumf %97, %98 : vector<512x128xf32>
    %100 = arith.truncf %99 : vector<512x128xf32> to vector<512x128xbf16>
    %c0_76 = arith.constant 0 : index
    %c0_77 = arith.constant 0 : index
    %101 = vector.load %arg16[%c0_76, %c0_77] : memref<128x3xbf16, #tpu.memory_space<vmem>>, vector<128x3xbf16>
    %cst_78 = arith.constant dense<0.000000e+00> : vector<512x3xf32>
    %102 = tpu.matmul %100, %101, %cst_78 {dimension_numbers = #tpu.dot_dimension_numbers<[1], [0], [0], [1], [0, 0, 1, 1], [], []>} : vector<512x128xbf16>, vector<128x3xbf16>, vector<512x3xf32> -> vector<512x3xf32>
    %c0_79 = arith.constant 0 : index
    %c0_80 = arith.constant 0 : index
    %103 = vector.load %arg29[%c0_79, %c0_80] : memref<1x3xf32, #tpu.memory_space<vmem>>, vector<1x3xf32>
    %104 = vector.broadcast %103 : vector<1x3xf32> to vector<512x3xf32>
    %105 = arith.addf %102, %104 : vector<512x3xf32>
    %cst_81 = arith.constant 0.000000e+00 : f32
    %106 = vector.broadcast %cst_81 : f32 to vector<512x3xf32>
    %107 = arith.maximumf %105, %106 : vector<512x3xf32>
    %c0_82 = arith.constant 0 : index
    %c0_83 = arith.constant 0 : index
    %108 = vector.load %arg30[%c0_82, %c0_83] : memref<512x3xf32, #tpu.memory_space<vmem>>, vector<512x3xf32>
    tpu.vector_store %arg30[%c0_82, %c0_83], %107 {strides = array<i32>} : memref<512x3xf32, #tpu.memory_space<vmem>>, vector<512x3xf32>,
    %c0_84 = arith.constant 0 : index
    %c0_85 = arith.constant 0 : index
    %109 = vector.load %arg31[%c0_84, %c0_85] : memref<512x1xf32, #tpu.memory_space<vmem>>, vector<512x1xf32>
    tpu.vector_store %arg31[%c0_84, %c0_85], %73 {strides = array<i32>} : memref<512x1xf32, #tpu.memory_space<vmem>>, vector<512x1xf32>,
    return
  }
  func.func @transform_0(%arg0: i32) -> (i32, i32) {
    %c0_i32 = arith.constant 0 : i32
    %c0_i32_0 = arith.constant 0 : i32
    return %arg0, %c0_i32 : i32, i32
  }
  func.func @transform_1(%arg0: i32) -> (i32, i32) {
    %c0_i32 = arith.constant 0 : i32
    %c0_i32_0 = arith.constant 0 : i32
    return %arg0, %c0_i32 : i32, i32
  }
  func.func @transform_2(%arg0: i32) -> (i32, i32) {
    %c0_i32 = arith.constant 0 : i32
    %c0_i32_0 = arith.constant 0 : i32
    %c0_i32_1 = arith.constant 0 : i32
    return %c0_i32, %c0_i32_0 : i32, i32
  }
  func.func @transform_3(%arg0: i32) -> (i32, i32) {
    %c0_i32 = arith.constant 0 : i32
    %c0_i32_0 = arith.constant 0 : i32
    %c0_i32_1 = arith.constant 0 : i32
    return %c0_i32, %c0_i32_0 : i32, i32
  }
  func.func @transform_4(%arg0: i32) -> (i32, i32) {
    %c0_i32 = arith.constant 0 : i32
    %c0_i32_0 = arith.constant 0 : i32
    %c0_i32_1 = arith.constant 0 : i32
    return %c0_i32, %c0_i32_0 : i32, i32
  }
  func.func @transform_5(%arg0: i32) -> (i32, i32) {
    %c0_i32 = arith.constant 0 : i32
    %c0_i32_0 = arith.constant 0 : i32
    %c0_i32_1 = arith.constant 0 : i32
    return %c0_i32, %c0_i32_0 : i32, i32
  }
  func.func @transform_6(%arg0: i32) -> (i32, i32) {
    %c0_i32 = arith.constant 0 : i32
    %c0_i32_0 = arith.constant 0 : i32
    %c0_i32_1 = arith.constant 0 : i32
    return %c0_i32, %c0_i32_0 : i32, i32
  }
  func.func @transform_7(%arg0: i32) -> (i32, i32) {
    %c0_i32 = arith.constant 0 : i32
    %c0_i32_0 = arith.constant 0 : i32
    %c0_i32_1 = arith.constant 0 : i32
    return %c0_i32, %c0_i32_0 : i32, i32
  }
  func.func @transform_8(%arg0: i32) -> (i32, i32) {
    %c0_i32 = arith.constant 0 : i32
    %c0_i32_0 = arith.constant 0 : i32
    %c0_i32_1 = arith.constant 0 : i32
    return %c0_i32, %c0_i32_0 : i32, i32
  }
  func.func @transform_9(%arg0: i32) -> (i32, i32) {
    %c0_i32 = arith.constant 0 : i32
    %c0_i32_0 = arith.constant 0 : i32
    %c0_i32_1 = arith.constant 0 : i32
    return %c0_i32, %c0_i32_0 : i32, i32
  }
  func.func @transform_10(%arg0: i32) -> (i32, i32) {
    %c0_i32 = arith.constant 0 : i32
    %c0_i32_0 = arith.constant 0 : i32
    %c0_i32_1 = arith.constant 0 : i32
    return %c0_i32, %c0_i32_0 : i32, i32
  }
  func.func @transform_11(%arg0: i32) -> (i32, i32) {
    %c0_i32 = arith.constant 0 : i32
    %c0_i32_0 = arith.constant 0 : i32
    %c0_i32_1 = arith.constant 0 : i32
    return %c0_i32, %c0_i32_0 : i32, i32
  }
  func.func @transform_12(%arg0: i32) -> (i32, i32) {
    %c0_i32 = arith.constant 0 : i32
    %c0_i32_0 = arith.constant 0 : i32
    %c0_i32_1 = arith.constant 0 : i32
    return %c0_i32, %c0_i32_0 : i32, i32
  }
  func.func @transform_13(%arg0: i32) -> (i32, i32) {
    %c0_i32 = arith.constant 0 : i32
    %c0_i32_0 = arith.constant 0 : i32
    %c0_i32_1 = arith.constant 0 : i32
    return %c0_i32, %c0_i32_0 : i32, i32
  }
  func.func @transform_14(%arg0: i32) -> (i32, i32) {
    %c0_i32 = arith.constant 0 : i32
    %c0_i32_0 = arith.constant 0 : i32
    %c0_i32_1 = arith.constant 0 : i32
    return %c0_i32, %c0_i32_0 : i32, i32
  }
  func.func @transform_15(%arg0: i32) -> (i32, i32) {
    %c0_i32 = arith.constant 0 : i32
    %c0_i32_0 = arith.constant 0 : i32
    %c0_i32_1 = arith.constant 0 : i32
    return %c0_i32, %c0_i32_0 : i32, i32
  }
  func.func @transform_16(%arg0: i32) -> (i32, i32) {
    %c0_i32 = arith.constant 0 : i32
    %c0_i32_0 = arith.constant 0 : i32
    %c0_i32_1 = arith.constant 0 : i32
    return %c0_i32, %c0_i32_0 : i32, i32
  }
  func.func @transform_17(%arg0: i32) -> (i32, i32) {
    %c0_i32 = arith.constant 0 : i32
    %c0_i32_0 = arith.constant 0 : i32
    %c0_i32_1 = arith.constant 0 : i32
    return %c0_i32, %c0_i32_0 : i32, i32
  }
  func.func @transform_18(%arg0: i32) -> (i32, i32) {
    %c0_i32 = arith.constant 0 : i32
    %c0_i32_0 = arith.constant 0 : i32
    %c0_i32_1 = arith.constant 0 : i32
    return %c0_i32, %c0_i32_0 : i32, i32
  }
  func.func @transform_19(%arg0: i32) -> (i32, i32) {
    %c0_i32 = arith.constant 0 : i32
    %c0_i32_0 = arith.constant 0 : i32
    %c0_i32_1 = arith.constant 0 : i32
    return %c0_i32, %c0_i32_0 : i32, i32
  }
  func.func @transform_20(%arg0: i32) -> (i32, i32) {
    %c0_i32 = arith.constant 0 : i32
    %c0_i32_0 = arith.constant 0 : i32
    %c0_i32_1 = arith.constant 0 : i32
    return %c0_i32, %c0_i32_0 : i32, i32
  }
  func.func @transform_21(%arg0: i32) -> (i32, i32) {
    %c0_i32 = arith.constant 0 : i32
    %c0_i32_0 = arith.constant 0 : i32
    %c0_i32_1 = arith.constant 0 : i32
    return %c0_i32, %c0_i32_0 : i32, i32
  }
  func.func @transform_22(%arg0: i32) -> (i32, i32) {
    %c0_i32 = arith.constant 0 : i32
    %c0_i32_0 = arith.constant 0 : i32
    %c0_i32_1 = arith.constant 0 : i32
    return %c0_i32, %c0_i32_0 : i32, i32
  }
  func.func @transform_23(%arg0: i32) -> (i32, i32) {
    %c0_i32 = arith.constant 0 : i32
    %c0_i32_0 = arith.constant 0 : i32
    %c0_i32_1 = arith.constant 0 : i32
    return %c0_i32, %c0_i32_0 : i32, i32
  }
  func.func @transform_24(%arg0: i32) -> (i32, i32) {
    %c0_i32 = arith.constant 0 : i32
    %c0_i32_0 = arith.constant 0 : i32
    %c0_i32_1 = arith.constant 0 : i32
    return %c0_i32, %c0_i32_0 : i32, i32
  }
  func.func @transform_25(%arg0: i32) -> (i32, i32) {
    %c0_i32 = arith.constant 0 : i32
    %c0_i32_0 = arith.constant 0 : i32
    %c0_i32_1 = arith.constant 0 : i32
    return %c0_i32, %c0_i32_0 : i32, i32
  }
  func.func @transform_26(%arg0: i32) -> (i32, i32) {
    %c0_i32 = arith.constant 0 : i32
    %c0_i32_0 = arith.constant 0 : i32
    %c0_i32_1 = arith.constant 0 : i32
    return %c0_i32, %c0_i32_0 : i32, i32
  }
  func.func @transform_27(%arg0: i32) -> (i32, i32) {
    %c0_i32 = arith.constant 0 : i32
    %c0_i32_0 = arith.constant 0 : i32
    %c0_i32_1 = arith.constant 0 : i32
    return %c0_i32, %c0_i32_0 : i32, i32
  }
  func.func @transform_28(%arg0: i32) -> (i32, i32) {
    %c0_i32 = arith.constant 0 : i32
    %c0_i32_0 = arith.constant 0 : i32
    %c0_i32_1 = arith.constant 0 : i32
    return %c0_i32, %c0_i32_0 : i32, i32
  }
  func.func @transform_29(%arg0: i32) -> (i32, i32) {
    %c0_i32 = arith.constant 0 : i32
    %c0_i32_0 = arith.constant 0 : i32
    return %arg0, %c0_i32 : i32, i32
  }
  func.func @transform_30(%arg0: i32) -> (i32, i32) {
    %c0_i32 = arith.constant 0 : i32
    %c0_i32_0 = arith.constant 0 : i32
    return %arg0, %c0_i32 : i32, i32
  }
}

</mosaic_0001>

<bundles_post_ra>
// kernel: tpu_custom_call.1
= control target key start
LH: loop header
LB: loop body
LE: loop exit
PB: predicated region body
PF: predicated region fallthrough
CT: control target
= control target key end

     0   :  { %s13742_s6 = smov 1   ;;  %s13743_s10 = smov 2   ;;  %s17022_s0 = inlined_call_operand.smem [shape: u32[31], index: -1, kind: input, shape index: {}] }
   0x1   :  { %s13799_s5 = sld [smem:[%s17022_s0]]   ;;  %s13744_s14 = smov 3  }
   0x2   :  { %s13804_s9 = sld [smem:[%s17022_s0 + %s13742_s6]]   ;;  %s13745_s18 = smov 4  }
   0x3   :  { %s13809_s13 = sld [smem:[%s17022_s0 + %s13743_s10]]   ;;  %s13746_s22 = smov 5  }
   0x4   :  { %s13814_s17 = sld [smem:[%s17022_s0 + %s13744_s14]]   ;;  %s13747_s26 = smov 6  }
   0x5   :  { %s13819_s21 = sld [smem:[%s17022_s0 + %s13745_s18]]   ;;  %s13748_s30 = smov 7  }
   0x6   :  { %s13824_s25 = sld [smem:[%s17022_s0 + %s13746_s22]]   ;;  %s13749_s4 = smov 8  }
   0x7   :  { %17041 = sst [smem:[#allocation30_spill]] %s13799_s5  ;;  %s13750_s10 = smov 9  }
   0x8   :  { %s13829_s29 = sld [smem:[%s17022_s0 + %s13747_s26]]   ;;  %s13751_s15 = smov 10  }
   0x9   :  { %17042 = sst [smem:[#allocation31_spill]] %s13809_s13  ;;  %s13752_s20 = smov 11  }
   0xa   :  { %17043 = sst [smem:[#allocation32_spill]] %s13814_s17  ;;  %s13753_s26 = smov 12  }
   0xb   :  { %s13834_s3 = sld [smem:[%s17022_s0 + %s13748_s30]]   ;;  %s13754_s1 = smov 13  }
   0xc   :  { %s13839_s8 = sld [smem:[%s17022_s0 + %s13749_s4]]   ;;  %s13755_s7 = smov 14  }
   0xd   :  { %s13844_s14 = sld [smem:[%s17022_s0 + %s13750_s10]]   ;;  %s13757_s22 = smov 16  }
   0xe   :  { %s13849_s19 = sld [smem:[%s17022_s0 + %s13751_s15]]   ;;  %s13756_s15 = smov 15  }
   0xf   :  { %s13854_s24 = sld [smem:[%s17022_s0 + %s13752_s20]]   ;;  %s13758_s28 = smov 17  }
  0x10   :  { %s13859_s30 = sld [smem:[%s17022_s0 + %s13753_s26]]   ;;  %s13767_s10 = smov 26  }
  0x11   :  { %17044 = sst [smem:[#allocation33_spill]] %s13834_s3  ;;  %s13768_s16 = smov 27  }
  0x12   :  { %17045 = sst [smem:[#allocation34_spill]] %s13839_s8  ;;  %s13769_s23 = smov 28  }
  0x13   :  { %17046 = sst [smem:[#allocation35_spill]] %s13844_s14 }
  0x14   :  { %17047 = sst [smem:[#allocation36_spill]] %s13849_s19 }
  0x15   :  { %s13864_s6 = sld [smem:[%s17022_s0 + %s13754_s1]]   ;;  %s13766_s1 = smov 25  }
  0x16   :  { %17048 = sst [smem:[#allocation37_spill]] %s13859_s30 }
  0x17   :  { %s13869_s12 = sld [smem:[%s17022_s0 + %s13755_s7]]   ;;  %s13759_s7 = smov 18  }
  0x18   :  { %s13874_s20 = sld [smem:[%s17022_s0 + %s13756_s15]]   ;;  %s13760_s15 = smov 19  }
  0x19   :  { %s13879_s27 = sld [smem:[%s17022_s0 + %s13757_s22]]   ;;  %s13761_s22 = smov 20  }
  0x1a   :  { %s13884_s4 = sld [smem:[%s17022_s0 + %s13758_s28]]   ;;  %s13762_s28 = smov 21  }
  0x1b   :  { %17049 = sst [smem:[#allocation38_spill]] %s13864_s6 }
  0x1c   :  { %s13889_s30 = sld [smem:[%s17022_s0 + %s13759_s7]]   ;;  %s13763_s7 = smov 22  }
  0x1d   :  { %17050 = sst [smem:[#allocation39_spill]] %s13869_s12 }
  0x1e   :  { %17051 = sst [smem:[#allocation40_spill]] %s13874_s20 }
  0x1f   :  { %s13894_s20 = sld [smem:[%s17022_s0 + %s13760_s15]]   ;;  %s13764_s15 = smov 23  }
  0x20   :  { %17052 = sst [smem:[#allocation41_spill]] %s13884_s4 }
  0x21   :  { %s13899_s6 = sld [smem:[%s17022_s0 + %s13761_s22]]   ;;  %s13765_s22 = smov 24  }
  0x22   :  { %17053 = sst [smem:[#allocation42_spill]] %s13889_s30 }
  0x23   :  { %s13904_s19 = sld [smem:[%s17022_s0 + %s13762_s28]]  }
  0x24   :  { %s13909_s30 = sld [smem:[%s17022_s0 + %s13763_s7]]  }
  0x25   :  { %17054 = sst [smem:[#allocation43_spill]] %s13894_s20 }
  0x26   :  { %s13914_s20 = sld [smem:[%s17022_s0 + %s13764_s15]]  }
  0x27   :  { %17055 = sst [smem:[#allocation44_spill]] %s13899_s6 }
  0x28   :  { %s11631_s6 = sld [smem:[%s17022_s0 + %s13765_s22]]  }
  0x29   :  { %17056 = sst [smem:[#allocation45_spill]] %s13904_s19 }
  0x2a   :  { %17057 = sst [smem:[#allocation46_spill]] %s13909_s30 }
  0x2b   :  { %s13922_s19 = sld [smem:[%s17022_s0 + %s13766_s1]]   ;;  %s13770_s1 = smov 29  }
  0x2c   :  { %17058 = sst [smem:[#allocation47_spill]] %s13914_s20 }
  0x2d   :  { %s13927_s30 = sld [smem:[%s17022_s0 + %s13767_s10]]   ;;  %s13771_s10 = smov 30  }
  0x2e   :  { %s13932_s20 = sld [smem:[%s17022_s0 + %s13768_s16]]   ;;  %v67_v0 = vstv %s11631_s6 }
  0x2f   :  { %s13937_s4 = sld [smem:[%s17022_s0 + %s13769_s23]]   ;;  %68 = vst [vmem:[#allocation2] sm:$0x1] %v67_v0 }
  0x31   :  { %17059 = sst [smem:[#allocation48_spill]] %s13922_s19 }
  0x32   :  { %s13942_s19 = sld [smem:[%s17022_s0 + %s13770_s1]]  }
  0x33   :  { %17060 = sst [smem:[#allocation49_spill]] %s13927_s30 }
  0x34   :  { %s13947_s30 = sld [smem:[%s17022_s0 + %s13771_s10]]  }
  0x38   :  { %17061 = sst [smem:[#allocation50_spill]] %s13942_s19 }
  0x39   :  { %69 = vsyncpa [#allocation4], 0 }
  0x3a   :  { %71 = vsyncpa [#allocation4 + $0x1], 0 }
  0x3b   :  { %72 = vsyncpa [#allocation6], 0 }
  0x3c   :  { %74 = vsyncpa [#allocation6 + $0x1], 0 }
  0x3d   :  { %75 = vsyncpa [#allocation9], 0 }
  0x3e   :  { %76 = vsyncpa [#allocation12], 0 }
  0x3f   :  { %77 = vsyncpa [#allocation15], 0 }
  0x40   :  { %78 = vsyncpa [#allocation18], 0 }
  0x41   :  { %79 = vsyncpa [#allocation21], 0  ;;  %s13949_s16 = smov 0   ;;  %s13951_s15 = smov 0  }
  0x42   :  { %s13953_s18 = smov 0   ;;  %s13955_s23 = smov 0  }
  0x43 LB: > { %s17062_s14 = sld [smem:[#allocation35_spill]]  ;;  %s17063_s12 = sld [smem:[#allocation39_spill]]  ;;  %s13736_s18 = sphi %s13953_s18, %s17153_s18   ;;  %s13732_s15 = sphi %s13951_s15, %s17152_s15   ;;  %s13728_s16 = sphi %s13949_s16, %s17151_s16   ;;  %s13740_s23 = sphi %s13955_s23, %s17154_s23  }
  0x44   : > { %s17064_s5 = sld [smem:[#allocation30_spill]]  ;;  %s17065_s8 = sld [smem:[#allocation34_spill]] }
  0x45   : > { %s17066_s3 = sld [smem:[#allocation33_spill]]  ;;  %s17067_s17 = sld [smem:[#allocation32_spill]] }
  0x46   : > { %s17068_s13 = sld [smem:[#allocation31_spill]]  ;;  %s13772_s0 = smov [#allocation7]  }
  0x47   : > { %s773_s6 = sshll.u32 %s13772_s0, 4  ;;  %s13970_s22 = sadd.s32 4294967295, %s13740_s23   ;;  %s13975_s6 = int_to_ptr.vmem [resolvable:$true] %s773_s6 }
  0x48   : > { %p11640_p0 = scmp.ge.s32.totalorder %s13740_s23, 1  ;;  %p17027_p1 = scmp.eq.s32.totalorder %s13970_s22, 0 }
  0x49   : > { %p761_p2 = scmp.lt.s32.totalorder %s13740_s23, 3  ;;  %s13773_s1 = smov [#allocation8]  }
  0x4a   : > { %s786_s28 = sshll.u32 %s13773_s1, 4  ;;  %s13774_s10 = smov [#allocation11]   ;;  %s13989_s28 = int_to_ptr.vmem [resolvable:$true] %s786_s28 }
  0x4b   : > { %p13977_p3 = pnand %p11640_p0, %p761_p2  ;;  %s13991_s7 = sshll.u32 %s13774_s10, 4  ;;  %s813_s7 = int_to_ptr.vmem [resolvable:$true] %s13991_s7 }
  0x4c   : > { %s13338_s11 = scalar_lea.hbm %s17068_s13, 4096 }
  0x4d   : > { %s17069_s26 = scalar_select %p13977_p3, 1, 0 }
  0x4e   : > { %p12639_p4 = pneg %p13977_p3  ;;  %p13339_p6 = scmp.ne.s32.totalorder %s17068_s13, %s13338_s11 }
  0x4f   : > { %p13345_p10 = scmp.lt.u32.totalorder %s13338_s11, %s17068_s13 }
  0x50   : > { %p13985_p5 = pnand %p12639_p4, %p17027_p1 }
  0x52   : > { %p13997_p7 = pneg %p13985_p5 }
  0x54   : > { %p13341_p8 = pnand %p13997_p7, %p13339_p6 }
  0x56   : > { %p13342_p9 = pneg %p13341_p8 }
  0x58   : > { %p13347_p11 = pnand %p13345_p10, %p13342_p9 }
  0x5a   : > { %13350 = shalt.err (!%p13347_p11)
}
  0x5b   : > { %s13351_s1 = scalar_lea.vmem %s13975_s6, 4096  ;;  %p13359_p2 = scmp.lt.s32.totalorder %s13975_s6, %s13975_s6 }
  0x5c   : > { %p13352_p12 = scmp.ne.s32.totalorder %s13975_s6, %s13351_s1  ;;  %p13360_p4 = scmp.lt.s32.totalorder %s13351_s1, %s13351_s1 }
  0x5e   : > { %p13354_p13 = pnand %p13352_p12, %p13997_p7  ;;  %p13361_p1 = por %p13360_p4, %p13359_p2 }
  0x60   : > { %p13355_p0 = pneg %p13354_p13 }
  0x62   : > { %p13362_p3 = pnand %p13361_p1, %p13355_p0 }
  0x64   : > { %13365 = shalt.err (!%p13362_p3)
}
  0x65   : > { %s13775_s10 = smov 256   ;;  %s13776_s11 = smov 16  }
  0x66   : > { %12642 = dma.hbm_to_vmem [thread:$0]  (!%p13985_p5), %s17068_s13, 4096, %s13975_s6, [#allocation6], %s13775_s10, %s13775_s10, %s13776_s11  }
  0x67   : > { %s13366_s19 = scalar_lea.hbm %s17067_s17, 4096 }
  0x68   : > { %p13367_p6 = scmp.ne.s32.totalorder %s17067_s17, %s13366_s19  ;;  %p13373_p10 = scmp.lt.u32.totalorder %s13366_s19, %s17067_s17 }
  0x6a   : > { %p13369_p8 = pnand %p13367_p6, %p13997_p7 }
  0x6c   : > { %p13370_p9 = pneg %p13369_p8 }
  0x6e   : > { %p13375_p11 = pnand %p13373_p10, %p13370_p9 }
  0x70   : > { %13378 = shalt.err (!%p13375_p11)
}
  0x71   : > { %s13379_s1 = scalar_lea.vmem %s13989_s28, 4096  ;;  %p13387_p13 = scmp.lt.s32.totalorder %s13989_s28, %s13989_s28 }
  0x72   : > { %p13380_p1 = scmp.ne.s32.totalorder %s13989_s28, %s13379_s1  ;;  %p13388_p0 = scmp.lt.s32.totalorder %s13379_s1, %s13379_s1 }
  0x74   : > { %p13382_p3 = pnand %p13380_p1, %p13997_p7  ;;  %p13389_p2 = por %p13388_p0, %p13387_p13 }
  0x76   : > { %p13383_p12 = pneg %p13382_p3 }
  0x78   : > { %p13390_p4 = pnand %p13389_p2, %p13383_p12 }
  0x7a   : > { %13393 = shalt.err (!%p13390_p4)
}
  0x7b   : > { %s13777_s6 = smov 128   ;;  %s13778_s19 = smov 8  }
  0x7c   : > { %12645 = dma.hbm_to_vmem [thread:$0]  (!%p13985_p5), %s17067_s17, 4096, %s13989_s28, [#allocation9], %s13777_s6, %s13777_s6, %s13778_s19  }
  0x7d   : > { %s13394_s10 = scalar_lea.hbm %s13824_s25, 4096 }
  0x7e   : > { %p13395_p6 = scmp.ne.s32.totalorder %s13824_s25, %s13394_s10  ;;  %p13401_p10 = scmp.lt.u32.totalorder %s13394_s10, %s13824_s25 }
  0x80   : > { %p13397_p8 = pnand %p13395_p6, %p13997_p7 }
  0x82   : > { %p13398_p9 = pneg %p13397_p8 }
  0x84   : > { %p13403_p11 = pnand %p13401_p10, %p13398_p9 }
  0x86   : > { %13406 = shalt.err (!%p13403_p11)
}
  0x87   : > { %s13407_s11 = scalar_lea.vmem %s813_s7, 4096  ;;  %p13415_p13 = scmp.lt.s32.totalorder %s813_s7, %s813_s7 }
  0x88   : > { %p13408_p1 = scmp.ne.s32.totalorder %s813_s7, %s13407_s11  ;;  %p13416_p0 = scmp.lt.s32.totalorder %s13407_s11, %s13407_s11 }
  0x8a   : > { %p13410_p3 = pnand %p13408_p1, %p13997_p7  ;;  %p13417_p2 = por %p13416_p0, %p13415_p13 }
  0x8c   : > { %p13411_p12 = pneg %p13410_p3 }
  0x8e   : > { %p13418_p4 = pnand %p13417_p2, %p13411_p12 }
  0x90   : > { %13421 = shalt.err (!%p13418_p4)
}
  0x91   : > { %12651 = dma.hbm_to_vmem [thread:$0]  (!%p13985_p5), %s13824_s25, 4096, %s813_s7, [#allocation12], %s13777_s6, %s13777_s6, %s13778_s19  }
  0x92   : > { %s13779_s28 = smov [#allocation14]   ;;  %s13780_s10 = smov [#allocation17]  }
  0x93   : > { %s838_s1 = sshll.u32 %s13779_s28, 4  ;;  %s864_s13 = sshll.u32 %s13780_s10, 4  ;;  %s839_s1 = int_to_ptr.vmem [resolvable:$true] %s838_s1  ;;  %s865_s13 = int_to_ptr.vmem [resolvable:$true] %s864_s13 }
  0x94   : > { %s13422_s11 = scalar_lea.hbm %s17066_s3, 4096 }
  0x95   : > { %p13423_p6 = scmp.ne.s32.totalorder %s17066_s3, %s13422_s11  ;;  %p13429_p10 = scmp.lt.u32.totalorder %s13422_s11, %s17066_s3 }
  0x97   : > { %p13425_p8 = pnand %p13423_p6, %p13997_p7 }
  0x99   : > { %p13426_p9 = pneg %p13425_p8 }
  0x9b   : > { %p13431_p11 = pnand %p13429_p10, %p13426_p9 }
  0x9d   : > { %13434 = shalt.err (!%p13431_p11)
}
  0x9e   : > { %s13435_s17 = scalar_lea.vmem %s839_s1, 4096  ;;  %p13443_p13 = scmp.lt.s32.totalorder %s839_s1, %s839_s1 }
  0x9f   : > { %p13436_p1 = scmp.ne.s32.totalorder %s839_s1, %s13435_s17  ;;  %p13444_p0 = scmp.lt.s32.totalorder %s13435_s17, %s13435_s17 }
  0xa1   : > { %p13438_p3 = pnand %p13436_p1, %p13997_p7  ;;  %p13445_p2 = por %p13444_p0, %p13443_p13 }
  0xa3   : > { %p13439_p12 = pneg %p13438_p3 }
  0xa5   : > { %p13446_p4 = pnand %p13445_p2, %p13439_p12 }
  0xa7   : > { %13449 = shalt.err (!%p13446_p4)
}
  0xa8   : > { %12657 = dma.hbm_to_vmem [thread:$0]  (!%p13985_p5), %s17066_s3, 4096, %s839_s1, [#allocation15], %s13777_s6, %s13777_s6, %s13778_s19  }
  0xa9   : > { %s13450_s7 = scalar_lea.hbm %s17062_s14, 4096 }
  0xaa   : > { %p13451_p6 = scmp.ne.s32.totalorder %s17062_s14, %s13450_s7  ;;  %p13457_p10 = scmp.lt.u32.totalorder %s13450_s7, %s17062_s14 }
  0xac   : > { %p13453_p8 = pnand %p13451_p6, %p13997_p7 }
  0xae   : > { %p13454_p9 = pneg %p13453_p8 }
  0xb0   : > { %p13459_p11 = pnand %p13457_p10, %p13454_p9 }
  0xb2   : > { %13462 = shalt.err (!%p13459_p11)
}
  0xb3   : > { %s13463_s17 = scalar_lea.vmem %s865_s13, 4096  ;;  %p13471_p13 = scmp.lt.s32.totalorder %s865_s13, %s865_s13 }
  0xb4   : > { %p13464_p1 = scmp.ne.s32.totalorder %s865_s13, %s13463_s17  ;;  %p13472_p0 = scmp.lt.s32.totalorder %s13463_s17, %s13463_s17 }
  0xb6   : > { %p13466_p3 = pnand %p13464_p1, %p13997_p7  ;;  %p13473_p2 = por %p13472_p0, %p13471_p13 }
  0xb8   : > { %p13467_p12 = pneg %p13466_p3 }
  0xba   : > { %p13474_p4 = pnand %p13473_p2, %p13467_p12 }
  0xbc   : > { %13477 = shalt.err (!%p13474_p4)
}
  0xbd   : > { %12663 = dma.hbm_to_vmem [thread:$0]  (!%p13985_p5), %s17062_s14, 4096, %s865_s13, [#allocation18], %s13777_s6, %s13777_s6, %s13778_s19  }
  0xbe   : > { %s13781_s28 = smov [#allocation10]   ;;  %s13782_s10 = smov [#allocation13]  }
  0xbf   : > { %s799_s1 = sshll.u32 %s13781_s28, 4  ;;  %s825_s11 = sshll.u32 %s13782_s10, 4  ;;  %s800_s1 = int_to_ptr.vmem [resolvable:$true] %s799_s1  ;;  %s826_s11 = int_to_ptr.vmem [resolvable:$true] %s825_s11 }
  0xc0   : > { %s13478_s7 = scalar_lea.hbm %s13819_s21, 4096 }
  0xc1   : > { %p13479_p6 = scmp.ne.s32.totalorder %s13819_s21, %s13478_s7  ;;  %p13485_p10 = scmp.lt.u32.totalorder %s13478_s7, %s13819_s21 }
  0xc3   : > { %p13481_p8 = pnand %p13479_p6, %p13997_p7 }
  0xc5   : > { %p13482_p9 = pneg %p13481_p8 }
  0xc7   : > { %p13487_p11 = pnand %p13485_p10, %p13482_p9 }
  0xc9   : > { %13490 = shalt.err (!%p13487_p11)
}
  0xca   : > { %s13491_s17 = scalar_lea.vmem %s800_s1, 4096  ;;  %p13499_p13 = scmp.lt.s32.totalorder %s800_s1, %s800_s1 }
  0xcb   : > { %p13492_p1 = scmp.ne.s32.totalorder %s800_s1, %s13491_s17  ;;  %p13500_p0 = scmp.lt.s32.totalorder %s13491_s17, %s13491_s17 }
  0xcd   : > { %p13494_p3 = pnand %p13492_p1, %p13997_p7  ;;  %p13501_p2 = por %p13500_p0, %p13499_p13 }
  0xcf   : > { %p13495_p12 = pneg %p13494_p3 }
  0xd1   : > { %p13502_p4 = pnand %p13501_p2, %p13495_p12 }
  0xd3   : > { %13505 = shalt.err (!%p13502_p4)
}
  0xd4   : > { %12648 = dma.hbm_to_vmem [thread:$0]  (!%p13985_p5), %s13819_s21, 4096, %s800_s1, [#allocation9], %s13777_s6, %s13777_s6, %s13778_s19  }
  0xd5   : > { %s13506_s13 = scalar_lea.hbm %s13829_s29, 4096 }
  0xd6   : > { %p13507_p6 = scmp.ne.s32.totalorder %s13829_s29, %s13506_s13  ;;  %p13513_p10 = scmp.lt.u32.totalorder %s13506_s13, %s13829_s29 }
  0xd8   : > { %p13509_p8 = pnand %p13507_p6, %p13997_p7 }
  0xda   : > { %p13510_p9 = pneg %p13509_p8 }
  0xdc   : > { %p13515_p11 = pnand %p13513_p10, %p13510_p9 }
  0xde   : > { %13518 = shalt.err (!%p13515_p11)
}
  0xdf   : > { %s13519_s28 = scalar_lea.vmem %s826_s11, 4096  ;;  %p13527_p13 = scmp.lt.s32.totalorder %s826_s11, %s826_s11 }
  0xe0   : > { %p13520_p1 = scmp.ne.s32.totalorder %s826_s11, %s13519_s28  ;;  %p13528_p0 = scmp.lt.s32.totalorder %s13519_s28, %s13519_s28 }
  0xe2   : > { %p13522_p3 = pnand %p13520_p1, %p13997_p7  ;;  %p13529_p2 = por %p13528_p0, %p13527_p13 }
  0xe4   : > { %p13523_p12 = pneg %p13522_p3 }
  0xe6   : > { %p13530_p4 = pnand %p13529_p2, %p13523_p12 }
  0xe8   : > { %13533 = shalt.err (!%p13530_p4)
}
  0xe9   : > { %12654 = dma.hbm_to_vmem [thread:$0]  (!%p13985_p5), %s13829_s29, 4096, %s826_s11, [#allocation12], %s13777_s6, %s13777_s6, %s13778_s19  }
  0xea   : > { %s13783_s1 = smov [#allocation16]   ;;  %s13784_s7 = smov [#allocation19]  }
  0xeb   : > { %s851_s10 = sshll.u32 %s13783_s1, 4  ;;  %s880_s17 = sshll.u32 %s13784_s7, 4  ;;  %s852_s10 = int_to_ptr.vmem [resolvable:$true] %s851_s10  ;;  %s881_s17 = int_to_ptr.vmem [resolvable:$true] %s880_s17 }
  0xec   : > { %s13534_s13 = scalar_lea.hbm %s17065_s8, 4096 }
  0xed   : > { %p13535_p6 = scmp.ne.s32.totalorder %s17065_s8, %s13534_s13  ;;  %p13541_p10 = scmp.lt.u32.totalorder %s13534_s13, %s17065_s8 }
  0xef   : > { %p13537_p8 = pnand %p13535_p6, %p13997_p7 }
  0xf1   : > { %p13538_p9 = pneg %p13537_p8 }
  0xf3   : > { %p13543_p11 = pnand %p13541_p10, %p13538_p9 }
  0xf5   : > { %13546 = shalt.err (!%p13543_p11)
}
  0xf6   : > { %s13547_s28 = scalar_lea.vmem %s852_s10, 4096  ;;  %p13555_p13 = scmp.lt.s32.totalorder %s852_s10, %s852_s10 }
  0xf7   : > { %p13548_p1 = scmp.ne.s32.totalorder %s852_s10, %s13547_s28  ;;  %p13556_p0 = scmp.lt.s32.totalorder %s13547_s28, %s13547_s28 }
  0xf9   : > { %p13550_p3 = pnand %p13548_p1, %p13997_p7  ;;  %p13557_p2 = por %p13556_p0, %p13555_p13 }
  0xfb   : > { %p13551_p12 = pneg %p13550_p3 }
  0xfd   : > { %p13558_p4 = pnand %p13557_p2, %p13551_p12 }
  0xff   : > { %13561 = shalt.err (!%p13558_p4)
}
 0x100   : > { %12660 = dma.hbm_to_vmem [thread:$0]  (!%p13985_p5), %s17065_s8, 4096, %s852_s10, [#allocation15], %s13777_s6, %s13777_s6, %s13778_s19  }
 0x101   : > { %s13562_s11 = scalar_lea.hbm %s13854_s24, 4096 }
 0x102   : > { %p13563_p6 = scmp.ne.s32.totalorder %s13854_s24, %s13562_s11  ;;  %p13569_p10 = scmp.lt.u32.totalorder %s13562_s11, %s13854_s24 }
 0x104   : > { %p13565_p8 = pnand %p13563_p6, %p13997_p7 }
 0x106   : > { %p13566_p9 = pneg %p13565_p8 }
 0x108   : > { %p13571_p11 = pnand %p13569_p10, %p13566_p9 }
 0x10a   : > { %13574 = shalt.err (!%p13571_p11)
}
 0x10b   : > { %s13575_s1 = scalar_lea.vmem %s881_s17, 4096  ;;  %p13583_p13 = scmp.lt.s32.totalorder %s881_s17, %s881_s17 }
 0x10c   : > { %p13576_p1 = scmp.ne.s32.totalorder %s881_s17, %s13575_s1  ;;  %p13584_p0 = scmp.lt.s32.totalorder %s13575_s1, %s13575_s1 }
 0x10e   : > { %p13578_p3 = pnand %p13576_p1, %p13997_p7  ;;  %p13585_p2 = por %p13584_p0, %p13583_p13 }
 0x110   : > { %p13579_p12 = pneg %p13578_p3 }
 0x112   : > { %p13586_p4 = pnand %p13585_p2, %p13579_p12 }
 0x114   : > { %13589 = shalt.err (!%p13586_p4)
}
 0x115   : > { %12666 = dma.hbm_to_vmem [thread:$0]  (!%p13985_p5), %s13854_s24, 4096, %s881_s17, [#allocation18], %s13777_s6, %s13777_s6, %s13778_s19  }
 0x116   : > { %s13785_s10 = smov [#allocation20]   ;;  %s13590_s13 = scalar_lea.hbm %s17063_s12, 1024 }
 0x117   : > { %s899_s7 = sshll.u32 %s13785_s10, 4  ;;  %p13591_p6 = scmp.ne.s32.totalorder %s17063_s12, %s13590_s13  ;;  %s900_s7 = int_to_ptr.vmem [resolvable:$true] %s899_s7 }
 0x118   : > { %p13597_p10 = scmp.lt.u32.totalorder %s13590_s13, %s17063_s12 }
 0x119   : > { %p13593_p8 = pnand %p13591_p6, %p13997_p7 }
 0x11b   : > { %p13594_p9 = pneg %p13593_p8 }
 0x11d   : > { %p13599_p11 = pnand %p13597_p10, %p13594_p9 }
 0x11f   : > { %13602 = shalt.err (!%p13599_p11)
}
 0x120   : > { %s13603_s28 = scalar_lea.vmem %s900_s7, 1024  ;;  %p13611_p13 = scmp.lt.s32.totalorder %s900_s7, %s900_s7 }
 0x121   : > { %p13604_p1 = scmp.ne.s32.totalorder %s900_s7, %s13603_s28  ;;  %p13612_p0 = scmp.lt.s32.totalorder %s13603_s28, %s13603_s28 }
 0x123   : > { %p13606_p3 = pnand %p13604_p1, %p13997_p7  ;;  %p13613_p2 = por %p13612_p0, %p13611_p13 }
 0x125   : > { %p13607_p12 = pneg %p13606_p3 }
 0x127   : > { %p13614_p4 = pnand %p13613_p2, %p13607_p12 }
 0x129   : > { %13617 = shalt.err (!%p13614_p4)
}
 0x12a   : > { %s17031_s6 = smov 64   ;;  %s17033_s0 = smov 4  }
 0x12b   : > { %12669 = dma.hbm_to_vmem [thread:$0]  (!%p13985_p5), %s17063_s12, 1024, %s900_s7, [#allocation21], %s17031_s6, %s17031_s6, %s17033_s0  }
 0x12c   : > { %s14138_s19 = sadd.s32 1, %s13740_s23   ;;  %s92_s17 = sadd.s32 1, %s13736_s18 }
 0x12d   : > { %s89_s11 = ssub.s32 %s13740_s23, %s14138_s19  ;;  %p99_p7 = scmp.ne.s32.totalorder %s13736_s18, %s13732_s15 }
 0x12e   : > { %p90_p6 = scmp.eq.s32.totalorder %s89_s11, 0  ;;  %p100_p8 = scmp.eq.s32.totalorder %s13740_s23, 0 }
 0x12f   : > { %p105_p9 = scmp.ne.s32.totalorder %s13732_s15, %s13728_s16  ;;  %p12687_p10 = scmp.lt.s32.totalorder %s13740_s23, 2 }
 0x130   : > { %s14150_s1 = scalar_select %p90_p6, %s13736_s18, %s92_s17  }
 0x131   : > { %p101_p11 = por %p100_p8, %p99_p7  ;;  %p17072_p1 = scmp.eq.s32.totalorder %s13970_s22, 0 }
 0x132   : > { %s955_s10 = sand.u32 1, %s13736_s18   ;;  %s12089_s7 = sshll.u32 %s13740_s23, 12 }
 0x133   : > { %p14154_p3 = por %p17072_p1, %p105_p9  ;;  %s14160_s13 = sshll.u32 %s955_s10, 8 }
 0x134   : > { %s14163_s28 = scalar_lea.hbm %s17064_s5, %s12089_s7  ;;  %s959_s16 = scalar_lea.vmem [#allocation3], %s14160_s13 }
 0x135   : > { %s17073_s2 = scalar_select %p14154_p3, 1, 0 }
 0x136   : > { %s966_s17 = sshll.u32 %s959_s16, 4  ;;  %p14166_p5 = pnand %p12687_p10, %p101_p11  ;;  %s14170_s17 = int_to_ptr.vmem [resolvable:$true] %s966_s17 }
 0x137   : > { %s14173_s6 = scalar_lea.hbm %s13804_s9, %s12089_s7  ;;  %s14175_s0 = scalar_lea.sflag [#allocation4], %s955_s10 }
 0x138   : > { %s13618_s3 = scalar_lea.hbm %s14163_s28, 4096  ;;  %p13620_p13 = pneg %p14166_p5 }
 0x139   : > { %p13619_p12 = scmp.ne.s32.totalorder %s14163_s28, %s13618_s3  ;;  %s13623_s16 = scalar_lea.hbm %s17064_s5, 8192 }
 0x13a   : > { %p13624_p4 = scmp.lt.u32.totalorder %s14163_s28, %s17064_s5  ;;  %p13625_p7 = scmp.lt.u32.totalorder %s13623_s16, %s13618_s3 }
 0x13b   : > { %p13621_p0 = pnand %p13620_p13, %p13619_p12  ;;  %p13627_p8 = scmp.lt.u32.totalorder %s13618_s3, %s14163_s28 }
 0x13c   : > { %p13626_p6 = por %p13625_p7, %p13624_p4 }
 0x13d   : > { %p13622_p2 = pneg %p13621_p0 }
 0x13e   : > { %p13628_p9 = por %p13627_p8, %p13626_p6 }
 0x140   : > { %p13629_p10 = pnand %p13628_p9, %p13622_p2 }
 0x142   : > { %13632 = shalt.err (!%p13629_p10)
}
 0x143   : > { %s13633_s10 = scalar_lea.vmem %s14170_s17, 4096  ;;  %s13788_s7 = smov [#allocation3]  }
 0x144   : > { %p13634_p11 = scmp.ne.s32.totalorder %s14170_s17, %s13633_s10  ;;  %s13638_s8 = sshll.u32 %s13788_s7, 4  ;;  %s13639_s8 = int_to_ptr.vmem [resolvable:$false] %s13638_s8 }
 0x145   : > { %s13640_s5 = scalar_lea.vmem %s13639_s8, 8192  ;;  %p13641_p12 = scmp.lt.s32.totalorder %s14170_s17, %s13639_s8 }
 0x146   : > { %p13636_p1 = pnand %p13634_p11, %p13620_p13  ;;  %p13642_p0 = scmp.lt.s32.totalorder %s13640_s5, %s13633_s10 }
 0x148   : > { %p13637_p3 = pneg %p13636_p1  ;;  %p13643_p4 = por %p13642_p0, %p13641_p12 }
 0x14a   : > { %p13644_p7 = pnand %p13643_p4, %p13637_p3 }
 0x14c   : > { %13647 = shalt.err (!%p13644_p7)
}
 0x14d   : > { %s17075_s3 = smov 4   ;;  %s17076_s16 = smov 64  }
 0x14e   : > { %12673 = dma.hbm_to_vmem [thread:$0]  (!%p14166_p5), %s14163_s28, 4096, %s14170_s17, %s14175_s0, %s17076_s16, %s17076_s16, %s17075_s3  }
 0x14f   : > { %s980_s5 = scalar_lea.vmem [#allocation5], %s14160_s13  ;;  %s976_s10 = sand.u32 1, %s13740_s23  }
 0x150   : > { %s987_s8 = sshll.u32 %s980_s5, 4  ;;  %s14206_s7 = scalar_lea.sflag [#allocation6], %s976_s10  ;;  %s14204_s8 = int_to_ptr.vmem [resolvable:$true] %s987_s8 }
 0x151   : > { %s13648_s12 = scalar_lea.hbm %s14173_s6, 4096  ;;  %s13653_s14 = scalar_lea.hbm %s13804_s9, 8192 }
 0x152   : > { %p13649_p3 = scmp.ne.s32.totalorder %s14173_s6, %s13648_s12  ;;  %p13654_p8 = scmp.lt.u32.totalorder %s14173_s6, %s13804_s9 }
 0x153   : > { %p13655_p9 = scmp.lt.u32.totalorder %s13653_s14, %s13648_s12  ;;  %p13657_p11 = scmp.lt.u32.totalorder %s13648_s12, %s14173_s6 }
 0x154   : > { %p13651_p2 = pnand %p13649_p3, %p13620_p13 }
 0x155   : > { %p13656_p10 = por %p13655_p9, %p13654_p8 }
 0x156   : > { %p13652_p6 = pneg %p13651_p2 }
 0x157   : > { %p13658_p1 = por %p13657_p11, %p13656_p10 }
 0x159   : > { %p13659_p12 = pnand %p13658_p1, %p13652_p6 }
 0x15b   : > { %13662 = shalt.err (!%p13659_p12)
}
 0x15c   : > { %s13663_s23 = scalar_lea.vmem %s14204_s8, 4096  ;;  %s13789_s0 = smov [#allocation5]  }
 0x15d   : > { %p13664_p0 = scmp.ne.s32.totalorder %s14204_s8, %s13663_s23  ;;  %s13668_s13 = sshll.u32 %s13789_s0, 4  ;;  %s13669_s13 = int_to_ptr.vmem [resolvable:$false] %s13668_s13 }
 0x15e   : > { %s13670_s28 = scalar_lea.vmem %s13669_s13, 8192  ;;  %p13671_p3 = scmp.lt.s32.totalorder %s14204_s8, %s13669_s13 }
 0x15f   : > { %p13666_p4 = pnand %p13664_p0, %p13620_p13  ;;  %p13672_p2 = scmp.lt.s32.totalorder %s13670_s28, %s13663_s23 }
 0x161   : > { %p13667_p7 = pneg %p13666_p4  ;;  %p13673_p8 = por %p13672_p2, %p13671_p3 }
 0x163   : > { %p13674_p9 = pnand %p13673_p8, %p13667_p7 }
 0x165   : > { %13677 = shalt.err (!%p13674_p9)
}
 0x166   : > { %12676 = dma.hbm_to_vmem [thread:$0]  (!%p14166_p5), %s14173_s6, 4096, %s14204_s8, %s14206_s7, %s17076_s16, %s17076_s16, %s17075_s3  }
 0x167   : > { %p17077_p13 = scmp.ne.s32.totalorder %s17069_s26, 0 }
 0x169   : > { %999 = sbr.rel (%p17077_p13) target bundleno = 3500 (0xdac), region = 136 }
 0x170   : > { %s1001_s14 = sand.u32 1, %s13732_s15   ;;  %p17078_p6 = scmp.ne.s32.totalorder %s17073_s2, 0 }
 0x171   : > { %s11659_s12 = sshll.u32 %s1001_s14, 8  ;;  %s1002_s17 = scalar_lea.sflag [#allocation4], %s1001_s14 }
 0x172   : > { %s14234_s5 = scalar_lea.vmem [#allocation3], %s11659_s12 }
 0x173   : > { %13695 = dma.done.wait (%p17078_p6), %s1002_s17, 4096  }
 0x174   : > { %13697 = vsyncadd (%p17078_p6), %s1002_s17, 4294963200  ;;  %s1010_s11 = sand.u32 1, %s13970_s22   ;;  %s14241_s6 = scalar_lea.vmem [#allocation5], %s11659_s12 }
 0x175   : > { %s1011_s10 = scalar_lea.sflag [#allocation6], %s1010_s11 }
 0x176   : > { %13699 = dma.done.wait (%p17078_p6), %s1011_s10, 4096  }
 0x177   : > { %13701 = vsyncadd (%p17078_p6), %s1011_s10, 4294963200  ;;  %p17079_p5 = scmp.eq.s32.totalorder %s13970_s22, 0 }
 0x179   : > { %13703 = dma.done.wait (%p17079_p5), [#allocation6], 4096   ;;  %p17080_p10 = pmov %p17079_p5 }
 0x17a   : > { %p17081_p11 = pmov %p17079_p5 }
 0x17b   : > { %13705 = vsyncadd (%p17080_p10), [#allocation6], 4294963200 }
 0x17c   : > { %13707 = dma.done.wait (%p17081_p11), [#allocation9], 8192   ;;  %p17082_p1 = pmov %p17079_p5 }
 0x17e   : > { %13709 = vsyncadd (%p17082_p1), [#allocation9], 4294959104  ;;  %p17083_p12 = pmov %p17082_p1 }
 0x17f   : > { %p17084_p0 = pmov %p17082_p1 }
 0x180   : > { %13711 = dma.done.wait (%p17083_p12), [#allocation12], 8192  }
 0x181   : > { %13713 = vsyncadd (%p17084_p0), [#allocation12], 4294959104  ;;  %p17085_p4 = pmov %p17084_p0 }
 0x182   : > { %p17086_p7 = pmov %p17084_p0 }
 0x183   : > { %13715 = dma.done.wait (%p17085_p4), [#allocation15], 8192  }
 0x184   : > { %13717 = vsyncadd (%p17086_p7), [#allocation15], 4294959104  ;;  %p17087_p3 = pmov %p17084_p0 }
 0x185   : > { %p17088_p2 = pmov %p17084_p0 }
 0x186   : > { %13719 = dma.done.wait (%p17087_p3), [#allocation18], 8192  }
 0x187   : > { %13721 = vsyncadd (%p17088_p2), [#allocation18], 4294959104  ;;  %p17089_p8 = pmov %p17084_p0 }
 0x188   : > { %p17090_p9 = pmov %p17084_p0 }
 0x189   : > { %13723 = dma.done.wait (%p17089_p8), [#allocation21], 1024  }
 0x18a   : > { %13725 = vsyncadd (%p17090_p9), [#allocation21], 4294966272  ;;  %v13790_v1 = vmov 0   ;;  %v12777_v2 = vld [vmem:[#allocation7 + $0x4] ss:$16 sps:$4 sm:$0xff]   ;;  %v14279_v23 = vld [vmem:[%s14234_s5 + $0x8] sm:$0xff]  }
 0x18b   : > { %1700 = vmatprep.mubr.bf16.mxu0 %v13790_v1  ;;  %1940 = vmatprep.mubr.bf16.mxu1 %v13790_v1  ;;  %v12779_v3 = vld [vmem:[#allocation7] ss:$16 sps:$4 sm:$0xff]   ;;  %v12780_v4 = vld [vmem:[#allocation7 + $0x24] ss:$16 sps:$4 sm:$0xff]   ;;  %v12842_v27 = vld [vmem:[#allocation7 + $0x8] ss:$16 sps:$4 sm:$0xff]  }
 0x18c   : > { %1668 = vmatprep.subr.bf16.mxu0 %v12777_v2  ;;  %12451 = vmatprep.subr.bf16.mxu1 %v12777_v2  ;;  %v12782_v5 = vld [vmem:[#allocation7 + $0x20] ss:$16 sps:$4 sm:$0xff]   ;;  %v12783_v6 = vld [vmem:[#allocation7 + $0x44] ss:$16 sps:$4 sm:$0xff]   ;;  %v12844_v28 = vld [vmem:[#allocation7 + $0xc] ss:$16 sps:$4 sm:$0xff]  }
 0x18d   : > { %1669 = vmatpush1.bf16.msra.mxu0 %v12779_v3  ;;  %12459 = vmatpush1.bf16.msra.mxu1 %v12779_v3  ;;  %v12785_v7 = vld [vmem:[#allocation7 + $0x40] ss:$16 sps:$4 sm:$0xff]   ;;  %v12786_v8 = vld [vmem:[#allocation7 + $0x64] ss:$16 sps:$4 sm:$0xff]   ;;  %v12849_v32 = vld [vmem:[%s14234_s5 + $0xc8] sm:$0xff]   ;;  %s17091_s26 = sld [smem:[#allocation41_spill]] }
 0x18e   : > { %1670 = vmatprep.subr.bf16.mxu0 %v12780_v4  ;;  %12452 = vmatprep.subr.bf16.mxu1 %v12780_v4  ;;  %v12788_v9 = vld [vmem:[#allocation7 + $0x60] ss:$16 sps:$4 sm:$0xff]   ;;  %v12789_v10 = vld [vmem:[#allocation7 + $0x84] ss:$16 sps:$4 sm:$0xff]   ;;  %v12850_v33 = vld [vmem:[#allocation7 + $0x28] ss:$16 sps:$4 sm:$0xff]  }
 0x18f   : > { %v12791_v11 = vld [vmem:[#allocation7 + $0x80] ss:$16 sps:$4 sm:$0xff]   ;;  %v12792_v12 = vld [vmem:[#allocation7 + $0xa4] ss:$16 sps:$4 sm:$0xff]   ;;  %v12852_v34 = vld [vmem:[#allocation7 + $0x2c] ss:$16 sps:$4 sm:$0xff]  }
 0x190   : > { %v12794_v13 = vld [vmem:[#allocation7 + $0xa0] ss:$16 sps:$4 sm:$0xff]   ;;  %v12795_v14 = vld [vmem:[#allocation7 + $0xc4] ss:$16 sps:$4 sm:$0xff]   ;;  %v12858_v38 = vld [vmem:[#allocation7 + $0x48] ss:$16 sps:$4 sm:$0xff]  }
 0x191   : > { %1671 = vmatpush1.bf16.msra.mxu0 %v12782_v5  ;;  %12460 = vmatpush1.bf16.msra.mxu1 %v12782_v5  ;;  %v12797_v15 = vld [vmem:[#allocation7 + $0xc0] ss:$16 sps:$4 sm:$0xff]   ;;  %v12798_v16 = vld [vmem:[#allocation7 + $0xe4] ss:$16 sps:$4 sm:$0xff]   ;;  %v12860_v39 = vld [vmem:[#allocation7 + $0x4c] ss:$16 sps:$4 sm:$0xff]  }
 0x192   : > { %1672 = vmatprep.subr.bf16.mxu0 %v12783_v6  ;;  %12453 = vmatprep.subr.bf16.mxu1 %v12783_v6  ;;  %v12800_v17 = vld [vmem:[#allocation7 + $0xe0] ss:$16 sps:$4 sm:$0xff]   ;;  %v12807_v18 = vld [vmem:[#allocation8 + $0x4] ss:$8 sps:$4 sm:$0xff]   ;;  %v12812_v21 = vld [vmem:[#allocation8 + $0x14] ss:$8 sps:$4 sm:$0xff]  }
 0x193   : > { %v14274_v19 = vld [vmem:[%s14234_s5] sm:$0xff]   ;;  %v12810_v22 = vld [vmem:[#allocation8 + $0x10] ss:$8 sps:$4 sm:$0xff]   ;;  %v12821_v29 = vld [vmem:[#allocation8 + $0x34] ss:$8 sps:$4 sm:$0xff]   ;;  %s17092_s2 = sld [smem:[#allocation42_spill]] }
 0x194   : > { %v12805_v20 = vld [vmem:[#allocation8] ss:$8 sps:$4 sm:$0xff]   ;;  %v12816_v24 = vld [vmem:[#allocation8 + $0x24] ss:$8 sps:$4 sm:$0xff]   ;;  %v12819_v30 = vld [vmem:[#allocation8 + $0x30] ss:$8 sps:$4 sm:$0xff]  }
 0x195   : > { %1673 = vmatpush1.bf16.msra.mxu0 %v12785_v7  ;;  %12461 = vmatpush1.bf16.msra.mxu1 %v12785_v7  ;;  %v12814_v25 = vld [vmem:[#allocation8 + $0x20] ss:$8 sps:$4 sm:$0xff]   ;;  %v12825_v31 = vld [vmem:[#allocation8 + $0x44] ss:$8 sps:$4 sm:$0xff]   ;;  %v14287_v35 = vld [vmem:[%s14234_s5 + $0x10] sm:$0xff]   ;;  %s17093_s3 = sld [smem:[#allocation43_spill]] }
 0x196   : > { %1674 = vmatprep.subr.bf16.mxu0 %v12786_v8  ;;  %12454 = vmatprep.subr.bf16.mxu1 %v12786_v8  ;;  %v12841_v26 = vld [vmem:[%s14234_s5 + $0xc0] sm:$0xff]   ;;  %v12830_v37 = vld [vmem:[#allocation8 + $0x54] ss:$8 sps:$4 sm:$0xff]   ;;  %v12828_v40 = vld [vmem:[#allocation8 + $0x50] ss:$8 sps:$4 sm:$0xff]   ;;  %s17094_s16 = sld [smem:[#allocation44_spill]] }
 0x197   : > { %v12823_v36 = vld [vmem:[#allocation8 + $0x40] ss:$8 sps:$4 sm:$0xff]   ;;  %v12834_v41 = vld [vmem:[#allocation8 + $0x64] ss:$8 sps:$4 sm:$0xff]   ;;  %v12854_v42 = vld [vmem:[%s14234_s5 + $0xd0] sm:$0xff]   ;;  %s17095_s8 = sld [smem:[#allocation45_spill]] }
 0x198   : > { %v14294_v43 = vld [vmem:[%s14234_s5 + $0x18] sm:$0xff]   ;;  %v12832_v45 = vld [vmem:[#allocation8 + $0x60] ss:$8 sps:$4 sm:$0xff]   ;;  %v12847_v49 = vld [vmem:[#allocation8 + $0x84] ss:$8 sps:$4 sm:$0xff]   ;;  %s17096_s7 = sld [smem:[#allocation36_spill]] }
 0x199   : > { %1675 = vmatpush1.bf16.msra.mxu0 %v12788_v9  ;;  %12462 = vmatpush1.bf16.msra.mxu1 %v12788_v9  ;;  %v12865_v44 = vld [vmem:[#allocation7 + $0x6c] ss:$16 sps:$4 sm:$0xff]   ;;  %v12863_v46 = vld [vmem:[#allocation7 + $0x68] ss:$16 sps:$4 sm:$0xff]   ;;  %v14301_v53 = vld [vmem:[%s14234_s5 + $0x20] sm:$0xff]   ;;  %s17097_s23 = sld [smem:[#allocation46_spill]] }
 0x19a   : > { %1676 = vmatprep.subr.bf16.mxu0 %v12789_v10  ;;  %12455 = vmatprep.subr.bf16.mxu1 %v12789_v10  ;;  %v12839_v47 = vld [vmem:[#allocation8 + $0x74] ss:$8 sps:$4 sm:$0xff]   ;;  %v12837_v48 = vld [vmem:[#allocation8 + $0x70] ss:$8 sps:$4 sm:$0xff]   ;;  %v12845_v54 = vld [vmem:[#allocation8 + $0x80] ss:$8 sps:$4 sm:$0xff]  }
 0x19b   : > { %v12871_v50 = vld [vmem:[#allocation7 + $0x88] ss:$16 sps:$4 sm:$0xff]   ;;  %v12873_v51 = vld [vmem:[#allocation7 + $0x8c] ss:$16 sps:$4 sm:$0xff]   ;;  %v12870_v59 = vld [vmem:[%s14234_s5 + $0xe0] sm:$0xff]   ;;  %s17098_s0 = sld [smem:[#allocation38_spill]] }
 0x19c   : > { %v12862_v52 = vld [vmem:[%s14234_s5 + $0xd8] sm:$0xff]   ;;  %v12868_v57 = vld [vmem:[#allocation8 + $0xa4] ss:$8 sps:$4 sm:$0xff]   ;;  %v12866_v62 = vld [vmem:[#allocation8 + $0xa0] ss:$8 sps:$4 sm:$0xff]   ;;  %s17099_s13 = sld [smem:[#allocation47_spill]] }
 0x19d   : > { %1677 = vmatpush1.bf16.msra.mxu0 %v12791_v11  ;;  %12463 = vmatpush1.bf16.msra.mxu1 %v12791_v11  ;;  %v12857_v55 = vld [vmem:[#allocation8 + $0x94] ss:$8 sps:$4 sm:$0xff]   ;;  %v12855_v56 = vld [vmem:[#allocation8 + $0x90] ss:$8 sps:$4 sm:$0xff]   ;;  %v14308_v61 = vld [vmem:[%s14234_s5 + $0x28] sm:$0xff]   ;;  %s11671_s28 = sshll.u32 %s13970_s22, 6 }
 0x19e   : > { %1678 = vmatprep.subr.bf16.mxu0 %v12792_v12  ;;  %12456 = vmatprep.subr.bf16.mxu1 %v12792_v12  ;;  %v12879_v58 = vld [vmem:[#allocation7 + $0xa8] ss:$16 sps:$4 sm:$0xff]   ;;  %v12881_v60 = vld [vmem:[#allocation7 + $0xac] ss:$16 sps:$4 sm:$0xff]   ;;  %v14315_v6 = vld [vmem:[%s14234_s5 + $0x30] sm:$0xff]   ;;  %p1144_p13 = scmp.lt.s32.totalorder %s11671_s28, 127 }
 0x19f   : > { %v12878_v63 = vld [vmem:[#allocation8 + $0xb4] ss:$8 sps:$4 sm:$0xff]   ;;  %v12875_v0 = vld [vmem:[%s14234_s5 + $0xe8] sm:$0xff]   ;;  %v12876_v4 = vld [vmem:[#allocation8 + $0xb0] ss:$8 sps:$4 sm:$0xff]   ;;  %vm11324_vm0 = vcmask 7168  }
 0x1a0   : > { %v12884_v2 = vld [vmem:[#allocation7 + $0xc8] ss:$16 sps:$4 sm:$0xff]   ;;  %v12886_v3 = vld [vmem:[#allocation7 + $0xcc] ss:$16 sps:$4 sm:$0xff]   ;;  %v12883_v10 = vld [vmem:[%s14234_s5 + $0xf0] sm:$0xff]   ;;  %s17156_s28 = smov (!%p1144_p13, %s11671_s28), 127 }
 0x1a1   : > { %1679 = vmatpush1.bf16.msra.mxu0 %v12794_v13  ;;  %12464 = vmatpush1.bf16.msra.mxu1 %v12794_v13  ;;  %v12889_v5 = vld [vmem:[#allocation8 + $0xc4] ss:$8 sps:$4 sm:$0xff]   ;;  %v12887_v7 = vld [vmem:[#allocation8 + $0xc0] ss:$8 sps:$4 sm:$0xff]   ;;  %v14322_v11 = vld [vmem:[%s14234_s5 + $0x38] sm:$0xff]   ;;  %s11672_s22 = sshll.u32 %s17156_s28, 3 }
 0x1a2   : > { %1680 = vmatprep.subr.bf16.mxu0 %v12795_v14  ;;  %12457 = vmatprep.subr.bf16.mxu1 %v12795_v14  ;;  %v12892_v8 = vld [vmem:[#allocation7 + $0xe8] ss:$16 sps:$4 sm:$0xff]   ;;  %v12894_v9 = vld [vmem:[#allocation7 + $0xec] ss:$16 sps:$4 sm:$0xff]   ;;  %s15825_s14 = scalar_lea.vmem %s13947_s30, %s11672_s22  ;;  %s17100_s12 = sld [smem:[#allocation48_spill]]  ;;  %vm11259_vm1 = vcmask 23552  }
 0x1a3   : > { %v12896_v12 = vld [vmem:[#allocation8 + $0xd0] ss:$8 sps:$4 sm:$0xff]   ;;  %v12898_v13 = vld [vmem:[#allocation8 + $0xd4] ss:$8 sps:$4 sm:$0xff]   ;;  %v12901_v14 = vld [vmem:[#allocation10 + $0x4] ss:$8 sps:$4 sm:$0xff]  }
 0x1a4   : > { %s17101_s17 = sld [smem:[#allocation37_spill]]  ;;  %s17127_s11 = sld [smem:[#allocation40_spill]] }
 0x1a5   : > { %1681 = vmatpush1.bf16.msra.mxu0 %v12797_v15  ;;  %12465 = vmatpush1.bf16.msra.mxu1 %v12797_v15  ;;  %v12904_v15 = vld [vmem:[#allocation8 + $0xe4] ss:$8 sps:$4 sm:$0xff]   ;;  %s17150_s10 = sld [smem:[#allocation50_spill]] }
 0x1a6   : > { %1682 = vmatprep.subr.bf16.mxu0 %v12798_v16  ;;  %12458 = vmatprep.subr.bf16.mxu1 %v12798_v16  ;;  %v14328_v16 = vld [vmem:[%s14234_s5 + $0x40] sm:$0xff]  }
 0x1a9   : > { %1683 = vmatpush1.bf16.msra.mxu0 %v12800_v17  ;;  %12466 = vmatpush1.bf16.msra.mxu1 %v12800_v17  ;;  %v12891_v17 = vld [vmem:[%s14234_s5 + $0xf8] sm:$0xff]  }
 0x1aa   : > { %2910 = vmatprep.subr.bf16.mxu0 %v12807_v18  ;;  %2021 = vmatprep.subr.bf16.mxu1 %v12844_v28  ;;  %v12902_v18 = vld [vmem:[#allocation8 + $0xe0] ss:$8 sps:$4 sm:$0xff]  }
 0x1ab   : > { %v14350_v28 = vld [vmem:[%s14234_s5 + $0x60] sm:$0xff]  }
 0x1ac   : > { %1701 = vmatmul.mubr.bf16.vlgmr.msra.gmra.mrb[0].mxu0 %v14274_v19  ;;  %1941 = vmatmul.mubr.bf16.vlgmr.msra.gmra.mrb[0].mxu1 %v12841_v26  ;;  %v12905_v26 = vld [vmem:[#allocation10 + $0x10] ss:$8 sps:$4 sm:$0xff]  }
 0x1ad   : > { %1710 = vmatprep.mubr.bf16.mxu0 %v13790_v1  ;;  %2911 = vmatpush1.bf16.msra.mxu0 %v12805_v20  ;;  %v12910_v20 = vld [vmem:[#allocation8 + $0xf4] ss:$8 sps:$4 sm:$0xff]  }
 0x1ae   : > { %2912 = vmatprep.subr.bf16.mxu0 %v12812_v21  ;;  %1950 = vmatprep.mubr.bf16.mxu1 %v13790_v1  ;;  %v12908_v21 = vld [vmem:[#allocation8 + $0xf0] ss:$8 sps:$4 sm:$0xff]  }
 0x1af   : > { %2022 = vmatpush1.bf16.msra.mxu1 %v12842_v27  ;;  %v12826_v27 = vld [vmem:[%s14234_s5 + $0x50] sm:$0xff]  }
 0x1b0   : > { %2023 = vmatprep.subr.bf16.mxu1 %v12852_v34  ;;  %v12840_v34 = vld [vmem:[%s14234_s5 + $0x78] sm:$0xff]  }
 0x1b1   : > { %2913 = vmatpush1.bf16.msra.mxu0 %v12810_v22  ;;  %v12899_v22 = vld [vmem:[#allocation10] ss:$8 sps:$4 sm:$0xff]  }
 0x1b2   : > { %2914 = vmatprep.subr.bf16.mxu0 %v12816_v24  ;;  %v14335_v24 = vld [vmem:[%s14234_s5 + $0x48] sm:$0xff]  }
 0x1b3   : > { %2024 = vmatpush1.bf16.msra.mxu1 %v12850_v33  ;;  %v12916_v33 = vld [vmem:[#allocation10 + $0x34] ss:$8 sps:$4 sm:$0xff]  }
 0x1b4   : > { %1711 = vmatmul.mubr.bf16.gmra.mrb[4].mxu0 %v14279_v23  ;;  %1951 = vmatmul.mubr.bf16.gmra.mrb[4].mxu1 %v12849_v32  ;;  %v12914_v32 = vld [vmem:[#allocation10 + $0x30] ss:$8 sps:$4 sm:$0xff]  }
 0x1b5   : > { %1720 = vmatprep.mubr.bf16.mxu0 %v13790_v1  ;;  %2915 = vmatpush1.bf16.msra.mxu0 %v12814_v25  ;;  %v12907_v25 = vld [vmem:[#allocation10 + $0x14] ss:$8 sps:$4 sm:$0xff]  }
 0x1b6   : > { %2916 = vmatprep.subr.bf16.mxu0 %v12821_v29  ;;  %1960 = vmatprep.mubr.bf16.mxu1 %v13790_v1  ;;  %v12913_v29 = vld [vmem:[#allocation10 + $0x24] ss:$8 sps:$4 sm:$0xff]  }
 0x1b7   : > { %2025 = vmatprep.subr.bf16.mxu1 %v12860_v39  ;;  %v14380_v39 = vld [vmem:[%s14234_s5 + $0x90] sm:$0xff]  }
 0x1b8   : > { %2026 = vmatpush1.bf16.msra.mxu1 %v12858_v38  ;;  %v12853_v38 = vld [vmem:[%s14234_s5 + $0x88] sm:$0xff]  }
 0x1b9   : > { %2917 = vmatpush1.bf16.msra.mxu0 %v12819_v30  ;;  %2027 = vmatprep.subr.bf16.mxu1 %v12865_v44  ;;  %v12835_v30 = vld [vmem:[%s14234_s5 + $0x68] sm:$0xff]  }
 0x1ba   : > { %2918 = vmatprep.subr.bf16.mxu0 %v12825_v31  ;;  %v14361_v31 = vld [vmem:[%s14234_s5 + $0x70] sm:$0xff]   ;;  %v12923_v44 = vld [vmem:[#allocation10 + $0x60] ss:$8 sps:$4 sm:$0xff]  }
 0x1bc   : > { %1721 = vmatmul.mubr.bf16.gmra.mrb[8].mxu0 %v14287_v35  ;;  %1961 = vmatmul.mubr.bf16.gmra.mrb[8].mxu1 %v12854_v42  ;;  %v14387_v42 = vld [vmem:[%s14234_s5 + $0x98] sm:$0xff]  }
 0x1bd   : > { %1730 = vmatprep.mubr.bf16.mxu0 %v13790_v1  ;;  %2919 = vmatpush1.bf16.msra.mxu0 %v12823_v36  ;;  %v12917_v36 = vld [vmem:[#allocation10 + $0x40] ss:$8 sps:$4 sm:$0xff]  }
 0x1be   : > { %2920 = vmatprep.subr.bf16.mxu0 %v12830_v37  ;;  %1970 = vmatprep.mubr.bf16.mxu1 %v13790_v1  ;;  %v12919_v37 = vld [vmem:[#allocation10 + $0x44] ss:$8 sps:$4 sm:$0xff]  }
 0x1bf   : > { %2028 = vmatpush1.bf16.msra.mxu1 %v12863_v46  ;;  %v14399_v46 = vld [vmem:[%s14234_s5 + $0xa8] sm:$0xff]  }
 0x1c0   : > { %2029 = vmatprep.subr.bf16.mxu1 %v12873_v51  ;;  %v12929_v51 = vld [vmem:[#allocation10 + $0x80] ss:$8 sps:$4 sm:$0xff]  }
 0x1c1   : > { %2921 = vmatpush1.bf16.msra.mxu0 %v12828_v40  ;;  %v12920_v40 = vld [vmem:[#allocation10 + $0x50] ss:$8 sps:$4 sm:$0xff]  }
 0x1c2   : > { %2922 = vmatprep.subr.bf16.mxu0 %v12834_v41  ;;  %v12922_v41 = vld [vmem:[#allocation10 + $0x54] ss:$8 sps:$4 sm:$0xff]  }
 0x1c3   : > { %2030 = vmatpush1.bf16.msra.mxu1 %v12871_v50  ;;  %v14412_v50 = vld [vmem:[%s14234_s5 + $0xb8] sm:$0xff]  }
 0x1c4   : > { %1731 = vmatmul.mubr.bf16.gmra.mrb[12].mxu0 %v14294_v43  ;;  %1971 = vmatmul.mubr.bf16.gmra.mrb[12].mxu1 %v12862_v52  ;;  %v12931_v52 = vld [vmem:[#allocation10 + $0x84] ss:$8 sps:$4 sm:$0xff]  }
 0x1c5   : > { %1740 = vmatprep.mubr.bf16.mxu0 %v13790_v1  ;;  %2923 = vmatpush1.bf16.msra.mxu0 %v12832_v45  ;;  %v12925_v45 = vld [vmem:[#allocation10 + $0x64] ss:$8 sps:$4 sm:$0xff]  }
 0x1c6   : > { %2924 = vmatprep.subr.bf16.mxu0 %v12839_v47  ;;  %1980 = vmatprep.mubr.bf16.mxu1 %v13790_v1  ;;  %v14406_v47 = vld [vmem:[%s14234_s5 + $0xb0] sm:$0xff]  }
 0x1c7   : > { %2031 = vmatprep.subr.bf16.mxu1 %v12881_v60 }
 0x1c8   : > { %2032 = vmatpush1.bf16.msra.mxu1 %v12879_v58  ;;  %v12932_v58 = vld [vmem:[#allocation10 + $0x90] ss:$8 sps:$4 sm:$0xff]  }
 0x1c9   : > { %2925 = vmatpush1.bf16.msra.mxu0 %v12837_v48  ;;  %2033 = vmatprep.subr.bf16.mxu1 %v12886_v3  ;;  %v12926_v48 = vld [vmem:[#allocation10 + $0x70] ss:$8 sps:$4 sm:$0xff]  }
 0x1ca   : > { %2926 = vmatprep.subr.bf16.mxu0 %v12847_v49  ;;  %v12928_v49 = vld [vmem:[#allocation10 + $0x74] ss:$8 sps:$4 sm:$0xff]  }
 0x1cc   : > { %1741 = vmatmul.mubr.bf16.gmra.mrb[16].mxu0 %v14301_v53  ;;  %1981 = vmatmul.mubr.bf16.gmra.mrb[16].mxu1 %v12870_v59  ;;  %v12934_v59 = vld [vmem:[#allocation10 + $0x94] ss:$8 sps:$4 sm:$0xff]  }
 0x1cd   : > { %1750 = vmatprep.mubr.bf16.mxu0 %v13790_v1  ;;  %2927 = vmatpush1.bf16.msra.mxu0 %v12845_v54 }
 0x1ce   : > { %2928 = vmatprep.subr.bf16.mxu0 %v12857_v55  ;;  %1990 = vmatprep.mubr.bf16.mxu1 %v13790_v1 }
 0x1cf   : > { %2034 = vmatpush1.bf16.msra.mxu1 %v12884_v2 }
 0x1d0   : > { %2035 = vmatprep.subr.bf16.mxu1 %v12894_v9 }
 0x1d1   : > { %2929 = vmatpush1.bf16.msra.mxu0 %v12855_v56  ;;  %v2374_v56 = vld [vmem:[%s13879_s27] sm:$0x3] }
 0x1d2   : > { %2930 = vmatprep.subr.bf16.mxu0 %v12868_v57 }
 0x1d3   : > { %2036 = vmatpush1.bf16.msra.mxu1 %v12892_v8 }
 0x1d4   : > { %1751 = vmatmul.mubr.bf16.gmra.mrb[20].mxu0 %v14308_v61  ;;  %1991 = vmatmul.mubr.bf16.gmra.mrb[20].mxu1 %v12875_v0 }
 0x1d5   : > { %1760 = vmatprep.mubr.bf16.mxu0 %v13790_v1  ;;  %2931 = vmatpush1.bf16.msra.mxu0 %v12866_v62 }
 0x1d6   : > { %2932 = vmatprep.subr.bf16.mxu0 %v12878_v63  ;;  %2000 = vmatprep.mubr.bf16.mxu1 %v13790_v1 }
 0x1d7   : > { %3659 = vmatprep.subr.bf16.mxu1 %v12901_v14 }
 0x1d9   : > { %2933 = vmatpush1.bf16.msra.mxu0 %v12876_v4 }
 0x1da   : > { %2934 = vmatprep.subr.bf16.mxu0 %v12889_v5 }
 0x1dc   : > { %1761 = vmatmul.mubr.bf16.gmra.mrb[24].mxu0 %v14315_v6  ;;  %2001 = vmatmul.mubr.bf16.gmra.mrb[24].mxu1 %v12883_v10 }
 0x1dd   : > { %1770 = vmatprep.mubr.bf16.mxu0 %v13790_v1  ;;  %2935 = vmatpush1.bf16.msra.mxu0 %v12887_v7 }
 0x1de   : > { %2010 = vmatprep.mubr.bf16.mxu1 %v13790_v1  ;;  %2936 = vmatprep.subr.bf16.mxu0 %v12898_v13 }
 0x1e1   : > { %2937 = vmatpush1.bf16.msra.mxu0 %v12896_v12 }
 0x1e2   : > { %2938 = vmatprep.subr.bf16.mxu0 %v12904_v15 }
 0x1e4   : > { %1771 = vmatmul.mubr.bf16.gmra.mrb[28].mxu0 %v14322_v11  ;;  %2011 = vmatmul.mubr.bf16.gmra.mrb[28].mxu1 %v12891_v17 }
 0x1e5   : > { %1780 = vmatprep.mubr.bf16.mxu0 %v13790_v1  ;;  %2053 = vmatprep.mubr.bf16.mxu1 %v13790_v1 }
 0x1e6   : > { %2939 = vmatpush1.bf16.msra.mxu0 %v12902_v18 }
 0x1e7   : > { %2940 = vmatprep.subr.bf16.mxu0 %v12910_v20 }
 0x1ea   : > { %2941 = vmatpush1.bf16.msra.mxu0 %v12908_v21 }
 0x1ec   : > { %1781 = vmatmul.mubr.bf16.gmra.mrb[32].mxu0 %v14328_v16  ;;  %2054 = vmatmul.mubr.bf16.vlgmr.msra.gmra.mrb[32].mxu1 %v14274_v19  ;;  %v12827_v19 = vld [vmem:[%s14234_s5 + $0x58] sm:$0xff]  }
 0x1ed   : > { %1790 = vmatprep.mubr.bf16.mxu0 %v13790_v1  ;;  %3660 = vmatpush1.bf16.msra.mxu1 %v12899_v22 }
 0x1ee   : > { %2063 = vmatprep.mubr.bf16.mxu1 %v13790_v1  ;;  %3661 = vmatprep.subr.bf16.mxu1 %v12907_v25 }
 0x1f1   : > { %3662 = vmatpush1.bf16.msra.mxu1 %v12905_v26 }
 0x1f2   : > { %3663 = vmatprep.subr.bf16.mxu1 %v12913_v29 }
 0x1f4   : > { %1791 = vmatmul.mubr.bf16.gmra.mrb[36].mxu0 %v14335_v24  ;;  %2064 = vmatmul.mubr.bf16.gmra.mrb[36].mxu1 %v14279_v23  ;;  %v12911_v23 = vld [vmem:[#allocation10 + $0x20] ss:$8 sps:$4 sm:$0xff]  }
 0x1f5   : > { %1800 = vmatprep.mubr.bf16.mxu0 %v13790_v1  ;;  %2073 = vmatprep.mubr.bf16.mxu1 %v13790_v1 }
 0x1f6   : > { %3664 = vmatpush1.bf16.msra.mxu1 %v12911_v23 }
 0x1f7   : > { %3665 = vmatprep.subr.bf16.mxu1 %v12916_v33 }
 0x1fa   : > { %3666 = vmatpush1.bf16.msra.mxu1 %v12914_v32 }
 0x1fb   : > { %3667 = vmatprep.subr.bf16.mxu1 %v12919_v37 }
 0x1fc   : > { %1801 = vmatmul.mubr.bf16.gmra.mrb[40].mxu0 %v12826_v27  ;;  %2074 = vmatmul.mubr.bf16.gmra.mrb[40].mxu1 %v14287_v35  ;;  %v12848_v35 = vld [vmem:[%s14234_s5 + $0x80] sm:$0xff]  }
 0x1fd   : > { %1810 = vmatprep.mubr.bf16.mxu0 %v13790_v1  ;;  %2083 = vmatprep.mubr.bf16.mxu1 %v13790_v1 }
 0x1fe   : > { %3668 = vmatpush1.bf16.msra.mxu1 %v12917_v36 }
 0x1ff   : > { %3669 = vmatprep.subr.bf16.mxu1 %v12922_v41 }
 0x202   : > { %3670 = vmatpush1.bf16.msra.mxu1 %v12920_v40 }
 0x203   : > { %3671 = vmatprep.subr.bf16.mxu1 %v12925_v45 }
 0x204   : > { %1811 = vmatmul.mubr.bf16.gmra.mrb[44].mxu0 %v12827_v19  ;;  %2084 = vmatmul.mubr.bf16.gmra.mrb[44].mxu1 %v14294_v43  ;;  %v14393_v43 = vld [vmem:[%s14234_s5 + $0xa0] sm:$0xff]  }
 0x205   : > { %1820 = vmatprep.mubr.bf16.mxu0 %v13790_v1  ;;  %2093 = vmatprep.mubr.bf16.mxu1 %v13790_v1 }
 0x206   : > { %3672 = vmatpush1.bf16.msra.mxu1 %v12923_v44 }
 0x207   : > { %3673 = vmatprep.subr.bf16.mxu1 %v12928_v49 }
 0x20a   : > { %3674 = vmatpush1.bf16.msra.mxu1 %v12926_v48 }
 0x20b   : > { %3675 = vmatprep.subr.bf16.mxu1 %v12931_v52 }
 0x20c   : > { %1821 = vmatmul.mubr.bf16.gmra.mrb[48].mxu0 %v14350_v28  ;;  %2094 = vmatmul.mubr.bf16.gmra.mrb[48].mxu1 %v14301_v53  ;;  %v2376_v53 = vlaneseq }
 0x20d   : > { %1830 = vmatprep.mubr.bf16.mxu0 %v13790_v1  ;;  %2103 = vmatprep.mubr.bf16.mxu1 %v13790_v1 }
 0x20e   : > { %3676 = vmatpush1.bf16.msra.mxu1 %v12929_v51  ;;  %v2377_v54 = vshrl.u32 %v2376_v53, 7 }
 0x20f   : > { %3677 = vmatprep.subr.bf16.mxu1 %v12934_v59 }
 0x210   : > { %v14419_v55 = vsub.s32 0, %v2377_v54  ;;  %v14422_v57 = vsub.s32 1, %v2377_v54 }
 0x212   : > { %v14426_v60 = vrot.slane %v2374_v56, %v14419_v55  ;;  %3678 = vmatpush1.bf16.msra.mxu1 %v12932_v58 }
 0x214   : > { %1831 = vmatmul.mubr.bf16.gmra.mrb[52].mxu0 %v12835_v30  ;;  %2104 = vmatmul.mubr.bf16.gmra.mrb[52].mxu1 %v14308_v61  ;;  %v14429_v61 = vrot.slane %v2374_v56, %v14422_v57 }
 0x215   : > { %1840 = vmatprep.mubr.bf16.mxu0 %v13790_v1  ;;  %2113 = vmatprep.mubr.bf16.mxu1 %v13790_v1 }
 0x21c   : > { %1841 = vmatmul.mubr.bf16.gmra.mrb[56].mxu0 %v14361_v31  ;;  %2114 = vmatmul.mubr.bf16.gmra.mrb[56].mxu1 %v14315_v6 }
 0x21d   : > { %1850 = vmatprep.mubr.bf16.mxu0 %v13790_v1  ;;  %2123 = vmatprep.mubr.bf16.mxu1 %v13790_v1 }
 0x224   : > { %1851 = vmatmul.mubr.bf16.gmra.mrb[60].mxu0 %v12840_v34  ;;  %2124 = vmatmul.mubr.bf16.gmra.mrb[60].mxu1 %v14322_v11 }
 0x225   : > { %1860 = vmatprep.mubr.bf16.mxu0 %v13790_v1  ;;  %2133 = vmatprep.mubr.bf16.mxu1 %v13790_v1 }
 0x22c   : > { %1861 = vmatmul.mubr.bf16.gmra.mrb[64].mxu0 %v12848_v35  ;;  %2134 = vmatmul.mubr.bf16.gmra.mrb[64].mxu1 %v14328_v16 }
 0x22d   : > { %1870 = vmatprep.mubr.bf16.mxu0 %v13790_v1  ;;  %2143 = vmatprep.mubr.bf16.mxu1 %v13790_v1 }
 0x234   : > { %1871 = vmatmul.mubr.bf16.gmra.mrb[68].mxu0 %v12853_v38  ;;  %2144 = vmatmul.mubr.bf16.gmra.mrb[68].mxu1 %v14335_v24 }
 0x235   : > { %1880 = vmatprep.mubr.bf16.mxu0 %v13790_v1  ;;  %2153 = vmatprep.mubr.bf16.mxu1 %v13790_v1 }
 0x23c   : > { %1881 = vmatmul.mubr.bf16.gmra.mrb[72].mxu0 %v14380_v39  ;;  %2154 = vmatmul.mubr.bf16.gmra.mrb[72].mxu1 %v12826_v27 }
 0x23d   : > { %1890 = vmatprep.mubr.bf16.mxu0 %v13790_v1  ;;  %2163 = vmatprep.mubr.bf16.mxu1 %v13790_v1 }
 0x244   : > { %1891 = vmatmul.mubr.bf16.gmra.mrb[76].mxu0 %v14387_v42  ;;  %2164 = vmatmul.mubr.bf16.gmra.mrb[76].mxu1 %v12827_v19 }
 0x245   : > { %1900 = vmatprep.mubr.bf16.mxu0 %v13790_v1  ;;  %2173 = vmatprep.mubr.bf16.mxu1 %v13790_v1 }
 0x24c   : > { %1901 = vmatmul.mubr.bf16.gmra.mrb[80].mxu0 %v14393_v43  ;;  %2174 = vmatmul.mubr.bf16.gmra.mrb[80].mxu1 %v14350_v28 }
 0x24d   : > { %1910 = vmatprep.mubr.bf16.mxu0 %v13790_v1  ;;  %2183 = vmatprep.mubr.bf16.mxu1 %v13790_v1 }
 0x254   : > { %1911 = vmatmul.mubr.bf16.gmra.mrb[84].mxu0 %v14399_v46  ;;  %2184 = vmatmul.mubr.bf16.gmra.mrb[84].mxu1 %v12835_v30 }
 0x255   : > { %1920 = vmatprep.mubr.bf16.mxu0 %v13790_v1  ;;  %2193 = vmatprep.mubr.bf16.mxu1 %v13790_v1 }
 0x25c   : > { %1921 = vmatmul.mubr.bf16.gmra.mrb[88].mxu0 %v14406_v47  ;;  %2194 = vmatmul.mubr.bf16.gmra.mrb[88].mxu1 %v14361_v31  ;;  %v12935_v31 = vld [vmem:[#allocation10 + $0xa0] ss:$8 sps:$4 sm:$0xff]  }
 0x25d   : > { %1930 = vmatprep.mubr.bf16.mxu0 %v13790_v1  ;;  %2203 = vmatprep.mubr.bf16.mxu1 %v13790_v1 }
 0x264   : > { %1931 = vmatmul.mubr.bf16.gmra.mrb[92].mxu0 %v14412_v50  ;;  %2204 = vmatmul.mubr.bf16.gmra.mrb[92].mxu1 %v12840_v34  ;;  %v12937_v34 = vld [vmem:[#allocation10 + $0xa4] ss:$8 sps:$4 sm:$0xff]  }
 0x265   : > { %2213 = vmatprep.mubr.bf16.mxu1 %v13790_v1  ;;  %3679 = vmatprep.subr.bf16.mxu1 %v12937_v34 }
 0x266   : > { %3680 = vmatpush1.bf16.msra.mxu1 %v12935_v31 }
 0x26c   : > { %2214 = vmatmul.mubr.bf16.gmra.mrb[96].mxu1 %v12848_v35 }
 0x26d   : > { %2223 = vmatprep.mubr.bf16.mxu1 %v13790_v1 }
 0x274   : > { %2224 = vmatmul.mubr.bf16.gmra.mrb[100].mxu1 %v12853_v38 }
 0x275   : > { %2233 = vmatprep.mubr.bf16.mxu1 %v13790_v1 }
 0x27c   : > { %2234 = vmatmul.mubr.bf16.gmra.mrb[104].mxu1 %v14380_v39 }
 0x27d   : > { %2243 = vmatprep.mubr.bf16.mxu1 %v13790_v1 }
 0x27f   : > { %v1702_v62 = vpop.f32.mrb[0].mxu0  ;;  %v1942_v11 = vpop.f32.mrb[0].mxu1 }
 0x280   : > { %v2386_v63 = vadd.f32 %v14426_v60, %v1702_v62  ;;  %v1704_v0 = vpop.f32.mrb[1].mxu0  ;;  %v2482_v13 = vadd.f32 %v14426_v60, %v1942_v11  ;;  %v1944_v14 = vpop.f32.mrb[1].mxu1 }
 0x281   : > { %v2387_v2 = vadd.f32 %v14429_v61, %v1704_v0  ;;  %v1706_v3 = vpop.f32.mrb[2].mxu0  ;;  %v2483_v17 = vadd.f32 %v14429_v61, %v1944_v14  ;;  %v1946_v18 = vpop.f32.mrb[2].mxu1 }
 0x282   : > { %v2388_v4 = vadd.f32 %v14426_v60, %v1706_v3  ;;  %v1708_v5 = vpop.f32.mrb[3].mxu0  ;;  %v2514_v7 = vmax.f32 %v2386_v63, 0.0  ;;  %v2610_v22 = vmax.f32 %v2482_v13, 0.0  ;;  %v2484_v24 = vadd.f32 %v14426_v60, %v1946_v18  ;;  %v1948_v25 = vpop.f32.mrb[3].mxu1 }
 0x283   : > { %v2389_v6 = vadd.f32 %v14429_v61, %v1708_v5  ;;  %v2515_v9 = vmax.f32 %v2387_v2, 0.0  ;;  %v2611_v19 = vmax.f32 %v2483_v17, 0.0  ;;  %v2485_v28 = vadd.f32 %v14429_v61, %v1948_v25 }
 0x284   : > { %v2516_v8 = vmax.f32 %v2388_v4, 0.0  ;;  %v2612_v30 = vmax.f32 %v2484_v24, 0.0  ;;  %2244 = vmatmul.mubr.bf16.gmra.mrb[108].mxu1 %v14387_v42 }
 0x285   : > { %v2517_v10 = vmax.f32 %v2389_v6, 0.0  ;;  %v2613_v33 = vmax.f32 %v2485_v28, 0.0  ;;  %2253 = vmatprep.mubr.bf16.mxu1 %v13790_v1 }
 0x286   : > { %v2642_v12 = vpack.c.bf16 %v2516_v8, %v2514_v7  ;;  %v14447_v37 = vpack.c.bf16 %v2612_v30, %v2610_v22 }
 0x287   : > { %v1712_v15 = vpop.f32.mrb[4].mxu0  ;;  %v2643_v16 = vpack.c.bf16 %v2517_v10, %v2515_v9  ;;  %v1952_v40 = vpop.f32.mrb[4].mxu1  ;;  %v14449_v41 = vpack.c.bf16 %v2613_v33, %v2611_v19  ;;  %v12938_v33 = vld [vmem:[#allocation10 + $0xb0] ss:$8 sps:$4 sm:$0xff]  }
 0x288   : > { %v2390_v20 = vadd.f32 %v14426_v60, %v1712_v15  ;;  %v1714_v21 = vpop.f32.mrb[5].mxu0  ;;  %v2486_v42 = vadd.f32 %v14426_v60, %v1952_v40  ;;  %v1954_v45 = vpop.f32.mrb[5].mxu1 }
 0x289   : > { %v2391_v26 = vadd.f32 %v14429_v61, %v1714_v21  ;;  %v1716_v27 = vpop.f32.mrb[6].mxu0  ;;  %2942 = vmatprep.mubr.bf16.mxu0 %v2643_v16  ;;  %v2487_v51 = vadd.f32 %v14429_v61, %v1954_v45  ;;  %v1956_v52 = vpop.f32.mrb[6].mxu1 }
 0x28a   : > { %v2392_v23 = vadd.f32 %v14426_v60, %v1716_v27  ;;  %v1718_v29 = vpop.f32.mrb[7].mxu0  ;;  %2943 = vmatmul.mubr.bf16.vlgmr.msra.gmra.mrb[96].mxu0 %v2642_v12  ;;  %v2518_v35 = vmax.f32 %v2390_v20, 0.0  ;;  %v2614_v56 = vmax.f32 %v2486_v42, 0.0  ;;  %v2488_v58 = vadd.f32 %v14426_v60, %v1956_v52  ;;  %v1958_v59 = vpop.f32.mrb[7].mxu1 }
 0x28b   : > { %v2393_v32 = vadd.f32 %v14429_v61, %v1718_v29  ;;  %v2519_v38 = vmax.f32 %v2391_v26, 0.0  ;;  %v2615_v0 = vmax.f32 %v2487_v51, 0.0  ;;  %v2489_v2 = vadd.f32 %v14429_v61, %v1958_v59 }
 0x28c   : > { %v2520_v36 = vmax.f32 %v2392_v23, 0.0  ;;  %v2616_v5 = vmax.f32 %v2488_v58, 0.0  ;;  %2254 = vmatmul.mubr.bf16.gmra.mrb[112].mxu1 %v14393_v43 }
 0x28d   : > { %v2521_v39 = vmax.f32 %v2393_v32, 0.0  ;;  %v2617_v7 = vmax.f32 %v2489_v2, 0.0  ;;  %2263 = vmatprep.mubr.bf16.mxu1 %v13790_v1 }
 0x28e   : > { %v2644_v44 = vpack.c.bf16 %v2520_v36, %v2518_v35  ;;  %v14461_v10 = vpack.c.bf16 %v2616_v5, %v2614_v56  ;;  %v12940_v36 = vld [vmem:[#allocation10 + $0xb4] ss:$8 sps:$4 sm:$0xff]  }
 0x28f   : > { %v1722_v48 = vpop.f32.mrb[8].mxu0  ;;  %v2645_v49 = vpack.c.bf16 %v2521_v39, %v2519_v38  ;;  %v1962_v13 = vpop.f32.mrb[8].mxu1  ;;  %v14463_v14 = vpack.c.bf16 %v2617_v7, %v2615_v0  ;;  %3681 = vmatprep.subr.bf16.mxu1 %v12940_v36 }
 0x290   : > { %v2394_v53 = vadd.f32 %v14426_v60, %v1722_v48  ;;  %v1724_v54 = vpop.f32.mrb[9].mxu0  ;;  %v2490_v16 = vadd.f32 %v14426_v60, %v1962_v13  ;;  %v1964_v17 = vpop.f32.mrb[9].mxu1  ;;  %3682 = vmatpush1.bf16.msra.mxu1 %v12938_v33 }
 0x291   : > { %v2395_v62 = vadd.f32 %v14429_v61, %v1724_v54  ;;  %v1726_v63 = vpop.f32.mrb[10].mxu0  ;;  %2952 = vmatprep.mubr.bf16.mxu0 %v2645_v49  ;;  %v2491_v20 = vadd.f32 %v14429_v61, %v1964_v17  ;;  %v1966_v21 = vpop.f32.mrb[10].mxu1 }
 0x292   : > { %v2396_v3 = vadd.f32 %v14426_v60, %v1726_v63  ;;  %v1728_v4 = vpop.f32.mrb[11].mxu0  ;;  %2953 = vmatmul.mubr.bf16.gmra.mrb[100].mxu0 %v2644_v44  ;;  %v2522_v8 = vmax.f32 %v2394_v53, 0.0  ;;  %v2618_v25 = vmax.f32 %v2490_v16, 0.0  ;;  %v2492_v26 = vadd.f32 %v14426_v60, %v1966_v21  ;;  %v1968_v27 = vpop.f32.mrb[11].mxu1 }
 0x293   : > { %v2397_v6 = vadd.f32 %v14429_v61, %v1728_v4  ;;  %v2523_v11 = vmax.f32 %v2395_v62, 0.0  ;;  %v2619_v23 = vmax.f32 %v2491_v20, 0.0  ;;  %v2493_v29 = vadd.f32 %v14429_v61, %v1968_v27 }
 0x294   : > { %v2524_v9 = vmax.f32 %v2396_v3, 0.0  ;;  %v2620_v32 = vmax.f32 %v2492_v26, 0.0  ;;  %2264 = vmatmul.mubr.bf16.gmra.mrb[116].mxu1 %v14399_v46 }
 0x295   : > { %v2525_v12 = vmax.f32 %v2397_v6, 0.0  ;;  %v2621_v35 = vmax.f32 %v2493_v29, 0.0  ;;  %2273 = vmatprep.mubr.bf16.mxu1 %v13790_v1 }
 0x296   : > { %v2646_v15 = vpack.c.bf16 %v2524_v9, %v2522_v8  ;;  %v14475_v40 = vpack.c.bf16 %v2620_v32, %v2618_v25 }
 0x297   : > { %v1732_v18 = vpop.f32.mrb[12].mxu0  ;;  %v2647_v43 = vpack.c.bf16 %v2525_v12, %v2523_v11  ;;  %v1972_v45 = vpop.f32.mrb[12].mxu1  ;;  %v14477_v48 = vpack.c.bf16 %v2621_v35, %v2619_v23 }
 0x298   : > { %v2398_v22 = vadd.f32 %v14426_v60, %v1732_v18  ;;  %v1734_v24 = vpop.f32.mrb[13].mxu0  ;;  %v2494_v46 = vadd.f32 %v14426_v60, %v1972_v45  ;;  %v1974_v51 = vpop.f32.mrb[13].mxu1 }
 0x299   : > { %v2399_v19 = vadd.f32 %v14429_v61, %v1734_v24  ;;  %v1736_v28 = vpop.f32.mrb[14].mxu0  ;;  %2962 = vmatprep.mubr.bf16.mxu0 %v2647_v43  ;;  %v2495_v54 = vadd.f32 %v14429_v61, %v1974_v51  ;;  %v1976_v56 = vpop.f32.mrb[14].mxu1 }
 0x29a   : > { %v2400_v30 = vadd.f32 %v14426_v60, %v1736_v28  ;;  %v1738_v31 = vpop.f32.mrb[15].mxu0  ;;  %2963 = vmatmul.mubr.bf16.gmra.mrb[104].mxu0 %v2646_v15  ;;  %v2526_v38 = vmax.f32 %v2398_v22, 0.0  ;;  %v2622_v62 = vmax.f32 %v2494_v46, 0.0  ;;  %v2496_v63 = vadd.f32 %v14426_v60, %v1976_v56  ;;  %v1978_v0 = vpop.f32.mrb[15].mxu1 }
 0x29b   : > { %v2401_v34 = vadd.f32 %v14429_v61, %v1738_v31  ;;  %v2527_v44 = vmax.f32 %v2399_v19, 0.0  ;;  %v2623_v4 = vmax.f32 %v2495_v54, 0.0  ;;  %v2497_v5 = vadd.f32 %v14429_v61, %v1978_v0 }
 0x29c   : > { %v2528_v39 = vmax.f32 %v2400_v30, 0.0  ;;  %v2624_v8 = vmax.f32 %v2496_v63, 0.0  ;;  %2274 = vmatmul.mubr.bf16.gmra.mrb[120].mxu1 %v14406_v47 }
 0x29d   : > { %v2529_v42 = vmax.f32 %v2401_v34, 0.0  ;;  %v2625_v11 = vmax.f32 %v2497_v5, 0.0  ;;  %2283 = vmatprep.mubr.bf16.mxu1 %v13790_v1 }
 0x29e   : > { %v2648_v49 = vpack.c.bf16 %v2528_v39, %v2526_v38  ;;  %v14489_v15 = vpack.c.bf16 %v2624_v8, %v2622_v62  ;;  %v12941_v38 = vld [vmem:[#allocation10 + $0xc0] ss:$8 sps:$4 sm:$0xff]  }
 0x29f   : > { %v1742_v52 = vpop.f32.mrb[16].mxu0  ;;  %v2649_v53 = vpack.c.bf16 %v2529_v42, %v2527_v44  ;;  %v1982_v18 = vpop.f32.mrb[16].mxu1  ;;  %v14491_v43 = vpack.c.bf16 %v2625_v11, %v2623_v4  ;;  %v12943_v42 = vld [vmem:[#allocation10 + $0xc4] ss:$8 sps:$4 sm:$0xff]  }
 0x2a0   : > { %v2402_v58 = vadd.f32 %v14426_v60, %v1742_v52  ;;  %v1744_v59 = vpop.f32.mrb[17].mxu0  ;;  %v2498_v21 = vadd.f32 %v14426_v60, %v1982_v18  ;;  %v1984_v22 = vpop.f32.mrb[17].mxu1  ;;  %3683 = vmatprep.subr.bf16.mxu1 %v12943_v42 }
 0x2a1   : > { %v2403_v2 = vadd.f32 %v14429_v61, %v1744_v59  ;;  %v1746_v3 = vpop.f32.mrb[18].mxu0  ;;  %2972 = vmatprep.mubr.bf16.mxu0 %v2649_v53  ;;  %v2499_v25 = vadd.f32 %v14429_v61, %v1984_v22  ;;  %v1986_v26 = vpop.f32.mrb[18].mxu1  ;;  %3684 = vmatpush1.bf16.msra.mxu1 %v12941_v38 }
 0x2a2   : > { %v2404_v6 = vadd.f32 %v14426_v60, %v1746_v3  ;;  %v1748_v7 = vpop.f32.mrb[19].mxu0  ;;  %2973 = vmatmul.mubr.bf16.gmra.mrb[108].mxu0 %v2648_v49  ;;  %v2530_v12 = vmax.f32 %v2402_v58, 0.0  ;;  %v2626_v28 = vmax.f32 %v2498_v21, 0.0  ;;  %v2500_v23 = vadd.f32 %v14426_v60, %v1986_v26  ;;  %v1988_v29 = vpop.f32.mrb[19].mxu1 }
 0x2a3   : > { %v2405_v9 = vadd.f32 %v14429_v61, %v1748_v7  ;;  %v2531_v16 = vmax.f32 %v2403_v2, 0.0  ;;  %v2627_v32 = vmax.f32 %v2499_v25, 0.0  ;;  %v2501_v33 = vadd.f32 %v14429_v61, %v1988_v29 }
 0x2a4   : > { %v2532_v13 = vmax.f32 %v2404_v6, 0.0  ;;  %v2628_v36 = vmax.f32 %v2500_v23, 0.0  ;;  %2284 = vmatmul.mubr.bf16.gmra.mrb[124].mxu1 %v14412_v50 }
 0x2a5   : > { %v2533_v17 = vmax.f32 %v2405_v9, 0.0  ;;  %v2629_v44 = vmax.f32 %v2501_v33, 0.0  ;;  %2293 = vmatprep.mubr.bf16.mxu1 %v13790_v1 }
 0x2a6   : > { %v2650_v20 = vpack.c.bf16 %v2532_v13, %v2530_v12  ;;  %v14503_v46 = vpack.c.bf16 %v2628_v36, %v2626_v28 }
 0x2a7   : > { %v1752_v24 = vpop.f32.mrb[20].mxu0  ;;  %v2651_v47 = vpack.c.bf16 %v2533_v17, %v2531_v16  ;;  %v1992_v53 = vpop.f32.mrb[20].mxu1  ;;  %v14505_v54 = vpack.c.bf16 %v2629_v44, %v2627_v32  ;;  %v13329_v17 = vld [vmem:[%s14234_s5 + $0xc0] sm:$0xff]  }
 0x2a8   : > { %v2406_v27 = vadd.f32 %v14426_v60, %v1752_v24  ;;  %v1754_v19 = vpop.f32.mrb[21].mxu0  ;;  %v2502_v50 = vadd.f32 %v14426_v60, %v1992_v53  ;;  %v1994_v58 = vpop.f32.mrb[21].mxu1  ;;  %v13330_v53 = vld [vmem:[%s14234_s5 + $0xc8] sm:$0xff]  }
 0x2a9   : > { %v2407_v30 = vadd.f32 %v14429_v61, %v1754_v19  ;;  %v1756_v31 = vpop.f32.mrb[22].mxu0  ;;  %2982 = vmatprep.mubr.bf16.mxu0 %v2651_v47  ;;  %v2503_v63 = vadd.f32 %v14429_v61, %v1994_v58  ;;  %v1996_v0 = vpop.f32.mrb[22].mxu1 }
 0x2aa   : > { %v2408_v34 = vadd.f32 %v14426_v60, %v1756_v31  ;;  %v1758_v35 = vpop.f32.mrb[23].mxu0  ;;  %2983 = vmatmul.mubr.bf16.gmra.mrb[112].mxu0 %v2650_v20  ;;  %v2534_v45 = vmax.f32 %v2406_v27, 0.0  ;;  %v2630_v4 = vmax.f32 %v2502_v50, 0.0  ;;  %v2504_v5 = vadd.f32 %v14426_v60, %v1996_v0  ;;  %v1998_v6 = vpop.f32.mrb[23].mxu1 }
 0x2ab   : > { %v2409_v39 = vadd.f32 %v14429_v61, %v1758_v35  ;;  %v2535_v51 = vmax.f32 %v2407_v30, 0.0  ;;  %v2631_v9 = vmax.f32 %v2503_v63, 0.0  ;;  %v2505_v11 = vadd.f32 %v14429_v61, %v1998_v6 }
 0x2ac   : > { %v2536_v49 = vmax.f32 %v2408_v34, 0.0  ;;  %v2632_v16 = vmax.f32 %v2504_v5, 0.0  ;;  %2294 = vmatmul.mubr.bf16.gmra.mrb[128].mxu1 %v13329_v17 }
 0x2ad   : > { %v2537_v52 = vmax.f32 %v2409_v39, 0.0  ;;  %v2633_v20 = vmax.f32 %v2505_v11, 0.0  ;;  %2303 = vmatprep.mubr.bf16.mxu1 %v13790_v1 }
 0x2ae   : > { %v2652_v56 = vpack.c.bf16 %v2536_v49, %v2534_v45  ;;  %v14517_v24 = vpack.c.bf16 %v2632_v16, %v2630_v4 }
 0x2af   : > { %v1762_v59 = vpop.f32.mrb[24].mxu0  ;;  %v2653_v62 = vpack.c.bf16 %v2537_v52, %v2535_v51  ;;  %v2002_v26 = vpop.f32.mrb[24].mxu1  ;;  %v14519_v27 = vpack.c.bf16 %v2633_v20, %v2631_v9 }
 0x2b0   : > { %v2410_v2 = vadd.f32 %v14426_v60, %v1762_v59  ;;  %v1764_v3 = vpop.f32.mrb[25].mxu0  ;;  %v2506_v28 = vadd.f32 %v14426_v60, %v2002_v26  ;;  %v2004_v23 = vpop.f32.mrb[25].mxu1  ;;  %v12946_v59 = vld [vmem:[#allocation10 + $0xd4] ss:$8 sps:$4 sm:$0xff]  }
 0x2b1   : > { %v2411_v7 = vadd.f32 %v14429_v61, %v1764_v3  ;;  %v1766_v8 = vpop.f32.mrb[26].mxu0  ;;  %2992 = vmatprep.mubr.bf16.mxu0 %v2653_v62  ;;  %v2507_v31 = vadd.f32 %v14429_v61, %v2004_v23  ;;  %v2006_v32 = vpop.f32.mrb[26].mxu1  ;;  %3685 = vmatprep.subr.bf16.mxu1 %v12946_v59 }
 0x2b2   : > { %v2412_v12 = vadd.f32 %v14426_v60, %v1766_v8  ;;  %v1768_v13 = vpop.f32.mrb[27].mxu0  ;;  %2993 = vmatmul.mubr.bf16.gmra.mrb[116].mxu0 %v2652_v56  ;;  %v2538_v21 = vmax.f32 %v2410_v2, 0.0  ;;  %v2634_v35 = vmax.f32 %v2506_v28, 0.0  ;;  %v2508_v36 = vadd.f32 %v14426_v60, %v2006_v32  ;;  %v2008_v38 = vpop.f32.mrb[27].mxu1  ;;  %v12944_v56 = vld [vmem:[#allocation10 + $0xd0] ss:$8 sps:$4 sm:$0xff]  }
 0x2b3   : > { %v2413_v18 = vadd.f32 %v14429_v61, %v1768_v13  ;;  %v2539_v47 = vmax.f32 %v2411_v7, 0.0  ;;  %v2635_v42 = vmax.f32 %v2507_v31, 0.0  ;;  %v2509_v45 = vadd.f32 %v14429_v61, %v2008_v38  ;;  %3686 = vmatpush1.bf16.msra.mxu1 %v12944_v56  ;;  %v12947_v32 = vld [vmem:[#allocation11] ss:$8 sps:$4 sm:$0xff]   ;;  %v12952_v38 = vld [vmem:[#allocation10 + $0xe4] ss:$8 sps:$4 sm:$0xff]  }
 0x2b4   : > { %v2540_v22 = vmax.f32 %v2412_v12, 0.0  ;;  %v2636_v52 = vmax.f32 %v2508_v36, 0.0  ;;  %2304 = vmatmul.mubr.bf16.gmra.mrb[132].mxu1 %v13330_v53  ;;  %v12950_v36 = vld [vmem:[#allocation10 + $0xe0] ss:$8 sps:$4 sm:$0xff]   ;;  %3687 = vmatprep.subr.bf16.mxu1 %v12952_v38 }
 0x2b5   : > { %v2541_v25 = vmax.f32 %v2413_v18, 0.0  ;;  %v2637_v58 = vmax.f32 %v2509_v45, 0.0  ;;  %2313 = vmatprep.mubr.bf16.mxu1 %v13790_v1 }
 0x2b6   : > { %v2654_v19 = vpack.c.bf16 %v2540_v22, %v2538_v21  ;;  %v14531_v0 = vpack.c.bf16 %v2636_v52, %v2634_v35 }
 0x2b7   : > { %v1772_v29 = vpop.f32.mrb[28].mxu0  ;;  %v2655_v30 = vpack.c.bf16 %v2541_v25, %v2539_v47  ;;  %v2012_v4 = vpop.f32.mrb[28].mxu1  ;;  %v14533_v5 = vpack.c.bf16 %v2637_v58, %v2635_v42  ;;  %3688 = vmatpush1.bf16.msra.mxu1 %v12950_v36 }
 0x2b8   : > { %v2414_v33 = vadd.f32 %v14426_v60, %v1772_v29  ;;  %v1774_v34 = vpop.f32.mrb[29].mxu0  ;;  %v2510_v7 = vadd.f32 %v14426_v60, %v2012_v4  ;;  %v2014_v8 = vpop.f32.mrb[29].mxu1  ;;  %v13331_v29 = vld [vmem:[%s14234_s5 + $0xd0] sm:$0xff]  }
 0x2b9   : > { %v2415_v39 = vadd.f32 %v14429_v61, %v1774_v34  ;;  %v1776_v44 = vpop.f32.mrb[30].mxu0  ;;  %3002 = vmatprep.mubr.bf16.mxu0 %v2655_v30  ;;  %v2511_v12 = vadd.f32 %v14429_v61, %v2014_v8  ;;  %v2016_v13 = vpop.f32.mrb[30].mxu1 }
 0x2ba   : > { %v2416_v49 = vadd.f32 %v14426_v60, %v1776_v44  ;;  %v1778_v51 = vpop.f32.mrb[31].mxu0  ;;  %3003 = vmatmul.mubr.bf16.gmra.mrb[120].mxu0 %v2654_v19  ;;  %v2542_v62 = vmax.f32 %v2414_v33, 0.0  ;;  %v2638_v18 = vmax.f32 %v2510_v7, 0.0  ;;  %v2512_v20 = vadd.f32 %v14426_v60, %v2016_v13  ;;  %v2018_v21 = vpop.f32.mrb[31].mxu1  ;;  %v12949_v33 = vld [vmem:[#allocation11 + $0x4] ss:$8 sps:$4 sm:$0xff]  }
 0x2bb   : > { %v2417_v50 = vadd.f32 %v14429_v61, %v1778_v51  ;;  %v2543_v2 = vmax.f32 %v2415_v39, 0.0  ;;  %v2639_v25 = vmax.f32 %v2511_v12, 0.0  ;;  %v2513_v26 = vadd.f32 %v14429_v61, %v2018_v21  ;;  %4408 = vmatprep.subr.bf16.mxu0 %v12949_v33  ;;  %v13333_v21 = vld [vmem:[%s14234_s5 + $0xe0] sm:$0xff]  }
 0x2bc   : > { %v2544_v63 = vmax.f32 %v2416_v49, 0.0  ;;  %v2640_v23 = vmax.f32 %v2512_v20, 0.0  ;;  %2314 = vmatmul.mubr.bf16.gmra.mrb[136].mxu1 %v13331_v29  ;;  %4409 = vmatpush1.bf16.msra.mxu0 %v12947_v32 }
 0x2bd   : > { %v2545_v3 = vmax.f32 %v2417_v50, 0.0  ;;  %v2641_v31 = vmax.f32 %v2513_v26, 0.0  ;;  %2323 = vmatprep.mubr.bf16.mxu1 %v13790_v1 }
 0x2be   : > { %v2656_v6 = vpack.c.bf16 %v2544_v63, %v2542_v62  ;;  %v14545_v39 = vpack.c.bf16 %v2640_v23, %v2638_v18  ;;  %v13332_v63 = vld [vmem:[%s14234_s5 + $0xd8] sm:$0xff]  }
 0x2bf   : > { %v1782_v9 = vpop.f32.mrb[32].mxu0  ;;  %v2657_v11 = vpack.c.bf16 %v2545_v3, %v2543_v2  ;;  %v14547_v45 = vpack.c.bf16 %v2641_v31, %v2639_v25  ;;  %v12955_v25 = vld [vmem:[#allocation11 + $0x14] ss:$8 sps:$4 sm:$0xff]  }
 0x2c0   : > { %v2418_v16 = vadd.f32 %v14426_v60, %v1782_v9  ;;  %v1784_v17 = vpop.f32.mrb[33].mxu0  ;;  %v12958_v23 = vld [vmem:[#allocation10 + $0xf4] ss:$8 sps:$4 sm:$0xff]   ;;  %4410 = vmatprep.subr.bf16.mxu0 %v12955_v25  ;;  %v12961_v25 = vld [vmem:[#allocation11 + $0x24] ss:$8 sps:$4 sm:$0xff]  }
 0x2c1   : > { %v2419_v22 = vadd.f32 %v14429_v61, %v1784_v17  ;;  %v1786_v47 = vpop.f32.mrb[34].mxu0  ;;  %3012 = vmatprep.mubr.bf16.mxu0 %v2657_v11  ;;  %3689 = vmatprep.subr.bf16.mxu1 %v12958_v23 }
 0x2c2   : > { %v2420_v19 = vadd.f32 %v14426_v60, %v1786_v47  ;;  %v1788_v28 = vpop.f32.mrb[35].mxu0  ;;  %3013 = vmatmul.mubr.bf16.gmra.mrb[124].mxu0 %v2656_v6  ;;  %v2546_v34 = vmax.f32 %v2418_v16, 0.0  ;;  %v12953_v47 = vld [vmem:[#allocation11 + $0x10] ss:$8 sps:$4 sm:$0xff]  }
 0x2c3   : > { %v2421_v30 = vadd.f32 %v14429_v61, %v1788_v28  ;;  %v2547_v44 = vmax.f32 %v2419_v22, 0.0  ;;  %v12956_v28 = vld [vmem:[#allocation10 + $0xf0] ss:$8 sps:$4 sm:$0xff]   ;;  %4411 = vmatpush1.bf16.msra.mxu0 %v12953_v47  ;;  %v12959_v47 = vld [vmem:[#allocation11 + $0x20] ss:$8 sps:$4 sm:$0xff]  }
 0x2c4   : > { %v2548_v35 = vmax.f32 %v2420_v19, 0.0  ;;  %2324 = vmatmul.mubr.bf16.gmra.mrb[140].mxu1 %v13332_v63  ;;  %4412 = vmatprep.subr.bf16.mxu0 %v12961_v25 }
 0x2c5   : > { %v2549_v42 = vmax.f32 %v2421_v30, 0.0  ;;  %2333 = vmatprep.mubr.bf16.mxu1 %v13790_v1  ;;  %3690 = vmatpush1.bf16.msra.mxu1 %v12956_v28 }
 0x2c6   : > { %v2658_v49 = vpack.c.bf16 %v2548_v35, %v2546_v34 }
 0x2c7   : > { %v1792_v51 = vpop.f32.mrb[36].mxu0  ;;  %v2659_v52 = vpack.c.bf16 %v2549_v42, %v2547_v44  ;;  %4413 = vmatpush1.bf16.msra.mxu0 %v12959_v47 }
 0x2c8   : > { %v2422_v53 = vadd.f32 %v14426_v60, %v1792_v51  ;;  %v1794_v56 = vpop.f32.mrb[37].mxu0 }
 0x2c9   : > { %v2423_v50 = vadd.f32 %v14429_v61, %v1794_v56  ;;  %v1796_v58 = vpop.f32.mrb[38].mxu0  ;;  %3022 = vmatprep.mubr.bf16.mxu0 %v2659_v52 }
 0x2ca   : > { %v2424_v59 = vadd.f32 %v14426_v60, %v1796_v58  ;;  %v1798_v62 = vpop.f32.mrb[39].mxu0  ;;  %3023 = vmatmul.mubr.bf16.gmra.mrb[128].mxu0 %v2658_v49  ;;  %v2550_v3 = vmax.f32 %v2422_v53, 0.0  ;;  %v13334_v49 = vld [vmem:[%s14234_s5 + $0xe8] sm:$0xff]  }
 0x2cb   : > { %v2425_v2 = vadd.f32 %v14429_v61, %v1798_v62  ;;  %v2551_v6 = vmax.f32 %v2423_v50, 0.0 }
 0x2cc   : > { %v2552_v4 = vmax.f32 %v2424_v59, 0.0  ;;  %2334 = vmatmul.mubr.bf16.gmra.mrb[144].mxu1 %v13333_v21 }
 0x2cd   : > { %v2553_v7 = vmax.f32 %v2425_v2, 0.0  ;;  %2343 = vmatprep.mubr.bf16.mxu1 %v13790_v1 }
 0x2ce   : > { %v2660_v8 = vpack.c.bf16 %v2552_v4, %v2550_v3 }
 0x2cf   : > { %v1802_v9 = vpop.f32.mrb[40].mxu0  ;;  %v2661_v11 = vpack.c.bf16 %v2553_v7, %v2551_v6 }
 0x2d0   : > { %v2426_v12 = vadd.f32 %v14426_v60, %v1802_v9  ;;  %v1804_v13 = vpop.f32.mrb[41].mxu0 }
 0x2d1   : > { %v2427_v16 = vadd.f32 %v14429_v61, %v1804_v13  ;;  %v1806_v17 = vpop.f32.mrb[42].mxu0  ;;  %3032 = vmatprep.mubr.bf16.mxu0 %v2661_v11 }
 0x2d2   : > { %v2428_v18 = vadd.f32 %v14426_v60, %v1806_v17  ;;  %v1808_v20 = vpop.f32.mrb[43].mxu0  ;;  %3033 = vmatmul.mubr.bf16.gmra.mrb[132].mxu0 %v2660_v8  ;;  %v2554_v26 = vmax.f32 %v2426_v12, 0.0  ;;  %v13335_v8 = vld [vmem:[%s14234_s5 + $0xf0] sm:$0xff]  }
 0x2d3   : > { %v2429_v22 = vadd.f32 %v14429_v61, %v1808_v20  ;;  %v2555_v29 = vmax.f32 %v2427_v16, 0.0 }
 0x2d4   : > { %v2556_v19 = vmax.f32 %v2428_v18, 0.0  ;;  %2344 = vmatmul.mubr.bf16.gmra.mrb[148].mxu1 %v13334_v49 }
 0x2d5   : > { %v2557_v30 = vmax.f32 %v2429_v22, 0.0  ;;  %2353 = vmatprep.mubr.bf16.mxu1 %v13790_v1 }
 0x2d6   : > { %v2662_v31 = vpack.c.bf16 %v2556_v19, %v2554_v26 }
 0x2d7   : > { %v1812_v32 = vpop.f32.mrb[44].mxu0  ;;  %v2663_v33 = vpack.c.bf16 %v2557_v30, %v2555_v29  ;;  %v13336_v29 = vld [vmem:[%s14234_s5 + $0xf8] sm:$0xff]   ;;  %s17117_s5 = sld [smem:[#allocation49_spill]] }
 0x2d8   : > { %v2430_v34 = vadd.f32 %v14426_v60, %v1812_v32  ;;  %v1814_v35 = vpop.f32.mrb[45].mxu0 }
 0x2d9   : > { %v2431_v36 = vadd.f32 %v14429_v61, %v1814_v35  ;;  %v1816_v38 = vpop.f32.mrb[46].mxu0  ;;  %3042 = vmatprep.mubr.bf16.mxu0 %v2663_v33 }
 0x2da   : > { %v2432_v44 = vadd.f32 %v14426_v60, %v1816_v38  ;;  %v1818_v42 = vpop.f32.mrb[47].mxu0  ;;  %3043 = vmatmul.mubr.bf16.gmra.mrb[136].mxu0 %v2662_v31  ;;  %v2558_v52 = vmax.f32 %v2430_v34, 0.0 }
 0x2db   : > { %v2433_v51 = vadd.f32 %v14429_v61, %v1818_v42  ;;  %v2559_v56 = vmax.f32 %v2431_v36, 0.0 }
 0x2dc   : > { %v2560_v53 = vmax.f32 %v2432_v44, 0.0  ;;  %2354 = vmatmul.mubr.bf16.gmra.mrb[152].mxu1 %v13335_v8  ;;  %v12964_v8 = vld [vmem:[#allocation11 + $0x34] ss:$8 sps:$4 sm:$0xff]  }
 0x2dd   : > { %v2561_v50 = vmax.f32 %v2433_v51, 0.0  ;;  %2363 = vmatprep.mubr.bf16.mxu1 %v13790_v1  ;;  %4414 = vmatprep.subr.bf16.mxu0 %v12964_v8 }
 0x2de   : > { %v2664_v58 = vpack.c.bf16 %v2560_v53, %v2558_v52 }
 0x2df   : > { %v1822_v59 = vpop.f32.mrb[48].mxu0  ;;  %v2665_v62 = vpack.c.bf16 %v2561_v50, %v2559_v56 }
 0x2e0   : > { %v2434_v63 = vadd.f32 %v14426_v60, %v1822_v59  ;;  %v1824_v2 = vpop.f32.mrb[49].mxu0 }
 0x2e1   : > { %v2435_v3 = vadd.f32 %v14429_v61, %v1824_v2  ;;  %v1826_v4 = vpop.f32.mrb[50].mxu0  ;;  %3052 = vmatprep.mubr.bf16.mxu0 %v2665_v62 }
 0x2e2   : > { %v2436_v6 = vadd.f32 %v14426_v60, %v1826_v4  ;;  %v1828_v7 = vpop.f32.mrb[51].mxu0  ;;  %3053 = vmatmul.mubr.bf16.gmra.mrb[140].mxu0 %v2664_v58  ;;  %v2562_v11 = vmax.f32 %v2434_v63, 0.0 }
 0x2e3   : > { %v2437_v9 = vadd.f32 %v14429_v61, %v1828_v7  ;;  %v2563_v13 = vmax.f32 %v2435_v3, 0.0  ;;  %v12962_v7 = vld [vmem:[#allocation11 + $0x30] ss:$8 sps:$4 sm:$0xff]  }
 0x2e4   : > { %v2564_v12 = vmax.f32 %v2436_v6, 0.0  ;;  %2364 = vmatmul.mubr.bf16.gmra.mrb[156].mxu1 %v13336_v29  ;;  %4415 = vmatpush1.bf16.msra.mxu0 %v12962_v7 }
 0x2e5   : > { %v2565_v16 = vmax.f32 %v2437_v9, 0.0 }
 0x2e6   : > { %v2666_v17 = vpack.c.bf16 %v2564_v12, %v2562_v11 }
 0x2e7   : > { %v1832_v18 = vpop.f32.mrb[52].mxu0  ;;  %v2667_v20 = vpack.c.bf16 %v2565_v16, %v2563_v13 }
 0x2e8   : > { %v2438_v21 = vadd.f32 %v14426_v60, %v1832_v18  ;;  %v1834_v22 = vpop.f32.mrb[53].mxu0 }
 0x2e9   : > { %v2439_v26 = vadd.f32 %v14429_v61, %v1834_v22  ;;  %v1836_v19 = vpop.f32.mrb[54].mxu0  ;;  %3062 = vmatprep.mubr.bf16.mxu0 %v2667_v20 }
 0x2ea   : > { %v2440_v28 = vadd.f32 %v14426_v60, %v1836_v19  ;;  %v1838_v23 = vpop.f32.mrb[55].mxu0  ;;  %3063 = vmatmul.mubr.bf16.gmra.mrb[144].mxu0 %v2666_v17  ;;  %v2566_v31 = vmax.f32 %v2438_v21, 0.0 }
 0x2eb   : > { %v2441_v30 = vadd.f32 %v14429_v61, %v1838_v23  ;;  %v2567_v33 = vmax.f32 %v2439_v26, 0.0 }
 0x2ec   : > { %v2568_v32 = vmax.f32 %v2440_v28, 0.0 }
 0x2ed   : > { %v2569_v34 = vmax.f32 %v2441_v30, 0.0 }
 0x2ee   : > { %v2668_v35 = vpack.c.bf16 %v2568_v32, %v2566_v31 }
 0x2ef   : > { %v1842_v36 = vpop.f32.mrb[56].mxu0  ;;  %v2669_v38 = vpack.c.bf16 %v2569_v34, %v2567_v33 }
 0x2f0   : > { %v2442_v44 = vadd.f32 %v14426_v60, %v1842_v36  ;;  %v1844_v42 = vpop.f32.mrb[57].mxu0 }
 0x2f1   : > { %v2443_v49 = vadd.f32 %v14429_v61, %v1844_v42  ;;  %v1846_v51 = vpop.f32.mrb[58].mxu0  ;;  %3072 = vmatprep.mubr.bf16.mxu0 %v2669_v38 }
 0x2f2   : > { %v2444_v52 = vadd.f32 %v14426_v60, %v1846_v51  ;;  %v1848_v53 = vpop.f32.mrb[59].mxu0  ;;  %3073 = vmatmul.mubr.bf16.gmra.mrb[148].mxu0 %v2668_v35  ;;  %v2570_v50 = vmax.f32 %v2442_v44, 0.0  ;;  %v12965_v51 = vld [vmem:[#allocation11 + $0x40] ss:$8 sps:$4 sm:$0xff]  }
 0x2f3   : > { %v2445_v56 = vadd.f32 %v14429_v61, %v1848_v53  ;;  %v2571_v59 = vmax.f32 %v2443_v49, 0.0 }
 0x2f4   : > { %v2572_v58 = vmax.f32 %v2444_v52, 0.0  ;;  %v12967_v52 = vld [vmem:[#allocation11 + $0x44] ss:$8 sps:$4 sm:$0xff]  }
 0x2f5   : > { %v2573_v62 = vmax.f32 %v2445_v56, 0.0  ;;  %4416 = vmatprep.subr.bf16.mxu0 %v12967_v52 }
 0x2f6   : > { %v2670_v63 = vpack.c.bf16 %v2572_v58, %v2570_v50  ;;  %4417 = vmatpush1.bf16.msra.mxu0 %v12965_v51 }
 0x2f7   : > { %v1852_v2 = vpop.f32.mrb[60].mxu0  ;;  %v2671_v3 = vpack.c.bf16 %v2573_v62, %v2571_v59 }
 0x2f8   : > { %v2446_v4 = vadd.f32 %v14426_v60, %v1852_v2  ;;  %v1854_v6 = vpop.f32.mrb[61].mxu0 }
 0x2f9   : > { %v2447_v9 = vadd.f32 %v14429_v61, %v1854_v6  ;;  %v1856_v11 = vpop.f32.mrb[62].mxu0  ;;  %3082 = vmatprep.mubr.bf16.mxu0 %v2671_v3 }
 0x2fa   : > { %v2448_v12 = vadd.f32 %v14426_v60, %v1856_v11  ;;  %v1858_v13 = vpop.f32.mrb[63].mxu0  ;;  %3083 = vmatmul.mubr.bf16.gmra.mrb[152].mxu0 %v2670_v63  ;;  %v2574_v17 = vmax.f32 %v2446_v4, 0.0 }
 0x2fb   : > { %v2449_v16 = vadd.f32 %v14429_v61, %v1858_v13  ;;  %v2575_v20 = vmax.f32 %v2447_v9, 0.0 }
 0x2fc   : > { %v2576_v18 = vmax.f32 %v2448_v12, 0.0 }
 0x2fd   : > { %v2577_v21 = vmax.f32 %v2449_v16, 0.0 }
 0x2fe   : > { %v2672_v22 = vpack.c.bf16 %v2576_v18, %v2574_v17 }
 0x2ff   : > { %v1862_v47 = vpop.f32.mrb[64].mxu0  ;;  %v2673_v25 = vpack.c.bf16 %v2577_v21, %v2575_v20 }
 0x300   : > { %v2450_v26 = vadd.f32 %v14426_v60, %v1862_v47  ;;  %v1864_v19 = vpop.f32.mrb[65].mxu0 }
 0x301   : > { %v2451_v28 = vadd.f32 %v14429_v61, %v1864_v19  ;;  %v1866_v23 = vpop.f32.mrb[66].mxu0  ;;  %3092 = vmatprep.mubr.bf16.mxu0 %v2673_v25 }
 0x302   : > { %v2452_v29 = vadd.f32 %v14426_v60, %v1866_v23  ;;  %v1868_v30 = vpop.f32.mrb[67].mxu0  ;;  %3093 = vmatmul.mubr.bf16.gmra.mrb[156].mxu0 %v2672_v22  ;;  %v2578_v32 = vmax.f32 %v2450_v26, 0.0  ;;  %v12968_v23 = vld [vmem:[#allocation11 + $0x50] ss:$8 sps:$4 sm:$0xff]  }
 0x303   : > { %v2453_v31 = vadd.f32 %v14429_v61, %v1868_v30  ;;  %v2579_v34 = vmax.f32 %v2451_v28, 0.0 }
 0x304   : > { %v2580_v33 = vmax.f32 %v2452_v29, 0.0  ;;  %v12970_v29 = vld [vmem:[#allocation11 + $0x54] ss:$8 sps:$4 sm:$0xff]  }
 0x305   : > { %v2581_v35 = vmax.f32 %v2453_v31, 0.0  ;;  %4418 = vmatprep.subr.bf16.mxu0 %v12970_v29 }
 0x306   : > { %v2674_v36 = vpack.c.bf16 %v2580_v33, %v2578_v32  ;;  %4419 = vmatpush1.bf16.msra.mxu0 %v12968_v23 }
 0x307   : > { %v1872_v38 = vpop.f32.mrb[68].mxu0  ;;  %v2675_v44 = vpack.c.bf16 %v2581_v35, %v2579_v34 }
 0x308   : > { %v2454_v42 = vadd.f32 %v14426_v60, %v1872_v38  ;;  %v1874_v49 = vpop.f32.mrb[69].mxu0 }
 0x309   : > { %v2455_v53 = vadd.f32 %v14429_v61, %v1874_v49  ;;  %v1876_v56 = vpop.f32.mrb[70].mxu0  ;;  %3102 = vmatprep.mubr.bf16.mxu0 %v2675_v44 }
 0x30a   : > { %v2456_v50 = vadd.f32 %v14426_v60, %v1876_v56  ;;  %v1878_v58 = vpop.f32.mrb[71].mxu0  ;;  %3103 = vmatmul.mubr.bf16.gmra.mrb[160].mxu0 %v2674_v36  ;;  %v2582_v62 = vmax.f32 %v2454_v42, 0.0 }
 0x30b   : > { %v2457_v59 = vadd.f32 %v14429_v61, %v1878_v58  ;;  %v2583_v2 = vmax.f32 %v2455_v53, 0.0 }
 0x30c   : > { %v2584_v63 = vmax.f32 %v2456_v50, 0.0 }
 0x30d   : > { %v2585_v3 = vmax.f32 %v2457_v59, 0.0 }
 0x30e   : > { %v2676_v4 = vpack.c.bf16 %v2584_v63, %v2582_v62 }
 0x30f   : > { %v1882_v6 = vpop.f32.mrb[72].mxu0  ;;  %v2677_v7 = vpack.c.bf16 %v2585_v3, %v2583_v2 }
 0x310   : > { %v2458_v8 = vadd.f32 %v14426_v60, %v1882_v6  ;;  %v1884_v9 = vpop.f32.mrb[73].mxu0 }
 0x311   : > { %v2459_v11 = vadd.f32 %v14429_v61, %v1884_v9  ;;  %v1886_v12 = vpop.f32.mrb[74].mxu0  ;;  %3112 = vmatprep.mubr.bf16.mxu0 %v2677_v7 }
 0x312   : > { %v2460_v13 = vadd.f32 %v14426_v60, %v1886_v12  ;;  %v1888_v16 = vpop.f32.mrb[75].mxu0  ;;  %3113 = vmatmul.mubr.bf16.gmra.mrb[164].mxu0 %v2676_v4  ;;  %v2586_v18 = vmax.f32 %v2458_v8, 0.0  ;;  %v12971_v12 = vld [vmem:[#allocation11 + $0x60] ss:$8 sps:$4 sm:$0xff]  }
 0x313   : > { %v2461_v17 = vadd.f32 %v14429_v61, %v1888_v16  ;;  %v2587_v21 = vmax.f32 %v2459_v11, 0.0 }
 0x314   : > { %v2588_v20 = vmax.f32 %v2460_v13, 0.0  ;;  %v12973_v13 = vld [vmem:[#allocation11 + $0x64] ss:$8 sps:$4 sm:$0xff]  }
 0x315   : > { %v2589_v22 = vmax.f32 %v2461_v17, 0.0  ;;  %4420 = vmatprep.subr.bf16.mxu0 %v12973_v13  ;;  %v12979_v13 = vld [vmem:[#allocation11 + $0x84] ss:$8 sps:$4 sm:$0xff]  }
 0x316   : > { %v2678_v47 = vpack.c.bf16 %v2588_v20, %v2586_v18  ;;  %4421 = vmatpush1.bf16.msra.mxu0 %v12971_v12  ;;  %v12977_v12 = vld [vmem:[#allocation11 + $0x80] ss:$8 sps:$4 sm:$0xff]  }
 0x317   : > { %v1892_v25 = vpop.f32.mrb[76].mxu0  ;;  %v2679_v26 = vpack.c.bf16 %v2589_v22, %v2587_v21 }
 0x318   : > { %v2462_v19 = vadd.f32 %v14426_v60, %v1892_v25  ;;  %v1894_v28 = vpop.f32.mrb[77].mxu0 }
 0x319   : > { %v2463_v30 = vadd.f32 %v14429_v61, %v1894_v28  ;;  %v1896_v31 = vpop.f32.mrb[78].mxu0  ;;  %3122 = vmatprep.mubr.bf16.mxu0 %v2679_v26 }
 0x31a   : > { %v2464_v32 = vadd.f32 %v14426_v60, %v1896_v31  ;;  %v1898_v33 = vpop.f32.mrb[79].mxu0  ;;  %3123 = vmatmul.mubr.bf16.gmra.mrb[168].mxu0 %v2678_v47  ;;  %v2590_v35 = vmax.f32 %v2462_v19, 0.0 }
 0x31b   : > { %v2465_v34 = vadd.f32 %v14429_v61, %v1898_v33  ;;  %v2591_v38 = vmax.f32 %v2463_v30, 0.0 }
 0x31c   : > { %v2592_v36 = vmax.f32 %v2464_v32, 0.0 }
 0x31d   : > { %v2593_v44 = vmax.f32 %v2465_v34, 0.0 }
 0x31e   : > { %v2680_v42 = vpack.c.bf16 %v2592_v36, %v2590_v35 }
 0x31f   : > { %v1902_v49 = vpop.f32.mrb[80].mxu0  ;;  %v2681_v51 = vpack.c.bf16 %v2593_v44, %v2591_v38 }
 0x320   : > { %v2466_v52 = vadd.f32 %v14426_v60, %v1902_v49  ;;  %v1904_v53 = vpop.f32.mrb[81].mxu0 }
 0x321   : > { %v2467_v56 = vadd.f32 %v14429_v61, %v1904_v53  ;;  %v1906_v50 = vpop.f32.mrb[82].mxu0  ;;  %3132 = vmatprep.mubr.bf16.mxu0 %v2681_v51 }
 0x322   : > { %v2468_v58 = vadd.f32 %v14426_v60, %v1906_v50  ;;  %v1908_v59 = vpop.f32.mrb[83].mxu0  ;;  %3133 = vmatmul.mubr.bf16.gmra.mrb[172].mxu0 %v2680_v42  ;;  %v2594_v63 = vmax.f32 %v2466_v52, 0.0  ;;  %v12974_v50 = vld [vmem:[#allocation11 + $0x70] ss:$8 sps:$4 sm:$0xff]  }
 0x323   : > { %v2469_v62 = vadd.f32 %v14429_v61, %v1908_v59  ;;  %v2595_v3 = vmax.f32 %v2467_v56, 0.0 }
 0x324   : > { %v2596_v2 = vmax.f32 %v2468_v58, 0.0  ;;  %v12976_v58 = vld [vmem:[#allocation11 + $0x74] ss:$8 sps:$4 sm:$0xff]  }
 0x325   : > { %v2597_v4 = vmax.f32 %v2469_v62, 0.0  ;;  %4422 = vmatprep.subr.bf16.mxu0 %v12976_v58 }
 0x326   : > { %v2682_v6 = vpack.c.bf16 %v2596_v2, %v2594_v63  ;;  %4423 = vmatpush1.bf16.msra.mxu0 %v12974_v50 }
 0x327   : > { %v1912_v7 = vpop.f32.mrb[84].mxu0  ;;  %v2683_v8 = vpack.c.bf16 %v2597_v4, %v2595_v3  ;;  %4424 = vmatprep.subr.bf16.mxu0 %v12979_v13 }
 0x328   : > { %v2470_v9 = vadd.f32 %v14426_v60, %v1912_v7  ;;  %v1914_v11 = vpop.f32.mrb[85].mxu0 }
 0x329   : > { %v2471_v16 = vadd.f32 %v14429_v61, %v1914_v11  ;;  %v1916_v17 = vpop.f32.mrb[86].mxu0  ;;  %3142 = vmatprep.mubr.bf16.mxu0 %v2683_v8 }
 0x32a   : > { %v2472_v18 = vadd.f32 %v14426_v60, %v1916_v17  ;;  %v1918_v20 = vpop.f32.mrb[87].mxu0  ;;  %3143 = vmatmul.mubr.bf16.gmra.mrb[176].mxu0 %v2682_v6  ;;  %v2598_v22 = vmax.f32 %v2470_v9, 0.0 }
 0x32b   : > { %v2473_v21 = vadd.f32 %v14429_v61, %v1918_v20  ;;  %v2599_v25 = vmax.f32 %v2471_v16, 0.0  ;;  %4425 = vmatpush1.bf16.msra.mxu0 %v12977_v12  ;;  %v12982_v16 = vld [vmem:[#allocation11 + $0x94] ss:$8 sps:$4 sm:$0xff]  }
 0x32c   : > { %v2600_v47 = vmax.f32 %v2472_v18, 0.0  ;;  %4426 = vmatprep.subr.bf16.mxu0 %v12982_v16 }
 0x32d   : > { %v2601_v26 = vmax.f32 %v2473_v21, 0.0 }
 0x32e   : > { %v2684_v19 = vpack.c.bf16 %v2600_v47, %v2598_v22 }
 0x32f   : > { %v1922_v28 = vpop.f32.mrb[88].mxu0  ;;  %v2685_v23 = vpack.c.bf16 %v2601_v26, %v2599_v25 }
 0x330   : > { %v2474_v29 = vadd.f32 %v14426_v60, %v1922_v28  ;;  %v1924_v30 = vpop.f32.mrb[89].mxu0 }
 0x331   : > { %v2475_v31 = vadd.f32 %v14429_v61, %v1924_v30  ;;  %v1926_v32 = vpop.f32.mrb[90].mxu0  ;;  %3152 = vmatprep.mubr.bf16.mxu0 %v2685_v23 }
 0x332   : > { %v2476_v33 = vadd.f32 %v14426_v60, %v1926_v32  ;;  %v1928_v34 = vpop.f32.mrb[91].mxu0  ;;  %3153 = vmatmul.mubr.bf16.gmra.mrb[180].mxu0 %v2684_v19  ;;  %v2602_v36 = vmax.f32 %v2474_v29, 0.0 }
 0x333   : > { %v2477_v35 = vadd.f32 %v14429_v61, %v1928_v34  ;;  %v2603_v44 = vmax.f32 %v2475_v31, 0.0  ;;  %v12983_v34 = vld [vmem:[#allocation11 + $0xa0] ss:$8 sps:$4 sm:$0xff]  }
 0x334   : > { %v2604_v38 = vmax.f32 %v2476_v33, 0.0 }
 0x335   : > { %v2605_v42 = vmax.f32 %v2477_v35, 0.0 }
 0x336   : > { %v2686_v49 = vpack.c.bf16 %v2604_v38, %v2602_v36 }
 0x337   : > { %v1932_v51 = vpop.f32.mrb[92].mxu0  ;;  %v2687_v52 = vpack.c.bf16 %v2605_v42, %v2603_v44 }
 0x338   : > { %v2478_v53 = vadd.f32 %v14426_v60, %v1932_v51  ;;  %v1934_v56 = vpop.f32.mrb[93].mxu0 }
 0x339   : > { %v2479_v59 = vadd.f32 %v14429_v61, %v1934_v56  ;;  %v1936_v62 = vpop.f32.mrb[94].mxu0  ;;  %3162 = vmatprep.mubr.bf16.mxu0 %v2687_v52 }
 0x33a   : > { %v2480_v63 = vadd.f32 %v14426_v60, %v1936_v62  ;;  %v1938_v2 = vpop.f32.mrb[95].mxu0  ;;  %3163 = vmatmul.mubr.bf16.gmra.mrb[184].mxu0 %v2686_v49  ;;  %v2606_v4 = vmax.f32 %v2478_v53, 0.0  ;;  %v2738_v60 = vld [vmem:[%s17091_s26] sm:$0x3] }
 0x33b   : > { %v2481_v3 = vadd.f32 %v14429_v61, %v1938_v2  ;;  %v2607_v7 = vmax.f32 %v2479_v59, 0.0  ;;  %v12980_v61 = vld [vmem:[#allocation11 + $0x90] ss:$8 sps:$4 sm:$0xff]   ;;  %v14626_v17 = vrot.slane %v2738_v60, %v14419_v55 }
 0x33c   : > { %v2608_v6 = vmax.f32 %v2480_v63, 0.0  ;;  %4427 = vmatpush1.bf16.msra.mxu0 %v12980_v61 }
 0x33d   : > { %v2609_v8 = vmax.f32 %v2481_v3, 0.0 }
 0x33e   : > { %v2688_v9 = vpack.c.bf16 %v2608_v6, %v2606_v4 }
 0x33f   : > { %v2689_v11 = vpack.c.bf16 %v2609_v8, %v2607_v7 }
 0x341   : > { %3172 = vmatprep.mubr.bf16.mxu0 %v2689_v11 }
 0x342   : > { %3173 = vmatmul.mubr.bf16.gmra.mrb[188].mxu0 %v2688_v9 }
 0x343   : > { %3182 = vmatprep.mubr.bf16.mxu0 %v14449_v41 }
 0x34a   : > { %3183 = vmatmul.mubr.bf16.gmra.mrb[192].mxu0 %v14447_v37  ;;  %v14630_v37 = vrot.slane %v2738_v60, %v14422_v57  ;;  %v12986_v60 = vld [vmem:[#allocation11 + $0xb0] ss:$8 sps:$4 sm:$0xff]  }
 0x34b   : > { %3192 = vmatprep.mubr.bf16.mxu0 %v14463_v14 }
 0x352   : > { %3193 = vmatmul.mubr.bf16.gmra.mrb[196].mxu0 %v14461_v10 }
 0x353   : > { %3202 = vmatprep.mubr.bf16.mxu0 %v14477_v48 }
 0x35a   : > { %3203 = vmatmul.mubr.bf16.gmra.mrb[200].mxu0 %v14475_v40 }
 0x35b   : > { %3212 = vmatprep.mubr.bf16.mxu0 %v14491_v43 }
 0x35d   : > { %v2944_v41 = vpop.f32.mrb[96].mxu0 }
 0x35e   : > { %v2945_v10 = vadd.f32 %v2944_v41, %v14626_v17  ;;  %v2946_v14 = vpop.f32.mrb[97].mxu0 }
 0x35f   : > { %v2947_v48 = vadd.f32 %v2946_v14, %v14630_v37  ;;  %v2948_v18 = vpop.f32.mrb[98].mxu0 }
 0x360   : > { %v2949_v20 = vadd.f32 %v2948_v18, %v14626_v17  ;;  %v2950_v40 = vpop.f32.mrb[99].mxu0  ;;  %v3263_v22 = vmax.f32 %v2945_v10, 0.0 }
 0x361   : > { %v2951_v21 = vadd.f32 %v2950_v40, %v14630_v37  ;;  %v3264_v43 = vmax.f32 %v2947_v48, 0.0 }
 0x362   : > { %v3265_v47 = vmax.f32 %v2949_v20, 0.0  ;;  %3213 = vmatmul.mubr.bf16.gmra.mrb[204].mxu0 %v14489_v15  ;;  %v12985_v15 = vld [vmem:[#allocation11 + $0xa4] ss:$8 sps:$4 sm:$0xff]  }
 0x363   : > { %v3266_v25 = vmax.f32 %v2951_v21, 0.0  ;;  %3222 = vmatprep.mubr.bf16.mxu0 %v14505_v54  ;;  %4428 = vmatprep.subr.bf16.mxu0 %v12985_v15 }
 0x364   : > { %v3391_v26 = vpack.c.bf16 %v3265_v47, %v3263_v22  ;;  %4429 = vmatpush1.bf16.msra.mxu0 %v12983_v34 }
 0x365   : > { %v2954_v19 = vpop.f32.mrb[100].mxu0  ;;  %v3392_v28 = vpack.c.bf16 %v3266_v25, %v3264_v43 }
 0x366   : > { %v2955_v23 = vadd.f32 %v2954_v19, %v14626_v17  ;;  %v2956_v29 = vpop.f32.mrb[101].mxu0 }
 0x367   : > { %v2957_v30 = vadd.f32 %v2956_v29, %v14630_v37  ;;  %v2958_v31 = vpop.f32.mrb[102].mxu0  ;;  %3691 = vmatprep.mubr.bf16.mxu1 %v3392_v28 }
 0x368   : > { %v2959_v32 = vadd.f32 %v2958_v31, %v14626_v17  ;;  %v2960_v33 = vpop.f32.mrb[103].mxu0  ;;  %3692 = vmatmul.mubr.bf16.vlgmr.msra.gmra.mrb[160].mxu1 %v3391_v26  ;;  %v3267_v36 = vmax.f32 %v2955_v23, 0.0 }
 0x369   : > { %v2961_v35 = vadd.f32 %v2960_v33, %v14630_v37  ;;  %v3268_v38 = vmax.f32 %v2957_v30, 0.0 }
 0x36a   : > { %v3269_v54 = vmax.f32 %v2959_v32, 0.0  ;;  %3223 = vmatmul.mubr.bf16.gmra.mrb[208].mxu0 %v14503_v46 }
 0x36b   : > { %v3270_v44 = vmax.f32 %v2961_v35, 0.0  ;;  %3232 = vmatprep.mubr.bf16.mxu0 %v14519_v27  ;;  %v12989_v35 = vld [vmem:[#allocation11 + $0xc0] ss:$8 sps:$4 sm:$0xff]  }
 0x36c   : > { %v3393_v42 = vpack.c.bf16 %v3269_v54, %v3267_v36  ;;  %v12991_v36 = vld [vmem:[#allocation11 + $0xc4] ss:$8 sps:$4 sm:$0xff]  }
 0x36d   : > { %v2964_v49 = vpop.f32.mrb[104].mxu0  ;;  %v3394_v51 = vpack.c.bf16 %v3270_v44, %v3268_v38 }
 0x36e   : > { %v2965_v52 = vadd.f32 %v2964_v49, %v14626_v17  ;;  %v2966_v53 = vpop.f32.mrb[105].mxu0 }
 0x36f   : > { %v2967_v56 = vadd.f32 %v2966_v53, %v14630_v37  ;;  %v2968_v50 = vpop.f32.mrb[106].mxu0  ;;  %3701 = vmatprep.mubr.bf16.mxu1 %v3394_v51 }
 0x370   : > { %v2969_v58 = vadd.f32 %v2968_v50, %v14626_v17  ;;  %v2970_v59 = vpop.f32.mrb[107].mxu0  ;;  %3702 = vmatmul.mubr.bf16.gmra.mrb[164].mxu1 %v3393_v42  ;;  %v3271_v62 = vmax.f32 %v2965_v52, 0.0 }
 0x371   : > { %v2971_v46 = vadd.f32 %v2970_v59, %v14630_v37  ;;  %v3272_v27 = vmax.f32 %v2967_v56, 0.0 }
 0x372   : > { %v3273_v63 = vmax.f32 %v2969_v58, 0.0  ;;  %3233 = vmatmul.mubr.bf16.gmra.mrb[212].mxu0 %v14517_v24  ;;  %v12988_v24 = vld [vmem:[#allocation11 + $0xb4] ss:$8 sps:$4 sm:$0xff]  }
 0x373   : > { %v3274_v2 = vmax.f32 %v2971_v46, 0.0  ;;  %3242 = vmatprep.mubr.bf16.mxu0 %v14533_v5  ;;  %4430 = vmatprep.subr.bf16.mxu0 %v12988_v24  ;;  %v12992_v24 = vld [vmem:[#allocation11 + $0xd0] ss:$8 sps:$4 sm:$0xff]  }
 0x374   : > { %v3395_v3 = vpack.c.bf16 %v3273_v63, %v3271_v62  ;;  %4431 = vmatpush1.bf16.msra.mxu0 %v12986_v60 }
 0x375   : > { %v2974_v4 = vpop.f32.mrb[108].mxu0  ;;  %v3396_v6 = vpack.c.bf16 %v3274_v2, %v3272_v27  ;;  %4432 = vmatprep.subr.bf16.mxu0 %v12991_v36 }
 0x376   : > { %v2975_v7 = vadd.f32 %v2974_v4, %v14626_v17  ;;  %v2976_v8 = vpop.f32.mrb[109].mxu0 }
 0x377   : > { %v2977_v9 = vadd.f32 %v2976_v8, %v14630_v37  ;;  %v2978_v11 = vpop.f32.mrb[110].mxu0  ;;  %3711 = vmatprep.mubr.bf16.mxu1 %v3396_v6 }
 0x378   : > { %v2979_v12 = vadd.f32 %v2978_v11, %v14626_v17  ;;  %v2980_v13 = vpop.f32.mrb[111].mxu0  ;;  %3712 = vmatmul.mubr.bf16.gmra.mrb[168].mxu1 %v3395_v3  ;;  %v3275_v16 = vmax.f32 %v2975_v7, 0.0  ;;  %4433 = vmatpush1.bf16.msra.mxu0 %v12989_v35 }
 0x379   : > { %v2981_v61 = vadd.f32 %v2980_v13, %v14630_v37  ;;  %v3276_v41 = vmax.f32 %v2977_v9, 0.0 }
 0x37a   : > { %v3277_v5 = vmax.f32 %v2979_v12, 0.0  ;;  %3243 = vmatmul.mubr.bf16.gmra.mrb[216].mxu0 %v14531_v0 }
 0x37b   : > { %v3278_v10 = vmax.f32 %v2981_v61, 0.0  ;;  %3252 = vmatprep.mubr.bf16.mxu0 %v14547_v45  ;;  %v12994_v61 = vld [vmem:[#allocation11 + $0xd4] ss:$8 sps:$4 sm:$0xff]  }
 0x37c   : > { %v3397_v14 = vpack.c.bf16 %v3277_v5, %v3275_v16  ;;  %4434 = vmatprep.subr.bf16.mxu0 %v12994_v61 }
 0x37d   : > { %v2984_v48 = vpop.f32.mrb[112].mxu0  ;;  %v3398_v18 = vpack.c.bf16 %v3278_v10, %v3276_v41  ;;  %4435 = vmatpush1.bf16.msra.mxu0 %v12992_v24 }
 0x37e   : > { %v2985_v20 = vadd.f32 %v2984_v48, %v14626_v17  ;;  %v2986_v40 = vpop.f32.mrb[113].mxu0 }
 0x37f   : > { %v2987_v21 = vadd.f32 %v2986_v40, %v14630_v37  ;;  %v2988_v22 = vpop.f32.mrb[114].mxu0  ;;  %3721 = vmatprep.mubr.bf16.mxu1 %v3398_v18 }
 0x380   : > { %v2989_v47 = vadd.f32 %v2988_v22, %v14626_v17  ;;  %v2990_v43 = vpop.f32.mrb[115].mxu0  ;;  %3722 = vmatmul.mubr.bf16.gmra.mrb[172].mxu1 %v3397_v14  ;;  %v3279_v25 = vmax.f32 %v2985_v20, 0.0 }
 0x381   : > { %v2991_v0 = vadd.f32 %v2990_v43, %v14630_v37  ;;  %v3280_v45 = vmax.f32 %v2987_v21, 0.0 }
 0x382   : > { %v3281_v26 = vmax.f32 %v2989_v47, 0.0  ;;  %3253 = vmatmul.mubr.bf16.gmra.mrb[220].mxu0 %v14545_v39 }
 0x383   : > { %v3282_v19 = vmax.f32 %v2991_v0, 0.0 }
 0x384   : > { %v3399_v28 = vpack.c.bf16 %v3281_v26, %v3279_v25 }
 0x385   : > { %v2994_v23 = vpop.f32.mrb[116].mxu0  ;;  %v3400_v29 = vpack.c.bf16 %v3282_v19, %v3280_v45 }
 0x386   : > { %v2995_v30 = vadd.f32 %v2994_v23, %v14626_v17  ;;  %v2996_v31 = vpop.f32.mrb[117].mxu0 }
 0x387   : > { %v2997_v32 = vadd.f32 %v2996_v31, %v14630_v37  ;;  %v2998_v33 = vpop.f32.mrb[118].mxu0  ;;  %3731 = vmatprep.mubr.bf16.mxu1 %v3400_v29  ;;  %v12995_v29 = vld [vmem:[#allocation13] ss:$8 sps:$4 sm:$0xff]  }
 0x388   : > { %v2999_v34 = vadd.f32 %v2998_v33, %v14626_v17  ;;  %v3000_v15 = vpop.f32.mrb[119].mxu0  ;;  %3732 = vmatmul.mubr.bf16.gmra.mrb[176].mxu1 %v3399_v28  ;;  %v3283_v54 = vmax.f32 %v2995_v30, 0.0  ;;  %v12997_v30 = vld [vmem:[#allocation13 + $0x4] ss:$8 sps:$4 sm:$0xff]  }
 0x389   : > { %v3001_v39 = vadd.f32 %v3000_v15, %v14630_v37  ;;  %v3284_v44 = vmax.f32 %v2997_v32, 0.0  ;;  %5145 = vmatprep.subr.bf16.mxu1 %v12997_v30 }
 0x38a   : > { %v3285_v38 = vmax.f32 %v2999_v34, 0.0  ;;  %5146 = vmatpush1.bf16.msra.mxu1 %v12995_v29 }
 0x38b   : > { %v3286_v42 = vmax.f32 %v3001_v39, 0.0 }
 0x38c   : > { %v3401_v49 = vpack.c.bf16 %v3285_v38, %v3283_v54  ;;  %v12998_v54 = vld [vmem:[#allocation11 + $0xe0] ss:$8 sps:$4 sm:$0xff]   ;;  %v13000_v38 = vld [vmem:[#allocation11 + $0xe4] ss:$8 sps:$4 sm:$0xff]  }
 0x38d   : > { %v3004_v51 = vpop.f32.mrb[120].mxu0  ;;  %v3402_v52 = vpack.c.bf16 %v3286_v42, %v3284_v44  ;;  %4436 = vmatprep.subr.bf16.mxu0 %v13000_v38 }
 0x38e   : > { %v3005_v53 = vadd.f32 %v3004_v51, %v14626_v17  ;;  %v3006_v56 = vpop.f32.mrb[121].mxu0  ;;  %4437 = vmatpush1.bf16.msra.mxu0 %v12998_v54  ;;  %v13009_v54 = vld [vmem:[#allocation13 + $0x24] ss:$8 sps:$4 sm:$0xff]  }
 0x38f   : > { %v3007_v50 = vadd.f32 %v3006_v56, %v14630_v37  ;;  %v3008_v58 = vpop.f32.mrb[122].mxu0  ;;  %3741 = vmatprep.mubr.bf16.mxu1 %v3402_v52 }
 0x390   : > { %v3009_v59 = vadd.f32 %v3008_v58, %v14626_v17  ;;  %v3010_v46 = vpop.f32.mrb[123].mxu0  ;;  %3742 = vmatmul.mubr.bf16.gmra.mrb[180].mxu1 %v3401_v49  ;;  %v3287_v63 = vmax.f32 %v3005_v53, 0.0 }
 0x391   : > { %v3011_v62 = vadd.f32 %v3010_v46, %v14630_v37  ;;  %v3288_v2 = vmax.f32 %v3007_v50, 0.0 }
 0x392   : > { %v3289_v27 = vmax.f32 %v3009_v59, 0.0 }
 0x393   : > { %v3290_v3 = vmax.f32 %v3011_v62, 0.0 }
 0x394   : > { %v3403_v4 = vpack.c.bf16 %v3289_v27, %v3287_v63 }
 0x395   : > { %v3014_v6 = vpop.f32.mrb[124].mxu0  ;;  %v3404_v7 = vpack.c.bf16 %v3290_v3, %v3288_v2 }
 0x396   : > { %v3015_v8 = vadd.f32 %v3014_v6, %v14626_v17  ;;  %v3016_v9 = vpop.f32.mrb[125].mxu0 }
 0x397   : > { %v3017_v11 = vadd.f32 %v3016_v9, %v14630_v37  ;;  %v3018_v12 = vpop.f32.mrb[126].mxu0  ;;  %3751 = vmatprep.mubr.bf16.mxu1 %v3404_v7  ;;  %v13001_v9 = vld [vmem:[#allocation13 + $0x10] ss:$8 sps:$4 sm:$0xff]  }
 0x398   : > { %v3019_v13 = vadd.f32 %v3018_v12, %v14626_v17  ;;  %v3020_v60 = vpop.f32.mrb[127].mxu0  ;;  %3752 = vmatmul.mubr.bf16.gmra.mrb[184].mxu1 %v3403_v4  ;;  %v3291_v5 = vmax.f32 %v3015_v8, 0.0 }
 0x399   : > { %v3021_v16 = vadd.f32 %v3020_v60, %v14630_v37  ;;  %v3292_v10 = vmax.f32 %v3017_v11, 0.0  ;;  %v13003_v11 = vld [vmem:[#allocation13 + $0x14] ss:$8 sps:$4 sm:$0xff]  }
 0x39a   : > { %v3293_v41 = vmax.f32 %v3019_v13, 0.0  ;;  %5147 = vmatprep.subr.bf16.mxu1 %v13003_v11 }
 0x39b   : > { %v3294_v14 = vmax.f32 %v3021_v16, 0.0  ;;  %5148 = vmatpush1.bf16.msra.mxu1 %v13001_v9 }
 0x39c   : > { %v3405_v48 = vpack.c.bf16 %v3293_v41, %v3291_v5  ;;  %5149 = vmatprep.subr.bf16.mxu1 %v13009_v54  ;;  %v13013_v54 = vld [vmem:[#allocation13 + $0x40] ss:$8 sps:$4 sm:$0xff]  }
 0x39d   : > { %v3024_v18 = vpop.f32.mrb[128].mxu0  ;;  %v3406_v20 = vpack.c.bf16 %v3294_v14, %v3292_v10  ;;  %v13004_v10 = vld [vmem:[#allocation11 + $0xf0] ss:$8 sps:$4 sm:$0xff]   ;;  %v13006_v14 = vld [vmem:[#allocation11 + $0xf4] ss:$8 sps:$4 sm:$0xff]  }
 0x39e   : > { %v3025_v40 = vadd.f32 %v3024_v18, %v14626_v17  ;;  %v3026_v21 = vpop.f32.mrb[129].mxu0  ;;  %4438 = vmatprep.subr.bf16.mxu0 %v13006_v14 }
 0x39f   : > { %v3027_v22 = vadd.f32 %v3026_v21, %v14630_v37  ;;  %v3028_v47 = vpop.f32.mrb[130].mxu0  ;;  %3761 = vmatprep.mubr.bf16.mxu1 %v3406_v20  ;;  %4439 = vmatpush1.bf16.msra.mxu0 %v13004_v10 }
 0x3a0   : > { %v3029_v43 = vadd.f32 %v3028_v47, %v14626_v17  ;;  %v3030_v0 = vpop.f32.mrb[131].mxu0  ;;  %3762 = vmatmul.mubr.bf16.gmra.mrb[188].mxu1 %v3405_v48  ;;  %v3295_v26 = vmax.f32 %v3025_v40, 0.0 }
 0x3a1   : > { %v3031_v25 = vadd.f32 %v3030_v0, %v14630_v37  ;;  %v3296_v19 = vmax.f32 %v3027_v22, 0.0 }
 0x3a2   : > { %v3297_v45 = vmax.f32 %v3029_v43, 0.0 }
 0x3a3   : > { %v3298_v28 = vmax.f32 %v3031_v25, 0.0 }
 0x3a4   : > { %v3407_v23 = vpack.c.bf16 %v3297_v45, %v3295_v26 }
 0x3a5   : > { %v3034_v31 = vpop.f32.mrb[132].mxu0  ;;  %v3408_v32 = vpack.c.bf16 %v3298_v28, %v3296_v19 }
 0x3a6   : > { %v3035_v33 = vadd.f32 %v3034_v31, %v14626_v17  ;;  %v3036_v34 = vpop.f32.mrb[133].mxu0 }
 0x3a7   : > { %v3037_v15 = vadd.f32 %v3036_v34, %v14630_v37  ;;  %v3038_v35 = vpop.f32.mrb[134].mxu0  ;;  %3771 = vmatprep.mubr.bf16.mxu1 %v3408_v32 }
 0x3a8   : > { %v3039_v36 = vadd.f32 %v3038_v35, %v14626_v17  ;;  %v3040_v39 = vpop.f32.mrb[135].mxu0  ;;  %3772 = vmatmul.mubr.bf16.gmra.mrb[192].mxu1 %v3407_v23  ;;  %v3299_v42 = vmax.f32 %v3035_v33, 0.0 }
 0x3a9   : > { %v3041_v44 = vadd.f32 %v3040_v39, %v14630_v37  ;;  %v3300_v51 = vmax.f32 %v3037_v15, 0.0  ;;  %v13007_v39 = vld [vmem:[#allocation13 + $0x20] ss:$8 sps:$4 sm:$0xff]  }
 0x3aa   : > { %v3301_v49 = vmax.f32 %v3039_v36, 0.0  ;;  %5150 = vmatpush1.bf16.msra.mxu1 %v13007_v39 }
 0x3ab   : > { %v3302_v52 = vmax.f32 %v3041_v44, 0.0 }
 0x3ac   : > { %v3409_v53 = vpack.c.bf16 %v3301_v49, %v3299_v42 }
 0x3ad   : > { %v3044_v56 = vpop.f32.mrb[136].mxu0  ;;  %v3410_v50 = vpack.c.bf16 %v3302_v52, %v3300_v51 }
 0x3ae   : > { %v3045_v58 = vadd.f32 %v3044_v56, %v14626_v17  ;;  %v3046_v59 = vpop.f32.mrb[137].mxu0 }
 0x3af   : > { %v3047_v46 = vadd.f32 %v3046_v59, %v14630_v37  ;;  %v3048_v62 = vpop.f32.mrb[138].mxu0  ;;  %3781 = vmatprep.mubr.bf16.mxu1 %v3410_v50 }
 0x3b0   : > { %v3049_v63 = vadd.f32 %v3048_v62, %v14626_v17  ;;  %v3050_v27 = vpop.f32.mrb[139].mxu0  ;;  %3782 = vmatmul.mubr.bf16.gmra.mrb[196].mxu1 %v3409_v53  ;;  %v3303_v3 = vmax.f32 %v3045_v58, 0.0 }
 0x3b1   : > { %v3051_v2 = vadd.f32 %v3050_v27, %v14630_v37  ;;  %v3304_v6 = vmax.f32 %v3047_v46, 0.0 }
 0x3b2   : > { %v3305_v4 = vmax.f32 %v3049_v63, 0.0 }
 0x3b3   : > { %v3306_v7 = vmax.f32 %v3051_v2, 0.0 }
 0x3b4   : > { %v3411_v8 = vpack.c.bf16 %v3305_v4, %v3303_v3 }
 0x3b5   : > { %v3054_v12 = vpop.f32.mrb[140].mxu0  ;;  %v3412_v13 = vpack.c.bf16 %v3306_v7, %v3304_v6 }
 0x3b6   : > { %v3055_v60 = vadd.f32 %v3054_v12, %v14626_v17  ;;  %v3056_v24 = vpop.f32.mrb[141].mxu0 }
 0x3b7   : > { %v3057_v61 = vadd.f32 %v3056_v24, %v14630_v37  ;;  %v3058_v16 = vpop.f32.mrb[142].mxu0  ;;  %3791 = vmatprep.mubr.bf16.mxu1 %v3412_v13 }
 0x3b8   : > { %v3059_v5 = vadd.f32 %v3058_v16, %v14626_v17  ;;  %v3060_v41 = vpop.f32.mrb[143].mxu0  ;;  %3792 = vmatmul.mubr.bf16.gmra.mrb[200].mxu1 %v3411_v8  ;;  %v3307_v18 = vmax.f32 %v3055_v60, 0.0  ;;  %v13010_v16 = vld [vmem:[#allocation13 + $0x30] ss:$8 sps:$4 sm:$0xff]  }
 0x3b9   : > { %v3061_v48 = vadd.f32 %v3060_v41, %v14630_v37  ;;  %v3308_v40 = vmax.f32 %v3057_v61, 0.0 }
 0x3ba   : > { %v3309_v20 = vmax.f32 %v3059_v5, 0.0  ;;  %v13012_v5 = vld [vmem:[#allocation13 + $0x34] ss:$8 sps:$4 sm:$0xff]  }
 0x3bb   : > { %v3310_v21 = vmax.f32 %v3061_v48, 0.0  ;;  %5151 = vmatprep.subr.bf16.mxu1 %v13012_v5  ;;  %v13016_v5 = vld [vmem:[#allocation13 + $0x50] ss:$8 sps:$4 sm:$0xff]  }
 0x3bc   : > { %v3413_v22 = vpack.c.bf16 %v3309_v20, %v3307_v18  ;;  %5152 = vmatpush1.bf16.msra.mxu1 %v13010_v16 }
 0x3bd   : > { %v3064_v47 = vpop.f32.mrb[144].mxu0  ;;  %v3414_v43 = vpack.c.bf16 %v3310_v21, %v3308_v40 }
 0x3be   : > { %v3065_v0 = vadd.f32 %v3064_v47, %v14626_v17  ;;  %v3066_v25 = vpop.f32.mrb[145].mxu0 }
 0x3bf   : > { %v3067_v26 = vadd.f32 %v3066_v25, %v14630_v37  ;;  %v3068_v45 = vpop.f32.mrb[146].mxu0  ;;  %3801 = vmatprep.mubr.bf16.mxu1 %v3414_v43 }
 0x3c0   : > { %v3069_v19 = vadd.f32 %v3068_v45, %v14626_v17  ;;  %v3070_v28 = vpop.f32.mrb[147].mxu0  ;;  %3802 = vmatmul.mubr.bf16.gmra.mrb[204].mxu1 %v3413_v22  ;;  %v3311_v29 = vmax.f32 %v3065_v0, 0.0 }
 0x3c1   : > { %v3071_v23 = vadd.f32 %v3070_v28, %v14630_v37  ;;  %v3312_v31 = vmax.f32 %v3067_v26, 0.0 }
 0x3c2   : > { %v3313_v30 = vmax.f32 %v3069_v19, 0.0 }
 0x3c3   : > { %v3314_v32 = vmax.f32 %v3071_v23, 0.0 }
 0x3c4   : > { %v3415_v33 = vpack.c.bf16 %v3313_v30, %v3311_v29 }
 0x3c5   : > { %v3074_v34 = vpop.f32.mrb[148].mxu0  ;;  %v3416_v15 = vpack.c.bf16 %v3314_v32, %v3312_v31 }
 0x3c6   : > { %v3075_v35 = vadd.f32 %v3074_v34, %v14626_v17  ;;  %v3076_v36 = vpop.f32.mrb[149].mxu0 }
 0x3c7   : > { %v3077_v38 = vadd.f32 %v3076_v36, %v14630_v37  ;;  %v3078_v44 = vpop.f32.mrb[150].mxu0  ;;  %3811 = vmatprep.mubr.bf16.mxu1 %v3416_v15 }
 0x3c8   : > { %v3079_v42 = vadd.f32 %v3078_v44, %v14626_v17  ;;  %v3080_v49 = vpop.f32.mrb[151].mxu0  ;;  %3812 = vmatmul.mubr.bf16.gmra.mrb[208].mxu1 %v3415_v33  ;;  %v3315_v52 = vmax.f32 %v3075_v35, 0.0 }
 0x3c9   : > { %v3081_v51 = vadd.f32 %v3080_v49, %v14630_v37  ;;  %v3316_v56 = vmax.f32 %v3077_v38, 0.0  ;;  %v13015_v38 = vld [vmem:[#allocation13 + $0x44] ss:$8 sps:$4 sm:$0xff]  }
 0x3ca   : > { %v3317_v53 = vmax.f32 %v3079_v42, 0.0  ;;  %5153 = vmatprep.subr.bf16.mxu1 %v13015_v38  ;;  %v13019_v38 = vld [vmem:[#allocation13 + $0x60] ss:$8 sps:$4 sm:$0xff]  }
 0x3cb   : > { %v3318_v50 = vmax.f32 %v3081_v51, 0.0  ;;  %5154 = vmatpush1.bf16.msra.mxu1 %v13013_v54 }
 0x3cc   : > { %v3417_v58 = vpack.c.bf16 %v3317_v53, %v3315_v52 }
 0x3cd   : > { %v3084_v59 = vpop.f32.mrb[152].mxu0  ;;  %v3418_v46 = vpack.c.bf16 %v3318_v50, %v3316_v56 }
 0x3ce   : > { %v3085_v62 = vadd.f32 %v3084_v59, %v14626_v17  ;;  %v3086_v63 = vpop.f32.mrb[153].mxu0 }
 0x3cf   : > { %v3087_v27 = vadd.f32 %v3086_v63, %v14630_v37  ;;  %v3088_v2 = vpop.f32.mrb[154].mxu0  ;;  %3821 = vmatprep.mubr.bf16.mxu1 %v3418_v46 }
 0x3d0   : > { %v3089_v3 = vadd.f32 %v3088_v2, %v14626_v17  ;;  %v3090_v4 = vpop.f32.mrb[155].mxu0  ;;  %3822 = vmatmul.mubr.bf16.gmra.mrb[212].mxu1 %v3417_v58  ;;  %v3319_v7 = vmax.f32 %v3085_v62, 0.0 }
 0x3d1   : > { %v3091_v6 = vadd.f32 %v3090_v4, %v14630_v37  ;;  %v3320_v9 = vmax.f32 %v3087_v27, 0.0 }
 0x3d2   : > { %v3321_v8 = vmax.f32 %v3089_v3, 0.0 }
 0x3d3   : > { %v3322_v11 = vmax.f32 %v3091_v6, 0.0 }
 0x3d4   : > { %v3419_v12 = vpack.c.bf16 %v3321_v8, %v3319_v7 }
 0x3d5   : > { %v3094_v13 = vpop.f32.mrb[156].mxu0  ;;  %v3420_v60 = vpack.c.bf16 %v3322_v11, %v3320_v9 }
 0x3d6   : > { %v3095_v24 = vadd.f32 %v3094_v13, %v14626_v17  ;;  %v3096_v61 = vpop.f32.mrb[157].mxu0 }
 0x3d7   : > { %v3097_v41 = vadd.f32 %v3096_v61, %v14630_v37  ;;  %v3098_v10 = vpop.f32.mrb[158].mxu0  ;;  %3831 = vmatprep.mubr.bf16.mxu1 %v3420_v60 }
 0x3d8   : > { %v3099_v14 = vadd.f32 %v3098_v10, %v14626_v17  ;;  %v3100_v48 = vpop.f32.mrb[159].mxu0  ;;  %3832 = vmatmul.mubr.bf16.gmra.mrb[216].mxu1 %v3419_v12  ;;  %v3323_v20 = vmax.f32 %v3095_v24, 0.0 }
 0x3d9   : > { %v3101_v18 = vadd.f32 %v3100_v48, %v14630_v37  ;;  %v3324_v21 = vmax.f32 %v3097_v41, 0.0  ;;  %v13018_v41 = vld [vmem:[#allocation13 + $0x54] ss:$8 sps:$4 sm:$0xff]  }
 0x3da   : > { %v3325_v40 = vmax.f32 %v3099_v14, 0.0  ;;  %5155 = vmatprep.subr.bf16.mxu1 %v13018_v41  ;;  %v13022_v41 = vld [vmem:[#allocation13 + $0x70] ss:$8 sps:$4 sm:$0xff]  }
 0x3db   : > { %v3326_v22 = vmax.f32 %v3101_v18, 0.0  ;;  %5156 = vmatpush1.bf16.msra.mxu1 %v13016_v5 }
 0x3dc   : > { %v3421_v47 = vpack.c.bf16 %v3325_v40, %v3323_v20 }
 0x3dd   : > { %v3104_v43 = vpop.f32.mrb[160].mxu0  ;;  %v3422_v0 = vpack.c.bf16 %v3326_v22, %v3324_v21 }
 0x3de   : > { %v3105_v25 = vadd.f32 %v3104_v43, %v14626_v17  ;;  %v3106_v26 = vpop.f32.mrb[161].mxu0 }
 0x3df   : > { %v3107_v45 = vadd.f32 %v3106_v26, %v14630_v37  ;;  %v3108_v19 = vpop.f32.mrb[162].mxu0  ;;  %3841 = vmatprep.mubr.bf16.mxu1 %v3422_v0 }
 0x3e0   : > { %v3109_v28 = vadd.f32 %v3108_v19, %v14626_v17  ;;  %v3110_v23 = vpop.f32.mrb[163].mxu0  ;;  %3842 = vmatmul.mubr.bf16.gmra.mrb[220].mxu1 %v3421_v47  ;;  %v3327_v30 = vmax.f32 %v3105_v25, 0.0 }
 0x3e1   : > { %v3111_v29 = vadd.f32 %v3110_v23, %v14630_v37  ;;  %v3328_v32 = vmax.f32 %v3107_v45, 0.0 }
 0x3e2   : > { %v3329_v31 = vmax.f32 %v3109_v28, 0.0 }
 0x3e3   : > { %v3330_v33 = vmax.f32 %v3111_v29, 0.0 }
 0x3e4   : > { %v3423_v34 = vpack.c.bf16 %v3329_v31, %v3327_v30 }
 0x3e5   : > { %v3114_v15 = vpop.f32.mrb[164].mxu0  ;;  %v3424_v35 = vpack.c.bf16 %v3330_v33, %v3328_v32 }
 0x3e6   : > { %v3115_v36 = vadd.f32 %v3114_v15, %v14626_v17  ;;  %v3116_v39 = vpop.f32.mrb[165].mxu0 }
 0x3e7   : > { %v3117_v44 = vadd.f32 %v3116_v39, %v14630_v37  ;;  %v3118_v42 = vpop.f32.mrb[166].mxu0  ;;  %3851 = vmatprep.mubr.bf16.mxu1 %v3424_v35 }
 0x3e8   : > { %v3119_v49 = vadd.f32 %v3118_v42, %v14626_v17  ;;  %v3120_v51 = vpop.f32.mrb[167].mxu0  ;;  %3852 = vmatmul.mubr.bf16.gmra.mrb[224].mxu1 %v3423_v34  ;;  %v3331_v53 = vmax.f32 %v3115_v36, 0.0 }
 0x3e9   : > { %v3121_v52 = vadd.f32 %v3120_v51, %v14630_v37  ;;  %v3332_v50 = vmax.f32 %v3117_v44, 0.0  ;;  %v13021_v44 = vld [vmem:[#allocation13 + $0x64] ss:$8 sps:$4 sm:$0xff]  }
 0x3ea   : > { %v3333_v56 = vmax.f32 %v3119_v49, 0.0  ;;  %5157 = vmatprep.subr.bf16.mxu1 %v13021_v44  ;;  %v13025_v44 = vld [vmem:[#allocation13 + $0x80] ss:$8 sps:$4 sm:$0xff]  }
 0x3eb   : > { %v3334_v58 = vmax.f32 %v3121_v52, 0.0  ;;  %5158 = vmatpush1.bf16.msra.mxu1 %v13019_v38 }
 0x3ec   : > { %v3425_v59 = vpack.c.bf16 %v3333_v56, %v3331_v53 }
 0x3ed   : > { %v3124_v46 = vpop.f32.mrb[168].mxu0  ;;  %v3426_v62 = vpack.c.bf16 %v3334_v58, %v3332_v50 }
 0x3ee   : > { %v3125_v63 = vadd.f32 %v3124_v46, %v14626_v17  ;;  %v3126_v27 = vpop.f32.mrb[169].mxu0 }
 0x3ef   : > { %v3127_v2 = vadd.f32 %v3126_v27, %v14630_v37  ;;  %v3128_v3 = vpop.f32.mrb[170].mxu0  ;;  %3861 = vmatprep.mubr.bf16.mxu1 %v3426_v62 }
 0x3f0   : > { %v3129_v4 = vadd.f32 %v3128_v3, %v14626_v17  ;;  %v3130_v6 = vpop.f32.mrb[171].mxu0  ;;  %3862 = vmatmul.mubr.bf16.gmra.mrb[228].mxu1 %v3425_v59  ;;  %v3335_v8 = vmax.f32 %v3125_v63, 0.0 }
 0x3f1   : > { %v3131_v7 = vadd.f32 %v3130_v6, %v14630_v37  ;;  %v3336_v11 = vmax.f32 %v3127_v2, 0.0 }
 0x3f2   : > { %v3337_v9 = vmax.f32 %v3129_v4, 0.0 }
 0x3f3   : > { %v3338_v12 = vmax.f32 %v3131_v7, 0.0 }
 0x3f4   : > { %v3427_v13 = vpack.c.bf16 %v3337_v9, %v3335_v8 }
 0x3f5   : > { %v3134_v60 = vpop.f32.mrb[172].mxu0  ;;  %v3428_v24 = vpack.c.bf16 %v3338_v12, %v3336_v11 }
 0x3f6   : > { %v3135_v61 = vadd.f32 %v3134_v60, %v14626_v17  ;;  %v3136_v16 = vpop.f32.mrb[173].mxu0 }
 0x3f7   : > { %v3137_v10 = vadd.f32 %v3136_v16, %v14630_v37  ;;  %v3138_v14 = vpop.f32.mrb[174].mxu0  ;;  %3871 = vmatprep.mubr.bf16.mxu1 %v3428_v24 }
 0x3f8   : > { %v3139_v48 = vadd.f32 %v3138_v14, %v14626_v17  ;;  %v3140_v18 = vpop.f32.mrb[175].mxu0  ;;  %3872 = vmatmul.mubr.bf16.gmra.mrb[232].mxu1 %v3427_v13  ;;  %v3339_v40 = vmax.f32 %v3135_v61, 0.0 }
 0x3f9   : > { %v3141_v20 = vadd.f32 %v3140_v18, %v14630_v37  ;;  %v3340_v22 = vmax.f32 %v3137_v10, 0.0  ;;  %v13024_v10 = vld [vmem:[#allocation13 + $0x74] ss:$8 sps:$4 sm:$0xff]  }
 0x3fa   : > { %v3341_v21 = vmax.f32 %v3139_v48, 0.0  ;;  %5159 = vmatprep.subr.bf16.mxu1 %v13024_v10 }
 0x3fb   : > { %v3342_v47 = vmax.f32 %v3141_v20, 0.0  ;;  %5160 = vmatpush1.bf16.msra.mxu1 %v13022_v41 }
 0x3fc   : > { %v3429_v43 = vpack.c.bf16 %v3341_v21, %v3339_v40 }
 0x3fd   : > { %v3144_v0 = vpop.f32.mrb[176].mxu0  ;;  %v3430_v25 = vpack.c.bf16 %v3342_v47, %v3340_v22 }
 0x3fe   : > { %v3145_v26 = vadd.f32 %v3144_v0, %v14626_v17  ;;  %v3146_v45 = vpop.f32.mrb[177].mxu0 }
 0x3ff   : > { %v3147_v19 = vadd.f32 %v3146_v45, %v14630_v37  ;;  %v3148_v28 = vpop.f32.mrb[178].mxu0  ;;  %3881 = vmatprep.mubr.bf16.mxu1 %v3430_v25 }
 0x400   : > { %v3149_v23 = vadd.f32 %v3148_v28, %v14626_v17  ;;  %v3150_v29 = vpop.f32.mrb[179].mxu0  ;;  %3882 = vmatmul.mubr.bf16.gmra.mrb[236].mxu1 %v3429_v43  ;;  %v3343_v31 = vmax.f32 %v3145_v26, 0.0 }
 0x401   : > { %v3151_v30 = vadd.f32 %v3150_v29, %v14630_v37  ;;  %v3344_v33 = vmax.f32 %v3147_v19, 0.0 }
 0x402   : > { %v3345_v32 = vmax.f32 %v3149_v23, 0.0 }
 0x403   : > { %v3346_v34 = vmax.f32 %v3151_v30, 0.0 }
 0x404   : > { %v3431_v15 = vpack.c.bf16 %v3345_v32, %v3343_v31 }
 0x405   : > { %v3154_v35 = vpop.f32.mrb[180].mxu0  ;;  %v3432_v36 = vpack.c.bf16 %v3346_v34, %v3344_v33 }
 0x406   : > { %v3155_v39 = vadd.f32 %v3154_v35, %v14626_v17  ;;  %v3156_v54 = vpop.f32.mrb[181].mxu0 }
 0x407   : > { %v3157_v42 = vadd.f32 %v3156_v54, %v14630_v37  ;;  %v3158_v49 = vpop.f32.mrb[182].mxu0  ;;  %3891 = vmatprep.mubr.bf16.mxu1 %v3432_v36 }
 0x408   : > { %v3159_v51 = vadd.f32 %v3158_v49, %v14626_v17  ;;  %v3160_v52 = vpop.f32.mrb[183].mxu0  ;;  %3892 = vmatmul.mubr.bf16.gmra.mrb[240].mxu1 %v3431_v15  ;;  %v3347_v56 = vmax.f32 %v3155_v39, 0.0 }
 0x409   : > { %v3161_v53 = vadd.f32 %v3160_v52, %v14630_v37  ;;  %v3348_v58 = vmax.f32 %v3157_v42, 0.0  ;;  %v13027_v42 = vld [vmem:[#allocation13 + $0x84] ss:$8 sps:$4 sm:$0xff]  }
 0x40a   : > { %v3349_v50 = vmax.f32 %v3159_v51, 0.0  ;;  %5161 = vmatprep.subr.bf16.mxu1 %v13027_v42 }
 0x40b   : > { %v3350_v59 = vmax.f32 %v3161_v53, 0.0  ;;  %5162 = vmatpush1.bf16.msra.mxu1 %v13025_v44 }
 0x40c   : > { %v3433_v46 = vpack.c.bf16 %v3349_v50, %v3347_v56 }
 0x40d   : > { %v3164_v62 = vpop.f32.mrb[184].mxu0  ;;  %v3434_v63 = vpack.c.bf16 %v3350_v59, %v3348_v58 }
 0x40e   : > { %v3165_v27 = vadd.f32 %v3164_v62, %v14626_v17  ;;  %v3166_v2 = vpop.f32.mrb[185].mxu0 }
 0x40f   : > { %v3167_v3 = vadd.f32 %v3166_v2, %v14630_v37  ;;  %v3168_v4 = vpop.f32.mrb[186].mxu0  ;;  %3901 = vmatprep.mubr.bf16.mxu1 %v3434_v63 }
 0x410   : > { %v3169_v6 = vadd.f32 %v3168_v4, %v14626_v17  ;;  %v3170_v7 = vpop.f32.mrb[187].mxu0  ;;  %3902 = vmatmul.mubr.bf16.gmra.mrb[244].mxu1 %v3433_v46  ;;  %v3351_v9 = vmax.f32 %v3165_v27, 0.0 }
 0x411   : > { %v3171_v8 = vadd.f32 %v3170_v7, %v14630_v37  ;;  %v3352_v12 = vmax.f32 %v3167_v3, 0.0 }
 0x412   : > { %v3353_v11 = vmax.f32 %v3169_v6, 0.0 }
 0x413   : > { %v3354_v13 = vmax.f32 %v3171_v8, 0.0 }
 0x414   : > { %v3435_v60 = vpack.c.bf16 %v3353_v11, %v3351_v9 }
 0x415   : > { %v3174_v24 = vpop.f32.mrb[188].mxu0  ;;  %v3436_v61 = vpack.c.bf16 %v3354_v13, %v3352_v12 }
 0x416   : > { %v3175_v16 = vadd.f32 %v3174_v24, %v14626_v17  ;;  %v3176_v5 = vpop.f32.mrb[189].mxu0 }
 0x417   : > { %v3177_v14 = vadd.f32 %v3176_v5, %v14630_v37  ;;  %v3178_v48 = vpop.f32.mrb[190].mxu0  ;;  %3911 = vmatprep.mubr.bf16.mxu1 %v3436_v61  ;;  %v3487_v5 = vld [vmem:[%s17092_s2] sm:$0x3] }
 0x418   : > { %v3179_v18 = vadd.f32 %v3178_v48, %v14626_v17  ;;  %v3180_v20 = vpop.f32.mrb[191].mxu0  ;;  %3912 = vmatmul.mubr.bf16.gmra.mrb[248].mxu1 %v3435_v60  ;;  %v3355_v21 = vmax.f32 %v3175_v16, 0.0  ;;  %v13030_v48 = vld [vmem:[#allocation13 + $0x94] ss:$8 sps:$4 sm:$0xff]  }
 0x419   : > { %v3181_v40 = vadd.f32 %v3180_v20, %v14630_v37  ;;  %v3356_v47 = vmax.f32 %v3177_v14, 0.0  ;;  %v13028_v14 = vld [vmem:[#allocation13 + $0x90] ss:$8 sps:$4 sm:$0xff]   ;;  %5163 = vmatprep.subr.bf16.mxu1 %v13030_v48 }
 0x41a   : > { %v3357_v22 = vmax.f32 %v3179_v18, 0.0  ;;  %5164 = vmatpush1.bf16.msra.mxu1 %v13028_v14 }
 0x41b   : > { %v3358_v43 = vmax.f32 %v3181_v40, 0.0 }
 0x41c   : > { %v3437_v0 = vpack.c.bf16 %v3357_v22, %v3355_v21  ;;  %v14754_v22 = vrot.slane %v3487_v5, %v14419_v55 }
 0x41d   : > { %v3184_v25 = vpop.f32.mrb[192].mxu0  ;;  %v3438_v26 = vpack.c.bf16 %v3358_v43, %v3356_v47  ;;  %v14758_v43 = vrot.slane %v3487_v5, %v14422_v57 }
 0x41e   : > { %v3185_v45 = vadd.f32 %v3184_v25, %v14626_v17  ;;  %v3186_v19 = vpop.f32.mrb[193].mxu0 }
 0x41f   : > { %v3187_v28 = vadd.f32 %v3186_v19, %v14630_v37  ;;  %v3188_v23 = vpop.f32.mrb[194].mxu0  ;;  %3921 = vmatprep.mubr.bf16.mxu1 %v3438_v26 }
 0x420   : > { %v3189_v29 = vadd.f32 %v3188_v23, %v14626_v17  ;;  %v3190_v30 = vpop.f32.mrb[195].mxu0  ;;  %3922 = vmatmul.mubr.bf16.gmra.mrb[252].mxu1 %v3437_v0  ;;  %v3359_v32 = vmax.f32 %v3185_v45, 0.0 }
 0x421   : > { %v3191_v31 = vadd.f32 %v3190_v30, %v14630_v37  ;;  %v3360_v34 = vmax.f32 %v3187_v28, 0.0 }
 0x422   : > { %v3361_v33 = vmax.f32 %v3189_v29, 0.0 }
 0x423   : > { %v3362_v15 = vmax.f32 %v3191_v31, 0.0 }
 0x424   : > { %v3439_v35 = vpack.c.bf16 %v3361_v33, %v3359_v32 }
 0x425   : > { %v3194_v36 = vpop.f32.mrb[196].mxu0  ;;  %v3440_v39 = vpack.c.bf16 %v3362_v15, %v3360_v34 }
 0x426   : > { %v3195_v54 = vadd.f32 %v3194_v36, %v14626_v17  ;;  %v3196_v38 = vpop.f32.mrb[197].mxu0 }
 0x427   : > { %v3197_v49 = vadd.f32 %v3196_v38, %v14630_v37  ;;  %v3198_v51 = vpop.f32.mrb[198].mxu0  ;;  %3931 = vmatprep.mubr.bf16.mxu1 %v3440_v39 }
 0x428   : > { %v3199_v52 = vadd.f32 %v3198_v51, %v14626_v17  ;;  %v3200_v53 = vpop.f32.mrb[199].mxu0  ;;  %3932 = vmatmul.mubr.bf16.gmra.mrb[0].mxu1 %v3439_v35  ;;  %v3363_v50 = vmax.f32 %v3195_v54, 0.0 }
 0x429   : > { %v3201_v56 = vadd.f32 %v3200_v53, %v14630_v37  ;;  %v3364_v59 = vmax.f32 %v3197_v49, 0.0 }
 0x42a   : > { %v3365_v58 = vmax.f32 %v3199_v52, 0.0 }
 0x42b   : > { %v3366_v46 = vmax.f32 %v3201_v56, 0.0 }
 0x42c   : > { %v3441_v62 = vpack.c.bf16 %v3365_v58, %v3363_v50 }
 0x42d   : > { %v3204_v63 = vpop.f32.mrb[200].mxu0  ;;  %v3442_v27 = vpack.c.bf16 %v3366_v46, %v3364_v59 }
 0x42e   : > { %v3205_v2 = vadd.f32 %v3204_v63, %v14626_v17  ;;  %v3206_v3 = vpop.f32.mrb[201].mxu0 }
 0x42f   : > { %v3207_v4 = vadd.f32 %v3206_v3, %v14630_v37  ;;  %v3208_v6 = vpop.f32.mrb[202].mxu0  ;;  %3941 = vmatprep.mubr.bf16.mxu1 %v3442_v27 }
 0x430   : > { %v3209_v7 = vadd.f32 %v3208_v6, %v14626_v17  ;;  %v3210_v8 = vpop.f32.mrb[203].mxu0  ;;  %3942 = vmatmul.mubr.bf16.gmra.mrb[4].mxu1 %v3441_v62  ;;  %v3367_v11 = vmax.f32 %v3205_v2, 0.0 }
 0x431   : > { %v3211_v9 = vadd.f32 %v3210_v8, %v14630_v37  ;;  %v3368_v13 = vmax.f32 %v3207_v4, 0.0 }
 0x432   : > { %v3369_v12 = vmax.f32 %v3209_v7, 0.0 }
 0x433   : > { %v3370_v60 = vmax.f32 %v3211_v9, 0.0 }
 0x434   : > { %v3443_v24 = vpack.c.bf16 %v3369_v12, %v3367_v11 }
 0x435   : > { %v3214_v61 = vpop.f32.mrb[204].mxu0  ;;  %v3444_v16 = vpack.c.bf16 %v3370_v60, %v3368_v13 }
 0x436   : > { %v3215_v41 = vadd.f32 %v3214_v61, %v14626_v17  ;;  %v3216_v10 = vpop.f32.mrb[205].mxu0 }
 0x437   : > { %v3217_v18 = vadd.f32 %v3216_v10, %v14630_v37  ;;  %v3218_v20 = vpop.f32.mrb[206].mxu0  ;;  %3951 = vmatprep.mubr.bf16.mxu1 %v3444_v16 }
 0x438   : > { %v3219_v40 = vadd.f32 %v3218_v20, %v14626_v17  ;;  %v3220_v21 = vpop.f32.mrb[207].mxu0  ;;  %3952 = vmatmul.mubr.bf16.gmra.mrb[8].mxu1 %v3443_v24  ;;  %v3371_v0 = vmax.f32 %v3215_v41, 0.0  ;;  %v13031_v24 = vld [vmem:[#allocation13 + $0xa0] ss:$8 sps:$4 sm:$0xff]   ;;  %v13033_v41 = vld [vmem:[#allocation13 + $0xa4] ss:$8 sps:$4 sm:$0xff]  }
 0x439   : > { %v3221_v47 = vadd.f32 %v3220_v21, %v14630_v37  ;;  %v3372_v26 = vmax.f32 %v3217_v18, 0.0  ;;  %5165 = vmatprep.subr.bf16.mxu1 %v13033_v41 }
 0x43a   : > { %v3373_v25 = vmax.f32 %v3219_v40, 0.0  ;;  %5166 = vmatpush1.bf16.msra.mxu1 %v13031_v24 }
 0x43b   : > { %v3374_v45 = vmax.f32 %v3221_v47, 0.0  ;;  %v3693_v19 = vpop.f32.mrb[160].mxu1 }
 0x43c   : > { %v3445_v28 = vpack.c.bf16 %v3373_v25, %v3371_v0  ;;  %v3694_v23 = vadd.f32 %v3693_v19, %v14754_v22  ;;  %v3695_v29 = vpop.f32.mrb[161].mxu1 }
 0x43d   : > { %v3696_v30 = vadd.f32 %v3695_v29, %v14758_v43  ;;  %v3224_v31 = vpop.f32.mrb[208].mxu0  ;;  %v3697_v32 = vpop.f32.mrb[162].mxu1  ;;  %v3446_v33 = vpack.c.bf16 %v3374_v45, %v3372_v26 }
 0x43e   : > { %v3225_v34 = vadd.f32 %v3224_v31, %v14626_v17  ;;  %v3698_v15 = vadd.f32 %v3697_v32, %v14754_v22  ;;  %v3226_v35 = vpop.f32.mrb[209].mxu0  ;;  %v3699_v36 = vpop.f32.mrb[163].mxu1  ;;  %v4012_v44 = vmax.f32 %v3694_v23, 0.0 }
 0x43f   : > { %v3227_v39 = vadd.f32 %v3226_v35, %v14630_v37  ;;  %v3700_v54 = vadd.f32 %v3699_v36, %v14758_v43  ;;  %v3228_v38 = vpop.f32.mrb[210].mxu0  ;;  %3961 = vmatprep.mubr.bf16.mxu1 %v3446_v33  ;;  %v4013_v52 = vmax.f32 %v3696_v30, 0.0 }
 0x440   : > { %v4014_v42 = vmax.f32 %v3698_v15, 0.0  ;;  %v3229_v49 = vadd.f32 %v3228_v38, %v14626_v17  ;;  %v3230_v51 = vpop.f32.mrb[211].mxu0  ;;  %3962 = vmatmul.mubr.bf16.gmra.mrb[12].mxu1 %v3445_v28  ;;  %v3375_v50 = vmax.f32 %v3225_v34, 0.0 }
 0x441   : > { %v4015_v53 = vmax.f32 %v3700_v54, 0.0  ;;  %v3231_v56 = vadd.f32 %v3230_v51, %v14630_v37  ;;  %v3376_v46 = vmax.f32 %v3227_v39, 0.0 }
 0x442   : > { %v4140_v58 = vpack.c.bf16 %v4014_v42, %v4012_v44  ;;  %v3377_v59 = vmax.f32 %v3229_v49, 0.0 }
 0x443   : > { %v3378_v62 = vmax.f32 %v3231_v56, 0.0  ;;  %v3703_v63 = vpop.f32.mrb[164].mxu1  ;;  %v4141_v27 = vpack.c.bf16 %v4015_v53, %v4013_v52 }
 0x444   : > { %v3447_v2 = vpack.c.bf16 %v3377_v59, %v3375_v50  ;;  %v3704_v3 = vadd.f32 %v3703_v63, %v14754_v22  ;;  %v3705_v4 = vpop.f32.mrb[165].mxu1 }
 0x445   : > { %v3706_v6 = vadd.f32 %v3705_v4, %v14758_v43  ;;  %v3234_v7 = vpop.f32.mrb[212].mxu0  ;;  %v3707_v8 = vpop.f32.mrb[166].mxu1  ;;  %4440 = vmatprep.mubr.bf16.mxu0 %v4141_v27  ;;  %v3448_v9 = vpack.c.bf16 %v3378_v62, %v3376_v46 }
 0x446   : > { %v3235_v11 = vadd.f32 %v3234_v7, %v14626_v17  ;;  %v3708_v12 = vadd.f32 %v3707_v8, %v14754_v22  ;;  %v3236_v13 = vpop.f32.mrb[213].mxu0  ;;  %v3709_v60 = vpop.f32.mrb[167].mxu1  ;;  %4441 = vmatmul.mubr.bf16.vlgmr.msra.gmra.mrb[224].mxu0 %v4140_v58  ;;  %v4016_v10 = vmax.f32 %v3704_v3, 0.0 }
 0x447   : > { %v3237_v61 = vadd.f32 %v3236_v13, %v14630_v37  ;;  %v3710_v16 = vadd.f32 %v3709_v60, %v14758_v43  ;;  %v3238_v5 = vpop.f32.mrb[214].mxu0  ;;  %3971 = vmatprep.mubr.bf16.mxu1 %v3448_v9  ;;  %v4017_v20 = vmax.f32 %v3706_v6, 0.0 }
 0x448   : > { %v4018_v14 = vmax.f32 %v3708_v12, 0.0  ;;  %v3239_v48 = vadd.f32 %v3238_v5, %v14626_v17  ;;  %v3240_v18 = vpop.f32.mrb[215].mxu0  ;;  %3972 = vmatmul.mubr.bf16.gmra.mrb[16].mxu1 %v3447_v2  ;;  %v3379_v47 = vmax.f32 %v3235_v11, 0.0 }
 0x449   : > { %v4019_v40 = vmax.f32 %v3710_v16, 0.0  ;;  %v3241_v21 = vadd.f32 %v3240_v18, %v14630_v37  ;;  %v3380_v26 = vmax.f32 %v3237_v61, 0.0  ;;  %v13034_v61 = vld [vmem:[#allocation13 + $0xb0] ss:$8 sps:$4 sm:$0xff]  }
 0x44a   : > { %v3381_v0 = vmax.f32 %v3239_v48, 0.0  ;;  %v4142_v25 = vpack.c.bf16 %v4018_v14, %v4016_v10  ;;  %v13036_v10 = vld [vmem:[#allocation13 + $0xb4] ss:$8 sps:$4 sm:$0xff]  }
 0x44b   : > { %v3382_v45 = vmax.f32 %v3241_v21, 0.0  ;;  %v3713_v19 = vpop.f32.mrb[168].mxu1  ;;  %v4143_v28 = vpack.c.bf16 %v4019_v40, %v4017_v20  ;;  %5167 = vmatprep.subr.bf16.mxu1 %v13036_v10 }
 0x44c   : > { %v3449_v23 = vpack.c.bf16 %v3381_v0, %v3379_v47  ;;  %v3714_v29 = vadd.f32 %v3713_v19, %v14754_v22  ;;  %v3715_v30 = vpop.f32.mrb[169].mxu1  ;;  %5168 = vmatpush1.bf16.msra.mxu1 %v13034_v61 }
 0x44d   : > { %v3716_v31 = vadd.f32 %v3715_v30, %v14758_v43  ;;  %v3244_v32 = vpop.f32.mrb[216].mxu0  ;;  %v3717_v33 = vpop.f32.mrb[170].mxu1  ;;  %4450 = vmatprep.mubr.bf16.mxu0 %v4143_v28  ;;  %v3450_v34 = vpack.c.bf16 %v3382_v45, %v3380_v26 }
 0x44e   : > { %v3245_v15 = vadd.f32 %v3244_v32, %v14626_v17  ;;  %v3718_v35 = vadd.f32 %v3717_v33, %v14754_v22  ;;  %v3246_v36 = vpop.f32.mrb[217].mxu0  ;;  %v3719_v39 = vpop.f32.mrb[171].mxu1  ;;  %4451 = vmatmul.mubr.bf16.gmra.mrb[228].mxu0 %v4142_v25  ;;  %v4020_v42 = vmax.f32 %v3714_v29, 0.0 }
 0x44f   : > { %v3247_v54 = vadd.f32 %v3246_v36, %v14630_v37  ;;  %v3720_v38 = vadd.f32 %v3719_v39, %v14758_v43  ;;  %v3248_v44 = vpop.f32.mrb[218].mxu0  ;;  %3981 = vmatprep.mubr.bf16.mxu1 %v3450_v34  ;;  %v4021_v53 = vmax.f32 %v3716_v31, 0.0 }
 0x450   : > { %v4022_v49 = vmax.f32 %v3718_v35, 0.0  ;;  %v3249_v51 = vadd.f32 %v3248_v44, %v14626_v17  ;;  %v3250_v52 = vpop.f32.mrb[219].mxu0  ;;  %3982 = vmatmul.mubr.bf16.gmra.mrb[20].mxu1 %v3449_v23  ;;  %v3383_v58 = vmax.f32 %v3245_v15, 0.0 }
 0x451   : > { %v4023_v56 = vmax.f32 %v3720_v38, 0.0  ;;  %v3251_v50 = vadd.f32 %v3250_v52, %v14630_v37  ;;  %v3384_v62 = vmax.f32 %v3247_v54, 0.0 }
 0x452   : > { %v3385_v59 = vmax.f32 %v3249_v51, 0.0  ;;  %v4144_v46 = vpack.c.bf16 %v4022_v49, %v4020_v42 }
 0x453   : > { %v3386_v63 = vmax.f32 %v3251_v50, 0.0  ;;  %v3723_v27 = vpop.f32.mrb[172].mxu1  ;;  %v4145_v2 = vpack.c.bf16 %v4023_v56, %v4021_v53 }
 0x454   : > { %v3451_v3 = vpack.c.bf16 %v3385_v59, %v3383_v58  ;;  %v3724_v4 = vadd.f32 %v3723_v27, %v14754_v22  ;;  %v3725_v6 = vpop.f32.mrb[173].mxu1  ;;  %v13037_v58 = vld [vmem:[#allocation13 + $0xc0] ss:$8 sps:$4 sm:$0xff]   ;;  %v13039_v59 = vld [vmem:[#allocation13 + $0xc4] ss:$8 sps:$4 sm:$0xff]  }
 0x455   : > { %v3726_v7 = vadd.f32 %v3725_v6, %v14758_v43  ;;  %v3254_v8 = vpop.f32.mrb[220].mxu0  ;;  %v3727_v9 = vpop.f32.mrb[174].mxu1  ;;  %4460 = vmatprep.mubr.bf16.mxu0 %v4145_v2  ;;  %v3452_v11 = vpack.c.bf16 %v3386_v63, %v3384_v62  ;;  %5169 = vmatprep.subr.bf16.mxu1 %v13039_v59 }
 0x456   : > { %v3255_v12 = vadd.f32 %v3254_v8, %v14626_v17  ;;  %v3728_v13 = vadd.f32 %v3727_v9, %v14754_v22  ;;  %v3256_v60 = vpop.f32.mrb[221].mxu0  ;;  %v3729_v24 = vpop.f32.mrb[175].mxu1  ;;  %4461 = vmatmul.mubr.bf16.gmra.mrb[232].mxu0 %v4144_v46  ;;  %v4024_v14 = vmax.f32 %v3724_v4, 0.0  ;;  %5170 = vmatpush1.bf16.msra.mxu1 %v13037_v58 }
 0x457   : > { %v3257_v16 = vadd.f32 %v3256_v60, %v14630_v37  ;;  %v3730_v5 = vadd.f32 %v3729_v24, %v14758_v43  ;;  %v3258_v41 = vpop.f32.mrb[222].mxu0  ;;  %3991 = vmatprep.mubr.bf16.mxu1 %v3452_v11  ;;  %v4025_v40 = vmax.f32 %v3726_v7, 0.0 }
 0x458   : > { %v4026_v48 = vmax.f32 %v3728_v13, 0.0  ;;  %v3259_v18 = vadd.f32 %v3258_v41, %v14626_v17  ;;  %v3260_v20 = vpop.f32.mrb[223].mxu0  ;;  %3992 = vmatmul.mubr.bf16.gmra.mrb[24].mxu1 %v3451_v3  ;;  %v3387_v0 = vmax.f32 %v3255_v12, 0.0 }
 0x459   : > { %v4027_v21 = vmax.f32 %v3730_v5, 0.0  ;;  %v3261_v47 = vadd.f32 %v3260_v20, %v14630_v37  ;;  %v3388_v45 = vmax.f32 %v3257_v16, 0.0 }
 0x45a   : > { %v3389_v25 = vmax.f32 %v3259_v18, 0.0  ;;  %v4146_v26 = vpack.c.bf16 %v4026_v48, %v4024_v14 }
 0x45b   : > { %v3390_v19 = vmax.f32 %v3261_v47, 0.0  ;;  %v3733_v28 = vpop.f32.mrb[176].mxu1  ;;  %v4147_v23 = vpack.c.bf16 %v4027_v21, %v4025_v40 }
 0x45c   : > { %v3453_v29 = vpack.c.bf16 %v3389_v25, %v3387_v0  ;;  %v3734_v30 = vadd.f32 %v3733_v28, %v14754_v22  ;;  %v3735_v31 = vpop.f32.mrb[177].mxu1  ;;  %v13040_v0 = vld [vmem:[#allocation13 + $0xd0] ss:$8 sps:$4 sm:$0xff]   ;;  %v13042_v25 = vld [vmem:[#allocation13 + $0xd4] ss:$8 sps:$4 sm:$0xff]  }
 0x45d   : > { %v3736_v17 = vadd.f32 %v3735_v31, %v14758_v43  ;;  %v3737_v32 = vpop.f32.mrb[178].mxu1  ;;  %4470 = vmatprep.mubr.bf16.mxu0 %v4147_v23  ;;  %v3454_v33 = vpack.c.bf16 %v3390_v19, %v3388_v45  ;;  %5171 = vmatprep.subr.bf16.mxu1 %v13042_v25 }
 0x45e   : > { %v3738_v37 = vadd.f32 %v3737_v32, %v14754_v22  ;;  %v3739_v34 = vpop.f32.mrb[179].mxu1  ;;  %4471 = vmatmul.mubr.bf16.gmra.mrb[236].mxu0 %v4146_v26  ;;  %v4028_v35 = vmax.f32 %v3734_v30, 0.0  ;;  %5172 = vmatpush1.bf16.msra.mxu1 %v13040_v0 }
 0x45f   : > { %v3740_v15 = vadd.f32 %v3739_v34, %v14758_v43  ;;  %4001 = vmatprep.mubr.bf16.mxu1 %v3454_v33  ;;  %v4029_v39 = vmax.f32 %v3736_v17, 0.0 }
 0x460   : > { %v4030_v36 = vmax.f32 %v3738_v37, 0.0  ;;  %4002 = vmatmul.mubr.bf16.gmra.mrb[28].mxu1 %v3453_v29 }
 0x461   : > { %v4031_v54 = vmax.f32 %v3740_v15, 0.0 }
 0x462   : > { %v4148_v38 = vpack.c.bf16 %v4030_v36, %v4028_v35 }
 0x463   : > { %v3743_v44 = vpop.f32.mrb[180].mxu1  ;;  %v4149_v42 = vpack.c.bf16 %v4031_v54, %v4029_v39 }
 0x464   : > { %v3744_v49 = vadd.f32 %v3743_v44, %v14754_v22  ;;  %v3745_v51 = vpop.f32.mrb[181].mxu1 }
 0x465   : > { %v3746_v52 = vadd.f32 %v3745_v51, %v14758_v43  ;;  %v3747_v53 = vpop.f32.mrb[182].mxu1  ;;  %4480 = vmatprep.mubr.bf16.mxu0 %v4149_v42  ;;  %v13043_v42 = vld [vmem:[#allocation14] ss:$8 sps:$4 sm:$0xff]  }
 0x466   : > { %v3748_v56 = vadd.f32 %v3747_v53, %v14754_v22  ;;  %v3749_v50 = vpop.f32.mrb[183].mxu1  ;;  %4481 = vmatmul.mubr.bf16.gmra.mrb[240].mxu0 %v4148_v38  ;;  %v4032_v62 = vmax.f32 %v3744_v49, 0.0  ;;  %v13045_v49 = vld [vmem:[#allocation14 + $0x4] ss:$8 sps:$4 sm:$0xff]  }
 0x467   : > { %v3750_v46 = vadd.f32 %v3749_v50, %v14758_v43  ;;  %v4033_v27 = vmax.f32 %v3746_v52, 0.0  ;;  %6034 = vmatprep.subr.bf16.mxu0 %v13045_v49 }
 0x468   : > { %v4034_v63 = vmax.f32 %v3748_v56, 0.0  ;;  %6035 = vmatpush1.bf16.msra.mxu0 %v13043_v42 }
 0x469   : > { %v4035_v2 = vmax.f32 %v3750_v46, 0.0 }
 0x46a   : > { %v4150_v3 = vpack.c.bf16 %v4034_v63, %v4032_v62  ;;  %v13046_v62 = vld [vmem:[#allocation13 + $0xe0] ss:$8 sps:$4 sm:$0xff]   ;;  %v13048_v63 = vld [vmem:[#allocation13 + $0xe4] ss:$8 sps:$4 sm:$0xff]  }
 0x46b   : > { %v3753_v4 = vpop.f32.mrb[184].mxu1  ;;  %v4151_v6 = vpack.c.bf16 %v4035_v2, %v4033_v27  ;;  %5173 = vmatprep.subr.bf16.mxu1 %v13048_v63 }
 0x46c   : > { %v3754_v7 = vadd.f32 %v3753_v4, %v14754_v22  ;;  %v3755_v8 = vpop.f32.mrb[185].mxu1  ;;  %5174 = vmatpush1.bf16.msra.mxu1 %v13046_v62  ;;  %v13057_v62 = vld [vmem:[#allocation14 + $0x24] ss:$8 sps:$4 sm:$0xff]  }
 0x46d   : > { %v3756_v9 = vadd.f32 %v3755_v8, %v14758_v43  ;;  %v3757_v11 = vpop.f32.mrb[186].mxu1  ;;  %4490 = vmatprep.mubr.bf16.mxu0 %v4151_v6 }
 0x46e   : > { %v3758_v12 = vadd.f32 %v3757_v11, %v14754_v22  ;;  %v3759_v13 = vpop.f32.mrb[187].mxu1  ;;  %4491 = vmatmul.mubr.bf16.gmra.mrb[244].mxu0 %v4150_v3  ;;  %v4036_v24 = vmax.f32 %v3754_v7, 0.0 }
 0x46f   : > { %v3760_v60 = vadd.f32 %v3759_v13, %v14758_v43  ;;  %v4037_v16 = vmax.f32 %v3756_v9, 0.0 }
 0x470   : > { %v4038_v61 = vmax.f32 %v3758_v12, 0.0 }
 0x471   : > { %v4039_v5 = vmax.f32 %v3760_v60, 0.0 }
 0x472   : > { %v4152_v41 = vpack.c.bf16 %v4038_v61, %v4036_v24 }
 0x473   : > { %v3763_v10 = vpop.f32.mrb[188].mxu1  ;;  %v4153_v14 = vpack.c.bf16 %v4039_v5, %v4037_v16 }
 0x474   : > { %v3764_v48 = vadd.f32 %v3763_v10, %v14754_v22  ;;  %v3765_v18 = vpop.f32.mrb[189].mxu1 }
 0x475   : > { %v3766_v20 = vadd.f32 %v3765_v18, %v14758_v43  ;;  %v3767_v40 = vpop.f32.mrb[190].mxu1  ;;  %4500 = vmatprep.mubr.bf16.mxu0 %v4153_v14  ;;  %v13049_v18 = vld [vmem:[#allocation14 + $0x10] ss:$8 sps:$4 sm:$0xff]  }
 0x476   : > { %v3768_v21 = vadd.f32 %v3767_v40, %v14754_v22  ;;  %v3769_v47 = vpop.f32.mrb[191].mxu1  ;;  %4501 = vmatmul.mubr.bf16.gmra.mrb[248].mxu0 %v4152_v41  ;;  %v4040_v45 = vmax.f32 %v3764_v48, 0.0 }
 0x477   : > { %v3770_v26 = vadd.f32 %v3769_v47, %v14758_v43  ;;  %v4041_v28 = vmax.f32 %v3766_v20, 0.0  ;;  %v13051_v20 = vld [vmem:[#allocation14 + $0x14] ss:$8 sps:$4 sm:$0xff]  }
 0x478   : > { %v4042_v19 = vmax.f32 %v3768_v21, 0.0  ;;  %6036 = vmatprep.subr.bf16.mxu0 %v13051_v20 }
 0x479   : > { %v4043_v23 = vmax.f32 %v3770_v26, 0.0  ;;  %6037 = vmatpush1.bf16.msra.mxu0 %v13049_v18 }
 0x47a   : > { %v4154_v29 = vpack.c.bf16 %v4042_v19, %v4040_v45  ;;  %6038 = vmatprep.subr.bf16.mxu0 %v13057_v62  ;;  %v13061_v62 = vld [vmem:[#allocation14 + $0x40] ss:$8 sps:$4 sm:$0xff]  }
 0x47b   : > { %v3773_v30 = vpop.f32.mrb[192].mxu1  ;;  %v4155_v31 = vpack.c.bf16 %v4043_v23, %v4041_v28  ;;  %v13052_v28 = vld [vmem:[#allocation13 + $0xf0] ss:$8 sps:$4 sm:$0xff]   ;;  %v13054_v23 = vld [vmem:[#allocation13 + $0xf4] ss:$8 sps:$4 sm:$0xff]  }
 0x47c   : > { %v3774_v17 = vadd.f32 %v3773_v30, %v14754_v22  ;;  %v3775_v32 = vpop.f32.mrb[193].mxu1  ;;  %5175 = vmatprep.subr.bf16.mxu1 %v13054_v23 }
 0x47d   : > { %v3776_v33 = vadd.f32 %v3775_v32, %v14758_v43  ;;  %v3777_v37 = vpop.f32.mrb[194].mxu1  ;;  %4510 = vmatprep.mubr.bf16.mxu0 %v4155_v31  ;;  %5176 = vmatpush1.bf16.msra.mxu1 %v13052_v28 }
 0x47e   : > { %v3778_v34 = vadd.f32 %v3777_v37, %v14754_v22  ;;  %v3779_v15 = vpop.f32.mrb[195].mxu1  ;;  %4511 = vmatmul.mubr.bf16.gmra.mrb[252].mxu0 %v4154_v29  ;;  %v4044_v36 = vmax.f32 %v3774_v17, 0.0 }
 0x47f   : > { %v3780_v35 = vadd.f32 %v3779_v15, %v14758_v43  ;;  %v4045_v54 = vmax.f32 %v3776_v33, 0.0 }
 0x480   : > { %v4046_v39 = vmax.f32 %v3778_v34, 0.0 }
 0x481   : > { %v4047_v38 = vmax.f32 %v3780_v35, 0.0 }
 0x482   : > { %v4156_v44 = vpack.c.bf16 %v4046_v39, %v4044_v36 }
 0x483   : > { %v3783_v51 = vpop.f32.mrb[196].mxu1  ;;  %v4157_v52 = vpack.c.bf16 %v4047_v38, %v4045_v54 }
 0x484   : > { %v3784_v53 = vadd.f32 %v3783_v51, %v14754_v22  ;;  %v3785_v56 = vpop.f32.mrb[197].mxu1 }
 0x485   : > { %v3786_v50 = vadd.f32 %v3785_v56, %v14758_v43  ;;  %v3787_v58 = vpop.f32.mrb[198].mxu1  ;;  %4520 = vmatprep.mubr.bf16.mxu0 %v4157_v52 }
 0x486   : > { %v3788_v59 = vadd.f32 %v3787_v58, %v14754_v22  ;;  %v3789_v46 = vpop.f32.mrb[199].mxu1  ;;  %4521 = vmatmul.mubr.bf16.gmra.mrb[0].mxu0 %v4156_v44  ;;  %v4048_v2 = vmax.f32 %v3784_v53, 0.0 }
 0x487   : > { %v3790_v27 = vadd.f32 %v3789_v46, %v14758_v43  ;;  %v4049_v4 = vmax.f32 %v3786_v50, 0.0  ;;  %v13055_v46 = vld [vmem:[#allocation14 + $0x20] ss:$8 sps:$4 sm:$0xff]  }
 0x488   : > { %v4050_v3 = vmax.f32 %v3788_v59, 0.0  ;;  %6039 = vmatpush1.bf16.msra.mxu0 %v13055_v46 }
 0x489   : > { %v4051_v6 = vmax.f32 %v3790_v27, 0.0 }
 0x48a   : > { %v4158_v7 = vpack.c.bf16 %v4050_v3, %v4048_v2 }
 0x48b   : > { %v3793_v8 = vpop.f32.mrb[200].mxu1  ;;  %v4159_v9 = vpack.c.bf16 %v4051_v6, %v4049_v4 }
 0x48c   : > { %v3794_v11 = vadd.f32 %v3793_v8, %v14754_v22  ;;  %v3795_v12 = vpop.f32.mrb[201].mxu1 }
 0x48d   : > { %v3796_v13 = vadd.f32 %v3795_v12, %v14758_v43  ;;  %v3797_v60 = vpop.f32.mrb[202].mxu1  ;;  %4530 = vmatprep.mubr.bf16.mxu0 %v4159_v9 }
 0x48e   : > { %v3798_v24 = vadd.f32 %v3797_v60, %v14754_v22  ;;  %v3799_v61 = vpop.f32.mrb[203].mxu1  ;;  %4531 = vmatmul.mubr.bf16.gmra.mrb[4].mxu0 %v4158_v7  ;;  %v4052_v5 = vmax.f32 %v3794_v11, 0.0 }
 0x48f   : > { %v3800_v16 = vadd.f32 %v3799_v61, %v14758_v43  ;;  %v4053_v10 = vmax.f32 %v3796_v13, 0.0 }
 0x490   : > { %v4054_v41 = vmax.f32 %v3798_v24, 0.0 }
 0x491   : > { %v4055_v14 = vmax.f32 %v3800_v16, 0.0 }
 0x492   : > { %v4160_v48 = vpack.c.bf16 %v4054_v41, %v4052_v5 }
 0x493   : > { %v3803_v40 = vpop.f32.mrb[204].mxu1  ;;  %v4161_v21 = vpack.c.bf16 %v4055_v14, %v4053_v10 }
 0x494   : > { %v3804_v47 = vadd.f32 %v3803_v40, %v14754_v22  ;;  %v3805_v0 = vpop.f32.mrb[205].mxu1 }
 0x495   : > { %v3806_v25 = vadd.f32 %v3805_v0, %v14758_v43  ;;  %v3807_v26 = vpop.f32.mrb[206].mxu1  ;;  %4540 = vmatprep.mubr.bf16.mxu0 %v4161_v21 }
 0x496   : > { %v3808_v45 = vadd.f32 %v3807_v26, %v14754_v22  ;;  %v3809_v19 = vpop.f32.mrb[207].mxu1  ;;  %4541 = vmatmul.mubr.bf16.gmra.mrb[8].mxu0 %v4160_v48  ;;  %v4056_v30 = vmax.f32 %v3804_v47, 0.0  ;;  %v13058_v26 = vld [vmem:[#allocation14 + $0x30] ss:$8 sps:$4 sm:$0xff]  }
 0x497   : > { %v3810_v29 = vadd.f32 %v3809_v19, %v14758_v43  ;;  %v4057_v17 = vmax.f32 %v3806_v25, 0.0 }
 0x498   : > { %v4058_v31 = vmax.f32 %v3808_v45, 0.0  ;;  %v13060_v45 = vld [vmem:[#allocation14 + $0x34] ss:$8 sps:$4 sm:$0xff]  }
 0x499   : > { %v4059_v32 = vmax.f32 %v3810_v29, 0.0  ;;  %6040 = vmatprep.subr.bf16.mxu0 %v13060_v45  ;;  %v13064_v45 = vld [vmem:[#allocation14 + $0x50] ss:$8 sps:$4 sm:$0xff]  }
 0x49a   : > { %v4162_v33 = vpack.c.bf16 %v4058_v31, %v4056_v30  ;;  %6041 = vmatpush1.bf16.msra.mxu0 %v13058_v26 }
 0x49b   : > { %v3813_v37 = vpop.f32.mrb[208].mxu1  ;;  %v4163_v34 = vpack.c.bf16 %v4059_v32, %v4057_v17 }
 0x49c   : > { %v3814_v15 = vadd.f32 %v3813_v37, %v14754_v22  ;;  %v3815_v35 = vpop.f32.mrb[209].mxu1 }
 0x49d   : > { %v3816_v36 = vadd.f32 %v3815_v35, %v14758_v43  ;;  %v3817_v39 = vpop.f32.mrb[210].mxu1  ;;  %4550 = vmatprep.mubr.bf16.mxu0 %v4163_v34 }
 0x49e   : > { %v3818_v54 = vadd.f32 %v3817_v39, %v14754_v22  ;;  %v3819_v38 = vpop.f32.mrb[211].mxu1  ;;  %4551 = vmatmul.mubr.bf16.gmra.mrb[12].mxu0 %v4162_v33  ;;  %v4060_v42 = vmax.f32 %v3814_v15, 0.0 }
 0x49f   : > { %v3820_v44 = vadd.f32 %v3819_v38, %v14758_v43  ;;  %v4061_v51 = vmax.f32 %v3816_v36, 0.0 }
 0x4a0   : > { %v4062_v49 = vmax.f32 %v3818_v54, 0.0 }
 0x4a1   : > { %v4063_v52 = vmax.f32 %v3820_v44, 0.0 }
 0x4a2   : > { %v4164_v53 = vpack.c.bf16 %v4062_v49, %v4060_v42 }
 0x4a3   : > { %v3823_v56 = vpop.f32.mrb[212].mxu1  ;;  %v4165_v50 = vpack.c.bf16 %v4063_v52, %v4061_v51 }
 0x4a4   : > { %v3824_v58 = vadd.f32 %v3823_v56, %v14754_v22  ;;  %v3825_v59 = vpop.f32.mrb[213].mxu1 }
 0x4a5   : > { %v3826_v63 = vadd.f32 %v3825_v59, %v14758_v43  ;;  %v3827_v27 = vpop.f32.mrb[214].mxu1  ;;  %4560 = vmatprep.mubr.bf16.mxu0 %v4165_v50 }
 0x4a6   : > { %v3828_v2 = vadd.f32 %v3827_v27, %v14754_v22  ;;  %v3829_v3 = vpop.f32.mrb[215].mxu1  ;;  %4561 = vmatmul.mubr.bf16.gmra.mrb[16].mxu0 %v4164_v53  ;;  %v4064_v6 = vmax.f32 %v3824_v58, 0.0 }
 0x4a7   : > { %v3830_v4 = vadd.f32 %v3829_v3, %v14758_v43  ;;  %v4065_v8 = vmax.f32 %v3826_v63, 0.0  ;;  %v13063_v63 = vld [vmem:[#allocation14 + $0x44] ss:$8 sps:$4 sm:$0xff]  }
 0x4a8   : > { %v4066_v7 = vmax.f32 %v3828_v2, 0.0  ;;  %6042 = vmatprep.subr.bf16.mxu0 %v13063_v63  ;;  %v13067_v63 = vld [vmem:[#allocation14 + $0x60] ss:$8 sps:$4 sm:$0xff]  }
 0x4a9   : > { %v4067_v9 = vmax.f32 %v3830_v4, 0.0  ;;  %6043 = vmatpush1.bf16.msra.mxu0 %v13061_v62 }
 0x4aa   : > { %v4166_v11 = vpack.c.bf16 %v4066_v7, %v4064_v6 }
 0x4ab   : > { %v3833_v12 = vpop.f32.mrb[216].mxu1  ;;  %v4167_v13 = vpack.c.bf16 %v4067_v9, %v4065_v8 }
 0x4ac   : > { %v3834_v60 = vadd.f32 %v3833_v12, %v14754_v22  ;;  %v3835_v24 = vpop.f32.mrb[217].mxu1 }
 0x4ad   : > { %v3836_v61 = vadd.f32 %v3835_v24, %v14758_v43  ;;  %v3837_v16 = vpop.f32.mrb[218].mxu1  ;;  %4570 = vmatprep.mubr.bf16.mxu0 %v4167_v13 }
 0x4ae   : > { %v3838_v5 = vadd.f32 %v3837_v16, %v14754_v22  ;;  %v3839_v41 = vpop.f32.mrb[219].mxu1  ;;  %4571 = vmatmul.mubr.bf16.gmra.mrb[20].mxu0 %v4166_v11  ;;  %v4068_v14 = vmax.f32 %v3834_v60, 0.0 }
 0x4af   : > { %v3840_v10 = vadd.f32 %v3839_v41, %v14758_v43  ;;  %v4069_v18 = vmax.f32 %v3836_v61, 0.0 }
 0x4b0   : > { %v4070_v48 = vmax.f32 %v3838_v5, 0.0 }
 0x4b1   : > { %v4071_v20 = vmax.f32 %v3840_v10, 0.0 }
 0x4b2   : > { %v4168_v40 = vpack.c.bf16 %v4070_v48, %v4068_v14 }
 0x4b3   : > { %v3843_v21 = vpop.f32.mrb[220].mxu1  ;;  %v4169_v47 = vpack.c.bf16 %v4071_v20, %v4069_v18 }
 0x4b4   : > { %v3844_v0 = vadd.f32 %v3843_v21, %v14754_v22  ;;  %v3845_v25 = vpop.f32.mrb[221].mxu1 }
 0x4b5   : > { %v3846_v19 = vadd.f32 %v3845_v25, %v14758_v43  ;;  %v3847_v28 = vpop.f32.mrb[222].mxu1  ;;  %4580 = vmatprep.mubr.bf16.mxu0 %v4169_v47 }
 0x4b6   : > { %v3848_v23 = vadd.f32 %v3847_v28, %v14754_v22  ;;  %v3849_v29 = vpop.f32.mrb[223].mxu1  ;;  %4581 = vmatmul.mubr.bf16.gmra.mrb[24].mxu0 %v4168_v40  ;;  %v4072_v31 = vmax.f32 %v3844_v0, 0.0 }
 0x4b7   : > { %v3850_v30 = vadd.f32 %v3849_v29, %v14758_v43  ;;  %v4073_v32 = vmax.f32 %v3846_v19, 0.0  ;;  %v13066_v19 = vld [vmem:[#allocation14 + $0x54] ss:$8 sps:$4 sm:$0xff]  }
 0x4b8   : > { %v4074_v17 = vmax.f32 %v3848_v23, 0.0  ;;  %6044 = vmatprep.subr.bf16.mxu0 %v13066_v19  ;;  %v13070_v19 = vld [vmem:[#allocation14 + $0x70] ss:$8 sps:$4 sm:$0xff]  }
 0x4b9   : > { %v4075_v33 = vmax.f32 %v3850_v30, 0.0  ;;  %6045 = vmatpush1.bf16.msra.mxu0 %v13064_v45 }
 0x4ba   : > { %v4170_v37 = vpack.c.bf16 %v4074_v17, %v4072_v31 }
 0x4bb   : > { %v3853_v34 = vpop.f32.mrb[224].mxu1  ;;  %v4171_v15 = vpack.c.bf16 %v4075_v33, %v4073_v32 }
 0x4bc   : > { %v3854_v35 = vadd.f32 %v3853_v34, %v14754_v22  ;;  %v3855_v36 = vpop.f32.mrb[225].mxu1 }
 0x4bd   : > { %v3856_v39 = vadd.f32 %v3855_v36, %v14758_v43  ;;  %v3857_v54 = vpop.f32.mrb[226].mxu1  ;;  %4590 = vmatprep.mubr.bf16.mxu0 %v4171_v15 }
 0x4be   : > { %v3858_v38 = vadd.f32 %v3857_v54, %v14754_v22  ;;  %v3859_v44 = vpop.f32.mrb[227].mxu1  ;;  %4591 = vmatmul.mubr.bf16.gmra.mrb[28].mxu0 %v4170_v37  ;;  %v4076_v49 = vmax.f32 %v3854_v35, 0.0 }
 0x4bf   : > { %v3860_v42 = vadd.f32 %v3859_v44, %v14758_v43  ;;  %v4077_v52 = vmax.f32 %v3856_v39, 0.0 }
 0x4c0   : > { %v4078_v51 = vmax.f32 %v3858_v38, 0.0 }
 0x4c1   : > { %v4079_v53 = vmax.f32 %v3860_v42, 0.0 }
 0x4c2   : > { %v4172_v56 = vpack.c.bf16 %v4078_v51, %v4076_v49 }
 0x4c3   : > { %v3863_v50 = vpop.f32.mrb[228].mxu1  ;;  %v4173_v58 = vpack.c.bf16 %v4079_v53, %v4077_v52 }
 0x4c4   : > { %v3864_v59 = vadd.f32 %v3863_v50, %v14754_v22  ;;  %v3865_v46 = vpop.f32.mrb[229].mxu1 }
 0x4c5   : > { %v3866_v27 = vadd.f32 %v3865_v46, %v14758_v43  ;;  %v3867_v2 = vpop.f32.mrb[230].mxu1  ;;  %4600 = vmatprep.mubr.bf16.mxu0 %v4173_v58 }
 0x4c6   : > { %v3868_v3 = vadd.f32 %v3867_v2, %v14754_v22  ;;  %v3869_v4 = vpop.f32.mrb[231].mxu1  ;;  %4601 = vmatmul.mubr.bf16.gmra.mrb[32].mxu0 %v4172_v56  ;;  %v4080_v7 = vmax.f32 %v3864_v59, 0.0 }
 0x4c7   : > { %v3870_v6 = vadd.f32 %v3869_v4, %v14758_v43  ;;  %v4081_v9 = vmax.f32 %v3866_v27, 0.0  ;;  %v13069_v27 = vld [vmem:[#allocation14 + $0x64] ss:$8 sps:$4 sm:$0xff]  }
 0x4c8   : > { %v4082_v8 = vmax.f32 %v3868_v3, 0.0  ;;  %6046 = vmatprep.subr.bf16.mxu0 %v13069_v27  ;;  %v13073_v27 = vld [vmem:[#allocation14 + $0x80] ss:$8 sps:$4 sm:$0xff]  }
 0x4c9   : > { %v4083_v11 = vmax.f32 %v3870_v6, 0.0  ;;  %6047 = vmatpush1.bf16.msra.mxu0 %v13067_v63 }
 0x4ca   : > { %v4174_v12 = vpack.c.bf16 %v4082_v8, %v4080_v7 }
 0x4cb   : > { %v3873_v13 = vpop.f32.mrb[232].mxu1  ;;  %v4175_v60 = vpack.c.bf16 %v4083_v11, %v4081_v9 }
 0x4cc   : > { %v3874_v24 = vadd.f32 %v3873_v13, %v14754_v22  ;;  %v3875_v61 = vpop.f32.mrb[233].mxu1 }
 0x4cd   : > { %v3876_v16 = vadd.f32 %v3875_v61, %v14758_v43  ;;  %v3877_v5 = vpop.f32.mrb[234].mxu1  ;;  %4610 = vmatprep.mubr.bf16.mxu0 %v4175_v60 }
 0x4ce   : > { %v3878_v41 = vadd.f32 %v3877_v5, %v14754_v22  ;;  %v3879_v10 = vpop.f32.mrb[235].mxu1  ;;  %4611 = vmatmul.mubr.bf16.gmra.mrb[36].mxu0 %v4174_v12  ;;  %v4084_v48 = vmax.f32 %v3874_v24, 0.0 }
 0x4cf   : > { %v3880_v14 = vadd.f32 %v3879_v10, %v14758_v43  ;;  %v4085_v20 = vmax.f32 %v3876_v16, 0.0 }
 0x4d0   : > { %v4086_v18 = vmax.f32 %v3878_v41, 0.0 }
 0x4d1   : > { %v4087_v40 = vmax.f32 %v3880_v14, 0.0 }
 0x4d2   : > { %v4176_v21 = vpack.c.bf16 %v4086_v18, %v4084_v48 }
 0x4d3   : > { %v3883_v47 = vpop.f32.mrb[236].mxu1  ;;  %v4177_v0 = vpack.c.bf16 %v4087_v40, %v4085_v20 }
 0x4d4   : > { %v3884_v25 = vadd.f32 %v3883_v47, %v14754_v22  ;;  %v3885_v26 = vpop.f32.mrb[237].mxu1 }
 0x4d5   : > { %v3886_v28 = vadd.f32 %v3885_v26, %v14758_v43  ;;  %v3887_v23 = vpop.f32.mrb[238].mxu1  ;;  %4620 = vmatprep.mubr.bf16.mxu0 %v4177_v0 }
 0x4d6   : > { %v3888_v29 = vadd.f32 %v3887_v23, %v14754_v22  ;;  %v3889_v30 = vpop.f32.mrb[239].mxu1  ;;  %4621 = vmatmul.mubr.bf16.gmra.mrb[40].mxu0 %v4176_v21  ;;  %v4088_v17 = vmax.f32 %v3884_v25, 0.0 }
 0x4d7   : > { %v3890_v31 = vadd.f32 %v3889_v30, %v14758_v43  ;;  %v4089_v33 = vmax.f32 %v3886_v28, 0.0  ;;  %v13072_v28 = vld [vmem:[#allocation14 + $0x74] ss:$8 sps:$4 sm:$0xff]  }
 0x4d8   : > { %v4090_v32 = vmax.f32 %v3888_v29, 0.0  ;;  %6048 = vmatprep.subr.bf16.mxu0 %v13072_v28 }
 0x4d9   : > { %v4091_v37 = vmax.f32 %v3890_v31, 0.0  ;;  %6049 = vmatpush1.bf16.msra.mxu0 %v13070_v19 }
 0x4da   : > { %v4178_v34 = vpack.c.bf16 %v4090_v32, %v4088_v17 }
 0x4db   : > { %v3893_v15 = vpop.f32.mrb[240].mxu1  ;;  %v4179_v35 = vpack.c.bf16 %v4091_v37, %v4089_v33 }
 0x4dc   : > { %v3894_v36 = vadd.f32 %v3893_v15, %v14754_v22  ;;  %v3895_v39 = vpop.f32.mrb[241].mxu1 }
 0x4dd   : > { %v3896_v54 = vadd.f32 %v3895_v39, %v14758_v43  ;;  %v3897_v38 = vpop.f32.mrb[242].mxu1  ;;  %4630 = vmatprep.mubr.bf16.mxu0 %v4179_v35 }
 0x4de   : > { %v3898_v44 = vadd.f32 %v3897_v38, %v14754_v22  ;;  %v3899_v42 = vpop.f32.mrb[243].mxu1  ;;  %4631 = vmatmul.mubr.bf16.gmra.mrb[44].mxu0 %v4178_v34  ;;  %v4092_v51 = vmax.f32 %v3894_v36, 0.0 }
 0x4df   : > { %v3900_v49 = vadd.f32 %v3899_v42, %v14758_v43  ;;  %v4093_v53 = vmax.f32 %v3896_v54, 0.0 }
 0x4e0   : > { %v4094_v52 = vmax.f32 %v3898_v44, 0.0 }
 0x4e1   : > { %v4095_v56 = vmax.f32 %v3900_v49, 0.0 }
 0x4e2   : > { %v4180_v50 = vpack.c.bf16 %v4094_v52, %v4092_v51 }
 0x4e3   : > { %v3903_v58 = vpop.f32.mrb[244].mxu1  ;;  %v4181_v59 = vpack.c.bf16 %v4095_v56, %v4093_v53 }
 0x4e4   : > { %v3904_v46 = vadd.f32 %v3903_v58, %v14754_v22  ;;  %v3905_v62 = vpop.f32.mrb[245].mxu1 }
 0x4e5   : > { %v3906_v2 = vadd.f32 %v3905_v62, %v14758_v43  ;;  %v3907_v3 = vpop.f32.mrb[246].mxu1  ;;  %4640 = vmatprep.mubr.bf16.mxu0 %v4181_v59 }
 0x4e6   : > { %v3908_v4 = vadd.f32 %v3907_v3, %v14754_v22  ;;  %v3909_v6 = vpop.f32.mrb[247].mxu1  ;;  %4641 = vmatmul.mubr.bf16.gmra.mrb[48].mxu0 %v4180_v50  ;;  %v4096_v8 = vmax.f32 %v3904_v46, 0.0 }
 0x4e7   : > { %v3910_v7 = vadd.f32 %v3909_v6, %v14758_v43  ;;  %v4097_v11 = vmax.f32 %v3906_v2, 0.0  ;;  %v13075_v2 = vld [vmem:[#allocation14 + $0x84] ss:$8 sps:$4 sm:$0xff]  }
 0x4e8   : > { %v4098_v9 = vmax.f32 %v3908_v4, 0.0  ;;  %6050 = vmatprep.subr.bf16.mxu0 %v13075_v2 }
 0x4e9   : > { %v4099_v12 = vmax.f32 %v3910_v7, 0.0  ;;  %6051 = vmatpush1.bf16.msra.mxu0 %v13073_v27 }
 0x4ea   : > { %v4182_v13 = vpack.c.bf16 %v4098_v9, %v4096_v8 }
 0x4eb   : > { %v3913_v60 = vpop.f32.mrb[248].mxu1  ;;  %v4183_v24 = vpack.c.bf16 %v4099_v12, %v4097_v11 }
 0x4ec   : > { %v3914_v61 = vadd.f32 %v3913_v60, %v14754_v22  ;;  %v3915_v16 = vpop.f32.mrb[249].mxu1 }
 0x4ed   : > { %v3916_v5 = vadd.f32 %v3915_v16, %v14758_v43  ;;  %v3917_v41 = vpop.f32.mrb[250].mxu1  ;;  %4650 = vmatprep.mubr.bf16.mxu0 %v4183_v24 }
 0x4ee   : > { %v3918_v10 = vadd.f32 %v3917_v41, %v14754_v22  ;;  %v3919_v14 = vpop.f32.mrb[251].mxu1  ;;  %4651 = vmatmul.mubr.bf16.gmra.mrb[52].mxu0 %v4182_v13  ;;  %v4100_v18 = vmax.f32 %v3914_v61, 0.0 }
 0x4ef   : > { %v3920_v48 = vadd.f32 %v3919_v14, %v14758_v43  ;;  %v4101_v40 = vmax.f32 %v3916_v5, 0.0 }
 0x4f0   : > { %v4102_v20 = vmax.f32 %v3918_v10, 0.0 }
 0x4f1   : > { %v4103_v21 = vmax.f32 %v3920_v48, 0.0 }
 0x4f2   : > { %v4184_v47 = vpack.c.bf16 %v4102_v20, %v4100_v18 }
 0x4f3   : > { %v3923_v0 = vpop.f32.mrb[252].mxu1  ;;  %v4185_v25 = vpack.c.bf16 %v4103_v21, %v4101_v40 }
 0x4f4   : > { %v3924_v26 = vadd.f32 %v3923_v0, %v14754_v22  ;;  %v3925_v45 = vpop.f32.mrb[253].mxu1 }
 0x4f5   : > { %v3926_v23 = vadd.f32 %v3925_v45, %v14758_v43  ;;  %v3927_v29 = vpop.f32.mrb[254].mxu1  ;;  %4660 = vmatprep.mubr.bf16.mxu0 %v4185_v25  ;;  %v4236_v45 = vld [vmem:[%s17093_s3] sm:$0x3] }
 0x4f6   : > { %v3928_v30 = vadd.f32 %v3927_v29, %v14754_v22  ;;  %v3929_v31 = vpop.f32.mrb[255].mxu1  ;;  %4661 = vmatmul.mubr.bf16.gmra.mrb[56].mxu0 %v4184_v47  ;;  %v4104_v32 = vmax.f32 %v3924_v26, 0.0  ;;  %v13078_v29 = vld [vmem:[#allocation14 + $0x94] ss:$8 sps:$4 sm:$0xff]  }
 0x4f7   : > { %v3930_v17 = vadd.f32 %v3929_v31, %v14758_v43  ;;  %v4105_v37 = vmax.f32 %v3926_v23, 0.0  ;;  %v13076_v23 = vld [vmem:[#allocation14 + $0x90] ss:$8 sps:$4 sm:$0xff]   ;;  %6052 = vmatprep.subr.bf16.mxu0 %v13078_v29 }
 0x4f8   : > { %v4106_v33 = vmax.f32 %v3928_v30, 0.0  ;;  %6053 = vmatpush1.bf16.msra.mxu0 %v13076_v23 }
 0x4f9   : > { %v4107_v34 = vmax.f32 %v3930_v17, 0.0 }
 0x4fa   : > { %v4186_v15 = vpack.c.bf16 %v4106_v33, %v4104_v32  ;;  %v14889_v33 = vrot.slane %v4236_v45, %v14419_v55 }
 0x4fb   : > { %v3933_v35 = vpop.f32.mrb[0].mxu1  ;;  %v4187_v36 = vpack.c.bf16 %v4107_v34, %v4105_v37  ;;  %v14893_v34 = vrot.slane %v4236_v45, %v14422_v57 }
 0x4fc   : > { %v3934_v39 = vadd.f32 %v3933_v35, %v14754_v22  ;;  %v3935_v54 = vpop.f32.mrb[1].mxu1 }
 0x4fd   : > { %v3936_v38 = vadd.f32 %v3935_v54, %v14758_v43  ;;  %v3937_v44 = vpop.f32.mrb[2].mxu1  ;;  %4670 = vmatprep.mubr.bf16.mxu0 %v4187_v36 }
 0x4fe   : > { %v3938_v42 = vadd.f32 %v3937_v44, %v14754_v22  ;;  %v3939_v49 = vpop.f32.mrb[3].mxu1  ;;  %4671 = vmatmul.mubr.bf16.gmra.mrb[60].mxu0 %v4186_v15  ;;  %v4108_v52 = vmax.f32 %v3934_v39, 0.0 }
 0x4ff   : > { %v3940_v51 = vadd.f32 %v3939_v49, %v14758_v43  ;;  %v4109_v56 = vmax.f32 %v3936_v38, 0.0 }
 0x500   : > { %v4110_v53 = vmax.f32 %v3938_v42, 0.0 }
 0x501   : > { %v4111_v50 = vmax.f32 %v3940_v51, 0.0 }
 0x502   : > { %v4188_v58 = vpack.c.bf16 %v4110_v53, %v4108_v52 }
 0x503   : > { %v3943_v59 = vpop.f32.mrb[4].mxu1  ;;  %v4189_v46 = vpack.c.bf16 %v4111_v50, %v4109_v56 }
 0x504   : > { %v3944_v62 = vadd.f32 %v3943_v59, %v14754_v22  ;;  %v3945_v63 = vpop.f32.mrb[5].mxu1 }
 0x505   : > { %v3946_v3 = vadd.f32 %v3945_v63, %v14758_v43  ;;  %v3947_v4 = vpop.f32.mrb[6].mxu1  ;;  %4680 = vmatprep.mubr.bf16.mxu0 %v4189_v46 }
 0x506   : > { %v3948_v6 = vadd.f32 %v3947_v4, %v14754_v22  ;;  %v3949_v7 = vpop.f32.mrb[7].mxu1  ;;  %4681 = vmatmul.mubr.bf16.gmra.mrb[64].mxu0 %v4188_v58  ;;  %v4112_v9 = vmax.f32 %v3944_v62, 0.0 }
 0x507   : > { %v3950_v8 = vadd.f32 %v3949_v7, %v14758_v43  ;;  %v4113_v12 = vmax.f32 %v3946_v3, 0.0 }
 0x508   : > { %v4114_v11 = vmax.f32 %v3948_v6, 0.0 }
 0x509   : > { %v4115_v13 = vmax.f32 %v3950_v8, 0.0 }
 0x50a   : > { %v4190_v60 = vpack.c.bf16 %v4114_v11, %v4112_v9 }
 0x50b   : > { %v3953_v24 = vpop.f32.mrb[8].mxu1  ;;  %v4191_v61 = vpack.c.bf16 %v4115_v13, %v4113_v12 }
 0x50c   : > { %v3954_v16 = vadd.f32 %v3953_v24, %v14754_v22  ;;  %v3955_v5 = vpop.f32.mrb[9].mxu1 }
 0x50d   : > { %v3956_v41 = vadd.f32 %v3955_v5, %v14758_v43  ;;  %v3957_v10 = vpop.f32.mrb[10].mxu1  ;;  %4690 = vmatprep.mubr.bf16.mxu0 %v4191_v61 }
 0x50e   : > { %v3958_v14 = vadd.f32 %v3957_v10, %v14754_v22  ;;  %v3959_v48 = vpop.f32.mrb[11].mxu1  ;;  %4691 = vmatmul.mubr.bf16.gmra.mrb[68].mxu0 %v4190_v60  ;;  %v4116_v20 = vmax.f32 %v3954_v16, 0.0 }
 0x50f   : > { %v3960_v18 = vadd.f32 %v3959_v48, %v14758_v43  ;;  %v4117_v21 = vmax.f32 %v3956_v41, 0.0 }
 0x510   : > { %v4118_v40 = vmax.f32 %v3958_v14, 0.0 }
 0x511   : > { %v4119_v47 = vmax.f32 %v3960_v18, 0.0 }
 0x512   : > { %v4192_v0 = vpack.c.bf16 %v4118_v40, %v4116_v20 }
 0x513   : > { %v3963_v25 = vpop.f32.mrb[12].mxu1  ;;  %v4193_v26 = vpack.c.bf16 %v4119_v47, %v4117_v21 }
 0x514   : > { %v3964_v19 = vadd.f32 %v3963_v25, %v14754_v22  ;;  %v3965_v28 = vpop.f32.mrb[13].mxu1 }
 0x515   : > { %v3966_v30 = vadd.f32 %v3965_v28, %v14758_v43  ;;  %v3967_v31 = vpop.f32.mrb[14].mxu1  ;;  %4700 = vmatprep.mubr.bf16.mxu0 %v4193_v26 }
 0x516   : > { %v3968_v17 = vadd.f32 %v3967_v31, %v14754_v22  ;;  %v3969_v32 = vpop.f32.mrb[15].mxu1  ;;  %4701 = vmatmul.mubr.bf16.gmra.mrb[72].mxu0 %v4192_v0  ;;  %v4120_v15 = vmax.f32 %v3964_v19, 0.0  ;;  %v13079_v0 = vld [vmem:[#allocation14 + $0xa0] ss:$8 sps:$4 sm:$0xff]   ;;  %v13081_v19 = vld [vmem:[#allocation14 + $0xa4] ss:$8 sps:$4 sm:$0xff]  }
 0x517   : > { %v3970_v37 = vadd.f32 %v3969_v32, %v14758_v43  ;;  %v4121_v36 = vmax.f32 %v3966_v30, 0.0  ;;  %6054 = vmatprep.subr.bf16.mxu0 %v13081_v19 }
 0x518   : > { %v4122_v35 = vmax.f32 %v3968_v17, 0.0  ;;  %6055 = vmatpush1.bf16.msra.mxu0 %v13079_v0 }
 0x519   : > { %v4123_v39 = vmax.f32 %v3970_v37, 0.0  ;;  %v4442_v54 = vpop.f32.mrb[224].mxu0 }
 0x51a   : > { %v4194_v38 = vpack.c.bf16 %v4122_v35, %v4120_v15  ;;  %v4443_v44 = vadd.f32 %v4442_v54, %v14889_v33  ;;  %v4444_v42 = vpop.f32.mrb[225].mxu0 }
 0x51b   : > { %v4445_v49 = vadd.f32 %v4444_v42, %v14893_v34  ;;  %v3973_v51 = vpop.f32.mrb[16].mxu1  ;;  %v4446_v52 = vpop.f32.mrb[226].mxu0  ;;  %v4195_v53 = vpack.c.bf16 %v4123_v39, %v4121_v36 }
 0x51c   : > { %v3974_v56 = vadd.f32 %v3973_v51, %v14754_v22  ;;  %v4447_v50 = vadd.f32 %v4446_v52, %v14889_v33  ;;  %v3975_v58 = vpop.f32.mrb[17].mxu1  ;;  %v4448_v59 = vpop.f32.mrb[227].mxu0  ;;  %v4761_v27 = vmax.f32 %v4443_v44, 0.0 }
 0x51d   : > { %v3976_v46 = vadd.f32 %v3975_v58, %v14758_v43  ;;  %v4449_v62 = vadd.f32 %v4448_v59, %v14893_v34  ;;  %v3977_v63 = vpop.f32.mrb[18].mxu1  ;;  %4710 = vmatprep.mubr.bf16.mxu0 %v4195_v53  ;;  %v4762_v6 = vmax.f32 %v4445_v49, 0.0 }
 0x51e   : > { %v4763_v2 = vmax.f32 %v4447_v50, 0.0  ;;  %v3978_v3 = vadd.f32 %v3977_v63, %v14754_v22  ;;  %v3979_v4 = vpop.f32.mrb[19].mxu1  ;;  %4711 = vmatmul.mubr.bf16.gmra.mrb[76].mxu0 %v4194_v38  ;;  %v4124_v9 = vmax.f32 %v3974_v56, 0.0 }
 0x51f   : > { %v4764_v7 = vmax.f32 %v4449_v62, 0.0  ;;  %v3980_v8 = vadd.f32 %v3979_v4, %v14758_v43  ;;  %v4125_v13 = vmax.f32 %v3976_v46, 0.0 }
 0x520   : > { %v4889_v11 = vpack.c.bf16 %v4763_v2, %v4761_v27  ;;  %v4126_v12 = vmax.f32 %v3978_v3, 0.0 }
 0x521   : > { %v4127_v60 = vmax.f32 %v3980_v8, 0.0  ;;  %v4452_v24 = vpop.f32.mrb[228].mxu0  ;;  %v4890_v61 = vpack.c.bf16 %v4764_v7, %v4762_v6 }
 0x522   : > { %v4196_v16 = vpack.c.bf16 %v4126_v12, %v4124_v9  ;;  %v4453_v5 = vadd.f32 %v4452_v24, %v14889_v33  ;;  %v4454_v41 = vpop.f32.mrb[229].mxu0 }
 0x523   : > { %v4455_v10 = vadd.f32 %v4454_v41, %v14893_v34  ;;  %v3983_v14 = vpop.f32.mrb[20].mxu1  ;;  %v4456_v48 = vpop.f32.mrb[230].mxu0  ;;  %5177 = vmatprep.mubr.bf16.mxu1 %v4890_v61  ;;  %v4197_v18 = vpack.c.bf16 %v4127_v60, %v4125_v13 }
 0x524   : > { %v3984_v20 = vadd.f32 %v3983_v14, %v14754_v22  ;;  %v4457_v40 = vadd.f32 %v4456_v48, %v14889_v33  ;;  %v3985_v21 = vpop.f32.mrb[21].mxu1  ;;  %v4458_v47 = vpop.f32.mrb[231].mxu0  ;;  %5178 = vmatmul.mubr.bf16.vlgmr.msra.gmra.mrb[32].mxu1 %v4889_v11  ;;  %v4765_v28 = vmax.f32 %v4453_v5, 0.0 }
 0x525   : > { %v3986_v25 = vadd.f32 %v3985_v21, %v14758_v43  ;;  %v4459_v26 = vadd.f32 %v4458_v47, %v14893_v34  ;;  %v3987_v45 = vpop.f32.mrb[22].mxu1  ;;  %4720 = vmatprep.mubr.bf16.mxu0 %v4197_v18  ;;  %v4766_v31 = vmax.f32 %v4455_v10, 0.0 }
 0x526   : > { %v4767_v23 = vmax.f32 %v4457_v40, 0.0  ;;  %v3988_v29 = vadd.f32 %v3987_v45, %v14754_v22  ;;  %v3989_v30 = vpop.f32.mrb[23].mxu1  ;;  %4721 = vmatmul.mubr.bf16.gmra.mrb[80].mxu0 %v4196_v16  ;;  %v4128_v37 = vmax.f32 %v3984_v20, 0.0 }
 0x527   : > { %v4768_v17 = vmax.f32 %v4459_v26, 0.0  ;;  %v3990_v32 = vadd.f32 %v3989_v30, %v14758_v43  ;;  %v4129_v36 = vmax.f32 %v3986_v25, 0.0  ;;  %v13082_v25 = vld [vmem:[#allocation14 + $0xb0] ss:$8 sps:$4 sm:$0xff]  }
 0x528   : > { %v4130_v15 = vmax.f32 %v3988_v29, 0.0  ;;  %v4891_v35 = vpack.c.bf16 %v4767_v23, %v4765_v28  ;;  %v13084_v28 = vld [vmem:[#allocation14 + $0xb4] ss:$8 sps:$4 sm:$0xff]  }
 0x529   : > { %v4131_v39 = vmax.f32 %v3990_v32, 0.0  ;;  %v4462_v54 = vpop.f32.mrb[232].mxu0  ;;  %v4892_v38 = vpack.c.bf16 %v4768_v17, %v4766_v31  ;;  %6056 = vmatprep.subr.bf16.mxu0 %v13084_v28 }
 0x52a   : > { %v4198_v44 = vpack.c.bf16 %v4130_v15, %v4128_v37  ;;  %v4463_v42 = vadd.f32 %v4462_v54, %v14889_v33  ;;  %v4464_v49 = vpop.f32.mrb[233].mxu0  ;;  %6057 = vmatpush1.bf16.msra.mxu0 %v13082_v25 }
 0x52b   : > { %v4465_v51 = vadd.f32 %v4464_v49, %v14893_v34  ;;  %v3993_v52 = vpop.f32.mrb[24].mxu1  ;;  %v4466_v53 = vpop.f32.mrb[234].mxu0  ;;  %5187 = vmatprep.mubr.bf16.mxu1 %v4892_v38  ;;  %v4199_v56 = vpack.c.bf16 %v4131_v39, %v4129_v36 }
 0x52c   : > { %v3994_v50 = vadd.f32 %v3993_v52, %v14754_v22  ;;  %v4467_v58 = vadd.f32 %v4466_v53, %v14889_v33  ;;  %v3995_v59 = vpop.f32.mrb[25].mxu1  ;;  %v4468_v46 = vpop.f32.mrb[235].mxu0  ;;  %5188 = vmatmul.mubr.bf16.gmra.mrb[36].mxu1 %v4891_v35  ;;  %v4769_v2 = vmax.f32 %v4463_v42, 0.0 }
 0x52d   : > { %v3996_v62 = vadd.f32 %v3995_v59, %v14758_v43  ;;  %v4469_v63 = vadd.f32 %v4468_v46, %v14893_v34  ;;  %v3997_v27 = vpop.f32.mrb[26].mxu1  ;;  %4730 = vmatprep.mubr.bf16.mxu0 %v4199_v56  ;;  %v4770_v7 = vmax.f32 %v4465_v51, 0.0 }
 0x52e   : > { %v4771_v3 = vmax.f32 %v4467_v58, 0.0  ;;  %v3998_v4 = vadd.f32 %v3997_v27, %v14754_v22  ;;  %v3999_v6 = vpop.f32.mrb[27].mxu1  ;;  %4731 = vmatmul.mubr.bf16.gmra.mrb[84].mxu0 %v4198_v44  ;;  %v4132_v11 = vmax.f32 %v3994_v50, 0.0 }
 0x52f   : > { %v4772_v8 = vmax.f32 %v4469_v63, 0.0  ;;  %v4000_v9 = vadd.f32 %v3999_v6, %v14758_v43  ;;  %v4133_v60 = vmax.f32 %v3996_v62, 0.0 }
 0x530   : > { %v4134_v12 = vmax.f32 %v3998_v4, 0.0  ;;  %v4893_v13 = vpack.c.bf16 %v4771_v3, %v4769_v2 }
 0x531   : > { %v4135_v24 = vmax.f32 %v4000_v9, 0.0  ;;  %v4472_v61 = vpop.f32.mrb[236].mxu0  ;;  %v4894_v16 = vpack.c.bf16 %v4772_v8, %v4770_v7 }
 0x532   : > { %v4200_v5 = vpack.c.bf16 %v4134_v12, %v4132_v11  ;;  %v4473_v41 = vadd.f32 %v4472_v61, %v14889_v33  ;;  %v4474_v10 = vpop.f32.mrb[237].mxu0  ;;  %v13085_v11 = vld [vmem:[#allocation14 + $0xc0] ss:$8 sps:$4 sm:$0xff]   ;;  %v13087_v12 = vld [vmem:[#allocation14 + $0xc4] ss:$8 sps:$4 sm:$0xff]  }
 0x533   : > { %v4475_v14 = vadd.f32 %v4474_v10, %v14893_v34  ;;  %v4003_v48 = vpop.f32.mrb[28].mxu1  ;;  %v4476_v18 = vpop.f32.mrb[238].mxu0  ;;  %5197 = vmatprep.mubr.bf16.mxu1 %v4894_v16  ;;  %v4201_v20 = vpack.c.bf16 %v4135_v24, %v4133_v60  ;;  %6058 = vmatprep.subr.bf16.mxu0 %v13087_v12 }
 0x534   : > { %v4004_v40 = vadd.f32 %v4003_v48, %v14754_v22  ;;  %v4477_v21 = vadd.f32 %v4476_v18, %v14889_v33  ;;  %v4005_v47 = vpop.f32.mrb[29].mxu1  ;;  %v4478_v0 = vpop.f32.mrb[239].mxu0  ;;  %5198 = vmatmul.mubr.bf16.gmra.mrb[40].mxu1 %v4893_v13  ;;  %v4773_v23 = vmax.f32 %v4473_v41, 0.0  ;;  %6059 = vmatpush1.bf16.msra.mxu0 %v13085_v11 }
 0x535   : > { %v4006_v26 = vadd.f32 %v4005_v47, %v14758_v43  ;;  %v4479_v45 = vadd.f32 %v4478_v0, %v14893_v34  ;;  %v4007_v19 = vpop.f32.mrb[30].mxu1  ;;  %4740 = vmatprep.mubr.bf16.mxu0 %v4201_v20  ;;  %v4774_v17 = vmax.f32 %v4475_v14, 0.0 }
 0x536   : > { %v4775_v29 = vmax.f32 %v4477_v21, 0.0  ;;  %v4008_v30 = vadd.f32 %v4007_v19, %v14754_v22  ;;  %v4009_v31 = vpop.f32.mrb[31].mxu1  ;;  %4741 = vmatmul.mubr.bf16.gmra.mrb[88].mxu0 %v4200_v5  ;;  %v4136_v15 = vmax.f32 %v4004_v40, 0.0 }
 0x537   : > { %v4776_v32 = vmax.f32 %v4479_v45, 0.0  ;;  %v4010_v37 = vadd.f32 %v4009_v31, %v14758_v43  ;;  %v4137_v39 = vmax.f32 %v4006_v26, 0.0 }
 0x538   : > { %v4138_v35 = vmax.f32 %v4008_v30, 0.0  ;;  %v4895_v36 = vpack.c.bf16 %v4775_v29, %v4773_v23 }
 0x539   : > { %v4139_v54 = vmax.f32 %v4010_v37, 0.0  ;;  %v4482_v38 = vpop.f32.mrb[240].mxu0  ;;  %v4896_v44 = vpack.c.bf16 %v4776_v32, %v4774_v17 }
 0x53a   : > { %v4202_v42 = vpack.c.bf16 %v4138_v35, %v4136_v15  ;;  %v4483_v49 = vadd.f32 %v4482_v38, %v14889_v33  ;;  %v4484_v51 = vpop.f32.mrb[241].mxu0  ;;  %v13088_v15 = vld [vmem:[#allocation14 + $0xd0] ss:$8 sps:$4 sm:$0xff]   ;;  %v13090_v35 = vld [vmem:[#allocation14 + $0xd4] ss:$8 sps:$4 sm:$0xff]  }
 0x53b   : > { %v4485_v22 = vadd.f32 %v4484_v51, %v14893_v34  ;;  %v4486_v52 = vpop.f32.mrb[242].mxu0  ;;  %5207 = vmatprep.mubr.bf16.mxu1 %v4896_v44  ;;  %v4203_v53 = vpack.c.bf16 %v4139_v54, %v4137_v39  ;;  %6060 = vmatprep.subr.bf16.mxu0 %v13090_v35 }
 0x53c   : > { %v4487_v43 = vadd.f32 %v4486_v52, %v14889_v33  ;;  %v4488_v56 = vpop.f32.mrb[243].mxu0  ;;  %5208 = vmatmul.mubr.bf16.gmra.mrb[44].mxu1 %v4895_v36  ;;  %v4777_v58 = vmax.f32 %v4483_v49, 0.0  ;;  %6061 = vmatpush1.bf16.msra.mxu0 %v13088_v15 }
 0x53d   : > { %v4489_v50 = vadd.f32 %v4488_v56, %v14893_v34  ;;  %4750 = vmatprep.mubr.bf16.mxu0 %v4203_v53  ;;  %v4778_v46 = vmax.f32 %v4485_v22, 0.0 }
 0x53e   : > { %v4779_v59 = vmax.f32 %v4487_v43, 0.0  ;;  %4751 = vmatmul.mubr.bf16.gmra.mrb[92].mxu0 %v4202_v42 }
 0x53f   : > { %v4780_v62 = vmax.f32 %v4489_v50, 0.0 }
 0x540   : > { %v4897_v63 = vpack.c.bf16 %v4779_v59, %v4777_v58 }
 0x541   : > { %v4492_v27 = vpop.f32.mrb[244].mxu0  ;;  %v4898_v2 = vpack.c.bf16 %v4780_v62, %v4778_v46 }
 0x542   : > { %v4493_v3 = vadd.f32 %v4492_v27, %v14889_v33  ;;  %v4494_v4 = vpop.f32.mrb[245].mxu0  ;;  %v13091_v27 = vld [vmem:[#allocation16] ss:$8 sps:$4 sm:$0xff]  }
 0x543   : > { %v4495_v6 = vadd.f32 %v4494_v4, %v14893_v34  ;;  %v4496_v7 = vpop.f32.mrb[246].mxu0  ;;  %5217 = vmatprep.mubr.bf16.mxu1 %v4898_v2  ;;  %v13093_v2 = vld [vmem:[#allocation16 + $0x4] ss:$8 sps:$4 sm:$0xff]  }
 0x544   : > { %v4497_v8 = vadd.f32 %v4496_v7, %v14889_v33  ;;  %v4498_v9 = vpop.f32.mrb[247].mxu0  ;;  %5218 = vmatmul.mubr.bf16.gmra.mrb[48].mxu1 %v4897_v63  ;;  %v4781_v60 = vmax.f32 %v4493_v3, 0.0  ;;  %6783 = vmatprep.subr.bf16.mxu1 %v13093_v2 }
 0x545   : > { %v4499_v13 = vadd.f32 %v4498_v9, %v14893_v34  ;;  %v4782_v61 = vmax.f32 %v4495_v6, 0.0  ;;  %6784 = vmatpush1.bf16.msra.mxu1 %v13091_v27 }
 0x546   : > { %v4783_v24 = vmax.f32 %v4497_v8, 0.0 }
 0x547   : > { %v4784_v16 = vmax.f32 %v4499_v13, 0.0 }
 0x548   : > { %v4899_v5 = vpack.c.bf16 %v4783_v24, %v4781_v60  ;;  %v13094_v60 = vld [vmem:[#allocation14 + $0xe0] ss:$8 sps:$4 sm:$0xff]   ;;  %v13096_v24 = vld [vmem:[#allocation14 + $0xe4] ss:$8 sps:$4 sm:$0xff]  }
 0x549   : > { %v4502_v41 = vpop.f32.mrb[248].mxu0  ;;  %v4900_v10 = vpack.c.bf16 %v4784_v16, %v4782_v61  ;;  %6062 = vmatprep.subr.bf16.mxu0 %v13096_v24 }
 0x54a   : > { %v4503_v14 = vadd.f32 %v4502_v41, %v14889_v33  ;;  %v4504_v48 = vpop.f32.mrb[249].mxu0  ;;  %6063 = vmatpush1.bf16.msra.mxu0 %v13094_v60  ;;  %v13105_v60 = vld [vmem:[#allocation16 + $0x24] ss:$8 sps:$4 sm:$0xff]  }
 0x54b   : > { %v4505_v18 = vadd.f32 %v4504_v48, %v14893_v34  ;;  %v4506_v20 = vpop.f32.mrb[250].mxu0  ;;  %5227 = vmatprep.mubr.bf16.mxu1 %v4900_v10 }
 0x54c   : > { %v4507_v40 = vadd.f32 %v4506_v20, %v14889_v33  ;;  %v4508_v21 = vpop.f32.mrb[251].mxu0  ;;  %5228 = vmatmul.mubr.bf16.gmra.mrb[52].mxu1 %v4899_v5  ;;  %v4785_v0 = vmax.f32 %v4503_v14, 0.0 }
 0x54d   : > { %v4509_v47 = vadd.f32 %v4508_v21, %v14893_v34  ;;  %v4786_v26 = vmax.f32 %v4505_v18, 0.0 }
 0x54e   : > { %v4787_v25 = vmax.f32 %v4507_v40, 0.0 }
 0x54f   : > { %v4788_v45 = vmax.f32 %v4509_v47, 0.0 }
 0x550   : > { %v4901_v19 = vpack.c.bf16 %v4787_v25, %v4785_v0 }
 0x551   : > { %v4512_v28 = vpop.f32.mrb[252].mxu0  ;;  %v4902_v23 = vpack.c.bf16 %v4788_v45, %v4786_v26 }
 0x552   : > { %v4513_v29 = vadd.f32 %v4512_v28, %v14889_v33  ;;  %v4514_v30 = vpop.f32.mrb[253].mxu0 }
 0x553   : > { %v4515_v31 = vadd.f32 %v4514_v30, %v14893_v34  ;;  %v4516_v17 = vpop.f32.mrb[254].mxu0  ;;  %5237 = vmatprep.mubr.bf16.mxu1 %v4902_v23  ;;  %v13099_v30 = vld [vmem:[#allocation16 + $0x14] ss:$8 sps:$4 sm:$0xff]  }
 0x554   : > { %v4517_v32 = vadd.f32 %v4516_v17, %v14889_v33  ;;  %v4518_v37 = vpop.f32.mrb[255].mxu0  ;;  %5238 = vmatmul.mubr.bf16.gmra.mrb[56].mxu1 %v4901_v19  ;;  %v4789_v39 = vmax.f32 %v4513_v29, 0.0  ;;  %v13097_v29 = vld [vmem:[#allocation16 + $0x10] ss:$8 sps:$4 sm:$0xff]   ;;  %6785 = vmatprep.subr.bf16.mxu1 %v13099_v30 }
 0x555   : > { %v4519_v36 = vadd.f32 %v4518_v37, %v14893_v34  ;;  %v4790_v38 = vmax.f32 %v4515_v31, 0.0  ;;  %6786 = vmatpush1.bf16.msra.mxu1 %v13097_v29 }
 0x556   : > { %v4791_v54 = vmax.f32 %v4517_v32, 0.0  ;;  %6787 = vmatprep.subr.bf16.mxu1 %v13105_v60  ;;  %v13109_v60 = vld [vmem:[#allocation16 + $0x40] ss:$8 sps:$4 sm:$0xff]  }
 0x557   : > { %v4792_v44 = vmax.f32 %v4519_v36, 0.0 }
 0x558   : > { %v4903_v42 = vpack.c.bf16 %v4791_v54, %v4789_v39 }
 0x559   : > { %v4522_v49 = vpop.f32.mrb[0].mxu0  ;;  %v4904_v51 = vpack.c.bf16 %v4792_v44, %v4790_v38  ;;  %v13100_v38 = vld [vmem:[#allocation14 + $0xf0] ss:$8 sps:$4 sm:$0xff]   ;;  %v13102_v44 = vld [vmem:[#allocation14 + $0xf4] ss:$8 sps:$4 sm:$0xff]  }
 0x55a   : > { %v4523_v22 = vadd.f32 %v4522_v49, %v14889_v33  ;;  %v4524_v52 = vpop.f32.mrb[1].mxu0  ;;  %6064 = vmatprep.subr.bf16.mxu0 %v13102_v44 }
 0x55b   : > { %v4525_v53 = vadd.f32 %v4524_v52, %v14893_v34  ;;  %v4526_v43 = vpop.f32.mrb[2].mxu0  ;;  %5247 = vmatprep.mubr.bf16.mxu1 %v4904_v51  ;;  %6065 = vmatpush1.bf16.msra.mxu0 %v13100_v38 }
 0x55c   : > { %v4527_v56 = vadd.f32 %v4526_v43, %v14889_v33  ;;  %v4528_v50 = vpop.f32.mrb[3].mxu0  ;;  %5248 = vmatmul.mubr.bf16.gmra.mrb[60].mxu1 %v4903_v42  ;;  %v4793_v59 = vmax.f32 %v4523_v22, 0.0 }
 0x55d   : > { %v4529_v58 = vadd.f32 %v4528_v50, %v14893_v34  ;;  %v4794_v62 = vmax.f32 %v4525_v53, 0.0 }
 0x55e   : > { %v4795_v46 = vmax.f32 %v4527_v56, 0.0 }
 0x55f   : > { %v4796_v63 = vmax.f32 %v4529_v58, 0.0 }
 0x560   : > { %v4905_v3 = vpack.c.bf16 %v4795_v46, %v4793_v59 }
 0x561   : > { %v4532_v4 = vpop.f32.mrb[4].mxu0  ;;  %v4906_v6 = vpack.c.bf16 %v4796_v63, %v4794_v62 }
 0x562   : > { %v4533_v7 = vadd.f32 %v4532_v4, %v14889_v33  ;;  %v4534_v8 = vpop.f32.mrb[5].mxu0 }
 0x563   : > { %v4535_v9 = vadd.f32 %v4534_v8, %v14893_v34  ;;  %v4536_v11 = vpop.f32.mrb[6].mxu0  ;;  %5257 = vmatprep.mubr.bf16.mxu1 %v4906_v6 }
 0x564   : > { %v4537_v12 = vadd.f32 %v4536_v11, %v14889_v33  ;;  %v4538_v13 = vpop.f32.mrb[7].mxu0  ;;  %5258 = vmatmul.mubr.bf16.gmra.mrb[64].mxu1 %v4905_v3  ;;  %v4797_v16 = vmax.f32 %v4533_v7, 0.0 }
 0x565   : > { %v4539_v61 = vadd.f32 %v4538_v13, %v14893_v34  ;;  %v4798_v41 = vmax.f32 %v4535_v9, 0.0  ;;  %v13103_v13 = vld [vmem:[#allocation16 + $0x20] ss:$8 sps:$4 sm:$0xff]  }
 0x566   : > { %v4799_v5 = vmax.f32 %v4537_v12, 0.0  ;;  %6788 = vmatpush1.bf16.msra.mxu1 %v13103_v13 }
 0x567   : > { %v4800_v10 = vmax.f32 %v4539_v61, 0.0 }
 0x568   : > { %v4907_v14 = vpack.c.bf16 %v4799_v5, %v4797_v16 }
 0x569   : > { %v4542_v48 = vpop.f32.mrb[8].mxu0  ;;  %v4908_v18 = vpack.c.bf16 %v4800_v10, %v4798_v41 }
 0x56a   : > { %v4543_v20 = vadd.f32 %v4542_v48, %v14889_v33  ;;  %v4544_v40 = vpop.f32.mrb[9].mxu0 }
 0x56b   : > { %v4545_v21 = vadd.f32 %v4544_v40, %v14893_v34  ;;  %v4546_v47 = vpop.f32.mrb[10].mxu0  ;;  %5267 = vmatprep.mubr.bf16.mxu1 %v4908_v18 }
 0x56c   : > { %v4547_v0 = vadd.f32 %v4546_v47, %v14889_v33  ;;  %v4548_v25 = vpop.f32.mrb[11].mxu0  ;;  %5268 = vmatmul.mubr.bf16.gmra.mrb[68].mxu1 %v4907_v14  ;;  %v4801_v45 = vmax.f32 %v4543_v20, 0.0 }
 0x56d   : > { %v4549_v26 = vadd.f32 %v4548_v25, %v14893_v34  ;;  %v4802_v28 = vmax.f32 %v4545_v21, 0.0 }
 0x56e   : > { %v4803_v19 = vmax.f32 %v4547_v0, 0.0 }
 0x56f   : > { %v4804_v23 = vmax.f32 %v4549_v26, 0.0 }
 0x570   : > { %v4909_v31 = vpack.c.bf16 %v4803_v19, %v4801_v45 }
 0x571   : > { %v4552_v17 = vpop.f32.mrb[12].mxu0  ;;  %v4910_v32 = vpack.c.bf16 %v4804_v23, %v4802_v28 }
 0x572   : > { %v4553_v37 = vadd.f32 %v4552_v17, %v14889_v33  ;;  %v4554_v15 = vpop.f32.mrb[13].mxu0 }
 0x573   : > { %v4555_v35 = vadd.f32 %v4554_v15, %v14893_v34  ;;  %v4556_v36 = vpop.f32.mrb[14].mxu0  ;;  %5277 = vmatprep.mubr.bf16.mxu1 %v4910_v32 }
 0x574   : > { %v4557_v39 = vadd.f32 %v4556_v36, %v14889_v33  ;;  %v4558_v54 = vpop.f32.mrb[15].mxu0  ;;  %5278 = vmatmul.mubr.bf16.gmra.mrb[72].mxu1 %v4909_v31  ;;  %v4805_v49 = vmax.f32 %v4553_v37, 0.0  ;;  %v13106_v36 = vld [vmem:[#allocation16 + $0x30] ss:$8 sps:$4 sm:$0xff]  }
 0x575   : > { %v4559_v42 = vadd.f32 %v4558_v54, %v14893_v34  ;;  %v4806_v22 = vmax.f32 %v4555_v35, 0.0 }
 0x576   : > { %v4807_v51 = vmax.f32 %v4557_v39, 0.0  ;;  %v13108_v39 = vld [vmem:[#allocation16 + $0x34] ss:$8 sps:$4 sm:$0xff]  }
 0x577   : > { %v4808_v52 = vmax.f32 %v4559_v42, 0.0  ;;  %6789 = vmatprep.subr.bf16.mxu1 %v13108_v39  ;;  %v13112_v39 = vld [vmem:[#allocation16 + $0x50] ss:$8 sps:$4 sm:$0xff]  }
 0x578   : > { %v4911_v53 = vpack.c.bf16 %v4807_v51, %v4805_v49  ;;  %6790 = vmatpush1.bf16.msra.mxu1 %v13106_v36 }
 0x579   : > { %v4562_v43 = vpop.f32.mrb[16].mxu0  ;;  %v4912_v56 = vpack.c.bf16 %v4808_v52, %v4806_v22 }
 0x57a   : > { %v4563_v50 = vadd.f32 %v4562_v43, %v14889_v33  ;;  %v4564_v58 = vpop.f32.mrb[17].mxu0 }
 0x57b   : > { %v4565_v59 = vadd.f32 %v4564_v58, %v14893_v34  ;;  %v4566_v46 = vpop.f32.mrb[18].mxu0  ;;  %5287 = vmatprep.mubr.bf16.mxu1 %v4912_v56 }
 0x57c   : > { %v4567_v62 = vadd.f32 %v4566_v46, %v14889_v33  ;;  %v4568_v63 = vpop.f32.mrb[19].mxu0  ;;  %5288 = vmatmul.mubr.bf16.gmra.mrb[76].mxu1 %v4911_v53  ;;  %v4809_v2 = vmax.f32 %v4563_v50, 0.0 }
 0x57d   : > { %v4569_v27 = vadd.f32 %v4568_v63, %v14893_v34  ;;  %v4810_v4 = vmax.f32 %v4565_v59, 0.0 }
 0x57e   : > { %v4811_v3 = vmax.f32 %v4567_v62, 0.0 }
 0x57f   : > { %v4812_v6 = vmax.f32 %v4569_v27, 0.0 }
 0x580   : > { %v4913_v7 = vpack.c.bf16 %v4811_v3, %v4809_v2 }
 0x581   : > { %v4572_v8 = vpop.f32.mrb[20].mxu0  ;;  %v4914_v9 = vpack.c.bf16 %v4812_v6, %v4810_v4 }
 0x582   : > { %v4573_v11 = vadd.f32 %v4572_v8, %v14889_v33  ;;  %v4574_v12 = vpop.f32.mrb[21].mxu0 }
 0x583   : > { %v4575_v24 = vadd.f32 %v4574_v12, %v14893_v34  ;;  %v4576_v61 = vpop.f32.mrb[22].mxu0  ;;  %5297 = vmatprep.mubr.bf16.mxu1 %v4914_v9 }
 0x584   : > { %v4577_v16 = vadd.f32 %v4576_v61, %v14889_v33  ;;  %v4578_v5 = vpop.f32.mrb[23].mxu0  ;;  %5298 = vmatmul.mubr.bf16.gmra.mrb[80].mxu1 %v4913_v7  ;;  %v4813_v10 = vmax.f32 %v4573_v11, 0.0 }
 0x585   : > { %v4579_v41 = vadd.f32 %v4578_v5, %v14893_v34  ;;  %v4814_v48 = vmax.f32 %v4575_v24, 0.0  ;;  %v13111_v24 = vld [vmem:[#allocation16 + $0x44] ss:$8 sps:$4 sm:$0xff]  }
 0x586   : > { %v4815_v14 = vmax.f32 %v4577_v16, 0.0  ;;  %6791 = vmatprep.subr.bf16.mxu1 %v13111_v24  ;;  %v13115_v24 = vld [vmem:[#allocation16 + $0x60] ss:$8 sps:$4 sm:$0xff]  }
 0x587   : > { %v4816_v18 = vmax.f32 %v4579_v41, 0.0  ;;  %6792 = vmatpush1.bf16.msra.mxu1 %v13109_v60 }
 0x588   : > { %v4915_v20 = vpack.c.bf16 %v4815_v14, %v4813_v10 }
 0x589   : > { %v4582_v40 = vpop.f32.mrb[24].mxu0  ;;  %v4916_v21 = vpack.c.bf16 %v4816_v18, %v4814_v48 }
 0x58a   : > { %v4583_v47 = vadd.f32 %v4582_v40, %v14889_v33  ;;  %v4584_v0 = vpop.f32.mrb[25].mxu0 }
 0x58b   : > { %v4585_v25 = vadd.f32 %v4584_v0, %v14893_v34  ;;  %v4586_v26 = vpop.f32.mrb[26].mxu0  ;;  %5307 = vmatprep.mubr.bf16.mxu1 %v4916_v21 }
 0x58c   : > { %v4587_v45 = vadd.f32 %v4586_v26, %v14889_v33  ;;  %v4588_v19 = vpop.f32.mrb[27].mxu0  ;;  %5308 = vmatmul.mubr.bf16.gmra.mrb[84].mxu1 %v4915_v20  ;;  %v4817_v23 = vmax.f32 %v4583_v47, 0.0 }
 0x58d   : > { %v4589_v28 = vadd.f32 %v4588_v19, %v14893_v34  ;;  %v4818_v30 = vmax.f32 %v4585_v25, 0.0 }
 0x58e   : > { %v4819_v29 = vmax.f32 %v4587_v45, 0.0 }
 0x58f   : > { %v4820_v31 = vmax.f32 %v4589_v28, 0.0 }
 0x590   : > { %v4917_v17 = vpack.c.bf16 %v4819_v29, %v4817_v23 }
 0x591   : > { %v4592_v32 = vpop.f32.mrb[28].mxu0  ;;  %v4918_v37 = vpack.c.bf16 %v4820_v31, %v4818_v30 }
 0x592   : > { %v4593_v15 = vadd.f32 %v4592_v32, %v14889_v33  ;;  %v4594_v35 = vpop.f32.mrb[29].mxu0 }
 0x593   : > { %v4595_v54 = vadd.f32 %v4594_v35, %v14893_v34  ;;  %v4596_v38 = vpop.f32.mrb[30].mxu0  ;;  %5317 = vmatprep.mubr.bf16.mxu1 %v4918_v37 }
 0x594   : > { %v4597_v44 = vadd.f32 %v4596_v38, %v14889_v33  ;;  %v4598_v42 = vpop.f32.mrb[31].mxu0  ;;  %5318 = vmatmul.mubr.bf16.gmra.mrb[88].mxu1 %v4917_v17  ;;  %v4821_v51 = vmax.f32 %v4593_v15, 0.0 }
 0x595   : > { %v4599_v49 = vadd.f32 %v4598_v42, %v14893_v34  ;;  %v4822_v52 = vmax.f32 %v4595_v54, 0.0  ;;  %v13114_v54 = vld [vmem:[#allocation16 + $0x54] ss:$8 sps:$4 sm:$0xff]  }
 0x596   : > { %v4823_v22 = vmax.f32 %v4597_v44, 0.0  ;;  %6793 = vmatprep.subr.bf16.mxu1 %v13114_v54  ;;  %v13118_v54 = vld [vmem:[#allocation16 + $0x70] ss:$8 sps:$4 sm:$0xff]  }
 0x597   : > { %v4824_v53 = vmax.f32 %v4599_v49, 0.0  ;;  %6794 = vmatpush1.bf16.msra.mxu1 %v13112_v39 }
 0x598   : > { %v4919_v43 = vpack.c.bf16 %v4823_v22, %v4821_v51 }
 0x599   : > { %v4602_v56 = vpop.f32.mrb[32].mxu0  ;;  %v4920_v50 = vpack.c.bf16 %v4824_v53, %v4822_v52 }
 0x59a   : > { %v4603_v58 = vadd.f32 %v4602_v56, %v14889_v33  ;;  %v4604_v59 = vpop.f32.mrb[33].mxu0 }
 0x59b   : > { %v4605_v46 = vadd.f32 %v4604_v59, %v14893_v34  ;;  %v4606_v62 = vpop.f32.mrb[34].mxu0  ;;  %5327 = vmatprep.mubr.bf16.mxu1 %v4920_v50 }
 0x59c   : > { %v4607_v63 = vadd.f32 %v4606_v62, %v14889_v33  ;;  %v4608_v27 = vpop.f32.mrb[35].mxu0  ;;  %5328 = vmatmul.mubr.bf16.gmra.mrb[92].mxu1 %v4919_v43  ;;  %v4825_v3 = vmax.f32 %v4603_v58, 0.0 }
 0x59d   : > { %v4609_v2 = vadd.f32 %v4608_v27, %v14893_v34  ;;  %v4826_v6 = vmax.f32 %v4605_v46, 0.0 }
 0x59e   : > { %v4827_v4 = vmax.f32 %v4607_v63, 0.0 }
 0x59f   : > { %v4828_v7 = vmax.f32 %v4609_v2, 0.0 }
 0x5a0   : > { %v4921_v8 = vpack.c.bf16 %v4827_v4, %v4825_v3 }
 0x5a1   : > { %v4612_v9 = vpop.f32.mrb[36].mxu0  ;;  %v4922_v11 = vpack.c.bf16 %v4828_v7, %v4826_v6 }
 0x5a2   : > { %v4613_v12 = vadd.f32 %v4612_v9, %v14889_v33  ;;  %v4614_v13 = vpop.f32.mrb[37].mxu0 }
 0x5a3   : > { %v4615_v61 = vadd.f32 %v4614_v13, %v14893_v34  ;;  %v4616_v16 = vpop.f32.mrb[38].mxu0  ;;  %5337 = vmatprep.mubr.bf16.mxu1 %v4922_v11 }
 0x5a4   : > { %v4617_v5 = vadd.f32 %v4616_v16, %v14889_v33  ;;  %v4618_v41 = vpop.f32.mrb[39].mxu0  ;;  %5338 = vmatmul.mubr.bf16.gmra.mrb[96].mxu1 %v4921_v8  ;;  %v4829_v14 = vmax.f32 %v4613_v12, 0.0 }
 0x5a5   : > { %v4619_v10 = vadd.f32 %v4618_v41, %v14893_v34  ;;  %v4830_v18 = vmax.f32 %v4615_v61, 0.0  ;;  %v13117_v61 = vld [vmem:[#allocation16 + $0x64] ss:$8 sps:$4 sm:$0xff]  }
 0x5a6   : > { %v4831_v48 = vmax.f32 %v4617_v5, 0.0  ;;  %6795 = vmatprep.subr.bf16.mxu1 %v13117_v61  ;;  %v13121_v61 = vld [vmem:[#allocation16 + $0x80] ss:$8 sps:$4 sm:$0xff]  }
 0x5a7   : > { %v4832_v20 = vmax.f32 %v4619_v10, 0.0  ;;  %6796 = vmatpush1.bf16.msra.mxu1 %v13115_v24 }
 0x5a8   : > { %v4923_v40 = vpack.c.bf16 %v4831_v48, %v4829_v14 }
 0x5a9   : > { %v4622_v21 = vpop.f32.mrb[40].mxu0  ;;  %v4924_v47 = vpack.c.bf16 %v4832_v20, %v4830_v18 }
 0x5aa   : > { %v4623_v0 = vadd.f32 %v4622_v21, %v14889_v33  ;;  %v4624_v25 = vpop.f32.mrb[41].mxu0 }
 0x5ab   : > { %v4625_v26 = vadd.f32 %v4624_v25, %v14893_v34  ;;  %v4626_v45 = vpop.f32.mrb[42].mxu0  ;;  %5347 = vmatprep.mubr.bf16.mxu1 %v4924_v47 }
 0x5ac   : > { %v4627_v19 = vadd.f32 %v4626_v45, %v14889_v33  ;;  %v4628_v28 = vpop.f32.mrb[43].mxu0  ;;  %5348 = vmatmul.mubr.bf16.gmra.mrb[100].mxu1 %v4923_v40  ;;  %v4833_v29 = vmax.f32 %v4623_v0, 0.0 }
 0x5ad   : > { %v4629_v23 = vadd.f32 %v4628_v28, %v14893_v34  ;;  %v4834_v31 = vmax.f32 %v4625_v26, 0.0 }
 0x5ae   : > { %v4835_v30 = vmax.f32 %v4627_v19, 0.0 }
 0x5af   : > { %v4836_v17 = vmax.f32 %v4629_v23, 0.0 }
 0x5b0   : > { %v4925_v32 = vpack.c.bf16 %v4835_v30, %v4833_v29 }
 0x5b1   : > { %v4632_v37 = vpop.f32.mrb[44].mxu0  ;;  %v4926_v15 = vpack.c.bf16 %v4836_v17, %v4834_v31 }
 0x5b2   : > { %v4633_v35 = vadd.f32 %v4632_v37, %v14889_v33  ;;  %v4634_v36 = vpop.f32.mrb[45].mxu0 }
 0x5b3   : > { %v4635_v38 = vadd.f32 %v4634_v36, %v14893_v34  ;;  %v4636_v44 = vpop.f32.mrb[46].mxu0  ;;  %5357 = vmatprep.mubr.bf16.mxu1 %v4926_v15 }
 0x5b4   : > { %v4637_v42 = vadd.f32 %v4636_v44, %v14889_v33  ;;  %v4638_v49 = vpop.f32.mrb[47].mxu0  ;;  %5358 = vmatmul.mubr.bf16.gmra.mrb[104].mxu1 %v4925_v32  ;;  %v4837_v22 = vmax.f32 %v4633_v35, 0.0 }
 0x5b5   : > { %v4639_v51 = vadd.f32 %v4638_v49, %v14893_v34  ;;  %v4838_v53 = vmax.f32 %v4635_v38, 0.0  ;;  %v13120_v38 = vld [vmem:[#allocation16 + $0x74] ss:$8 sps:$4 sm:$0xff]  }
 0x5b6   : > { %v4839_v52 = vmax.f32 %v4637_v42, 0.0  ;;  %6797 = vmatprep.subr.bf16.mxu1 %v13120_v38 }
 0x5b7   : > { %v4840_v43 = vmax.f32 %v4639_v51, 0.0  ;;  %6798 = vmatpush1.bf16.msra.mxu1 %v13118_v54 }
 0x5b8   : > { %v4927_v56 = vpack.c.bf16 %v4839_v52, %v4837_v22 }
 0x5b9   : > { %v4642_v50 = vpop.f32.mrb[48].mxu0  ;;  %v4928_v58 = vpack.c.bf16 %v4840_v43, %v4838_v53 }
 0x5ba   : > { %v4643_v59 = vadd.f32 %v4642_v50, %v14889_v33  ;;  %v4644_v46 = vpop.f32.mrb[49].mxu0 }
 0x5bb   : > { %v4645_v62 = vadd.f32 %v4644_v46, %v14893_v34  ;;  %v4646_v63 = vpop.f32.mrb[50].mxu0  ;;  %5367 = vmatprep.mubr.bf16.mxu1 %v4928_v58 }
 0x5bc   : > { %v4647_v27 = vadd.f32 %v4646_v63, %v14889_v33  ;;  %v4648_v2 = vpop.f32.mrb[51].mxu0  ;;  %5368 = vmatmul.mubr.bf16.gmra.mrb[108].mxu1 %v4927_v56  ;;  %v4841_v4 = vmax.f32 %v4643_v59, 0.0 }
 0x5bd   : > { %v4649_v3 = vadd.f32 %v4648_v2, %v14893_v34  ;;  %v4842_v7 = vmax.f32 %v4645_v62, 0.0 }
 0x5be   : > { %v4843_v6 = vmax.f32 %v4647_v27, 0.0 }
 0x5bf   : > { %v4844_v8 = vmax.f32 %v4649_v3, 0.0 }
 0x5c0   : > { %v4929_v9 = vpack.c.bf16 %v4843_v6, %v4841_v4 }
 0x5c1   : > { %v4652_v11 = vpop.f32.mrb[52].mxu0  ;;  %v4930_v12 = vpack.c.bf16 %v4844_v8, %v4842_v7 }
 0x5c2   : > { %v4653_v13 = vadd.f32 %v4652_v11, %v14889_v33  ;;  %v4654_v60 = vpop.f32.mrb[53].mxu0 }
 0x5c3   : > { %v4655_v16 = vadd.f32 %v4654_v60, %v14893_v34  ;;  %v4656_v5 = vpop.f32.mrb[54].mxu0  ;;  %5377 = vmatprep.mubr.bf16.mxu1 %v4930_v12 }
 0x5c4   : > { %v4657_v41 = vadd.f32 %v4656_v5, %v14889_v33  ;;  %v4658_v10 = vpop.f32.mrb[55].mxu0  ;;  %5378 = vmatmul.mubr.bf16.gmra.mrb[112].mxu1 %v4929_v9  ;;  %v4845_v48 = vmax.f32 %v4653_v13, 0.0 }
 0x5c5   : > { %v4659_v14 = vadd.f32 %v4658_v10, %v14893_v34  ;;  %v4846_v20 = vmax.f32 %v4655_v16, 0.0  ;;  %v13123_v16 = vld [vmem:[#allocation16 + $0x84] ss:$8 sps:$4 sm:$0xff]  }
 0x5c6   : > { %v4847_v18 = vmax.f32 %v4657_v41, 0.0  ;;  %6799 = vmatprep.subr.bf16.mxu1 %v13123_v16 }
 0x5c7   : > { %v4848_v40 = vmax.f32 %v4659_v14, 0.0  ;;  %6800 = vmatpush1.bf16.msra.mxu1 %v13121_v61 }
 0x5c8   : > { %v4931_v21 = vpack.c.bf16 %v4847_v18, %v4845_v48 }
 0x5c9   : > { %v4662_v47 = vpop.f32.mrb[56].mxu0  ;;  %v4932_v0 = vpack.c.bf16 %v4848_v40, %v4846_v20 }
 0x5ca   : > { %v4663_v25 = vadd.f32 %v4662_v47, %v14889_v33  ;;  %v4664_v26 = vpop.f32.mrb[57].mxu0 }
 0x5cb   : > { %v4665_v45 = vadd.f32 %v4664_v26, %v14893_v34  ;;  %v4666_v19 = vpop.f32.mrb[58].mxu0  ;;  %5387 = vmatprep.mubr.bf16.mxu1 %v4932_v0 }
 0x5cc   : > { %v4667_v28 = vadd.f32 %v4666_v19, %v14889_v33  ;;  %v4668_v23 = vpop.f32.mrb[59].mxu0  ;;  %5388 = vmatmul.mubr.bf16.gmra.mrb[116].mxu1 %v4931_v21  ;;  %v4849_v30 = vmax.f32 %v4663_v25, 0.0 }
 0x5cd   : > { %v4669_v29 = vadd.f32 %v4668_v23, %v14893_v34  ;;  %v4850_v17 = vmax.f32 %v4665_v45, 0.0 }
 0x5ce   : > { %v4851_v31 = vmax.f32 %v4667_v28, 0.0 }
 0x5cf   : > { %v4852_v32 = vmax.f32 %v4669_v29, 0.0 }
 0x5d0   : > { %v4933_v37 = vpack.c.bf16 %v4851_v31, %v4849_v30 }
 0x5d1   : > { %v4672_v15 = vpop.f32.mrb[60].mxu0  ;;  %v4934_v35 = vpack.c.bf16 %v4852_v32, %v4850_v17 }
 0x5d2   : > { %v4673_v36 = vadd.f32 %v4672_v15, %v14889_v33  ;;  %v4674_v39 = vpop.f32.mrb[61].mxu0 }
 0x5d3   : > { %v4675_v44 = vadd.f32 %v4674_v39, %v14893_v34  ;;  %v4676_v42 = vpop.f32.mrb[62].mxu0  ;;  %5397 = vmatprep.mubr.bf16.mxu1 %v4934_v35  ;;  %v5498_v39 = vld [vmem:[%s17094_s16] sm:$0x3] }
 0x5d4   : > { %v4677_v49 = vadd.f32 %v4676_v42, %v14889_v33  ;;  %v4678_v51 = vpop.f32.mrb[63].mxu0  ;;  %5398 = vmatmul.mubr.bf16.gmra.mrb[120].mxu1 %v4933_v37  ;;  %v4853_v52 = vmax.f32 %v4673_v36, 0.0  ;;  %v13126_v42 = vld [vmem:[#allocation16 + $0x94] ss:$8 sps:$4 sm:$0xff]  }
 0x5d5   : > { %v4679_v22 = vadd.f32 %v4678_v51, %v14893_v34  ;;  %v4854_v43 = vmax.f32 %v4675_v44, 0.0  ;;  %v13124_v44 = vld [vmem:[#allocation16 + $0x90] ss:$8 sps:$4 sm:$0xff]   ;;  %6801 = vmatprep.subr.bf16.mxu1 %v13126_v42 }
 0x5d6   : > { %v4855_v53 = vmax.f32 %v4677_v49, 0.0  ;;  %6802 = vmatpush1.bf16.msra.mxu1 %v13124_v44 }
 0x5d7   : > { %v4856_v56 = vmax.f32 %v4679_v22, 0.0 }
 0x5d8   : > { %v4935_v50 = vpack.c.bf16 %v4855_v53, %v4853_v52  ;;  %v15024_v53 = vrot.slane %v5498_v39, %v14419_v55 }
 0x5d9   : > { %v4682_v58 = vpop.f32.mrb[64].mxu0  ;;  %v4936_v59 = vpack.c.bf16 %v4856_v56, %v4854_v43  ;;  %v15028_v56 = vrot.slane %v5498_v39, %v14422_v57 }
 0x5da   : > { %v4683_v46 = vadd.f32 %v4682_v58, %v14889_v33  ;;  %v4684_v62 = vpop.f32.mrb[65].mxu0 }
 0x5db   : > { %v4685_v63 = vadd.f32 %v4684_v62, %v14893_v34  ;;  %v4686_v27 = vpop.f32.mrb[66].mxu0  ;;  %5407 = vmatprep.mubr.bf16.mxu1 %v4936_v59 }
 0x5dc   : > { %v4687_v2 = vadd.f32 %v4686_v27, %v14889_v33  ;;  %v4688_v3 = vpop.f32.mrb[67].mxu0  ;;  %5408 = vmatmul.mubr.bf16.gmra.mrb[124].mxu1 %v4935_v50  ;;  %v4857_v6 = vmax.f32 %v4683_v46, 0.0 }
 0x5dd   : > { %v4689_v4 = vadd.f32 %v4688_v3, %v14893_v34  ;;  %v4858_v8 = vmax.f32 %v4685_v63, 0.0 }
 0x5de   : > { %v4859_v7 = vmax.f32 %v4687_v2, 0.0 }
 0x5df   : > { %v4860_v9 = vmax.f32 %v4689_v4, 0.0 }
 0x5e0   : > { %v4937_v11 = vpack.c.bf16 %v4859_v7, %v4857_v6 }
 0x5e1   : > { %v4692_v12 = vpop.f32.mrb[68].mxu0  ;;  %v4938_v13 = vpack.c.bf16 %v4860_v9, %v4858_v8 }
 0x5e2   : > { %v4693_v60 = vadd.f32 %v4692_v12, %v14889_v33  ;;  %v4694_v24 = vpop.f32.mrb[69].mxu0 }
 0x5e3   : > { %v4695_v5 = vadd.f32 %v4694_v24, %v14893_v34  ;;  %v4696_v41 = vpop.f32.mrb[70].mxu0  ;;  %5417 = vmatprep.mubr.bf16.mxu1 %v4938_v13 }
 0x5e4   : > { %v4697_v10 = vadd.f32 %v4696_v41, %v14889_v33  ;;  %v4698_v14 = vpop.f32.mrb[71].mxu0  ;;  %5418 = vmatmul.mubr.bf16.gmra.mrb[128].mxu1 %v4937_v11  ;;  %v4861_v18 = vmax.f32 %v4693_v60, 0.0 }
 0x5e5   : > { %v4699_v48 = vadd.f32 %v4698_v14, %v14893_v34  ;;  %v4862_v40 = vmax.f32 %v4695_v5, 0.0 }
 0x5e6   : > { %v4863_v20 = vmax.f32 %v4697_v10, 0.0 }
 0x5e7   : > { %v4864_v21 = vmax.f32 %v4699_v48, 0.0 }
 0x5e8   : > { %v4939_v47 = vpack.c.bf16 %v4863_v20, %v4861_v18 }
 0x5e9   : > { %v4702_v0 = vpop.f32.mrb[72].mxu0  ;;  %v4940_v25 = vpack.c.bf16 %v4864_v21, %v4862_v40 }
 0x5ea   : > { %v4703_v26 = vadd.f32 %v4702_v0, %v14889_v33  ;;  %v4704_v45 = vpop.f32.mrb[73].mxu0 }
 0x5eb   : > { %v4705_v19 = vadd.f32 %v4704_v45, %v14893_v34  ;;  %v4706_v28 = vpop.f32.mrb[74].mxu0  ;;  %5427 = vmatprep.mubr.bf16.mxu1 %v4940_v25 }
 0x5ec   : > { %v4707_v23 = vadd.f32 %v4706_v28, %v14889_v33  ;;  %v4708_v29 = vpop.f32.mrb[75].mxu0  ;;  %5428 = vmatmul.mubr.bf16.gmra.mrb[132].mxu1 %v4939_v47  ;;  %v4865_v31 = vmax.f32 %v4703_v26, 0.0 }
 0x5ed   : > { %v4709_v30 = vadd.f32 %v4708_v29, %v14893_v34  ;;  %v4866_v32 = vmax.f32 %v4705_v19, 0.0 }
 0x5ee   : > { %v4867_v17 = vmax.f32 %v4707_v23, 0.0 }
 0x5ef   : > { %v4868_v37 = vmax.f32 %v4709_v30, 0.0 }
 0x5f0   : > { %v4941_v15 = vpack.c.bf16 %v4867_v17, %v4865_v31 }
 0x5f1   : > { %v4712_v35 = vpop.f32.mrb[76].mxu0  ;;  %v4942_v36 = vpack.c.bf16 %v4868_v37, %v4866_v32 }
 0x5f2   : > { %v4713_v54 = vadd.f32 %v4712_v35, %v14889_v33  ;;  %v4714_v38 = vpop.f32.mrb[77].mxu0 }
 0x5f3   : > { %v4715_v49 = vadd.f32 %v4714_v38, %v14893_v34  ;;  %v4716_v51 = vpop.f32.mrb[78].mxu0  ;;  %5437 = vmatprep.mubr.bf16.mxu1 %v4942_v36 }
 0x5f4   : > { %v4717_v22 = vadd.f32 %v4716_v51, %v14889_v33  ;;  %v4718_v52 = vpop.f32.mrb[79].mxu0  ;;  %5438 = vmatmul.mubr.bf16.gmra.mrb[136].mxu1 %v4941_v15  ;;  %v4869_v50 = vmax.f32 %v4713_v54, 0.0  ;;  %v13127_v15 = vld [vmem:[#allocation16 + $0xa0] ss:$8 sps:$4 sm:$0xff]   ;;  %v13129_v54 = vld [vmem:[#allocation16 + $0xa4] ss:$8 sps:$4 sm:$0xff]  }
 0x5f5   : > { %v4719_v43 = vadd.f32 %v4718_v52, %v14893_v34  ;;  %v4870_v59 = vmax.f32 %v4715_v49, 0.0  ;;  %6803 = vmatprep.subr.bf16.mxu1 %v13129_v54 }
 0x5f6   : > { %v4871_v58 = vmax.f32 %v4717_v22, 0.0  ;;  %6804 = vmatpush1.bf16.msra.mxu1 %v13127_v15 }
 0x5f7   : > { %v4872_v46 = vmax.f32 %v4719_v43, 0.0  ;;  %v5179_v62 = vpop.f32.mrb[32].mxu1 }
 0x5f8   : > { %v5510_v63 = vadd.f32 %v15024_v53, %v5179_v62  ;;  %v5181_v27 = vpop.f32.mrb[33].mxu1  ;;  %v4943_v2 = vpack.c.bf16 %v4871_v58, %v4869_v50 }
 0x5f9   : > { %v5511_v3 = vadd.f32 %v15028_v56, %v5181_v27  ;;  %v4722_v4 = vpop.f32.mrb[80].mxu0  ;;  %v5183_v6 = vpop.f32.mrb[34].mxu1  ;;  %v4944_v7 = vpack.c.bf16 %v4872_v46, %v4870_v59 }
 0x5fa   : > { %v4723_v8 = vadd.f32 %v4722_v4, %v14889_v33  ;;  %v5512_v9 = vadd.f32 %v15024_v53, %v5183_v6  ;;  %v4724_v11 = vpop.f32.mrb[81].mxu0  ;;  %v5185_v12 = vpop.f32.mrb[35].mxu1  ;;  %v5638_v61 = vmax.f32 %v5510_v63, 0.0 }
 0x5fb   : > { %v4725_v13 = vadd.f32 %v4724_v11, %v14893_v34  ;;  %v5513_v60 = vadd.f32 %v15028_v56, %v5185_v12  ;;  %v4726_v24 = vpop.f32.mrb[82].mxu0  ;;  %5447 = vmatprep.mubr.bf16.mxu1 %v4944_v7  ;;  %v5639_v10 = vmax.f32 %v5511_v3, 0.0 }
 0x5fc   : > { %v5640_v16 = vmax.f32 %v5512_v9, 0.0  ;;  %v4727_v5 = vadd.f32 %v4726_v24, %v14889_v33  ;;  %v4728_v41 = vpop.f32.mrb[83].mxu0  ;;  %5448 = vmatmul.mubr.bf16.gmra.mrb[140].mxu1 %v4943_v2  ;;  %v4873_v18 = vmax.f32 %v4723_v8, 0.0 }
 0x5fd   : > { %v5641_v14 = vmax.f32 %v5513_v60, 0.0  ;;  %v4729_v48 = vadd.f32 %v4728_v41, %v14893_v34  ;;  %v4874_v21 = vmax.f32 %v4725_v13, 0.0 }
 0x5fe   : > { %v5766_v20 = vpack.c.bf16 %v5640_v16, %v5638_v61  ;;  %v4875_v40 = vmax.f32 %v4727_v5, 0.0 }
 0x5ff   : > { %v4876_v47 = vmax.f32 %v4729_v48, 0.0  ;;  %v5189_v0 = vpop.f32.mrb[36].mxu1  ;;  %v5767_v25 = vpack.c.bf16 %v5641_v14, %v5639_v10 }
 0x600   : > { %v5514_v26 = vadd.f32 %v15024_v53, %v5189_v0  ;;  %v5191_v45 = vpop.f32.mrb[37].mxu1  ;;  %v4945_v19 = vpack.c.bf16 %v4875_v40, %v4873_v18 }
 0x601   : > { %v5515_v28 = vadd.f32 %v15028_v56, %v5191_v45  ;;  %v4732_v23 = vpop.f32.mrb[84].mxu0  ;;  %v5193_v29 = vpop.f32.mrb[38].mxu1  ;;  %6066 = vmatprep.mubr.bf16.mxu0 %v5767_v25  ;;  %v4946_v30 = vpack.c.bf16 %v4876_v47, %v4874_v21 }
 0x602   : > { %v4733_v31 = vadd.f32 %v4732_v23, %v14889_v33  ;;  %v5516_v17 = vadd.f32 %v15024_v53, %v5193_v29  ;;  %v4734_v32 = vpop.f32.mrb[85].mxu0  ;;  %v5195_v37 = vpop.f32.mrb[39].mxu1  ;;  %6067 = vmatmul.mubr.bf16.vlgmr.msra.gmra.mrb[96].mxu0 %v5766_v20  ;;  %v5642_v38 = vmax.f32 %v5514_v26, 0.0 }
 0x603   : > { %v4735_v35 = vadd.f32 %v4734_v32, %v14893_v34  ;;  %v5517_v36 = vadd.f32 %v15028_v56, %v5195_v37  ;;  %v4736_v39 = vpop.f32.mrb[86].mxu0  ;;  %5457 = vmatprep.mubr.bf16.mxu1 %v4946_v30  ;;  %v5643_v51 = vmax.f32 %v5515_v28, 0.0 }
 0x604   : > { %v5644_v44 = vmax.f32 %v5516_v17, 0.0  ;;  %v4737_v42 = vadd.f32 %v4736_v39, %v14889_v33  ;;  %v4738_v49 = vpop.f32.mrb[87].mxu0  ;;  %5458 = vmatmul.mubr.bf16.gmra.mrb[144].mxu1 %v4945_v19  ;;  %v4877_v43 = vmax.f32 %v4733_v31, 0.0 }
 0x605   : > { %v5645_v22 = vmax.f32 %v5517_v36, 0.0  ;;  %v4739_v52 = vadd.f32 %v4738_v49, %v14893_v34  ;;  %v4878_v59 = vmax.f32 %v4735_v35, 0.0  ;;  %v13130_v35 = vld [vmem:[#allocation16 + $0xb0] ss:$8 sps:$4 sm:$0xff]  }
 0x606   : > { %v5768_v50 = vpack.c.bf16 %v5644_v44, %v5642_v38  ;;  %v4879_v58 = vmax.f32 %v4737_v42, 0.0  ;;  %v13132_v38 = vld [vmem:[#allocation16 + $0xb4] ss:$8 sps:$4 sm:$0xff]  }
 0x607   : > { %v4880_v46 = vmax.f32 %v4739_v52, 0.0  ;;  %v5199_v62 = vpop.f32.mrb[40].mxu1  ;;  %v5769_v63 = vpack.c.bf16 %v5645_v22, %v5643_v51  ;;  %6805 = vmatprep.subr.bf16.mxu1 %v13132_v38 }
 0x608   : > { %v5518_v27 = vadd.f32 %v15024_v53, %v5199_v62  ;;  %v5201_v2 = vpop.f32.mrb[41].mxu1  ;;  %v4947_v3 = vpack.c.bf16 %v4879_v58, %v4877_v43  ;;  %6806 = vmatpush1.bf16.msra.mxu1 %v13130_v35 }
 0x609   : > { %v5519_v4 = vadd.f32 %v15028_v56, %v5201_v2  ;;  %v4742_v6 = vpop.f32.mrb[88].mxu0  ;;  %v5203_v7 = vpop.f32.mrb[42].mxu1  ;;  %6076 = vmatprep.mubr.bf16.mxu0 %v5769_v63  ;;  %v4948_v8 = vpack.c.bf16 %v4880_v46, %v4878_v59 }
 0x60a   : > { %v4743_v9 = vadd.f32 %v4742_v6, %v14889_v33  ;;  %v5520_v11 = vadd.f32 %v15024_v53, %v5203_v7  ;;  %v4744_v12 = vpop.f32.mrb[89].mxu0  ;;  %v5205_v13 = vpop.f32.mrb[43].mxu1  ;;  %6077 = vmatmul.mubr.bf16.gmra.mrb[100].mxu0 %v5768_v50  ;;  %v5646_v16 = vmax.f32 %v5518_v27, 0.0 }
 0x60b   : > { %v4745_v60 = vadd.f32 %v4744_v12, %v14893_v34  ;;  %v5521_v24 = vadd.f32 %v15028_v56, %v5205_v13  ;;  %v4746_v61 = vpop.f32.mrb[90].mxu0  ;;  %5467 = vmatprep.mubr.bf16.mxu1 %v4948_v8  ;;  %v5647_v14 = vmax.f32 %v5519_v4, 0.0 }
 0x60c   : > { %v5648_v5 = vmax.f32 %v5520_v11, 0.0  ;;  %v4747_v41 = vadd.f32 %v4746_v61, %v14889_v33  ;;  %v4748_v10 = vpop.f32.mrb[91].mxu0  ;;  %5468 = vmatmul.mubr.bf16.gmra.mrb[148].mxu1 %v4947_v3  ;;  %v4881_v20 = vmax.f32 %v4743_v9, 0.0 }
 0x60d   : > { %v5649_v48 = vmax.f32 %v5521_v24, 0.0  ;;  %v4749_v18 = vadd.f32 %v4748_v10, %v14893_v34  ;;  %v4882_v47 = vmax.f32 %v4745_v60, 0.0 }
 0x60e   : > { %v5770_v40 = vpack.c.bf16 %v5648_v5, %v5646_v16  ;;  %v4883_v21 = vmax.f32 %v4747_v41, 0.0 }
 0x60f   : > { %v4884_v0 = vmax.f32 %v4749_v18, 0.0  ;;  %v5209_v25 = vpop.f32.mrb[44].mxu1  ;;  %v5771_v26 = vpack.c.bf16 %v5649_v48, %v5647_v14 }
 0x610   : > { %v5522_v45 = vadd.f32 %v15024_v53, %v5209_v25  ;;  %v5211_v19 = vpop.f32.mrb[45].mxu1  ;;  %v4949_v28 = vpack.c.bf16 %v4883_v21, %v4881_v20  ;;  %v13133_v20 = vld [vmem:[#allocation16 + $0xc0] ss:$8 sps:$4 sm:$0xff]  }
 0x611   : > { %v5523_v23 = vadd.f32 %v15028_v56, %v5211_v19  ;;  %v4752_v29 = vpop.f32.mrb[92].mxu0  ;;  %v5213_v30 = vpop.f32.mrb[46].mxu1  ;;  %6086 = vmatprep.mubr.bf16.mxu0 %v5771_v26  ;;  %v4950_v31 = vpack.c.bf16 %v4884_v0, %v4882_v47 }
 0x612   : > { %v4753_v17 = vadd.f32 %v4752_v29, %v14889_v33  ;;  %v5524_v32 = vadd.f32 %v15024_v53, %v5213_v30  ;;  %v4754_v37 = vpop.f32.mrb[93].mxu0  ;;  %v5215_v15 = vpop.f32.mrb[47].mxu1  ;;  %6087 = vmatmul.mubr.bf16.gmra.mrb[104].mxu0 %v5770_v40  ;;  %v5650_v44 = vmax.f32 %v5522_v45, 0.0  ;;  %v13135_v40 = vld [vmem:[#allocation16 + $0xc4] ss:$8 sps:$4 sm:$0xff]  }
 0x613   : > { %v4755_v36 = vadd.f32 %v4754_v37, %v14893_v34  ;;  %v5525_v39 = vadd.f32 %v15028_v56, %v5215_v15  ;;  %v4756_v54 = vpop.f32.mrb[94].mxu0  ;;  %5477 = vmatprep.mubr.bf16.mxu1 %v4950_v31  ;;  %v5651_v22 = vmax.f32 %v5523_v23, 0.0  ;;  %6807 = vmatprep.subr.bf16.mxu1 %v13135_v40 }
 0x614   : > { %v5652_v42 = vmax.f32 %v5524_v32, 0.0  ;;  %v4757_v49 = vadd.f32 %v4756_v54, %v14889_v33  ;;  %v4758_v51 = vpop.f32.mrb[95].mxu0  ;;  %5478 = vmatmul.mubr.bf16.gmra.mrb[152].mxu1 %v4949_v28  ;;  %v4885_v50 = vmax.f32 %v4753_v17, 0.0 }
 0x615   : > { %v5653_v52 = vmax.f32 %v5525_v39, 0.0  ;;  %v4759_v43 = vadd.f32 %v4758_v51, %v14893_v34  ;;  %v4886_v46 = vmax.f32 %v4755_v36, 0.0  ;;  %6808 = vmatpush1.bf16.msra.mxu1 %v13133_v20 }
 0x616   : > { %v5772_v58 = vpack.c.bf16 %v5652_v42, %v5650_v44  ;;  %v4887_v59 = vmax.f32 %v4757_v49, 0.0 }
 0x617   : > { %v4888_v62 = vmax.f32 %v4759_v43, 0.0  ;;  %v5219_v63 = vpop.f32.mrb[48].mxu1  ;;  %v5773_v27 = vpack.c.bf16 %v5653_v52, %v5651_v22 }
 0x618   : > { %v5526_v2 = vadd.f32 %v15024_v53, %v5219_v63  ;;  %v5221_v3 = vpop.f32.mrb[49].mxu1  ;;  %v4951_v4 = vpack.c.bf16 %v4887_v59, %v4885_v50  ;;  %v13136_v50 = vld [vmem:[#allocation16 + $0xd0] ss:$8 sps:$4 sm:$0xff]  }
 0x619   : > { %v5527_v33 = vadd.f32 %v15028_v56, %v5221_v3  ;;  %v5223_v6 = vpop.f32.mrb[50].mxu1  ;;  %6096 = vmatprep.mubr.bf16.mxu0 %v5773_v27  ;;  %v4952_v7 = vpack.c.bf16 %v4888_v62, %v4886_v46 }
 0x61a   : > { %v5528_v34 = vadd.f32 %v15024_v53, %v5223_v6  ;;  %v5225_v8 = vpop.f32.mrb[51].mxu1  ;;  %6097 = vmatmul.mubr.bf16.gmra.mrb[108].mxu0 %v5772_v58  ;;  %v5654_v11 = vmax.f32 %v5526_v2, 0.0  ;;  %v13138_v58 = vld [vmem:[#allocation16 + $0xd4] ss:$8 sps:$4 sm:$0xff]  }
 0x61b   : > { %v5529_v9 = vadd.f32 %v15028_v56, %v5225_v8  ;;  %5487 = vmatprep.mubr.bf16.mxu1 %v4952_v7  ;;  %v5655_v13 = vmax.f32 %v5527_v33, 0.0  ;;  %6809 = vmatprep.subr.bf16.mxu1 %v13138_v58 }
 0x61c   : > { %v5656_v12 = vmax.f32 %v5528_v34, 0.0  ;;  %5488 = vmatmul.mubr.bf16.gmra.mrb[156].mxu1 %v4951_v4 }
 0x61d   : > { %v5657_v60 = vmax.f32 %v5529_v9, 0.0  ;;  %6810 = vmatpush1.bf16.msra.mxu1 %v13136_v50 }
 0x61e   : > { %v5774_v24 = vpack.c.bf16 %v5656_v12, %v5654_v11 }
 0x61f   : > { %v5229_v61 = vpop.f32.mrb[52].mxu1  ;;  %v5775_v16 = vpack.c.bf16 %v5657_v60, %v5655_v13 }
 0x620   : > { %v5530_v5 = vadd.f32 %v15024_v53, %v5229_v61  ;;  %v5231_v41 = vpop.f32.mrb[53].mxu1 }
 0x621   : > { %v5531_v10 = vadd.f32 %v15028_v56, %v5231_v41  ;;  %v5233_v14 = vpop.f32.mrb[54].mxu1  ;;  %6106 = vmatprep.mubr.bf16.mxu0 %v5775_v16  ;;  %v13139_v16 = vld [vmem:[#allocation17] ss:$8 sps:$4 sm:$0xff]  }
 0x622   : > { %v5532_v48 = vadd.f32 %v15024_v53, %v5233_v14  ;;  %v5235_v18 = vpop.f32.mrb[55].mxu1  ;;  %6107 = vmatmul.mubr.bf16.gmra.mrb[112].mxu0 %v5774_v24  ;;  %v5658_v47 = vmax.f32 %v5530_v5, 0.0  ;;  %v13141_v5 = vld [vmem:[#allocation17 + $0x4] ss:$8 sps:$4 sm:$0xff]  }
 0x623   : > { %v5533_v21 = vadd.f32 %v15028_v56, %v5235_v18  ;;  %v5659_v25 = vmax.f32 %v5531_v10, 0.0  ;;  %7532 = vmatprep.subr.bf16.mxu0 %v13141_v5 }
 0x624   : > { %v5660_v0 = vmax.f32 %v5532_v48, 0.0  ;;  %7533 = vmatpush1.bf16.msra.mxu0 %v13139_v16 }
 0x625   : > { %v5661_v26 = vmax.f32 %v5533_v21, 0.0 }
 0x626   : > { %v5776_v45 = vpack.c.bf16 %v5660_v0, %v5658_v47  ;;  %v13142_v47 = vld [vmem:[#allocation16 + $0xe0] ss:$8 sps:$4 sm:$0xff]   ;;  %v13144_v0 = vld [vmem:[#allocation16 + $0xe4] ss:$8 sps:$4 sm:$0xff]  }
 0x627   : > { %v5239_v19 = vpop.f32.mrb[56].mxu1  ;;  %v5777_v28 = vpack.c.bf16 %v5661_v26, %v5659_v25  ;;  %6811 = vmatprep.subr.bf16.mxu1 %v13144_v0 }
 0x628   : > { %v5534_v23 = vadd.f32 %v15024_v53, %v5239_v19  ;;  %v5241_v29 = vpop.f32.mrb[57].mxu1  ;;  %6812 = vmatpush1.bf16.msra.mxu1 %v13142_v47  ;;  %v13153_v47 = vld [vmem:[#allocation17 + $0x24] ss:$8 sps:$4 sm:$0xff]  }
 0x629   : > { %v5535_v30 = vadd.f32 %v15028_v56, %v5241_v29  ;;  %v5243_v31 = vpop.f32.mrb[58].mxu1  ;;  %6116 = vmatprep.mubr.bf16.mxu0 %v5777_v28 }
 0x62a   : > { %v5536_v17 = vadd.f32 %v15024_v53, %v5243_v31  ;;  %v5245_v32 = vpop.f32.mrb[59].mxu1  ;;  %6117 = vmatmul.mubr.bf16.gmra.mrb[116].mxu0 %v5776_v45  ;;  %v5662_v15 = vmax.f32 %v5534_v23, 0.0 }
 0x62b   : > { %v5537_v37 = vadd.f32 %v15028_v56, %v5245_v32  ;;  %v5663_v36 = vmax.f32 %v5535_v30, 0.0 }
 0x62c   : > { %v5664_v35 = vmax.f32 %v5536_v17, 0.0 }
 0x62d   : > { %v5665_v39 = vmax.f32 %v5537_v37, 0.0 }
 0x62e   : > { %v5778_v54 = vpack.c.bf16 %v5664_v35, %v5662_v15 }
 0x62f   : > { %v5249_v38 = vpop.f32.mrb[60].mxu1  ;;  %v5779_v44 = vpack.c.bf16 %v5665_v39, %v5663_v36 }
 0x630   : > { %v5538_v42 = vadd.f32 %v15024_v53, %v5249_v38  ;;  %v5251_v49 = vpop.f32.mrb[61].mxu1 }
 0x631   : > { %v5539_v51 = vadd.f32 %v15028_v56, %v5251_v49  ;;  %v5253_v22 = vpop.f32.mrb[62].mxu1  ;;  %6126 = vmatprep.mubr.bf16.mxu0 %v5779_v44  ;;  %v13145_v49 = vld [vmem:[#allocation17 + $0x10] ss:$8 sps:$4 sm:$0xff]  }
 0x632   : > { %v5540_v52 = vadd.f32 %v15024_v53, %v5253_v22  ;;  %v5255_v43 = vpop.f32.mrb[63].mxu1  ;;  %6127 = vmatmul.mubr.bf16.gmra.mrb[120].mxu0 %v5778_v54  ;;  %v5666_v46 = vmax.f32 %v5538_v42, 0.0 }
 0x633   : > { %v5541_v59 = vadd.f32 %v15028_v56, %v5255_v43  ;;  %v5667_v63 = vmax.f32 %v5539_v51, 0.0  ;;  %v13147_v51 = vld [vmem:[#allocation17 + $0x14] ss:$8 sps:$4 sm:$0xff]  }
 0x634   : > { %v5668_v62 = vmax.f32 %v5540_v52, 0.0  ;;  %7534 = vmatprep.subr.bf16.mxu0 %v13147_v51 }
 0x635   : > { %v5669_v27 = vmax.f32 %v5541_v59, 0.0  ;;  %7535 = vmatpush1.bf16.msra.mxu0 %v13145_v49 }
 0x636   : > { %v5780_v2 = vpack.c.bf16 %v5668_v62, %v5666_v46  ;;  %7536 = vmatprep.subr.bf16.mxu0 %v13153_v47  ;;  %v13157_v47 = vld [vmem:[#allocation17 + $0x40] ss:$8 sps:$4 sm:$0xff]  }
 0x637   : > { %v5259_v3 = vpop.f32.mrb[64].mxu1  ;;  %v5781_v4 = vpack.c.bf16 %v5669_v27, %v5667_v63  ;;  %v13148_v63 = vld [vmem:[#allocation16 + $0xf0] ss:$8 sps:$4 sm:$0xff]   ;;  %v13150_v27 = vld [vmem:[#allocation16 + $0xf4] ss:$8 sps:$4 sm:$0xff]  }
 0x638   : > { %v5542_v33 = vadd.f32 %v15024_v53, %v5259_v3  ;;  %v5261_v6 = vpop.f32.mrb[65].mxu1  ;;  %6813 = vmatprep.subr.bf16.mxu1 %v13150_v27 }
 0x639   : > { %v5543_v7 = vadd.f32 %v15028_v56, %v5261_v6  ;;  %v5263_v34 = vpop.f32.mrb[66].mxu1  ;;  %6136 = vmatprep.mubr.bf16.mxu0 %v5781_v4  ;;  %6814 = vmatpush1.bf16.msra.mxu1 %v13148_v63 }
 0x63a   : > { %v5544_v8 = vadd.f32 %v15024_v53, %v5263_v34  ;;  %v5265_v9 = vpop.f32.mrb[67].mxu1  ;;  %6137 = vmatmul.mubr.bf16.gmra.mrb[124].mxu0 %v5780_v2  ;;  %v5670_v12 = vmax.f32 %v5542_v33, 0.0  ;;  %8212 = vmatprep.subr.bf16.mxu1 %v13790_v1 }
 0x63b   : > { %v5545_v11 = vadd.f32 %v15028_v56, %v5265_v9  ;;  %v5671_v60 = vmax.f32 %v5543_v7, 0.0 }
 0x63c   : > { %v5672_v13 = vmax.f32 %v5544_v8, 0.0 }
 0x63d   : > { %v5673_v24 = vmax.f32 %v5545_v11, 0.0 }
 0x63e   : > { %v5782_v61 = vpack.c.bf16 %v5672_v13, %v5670_v12 }
 0x63f   : > { %v5269_v41 = vpop.f32.mrb[68].mxu1  ;;  %v5783_v10 = vpack.c.bf16 %v5673_v24, %v5671_v60 }
 0x640   : > { %v5546_v14 = vadd.f32 %v15024_v53, %v5269_v41  ;;  %v5271_v48 = vpop.f32.mrb[69].mxu1 }
 0x641   : > { %v5547_v18 = vadd.f32 %v15028_v56, %v5271_v48  ;;  %v5273_v20 = vpop.f32.mrb[70].mxu1  ;;  %6146 = vmatprep.mubr.bf16.mxu0 %v5783_v10 }
 0x642   : > { %v5548_v40 = vadd.f32 %v15024_v53, %v5273_v20  ;;  %v5275_v21 = vpop.f32.mrb[71].mxu1  ;;  %6147 = vmatmul.mubr.bf16.gmra.mrb[128].mxu0 %v5782_v61  ;;  %v5674_v26 = vmax.f32 %v5546_v14, 0.0 }
 0x643   : > { %v5549_v25 = vadd.f32 %v15028_v56, %v5275_v21  ;;  %v5675_v19 = vmax.f32 %v5547_v18, 0.0  ;;  %v13151_v21 = vld [vmem:[#allocation17 + $0x20] ss:$8 sps:$4 sm:$0xff]  }
 0x644   : > { %v5676_v45 = vmax.f32 %v5548_v40, 0.0  ;;  %7537 = vmatpush1.bf16.msra.mxu0 %v13151_v21 }
 0x645   : > { %v5677_v28 = vmax.f32 %v5549_v25, 0.0 }
 0x646   : > { %v5784_v23 = vpack.c.bf16 %v5676_v45, %v5674_v26 }
 0x647   : > { %v5279_v29 = vpop.f32.mrb[72].mxu1  ;;  %v5785_v30 = vpack.c.bf16 %v5677_v28, %v5675_v19 }
 0x648   : > { %v5550_v31 = vadd.f32 %v15024_v53, %v5279_v29  ;;  %v5281_v17 = vpop.f32.mrb[73].mxu1 }
 0x649   : > { %v5551_v32 = vadd.f32 %v15028_v56, %v5281_v17  ;;  %v5283_v37 = vpop.f32.mrb[74].mxu1  ;;  %6156 = vmatprep.mubr.bf16.mxu0 %v5785_v30 }
 0x64a   : > { %v5552_v15 = vadd.f32 %v15024_v53, %v5283_v37  ;;  %v5285_v35 = vpop.f32.mrb[75].mxu1  ;;  %6157 = vmatmul.mubr.bf16.gmra.mrb[132].mxu0 %v5784_v23  ;;  %v5678_v39 = vmax.f32 %v5550_v31, 0.0 }
 0x64b   : > { %v5553_v36 = vadd.f32 %v15028_v56, %v5285_v35  ;;  %v5679_v38 = vmax.f32 %v5551_v32, 0.0 }
 0x64c   : > { %v5680_v54 = vmax.f32 %v5552_v15, 0.0 }
 0x64d   : > { %v5681_v44 = vmax.f32 %v5553_v36, 0.0 }
 0x64e   : > { %v5786_v42 = vpack.c.bf16 %v5680_v54, %v5678_v39 }
 0x64f   : > { %v5289_v22 = vpop.f32.mrb[76].mxu1  ;;  %v5787_v52 = vpack.c.bf16 %v5681_v44, %v5679_v38 }
 0x650   : > { %v5554_v43 = vadd.f32 %v15024_v53, %v5289_v22  ;;  %v5291_v50 = vpop.f32.mrb[77].mxu1 }
 0x651   : > { %v5555_v58 = vadd.f32 %v15028_v56, %v5291_v50  ;;  %v5293_v59 = vpop.f32.mrb[78].mxu1  ;;  %6166 = vmatprep.mubr.bf16.mxu0 %v5787_v52 }
 0x652   : > { %v5556_v46 = vadd.f32 %v15024_v53, %v5293_v59  ;;  %v5295_v62 = vpop.f32.mrb[79].mxu1  ;;  %6167 = vmatmul.mubr.bf16.gmra.mrb[136].mxu0 %v5786_v42  ;;  %v5682_v3 = vmax.f32 %v5554_v43, 0.0  ;;  %v13154_v59 = vld [vmem:[#allocation17 + $0x30] ss:$8 sps:$4 sm:$0xff]  }
 0x653   : > { %v5557_v2 = vadd.f32 %v15028_v56, %v5295_v62  ;;  %v5683_v33 = vmax.f32 %v5555_v58, 0.0 }
 0x654   : > { %v5684_v4 = vmax.f32 %v5556_v46, 0.0  ;;  %v13156_v46 = vld [vmem:[#allocation17 + $0x34] ss:$8 sps:$4 sm:$0xff]  }
 0x655   : > { %v5685_v6 = vmax.f32 %v5557_v2, 0.0  ;;  %7538 = vmatprep.subr.bf16.mxu0 %v13156_v46  ;;  %v13160_v46 = vld [vmem:[#allocation17 + $0x50] ss:$8 sps:$4 sm:$0xff]  }
 0x656   : > { %v5788_v7 = vpack.c.bf16 %v5684_v4, %v5682_v3  ;;  %7539 = vmatpush1.bf16.msra.mxu0 %v13154_v59 }
 0x657   : > { %v5299_v34 = vpop.f32.mrb[80].mxu1  ;;  %v5789_v8 = vpack.c.bf16 %v5685_v6, %v5683_v33 }
 0x658   : > { %v5558_v9 = vadd.f32 %v15024_v53, %v5299_v34  ;;  %v5301_v11 = vpop.f32.mrb[81].mxu1 }
 0x659   : > { %v5559_v12 = vadd.f32 %v15028_v56, %v5301_v11  ;;  %v5303_v13 = vpop.f32.mrb[82].mxu1  ;;  %6176 = vmatprep.mubr.bf16.mxu0 %v5789_v8 }
 0x65a   : > { %v5560_v60 = vadd.f32 %v15024_v53, %v5303_v13  ;;  %v5305_v24 = vpop.f32.mrb[83].mxu1  ;;  %6177 = vmatmul.mubr.bf16.gmra.mrb[140].mxu0 %v5788_v7  ;;  %v5686_v16 = vmax.f32 %v5558_v9, 0.0 }
 0x65b   : > { %v5561_v61 = vadd.f32 %v15028_v56, %v5305_v24  ;;  %v5687_v41 = vmax.f32 %v5559_v12, 0.0 }
 0x65c   : > { %v5688_v5 = vmax.f32 %v5560_v60, 0.0 }
 0x65d   : > { %v5689_v10 = vmax.f32 %v5561_v61, 0.0 }
 0x65e   : > { %v5790_v14 = vpack.c.bf16 %v5688_v5, %v5686_v16 }
 0x65f   : > { %v5309_v48 = vpop.f32.mrb[84].mxu1  ;;  %v5791_v18 = vpack.c.bf16 %v5689_v10, %v5687_v41 }
 0x660   : > { %v5562_v20 = vadd.f32 %v15024_v53, %v5309_v48  ;;  %v5311_v40 = vpop.f32.mrb[85].mxu1 }
 0x661   : > { %v5563_v0 = vadd.f32 %v15028_v56, %v5311_v40  ;;  %v5313_v25 = vpop.f32.mrb[86].mxu1  ;;  %6186 = vmatprep.mubr.bf16.mxu0 %v5791_v18 }
 0x662   : > { %v5564_v26 = vadd.f32 %v15024_v53, %v5313_v25  ;;  %v5315_v45 = vpop.f32.mrb[87].mxu1  ;;  %6187 = vmatmul.mubr.bf16.gmra.mrb[144].mxu0 %v5790_v14  ;;  %v5690_v28 = vmax.f32 %v5562_v20, 0.0 }
 0x663   : > { %v5565_v19 = vadd.f32 %v15028_v56, %v5315_v45  ;;  %v5691_v29 = vmax.f32 %v5563_v0, 0.0  ;;  %v13159_v0 = vld [vmem:[#allocation17 + $0x44] ss:$8 sps:$4 sm:$0xff]  }
 0x664   : > { %v5692_v23 = vmax.f32 %v5564_v26, 0.0  ;;  %7540 = vmatprep.subr.bf16.mxu0 %v13159_v0  ;;  %v13163_v0 = vld [vmem:[#allocation17 + $0x60] ss:$8 sps:$4 sm:$0xff]  }
 0x665   : > { %v5693_v30 = vmax.f32 %v5565_v19, 0.0  ;;  %7541 = vmatpush1.bf16.msra.mxu0 %v13157_v47 }
 0x666   : > { %v5792_v31 = vpack.c.bf16 %v5692_v23, %v5690_v28 }
 0x667   : > { %v5319_v17 = vpop.f32.mrb[88].mxu1  ;;  %v5793_v32 = vpack.c.bf16 %v5693_v30, %v5691_v29 }
 0x668   : > { %v5566_v37 = vadd.f32 %v15024_v53, %v5319_v17  ;;  %v5321_v15 = vpop.f32.mrb[89].mxu1 }
 0x669   : > { %v5567_v35 = vadd.f32 %v15028_v56, %v5321_v15  ;;  %v5323_v36 = vpop.f32.mrb[90].mxu1  ;;  %6196 = vmatprep.mubr.bf16.mxu0 %v5793_v32 }
 0x66a   : > { %v5568_v39 = vadd.f32 %v15024_v53, %v5323_v36  ;;  %v5325_v54 = vpop.f32.mrb[91].mxu1  ;;  %6197 = vmatmul.mubr.bf16.gmra.mrb[148].mxu0 %v5792_v31  ;;  %v5694_v44 = vmax.f32 %v5566_v37, 0.0 }
 0x66b   : > { %v5569_v38 = vadd.f32 %v15028_v56, %v5325_v54  ;;  %v5695_v49 = vmax.f32 %v5567_v35, 0.0 }
 0x66c   : > { %v5696_v42 = vmax.f32 %v5568_v39, 0.0 }
 0x66d   : > { %v5697_v51 = vmax.f32 %v5569_v38, 0.0 }
 0x66e   : > { %v5794_v22 = vpack.c.bf16 %v5696_v42, %v5694_v44 }
 0x66f   : > { %v5329_v52 = vpop.f32.mrb[92].mxu1  ;;  %v5795_v43 = vpack.c.bf16 %v5697_v51, %v5695_v49 }
 0x670   : > { %v5570_v50 = vadd.f32 %v15024_v53, %v5329_v52  ;;  %v5331_v58 = vpop.f32.mrb[93].mxu1 }
 0x671   : > { %v5571_v62 = vadd.f32 %v15028_v56, %v5331_v58  ;;  %v5333_v63 = vpop.f32.mrb[94].mxu1  ;;  %6206 = vmatprep.mubr.bf16.mxu0 %v5795_v43 }
 0x672   : > { %v5572_v27 = vadd.f32 %v15024_v53, %v5333_v63  ;;  %v5335_v2 = vpop.f32.mrb[95].mxu1  ;;  %6207 = vmatmul.mubr.bf16.gmra.mrb[152].mxu0 %v5794_v22  ;;  %v5698_v4 = vmax.f32 %v5570_v50, 0.0 }
 0x673   : > { %v5573_v3 = vadd.f32 %v15028_v56, %v5335_v2  ;;  %v5699_v6 = vmax.f32 %v5571_v62, 0.0  ;;  %v13162_v62 = vld [vmem:[#allocation17 + $0x54] ss:$8 sps:$4 sm:$0xff]  }
 0x674   : > { %v5700_v33 = vmax.f32 %v5572_v27, 0.0  ;;  %7542 = vmatprep.subr.bf16.mxu0 %v13162_v62  ;;  %v13166_v62 = vld [vmem:[#allocation17 + $0x70] ss:$8 sps:$4 sm:$0xff]  }
 0x675   : > { %v5701_v7 = vmax.f32 %v5573_v3, 0.0  ;;  %7543 = vmatpush1.bf16.msra.mxu0 %v13160_v46 }
 0x676   : > { %v5796_v34 = vpack.c.bf16 %v5700_v33, %v5698_v4 }
 0x677   : > { %v5339_v8 = vpop.f32.mrb[96].mxu1  ;;  %v5797_v9 = vpack.c.bf16 %v5701_v7, %v5699_v6 }
 0x678   : > { %v5574_v11 = vadd.f32 %v15024_v53, %v5339_v8  ;;  %v5341_v12 = vpop.f32.mrb[97].mxu1 }
 0x679   : > { %v5575_v13 = vadd.f32 %v15028_v56, %v5341_v12  ;;  %v5343_v60 = vpop.f32.mrb[98].mxu1  ;;  %6216 = vmatprep.mubr.bf16.mxu0 %v5797_v9 }
 0x67a   : > { %v5576_v24 = vadd.f32 %v15024_v53, %v5343_v60  ;;  %v5345_v61 = vpop.f32.mrb[99].mxu1  ;;  %6217 = vmatmul.mubr.bf16.gmra.mrb[156].mxu0 %v5796_v34  ;;  %v5702_v5 = vmax.f32 %v5574_v11, 0.0 }
 0x67b   : > { %v5577_v16 = vadd.f32 %v15028_v56, %v5345_v61  ;;  %v5703_v10 = vmax.f32 %v5575_v13, 0.0 }
 0x67c   : > { %v5704_v41 = vmax.f32 %v5576_v24, 0.0 }
 0x67d   : > { %v5705_v14 = vmax.f32 %v5577_v16, 0.0 }
 0x67e   : > { %v5798_v48 = vpack.c.bf16 %v5704_v41, %v5702_v5 }
 0x67f   : > { %v5349_v18 = vpop.f32.mrb[100].mxu1  ;;  %v5799_v20 = vpack.c.bf16 %v5705_v14, %v5703_v10 }
 0x680   : > { %v5578_v40 = vadd.f32 %v15024_v53, %v5349_v18  ;;  %v5351_v21 = vpop.f32.mrb[101].mxu1 }
 0x681   : > { %v5579_v25 = vadd.f32 %v15028_v56, %v5351_v21  ;;  %v5353_v26 = vpop.f32.mrb[102].mxu1  ;;  %6226 = vmatprep.mubr.bf16.mxu0 %v5799_v20 }
 0x682   : > { %v5580_v45 = vadd.f32 %v15024_v53, %v5353_v26  ;;  %v5355_v19 = vpop.f32.mrb[103].mxu1  ;;  %6227 = vmatmul.mubr.bf16.gmra.mrb[160].mxu0 %v5798_v48  ;;  %v5706_v23 = vmax.f32 %v5578_v40, 0.0 }
 0x683   : > { %v5581_v28 = vadd.f32 %v15028_v56, %v5355_v19  ;;  %v5707_v30 = vmax.f32 %v5579_v25, 0.0  ;;  %v13165_v25 = vld [vmem:[#allocation17 + $0x64] ss:$8 sps:$4 sm:$0xff]  }
 0x684   : > { %v5708_v29 = vmax.f32 %v5580_v45, 0.0  ;;  %7544 = vmatprep.subr.bf16.mxu0 %v13165_v25  ;;  %v13169_v25 = vld [vmem:[#allocation17 + $0x80] ss:$8 sps:$4 sm:$0xff]  }
 0x685   : > { %v5709_v31 = vmax.f32 %v5581_v28, 0.0  ;;  %7545 = vmatpush1.bf16.msra.mxu0 %v13163_v0 }
 0x686   : > { %v5800_v17 = vpack.c.bf16 %v5708_v29, %v5706_v23 }
 0x687   : > { %v5359_v32 = vpop.f32.mrb[104].mxu1  ;;  %v5801_v37 = vpack.c.bf16 %v5709_v31, %v5707_v30 }
 0x688   : > { %v5582_v15 = vadd.f32 %v15024_v53, %v5359_v32  ;;  %v5361_v35 = vpop.f32.mrb[105].mxu1 }
 0x689   : > { %v5583_v36 = vadd.f32 %v15028_v56, %v5361_v35  ;;  %v5363_v39 = vpop.f32.mrb[106].mxu1  ;;  %6236 = vmatprep.mubr.bf16.mxu0 %v5801_v37 }
 0x68a   : > { %v5584_v54 = vadd.f32 %v15024_v53, %v5363_v39  ;;  %v5365_v38 = vpop.f32.mrb[107].mxu1  ;;  %6237 = vmatmul.mubr.bf16.gmra.mrb[164].mxu0 %v5800_v17  ;;  %v5710_v42 = vmax.f32 %v5582_v15, 0.0 }
 0x68b   : > { %v5585_v44 = vadd.f32 %v15028_v56, %v5365_v38  ;;  %v5711_v51 = vmax.f32 %v5583_v36, 0.0 }
 0x68c   : > { %v5712_v49 = vmax.f32 %v5584_v54, 0.0 }
 0x68d   : > { %v5713_v22 = vmax.f32 %v5585_v44, 0.0 }
 0x68e   : > { %v5802_v52 = vpack.c.bf16 %v5712_v49, %v5710_v42 }
 0x68f   : > { %v5369_v43 = vpop.f32.mrb[108].mxu1  ;;  %v5803_v50 = vpack.c.bf16 %v5713_v22, %v5711_v51 }
 0x690   : > { %v5586_v58 = vadd.f32 %v15024_v53, %v5369_v43  ;;  %v5371_v59 = vpop.f32.mrb[109].mxu1 }
 0x691   : > { %v5587_v63 = vadd.f32 %v15028_v56, %v5371_v59  ;;  %v5373_v27 = vpop.f32.mrb[110].mxu1  ;;  %6246 = vmatprep.mubr.bf16.mxu0 %v5803_v50 }
 0x692   : > { %v5588_v2 = vadd.f32 %v15024_v53, %v5373_v27  ;;  %v5375_v3 = vpop.f32.mrb[111].mxu1  ;;  %6247 = vmatmul.mubr.bf16.gmra.mrb[168].mxu0 %v5802_v52  ;;  %v5714_v33 = vmax.f32 %v5586_v58, 0.0 }
 0x693   : > { %v5589_v4 = vadd.f32 %v15028_v56, %v5375_v3  ;;  %v5715_v7 = vmax.f32 %v5587_v63, 0.0  ;;  %v13168_v63 = vld [vmem:[#allocation17 + $0x74] ss:$8 sps:$4 sm:$0xff]  }
 0x694   : > { %v5716_v6 = vmax.f32 %v5588_v2, 0.0  ;;  %7546 = vmatprep.subr.bf16.mxu0 %v13168_v63 }
 0x695   : > { %v5717_v34 = vmax.f32 %v5589_v4, 0.0  ;;  %7547 = vmatpush1.bf16.msra.mxu0 %v13166_v62 }
 0x696   : > { %v5804_v8 = vpack.c.bf16 %v5716_v6, %v5714_v33 }
 0x697   : > { %v5379_v9 = vpop.f32.mrb[112].mxu1  ;;  %v5805_v11 = vpack.c.bf16 %v5717_v34, %v5715_v7 }
 0x698   : > { %v5590_v12 = vadd.f32 %v15024_v53, %v5379_v9  ;;  %v5381_v13 = vpop.f32.mrb[113].mxu1 }
 0x699   : > { %v5591_v60 = vadd.f32 %v15028_v56, %v5381_v13  ;;  %v5383_v24 = vpop.f32.mrb[114].mxu1  ;;  %6256 = vmatprep.mubr.bf16.mxu0 %v5805_v11 }
 0x69a   : > { %v5592_v61 = vadd.f32 %v15024_v53, %v5383_v24  ;;  %v5385_v16 = vpop.f32.mrb[115].mxu1  ;;  %6257 = vmatmul.mubr.bf16.gmra.mrb[172].mxu0 %v5804_v8  ;;  %v5718_v41 = vmax.f32 %v5590_v12, 0.0 }
 0x69b   : > { %v5593_v5 = vadd.f32 %v15028_v56, %v5385_v16  ;;  %v5719_v14 = vmax.f32 %v5591_v60, 0.0 }
 0x69c   : > { %v5720_v10 = vmax.f32 %v5592_v61, 0.0 }
 0x69d   : > { %v5721_v48 = vmax.f32 %v5593_v5, 0.0 }
 0x69e   : > { %v5806_v18 = vpack.c.bf16 %v5720_v10, %v5718_v41 }
 0x69f   : > { %v5389_v20 = vpop.f32.mrb[116].mxu1  ;;  %v5807_v40 = vpack.c.bf16 %v5721_v48, %v5719_v14 }
 0x6a0   : > { %v5594_v21 = vadd.f32 %v15024_v53, %v5389_v20  ;;  %v5391_v47 = vpop.f32.mrb[117].mxu1 }
 0x6a1   : > { %v5595_v26 = vadd.f32 %v15028_v56, %v5391_v47  ;;  %v5393_v45 = vpop.f32.mrb[118].mxu1  ;;  %6266 = vmatprep.mubr.bf16.mxu0 %v5807_v40 }
 0x6a2   : > { %v5596_v19 = vadd.f32 %v15024_v53, %v5393_v45  ;;  %v5395_v28 = vpop.f32.mrb[119].mxu1  ;;  %6267 = vmatmul.mubr.bf16.gmra.mrb[176].mxu0 %v5806_v18  ;;  %v5722_v29 = vmax.f32 %v5594_v21, 0.0 }
 0x6a3   : > { %v5597_v23 = vadd.f32 %v15028_v56, %v5395_v28  ;;  %v5723_v31 = vmax.f32 %v5595_v26, 0.0  ;;  %v13171_v26 = vld [vmem:[#allocation17 + $0x84] ss:$8 sps:$4 sm:$0xff]  }
 0x6a4   : > { %v5724_v30 = vmax.f32 %v5596_v19, 0.0  ;;  %7548 = vmatprep.subr.bf16.mxu0 %v13171_v26 }
 0x6a5   : > { %v5725_v17 = vmax.f32 %v5597_v23, 0.0  ;;  %7549 = vmatpush1.bf16.msra.mxu0 %v13169_v25 }
 0x6a6   : > { %v5808_v32 = vpack.c.bf16 %v5724_v30, %v5722_v29 }
 0x6a7   : > { %v5399_v37 = vpop.f32.mrb[120].mxu1  ;;  %v5809_v15 = vpack.c.bf16 %v5725_v17, %v5723_v31 }
 0x6a8   : > { %v5598_v35 = vadd.f32 %v15024_v53, %v5399_v37  ;;  %v5401_v36 = vpop.f32.mrb[121].mxu1 }
 0x6a9   : > { %v5599_v39 = vadd.f32 %v15028_v56, %v5401_v36  ;;  %v5403_v54 = vpop.f32.mrb[122].mxu1  ;;  %6276 = vmatprep.mubr.bf16.mxu0 %v5809_v15 }
 0x6aa   : > { %v5600_v38 = vadd.f32 %v15024_v53, %v5403_v54  ;;  %v5405_v44 = vpop.f32.mrb[123].mxu1  ;;  %6277 = vmatmul.mubr.bf16.gmra.mrb[180].mxu0 %v5808_v32  ;;  %v5726_v49 = vmax.f32 %v5598_v35, 0.0 }
 0x6ab   : > { %v5601_v42 = vadd.f32 %v15028_v56, %v5405_v44  ;;  %v5727_v22 = vmax.f32 %v5599_v39, 0.0 }
 0x6ac   : > { %v5728_v51 = vmax.f32 %v5600_v38, 0.0 }
 0x6ad   : > { %v5729_v52 = vmax.f32 %v5601_v42, 0.0 }
 0x6ae   : > { %v5810_v43 = vpack.c.bf16 %v5728_v51, %v5726_v49 }
 0x6af   : > { %v5409_v50 = vpop.f32.mrb[124].mxu1  ;;  %v5811_v58 = vpack.c.bf16 %v5729_v52, %v5727_v22 }
 0x6b0   : > { %v5602_v59 = vadd.f32 %v15024_v53, %v5409_v50  ;;  %v5411_v46 = vpop.f32.mrb[125].mxu1 }
 0x6b1   : > { %v5603_v27 = vadd.f32 %v15028_v56, %v5411_v46  ;;  %v5413_v2 = vpop.f32.mrb[126].mxu1  ;;  %6286 = vmatprep.mubr.bf16.mxu0 %v5811_v58  ;;  %v5862_v46 = vld [vmem:[%s17095_s8] sm:$0x3] }
 0x6b2   : > { %v5604_v3 = vadd.f32 %v15024_v53, %v5413_v2  ;;  %v5415_v4 = vpop.f32.mrb[127].mxu1  ;;  %6287 = vmatmul.mubr.bf16.gmra.mrb[184].mxu0 %v5810_v43  ;;  %v5730_v6 = vmax.f32 %v5602_v59, 0.0  ;;  %v13174_v2 = vld [vmem:[#allocation17 + $0x94] ss:$8 sps:$4 sm:$0xff]  }
 0x6b3   : > { %v5605_v33 = vadd.f32 %v15028_v56, %v5415_v4  ;;  %v5731_v34 = vmax.f32 %v5603_v27, 0.0  ;;  %v13172_v27 = vld [vmem:[#allocation17 + $0x90] ss:$8 sps:$4 sm:$0xff]   ;;  %7550 = vmatprep.subr.bf16.mxu0 %v13174_v2 }
 0x6b4   : > { %v5732_v7 = vmax.f32 %v5604_v3, 0.0  ;;  %7551 = vmatpush1.bf16.msra.mxu0 %v13172_v27 }
 0x6b5   : > { %v5733_v8 = vmax.f32 %v5605_v33, 0.0 }
 0x6b6   : > { %v5812_v9 = vpack.c.bf16 %v5732_v7, %v5730_v6  ;;  %v15160_v7 = vrot.slane %v5862_v46, %v14419_v55 }
 0x6b7   : > { %v5419_v11 = vpop.f32.mrb[128].mxu1  ;;  %v5813_v12 = vpack.c.bf16 %v5733_v8, %v5731_v34  ;;  %v15164_v8 = vrot.slane %v5862_v46, %v14422_v57 }
 0x6b8   : > { %v5606_v13 = vadd.f32 %v15024_v53, %v5419_v11  ;;  %v5421_v60 = vpop.f32.mrb[129].mxu1 }
 0x6b9   : > { %v5607_v24 = vadd.f32 %v15028_v56, %v5421_v60  ;;  %v5423_v61 = vpop.f32.mrb[130].mxu1  ;;  %6296 = vmatprep.mubr.bf16.mxu0 %v5813_v12 }
 0x6ba   : > { %v5608_v16 = vadd.f32 %v15024_v53, %v5423_v61  ;;  %v5425_v5 = vpop.f32.mrb[131].mxu1  ;;  %6297 = vmatmul.mubr.bf16.gmra.mrb[188].mxu0 %v5812_v9  ;;  %v5734_v10 = vmax.f32 %v5606_v13, 0.0 }
 0x6bb   : > { %v5609_v41 = vadd.f32 %v15028_v56, %v5425_v5  ;;  %v5735_v48 = vmax.f32 %v5607_v24, 0.0 }
 0x6bc   : > { %v5736_v14 = vmax.f32 %v5608_v16, 0.0 }
 0x6bd   : > { %v5737_v18 = vmax.f32 %v5609_v41, 0.0 }
 0x6be   : > { %v5814_v20 = vpack.c.bf16 %v5736_v14, %v5734_v10 }
 0x6bf   : > { %v5429_v40 = vpop.f32.mrb[132].mxu1  ;;  %v5815_v21 = vpack.c.bf16 %v5737_v18, %v5735_v48 }
 0x6c0   : > { %v5610_v47 = vadd.f32 %v15024_v53, %v5429_v40  ;;  %v5431_v0 = vpop.f32.mrb[133].mxu1 }
 0x6c1   : > { %v5611_v45 = vadd.f32 %v15028_v56, %v5431_v0  ;;  %v5433_v19 = vpop.f32.mrb[134].mxu1  ;;  %6306 = vmatprep.mubr.bf16.mxu0 %v5815_v21 }
 0x6c2   : > { %v5612_v28 = vadd.f32 %v15024_v53, %v5433_v19  ;;  %v5435_v23 = vpop.f32.mrb[135].mxu1  ;;  %6307 = vmatmul.mubr.bf16.gmra.mrb[192].mxu0 %v5814_v20  ;;  %v5738_v30 = vmax.f32 %v5610_v47, 0.0 }
 0x6c3   : > { %v5613_v29 = vadd.f32 %v15028_v56, %v5435_v23  ;;  %v5739_v17 = vmax.f32 %v5611_v45, 0.0 }
 0x6c4   : > { %v5740_v31 = vmax.f32 %v5612_v28, 0.0 }
 0x6c5   : > { %v5741_v32 = vmax.f32 %v5613_v29, 0.0 }
 0x6c6   : > { %v5816_v37 = vpack.c.bf16 %v5740_v31, %v5738_v30 }
 0x6c7   : > { %v5439_v15 = vpop.f32.mrb[136].mxu1  ;;  %v5817_v35 = vpack.c.bf16 %v5741_v32, %v5739_v17 }
 0x6c8   : > { %v5614_v36 = vadd.f32 %v15024_v53, %v5439_v15  ;;  %v5441_v39 = vpop.f32.mrb[137].mxu1 }
 0x6c9   : > { %v5615_v54 = vadd.f32 %v15028_v56, %v5441_v39  ;;  %v5443_v38 = vpop.f32.mrb[138].mxu1  ;;  %6316 = vmatprep.mubr.bf16.mxu0 %v5817_v35 }
 0x6ca   : > { %v5616_v44 = vadd.f32 %v15024_v53, %v5443_v38  ;;  %v5445_v42 = vpop.f32.mrb[139].mxu1  ;;  %6317 = vmatmul.mubr.bf16.gmra.mrb[196].mxu0 %v5816_v37  ;;  %v5742_v51 = vmax.f32 %v5614_v36, 0.0 }
 0x6cb   : > { %v5617_v49 = vadd.f32 %v15028_v56, %v5445_v42  ;;  %v5743_v52 = vmax.f32 %v5615_v54, 0.0 }
 0x6cc   : > { %v5744_v22 = vmax.f32 %v5616_v44, 0.0 }
 0x6cd   : > { %v5745_v43 = vmax.f32 %v5617_v49, 0.0 }
 0x6ce   : > { %v5818_v50 = vpack.c.bf16 %v5744_v22, %v5742_v51 }
 0x6cf   : > { %v5449_v58 = vpop.f32.mrb[140].mxu1  ;;  %v5819_v59 = vpack.c.bf16 %v5745_v43, %v5743_v52 }
 0x6d0   : > { %v5618_v62 = vadd.f32 %v15024_v53, %v5449_v58  ;;  %v5451_v63 = vpop.f32.mrb[141].mxu1 }
 0x6d1   : > { %v5619_v3 = vadd.f32 %v15028_v56, %v5451_v63  ;;  %v5453_v4 = vpop.f32.mrb[142].mxu1  ;;  %6326 = vmatprep.mubr.bf16.mxu0 %v5819_v59 }
 0x6d2   : > { %v5620_v33 = vadd.f32 %v15024_v53, %v5453_v4  ;;  %v5455_v6 = vpop.f32.mrb[143].mxu1  ;;  %6327 = vmatmul.mubr.bf16.gmra.mrb[200].mxu0 %v5818_v50  ;;  %v5746_v9 = vmax.f32 %v5618_v62, 0.0  ;;  %v13175_v50 = vld [vmem:[#allocation17 + $0xa0] ss:$8 sps:$4 sm:$0xff]   ;;  %v13177_v62 = vld [vmem:[#allocation17 + $0xa4] ss:$8 sps:$4 sm:$0xff]  }
 0x6d3   : > { %v5621_v34 = vadd.f32 %v15028_v56, %v5455_v6  ;;  %v5747_v12 = vmax.f32 %v5619_v3, 0.0  ;;  %7552 = vmatprep.subr.bf16.mxu0 %v13177_v62 }
 0x6d4   : > { %v5748_v11 = vmax.f32 %v5620_v33, 0.0  ;;  %7553 = vmatpush1.bf16.msra.mxu0 %v13175_v50 }
 0x6d5   : > { %v5749_v13 = vmax.f32 %v5621_v34, 0.0  ;;  %v6068_v60 = vpop.f32.mrb[96].mxu0 }
 0x6d6   : > { %v5820_v24 = vpack.c.bf16 %v5748_v11, %v5746_v9  ;;  %v6069_v61 = vadd.f32 %v6068_v60, %v15160_v7  ;;  %v6070_v16 = vpop.f32.mrb[97].mxu0 }
 0x6d7   : > { %v6071_v5 = vadd.f32 %v6070_v16, %v15164_v8  ;;  %v5459_v41 = vpop.f32.mrb[144].mxu1  ;;  %v6072_v10 = vpop.f32.mrb[98].mxu0  ;;  %v5821_v14 = vpack.c.bf16 %v5749_v13, %v5747_v12 }
 0x6d8   : > { %v5622_v48 = vadd.f32 %v15024_v53, %v5459_v41  ;;  %v6073_v18 = vadd.f32 %v6072_v10, %v15160_v7  ;;  %v5461_v20 = vpop.f32.mrb[145].mxu1  ;;  %v6074_v40 = vpop.f32.mrb[99].mxu0  ;;  %v6387_v25 = vmax.f32 %v6069_v61, 0.0 }
 0x6d9   : > { %v5623_v21 = vadd.f32 %v15028_v56, %v5461_v20  ;;  %v6075_v47 = vadd.f32 %v6074_v40, %v15164_v8  ;;  %v5463_v0 = vpop.f32.mrb[146].mxu1  ;;  %6336 = vmatprep.mubr.bf16.mxu0 %v5821_v14  ;;  %v6388_v28 = vmax.f32 %v6071_v5, 0.0 }
 0x6da   : > { %v6389_v26 = vmax.f32 %v6073_v18, 0.0  ;;  %v5624_v45 = vadd.f32 %v15024_v53, %v5463_v0  ;;  %v5465_v19 = vpop.f32.mrb[147].mxu1  ;;  %6337 = vmatmul.mubr.bf16.gmra.mrb[204].mxu0 %v5820_v24  ;;  %v5750_v30 = vmax.f32 %v5622_v48, 0.0 }
 0x6db   : > { %v6390_v23 = vmax.f32 %v6075_v47, 0.0  ;;  %v5625_v29 = vadd.f32 %v15028_v56, %v5465_v19  ;;  %v5751_v32 = vmax.f32 %v5623_v21, 0.0 }
 0x6dc   : > { %v6515_v31 = vpack.c.bf16 %v6389_v26, %v6387_v25  ;;  %v5752_v17 = vmax.f32 %v5624_v45, 0.0 }
 0x6dd   : > { %v5753_v37 = vmax.f32 %v5625_v29, 0.0  ;;  %v6078_v15 = vpop.f32.mrb[100].mxu0  ;;  %v6516_v35 = vpack.c.bf16 %v6390_v23, %v6388_v28 }
 0x6de   : > { %v5822_v36 = vpack.c.bf16 %v5752_v17, %v5750_v30  ;;  %v6079_v39 = vadd.f32 %v6078_v15, %v15160_v7  ;;  %v6080_v54 = vpop.f32.mrb[101].mxu0 }
 0x6df   : > { %v6081_v38 = vadd.f32 %v6080_v54, %v15164_v8  ;;  %v5469_v44 = vpop.f32.mrb[148].mxu1  ;;  %v6082_v42 = vpop.f32.mrb[102].mxu0  ;;  %6815 = vmatprep.mubr.bf16.mxu1 %v6516_v35  ;;  %v5823_v49 = vpack.c.bf16 %v5753_v37, %v5751_v32 }
 0x6e0   : > { %v5626_v51 = vadd.f32 %v15024_v53, %v5469_v44  ;;  %v6083_v22 = vadd.f32 %v6082_v42, %v15160_v7  ;;  %v5471_v52 = vpop.f32.mrb[149].mxu1  ;;  %v6084_v43 = vpop.f32.mrb[103].mxu0  ;;  %6816 = vmatmul.mubr.bf16.vlgmr.msra.gmra.mrb[160].mxu1 %v6515_v31  ;;  %v6391_v63 = vmax.f32 %v6079_v39, 0.0 }
 0x6e1   : > { %v5627_v58 = vadd.f32 %v15028_v56, %v5471_v52  ;;  %v6085_v59 = vadd.f32 %v6084_v43, %v15164_v8  ;;  %v5473_v46 = vpop.f32.mrb[150].mxu1  ;;  %6346 = vmatprep.mubr.bf16.mxu0 %v5823_v49  ;;  %v6392_v4 = vmax.f32 %v6081_v38, 0.0 }
 0x6e2   : > { %v6393_v27 = vmax.f32 %v6083_v22, 0.0  ;;  %v5628_v2 = vadd.f32 %v15024_v53, %v5473_v46  ;;  %v5475_v3 = vpop.f32.mrb[151].mxu1  ;;  %6347 = vmatmul.mubr.bf16.gmra.mrb[208].mxu0 %v5822_v36  ;;  %v5754_v34 = vmax.f32 %v5626_v51, 0.0 }
 0x6e3   : > { %v6394_v33 = vmax.f32 %v6085_v59, 0.0  ;;  %v5629_v6 = vadd.f32 %v15028_v56, %v5475_v3  ;;  %v5755_v12 = vmax.f32 %v5627_v58, 0.0  ;;  %v13178_v58 = vld [vmem:[#allocation17 + $0xb0] ss:$8 sps:$4 sm:$0xff]  }
 0x6e4   : > { %v6517_v9 = vpack.c.bf16 %v6393_v27, %v6391_v63  ;;  %v5756_v11 = vmax.f32 %v5628_v2, 0.0  ;;  %v13180_v63 = vld [vmem:[#allocation17 + $0xb4] ss:$8 sps:$4 sm:$0xff]  }
 0x6e5   : > { %v5757_v13 = vmax.f32 %v5629_v6, 0.0  ;;  %v6088_v60 = vpop.f32.mrb[104].mxu0  ;;  %v6518_v24 = vpack.c.bf16 %v6394_v33, %v6392_v4  ;;  %7554 = vmatprep.subr.bf16.mxu0 %v13180_v63 }
 0x6e6   : > { %v5824_v61 = vpack.c.bf16 %v5756_v11, %v5754_v34  ;;  %v6089_v16 = vadd.f32 %v6088_v60, %v15160_v7  ;;  %v6090_v5 = vpop.f32.mrb[105].mxu0  ;;  %7555 = vmatpush1.bf16.msra.mxu0 %v13178_v58 }
 0x6e7   : > { %v6091_v41 = vadd.f32 %v6090_v5, %v15164_v8  ;;  %v5479_v10 = vpop.f32.mrb[152].mxu1  ;;  %v6092_v14 = vpop.f32.mrb[106].mxu0  ;;  %6825 = vmatprep.mubr.bf16.mxu1 %v6518_v24  ;;  %v5825_v48 = vpack.c.bf16 %v5757_v13, %v5755_v12 }
 0x6e8   : > { %v5630_v18 = vadd.f32 %v15024_v53, %v5479_v10  ;;  %v6093_v20 = vadd.f32 %v6092_v14, %v15160_v7  ;;  %v5481_v40 = vpop.f32.mrb[153].mxu1  ;;  %v6094_v21 = vpop.f32.mrb[107].mxu0  ;;  %6826 = vmatmul.mubr.bf16.gmra.mrb[164].mxu1 %v6517_v9  ;;  %v6395_v26 = vmax.f32 %v6089_v16, 0.0 }
 0x6e9   : > { %v5631_v47 = vadd.f32 %v15028_v56, %v5481_v40  ;;  %v6095_v0 = vadd.f32 %v6094_v21, %v15164_v8  ;;  %v5483_v25 = vpop.f32.mrb[154].mxu1  ;;  %6356 = vmatprep.mubr.bf16.mxu0 %v5825_v48  ;;  %v6396_v23 = vmax.f32 %v6091_v41, 0.0 }
 0x6ea   : > { %v6397_v45 = vmax.f32 %v6093_v20, 0.0  ;;  %v5632_v19 = vadd.f32 %v15024_v53, %v5483_v25  ;;  %v5485_v28 = vpop.f32.mrb[155].mxu1  ;;  %6357 = vmatmul.mubr.bf16.gmra.mrb[212].mxu0 %v5824_v61  ;;  %v5758_v31 = vmax.f32 %v5630_v18, 0.0 }
 0x6eb   : > { %v6398_v29 = vmax.f32 %v6095_v0, 0.0  ;;  %v5633_v30 = vadd.f32 %v15028_v56, %v5485_v28  ;;  %v5759_v37 = vmax.f32 %v5631_v47, 0.0 }
 0x6ec   : > { %v6519_v17 = vpack.c.bf16 %v6397_v45, %v6395_v26  ;;  %v5760_v32 = vmax.f32 %v5632_v19, 0.0 }
 0x6ed   : > { %v5761_v15 = vmax.f32 %v5633_v30, 0.0  ;;  %v6098_v35 = vpop.f32.mrb[108].mxu0  ;;  %v6520_v36 = vpack.c.bf16 %v6398_v29, %v6396_v23 }
 0x6ee   : > { %v5826_v39 = vpack.c.bf16 %v5760_v32, %v5758_v31  ;;  %v6099_v54 = vadd.f32 %v6098_v35, %v15160_v7  ;;  %v6100_v38 = vpop.f32.mrb[109].mxu0  ;;  %v13181_v31 = vld [vmem:[#allocation17 + $0xc0] ss:$8 sps:$4 sm:$0xff]  }
 0x6ef   : > { %v6101_v44 = vadd.f32 %v6100_v38, %v15164_v8  ;;  %v5489_v42 = vpop.f32.mrb[156].mxu1  ;;  %v6102_v49 = vpop.f32.mrb[110].mxu0  ;;  %6835 = vmatprep.mubr.bf16.mxu1 %v6520_v36  ;;  %v5827_v51 = vpack.c.bf16 %v5761_v15, %v5759_v37 }
 0x6f0   : > { %v5634_v22 = vadd.f32 %v15024_v53, %v5489_v42  ;;  %v6103_v52 = vadd.f32 %v6102_v49, %v15160_v7  ;;  %v5491_v43 = vpop.f32.mrb[157].mxu1  ;;  %v6104_v50 = vpop.f32.mrb[111].mxu0  ;;  %6836 = vmatmul.mubr.bf16.gmra.mrb[168].mxu1 %v6519_v17  ;;  %v6399_v27 = vmax.f32 %v6099_v54, 0.0  ;;  %v13183_v17 = vld [vmem:[#allocation17 + $0xc4] ss:$8 sps:$4 sm:$0xff]  }
 0x6f1   : > { %v5635_v59 = vadd.f32 %v15028_v56, %v5491_v43  ;;  %v6105_v46 = vadd.f32 %v6104_v50, %v15164_v8  ;;  %v5493_v62 = vpop.f32.mrb[158].mxu1  ;;  %6366 = vmatprep.mubr.bf16.mxu0 %v5827_v51  ;;  %v6400_v33 = vmax.f32 %v6101_v44, 0.0  ;;  %7556 = vmatprep.subr.bf16.mxu0 %v13183_v17 }
 0x6f2   : > { %v6401_v2 = vmax.f32 %v6103_v52, 0.0  ;;  %v5636_v3 = vadd.f32 %v15024_v53, %v5493_v62  ;;  %v5495_v4 = vpop.f32.mrb[159].mxu1  ;;  %6367 = vmatmul.mubr.bf16.gmra.mrb[216].mxu0 %v5826_v39  ;;  %v5762_v9 = vmax.f32 %v5634_v22, 0.0 }
 0x6f3   : > { %v6402_v6 = vmax.f32 %v6105_v46, 0.0  ;;  %v5637_v34 = vadd.f32 %v15028_v56, %v5495_v4  ;;  %v5763_v13 = vmax.f32 %v5635_v59, 0.0  ;;  %7557 = vmatpush1.bf16.msra.mxu0 %v13181_v31 }
 0x6f4   : > { %v6521_v11 = vpack.c.bf16 %v6401_v2, %v6399_v27  ;;  %v5764_v12 = vmax.f32 %v5636_v3, 0.0 }
 0x6f5   : > { %v5765_v60 = vmax.f32 %v5637_v34, 0.0  ;;  %v6108_v24 = vpop.f32.mrb[112].mxu0  ;;  %v6522_v61 = vpack.c.bf16 %v6402_v6, %v6400_v33 }
 0x6f6   : > { %v5828_v16 = vpack.c.bf16 %v5764_v12, %v5762_v9  ;;  %v6109_v5 = vadd.f32 %v6108_v24, %v15160_v7  ;;  %v6110_v41 = vpop.f32.mrb[113].mxu0  ;;  %v13184_v9 = vld [vmem:[#allocation17 + $0xd0] ss:$8 sps:$4 sm:$0xff]  }
 0x6f7   : > { %v6111_v53 = vadd.f32 %v6110_v41, %v15164_v8  ;;  %v6112_v10 = vpop.f32.mrb[114].mxu0  ;;  %6845 = vmatprep.mubr.bf16.mxu1 %v6522_v61  ;;  %v5829_v14 = vpack.c.bf16 %v5765_v60, %v5763_v13 }
 0x6f8   : > { %v6113_v56 = vadd.f32 %v6112_v10, %v15160_v7  ;;  %v6114_v48 = vpop.f32.mrb[115].mxu0  ;;  %6846 = vmatmul.mubr.bf16.gmra.mrb[172].mxu1 %v6521_v11  ;;  %v6403_v20 = vmax.f32 %v6109_v5, 0.0  ;;  %v13186_v11 = vld [vmem:[#allocation17 + $0xd4] ss:$8 sps:$4 sm:$0xff]  }
 0x6f9   : > { %v6115_v18 = vadd.f32 %v6114_v48, %v15164_v8  ;;  %6376 = vmatprep.mubr.bf16.mxu0 %v5829_v14  ;;  %v6404_v21 = vmax.f32 %v6111_v53, 0.0  ;;  %7558 = vmatprep.subr.bf16.mxu0 %v13186_v11 }
 0x6fa   : > { %v6405_v40 = vmax.f32 %v6113_v56, 0.0  ;;  %6377 = vmatmul.mubr.bf16.gmra.mrb[220].mxu0 %v5828_v16 }
 0x6fb   : > { %v6406_v47 = vmax.f32 %v6115_v18, 0.0  ;;  %7559 = vmatpush1.bf16.msra.mxu0 %v13184_v9 }
 0x6fc   : > { %v6523_v0 = vpack.c.bf16 %v6405_v40, %v6403_v20 }
 0x6fd   : > { %v6118_v25 = vpop.f32.mrb[116].mxu0  ;;  %v6524_v26 = vpack.c.bf16 %v6406_v47, %v6404_v21 }
 0x6fe   : > { %v6119_v45 = vadd.f32 %v6118_v25, %v15160_v7  ;;  %v6120_v19 = vpop.f32.mrb[117].mxu0 }
 0x6ff   : > { %v6121_v28 = vadd.f32 %v6120_v19, %v15164_v8  ;;  %v6122_v23 = vpop.f32.mrb[118].mxu0  ;;  %6855 = vmatprep.mubr.bf16.mxu1 %v6524_v26  ;;  %v13187_v26 = vld [vmem:[%s17096_s7] sm:$0xff]  }
 0x700   : > { %v6123_v29 = vadd.f32 %v6122_v23, %v15160_v7  ;;  %v6124_v30 = vpop.f32.mrb[119].mxu0  ;;  %6856 = vmatmul.mubr.bf16.gmra.mrb[176].mxu1 %v6523_v0  ;;  %v6407_v37 = vmax.f32 %v6119_v45, 0.0 }
 0x701   : > { %v6125_v32 = vadd.f32 %v6124_v30, %v15164_v8  ;;  %v6408_v35 = vmax.f32 %v6121_v28, 0.0  ;;  %8213 = vmatpush1.bf16.msra.mxu1 %v13187_v26 }
 0x702   : > { %v6409_v15 = vmax.f32 %v6123_v29, 0.0  ;;  %8214 = vmatprep.subr.bf16.mxu1 %v13790_v1 }
 0x703   : > { %v6410_v36 = vmax.f32 %v6125_v32, 0.0  ;;  %v13188_v32 = vld [vmem:[#allocation17 + $0xe0] ss:$8 sps:$4 sm:$0xff]  }
 0x704   : > { %v6525_v39 = vpack.c.bf16 %v6409_v15, %v6407_v37  ;;  %v13190_v37 = vld [vmem:[#allocation17 + $0xe4] ss:$8 sps:$4 sm:$0xff]  }
 0x705   : > { %v6128_v54 = vpop.f32.mrb[120].mxu0  ;;  %v6526_v38 = vpack.c.bf16 %v6410_v36, %v6408_v35  ;;  %7560 = vmatprep.subr.bf16.mxu0 %v13190_v37 }
 0x706   : > { %v6129_v44 = vadd.f32 %v6128_v54, %v15160_v7  ;;  %v6130_v42 = vpop.f32.mrb[121].mxu0  ;;  %7561 = vmatpush1.bf16.msra.mxu0 %v13188_v32  ;;  %v13195_v32 = vld [vmem:[%s17096_s7 + $0x10] sm:$0xff]  }
 0x707   : > { %v6131_v49 = vadd.f32 %v6130_v42, %v15164_v8  ;;  %v6132_v51 = vpop.f32.mrb[122].mxu0  ;;  %6865 = vmatprep.mubr.bf16.mxu1 %v6526_v38 }
 0x708   : > { %v6133_v22 = vadd.f32 %v6132_v51, %v15160_v7  ;;  %v6134_v52 = vpop.f32.mrb[123].mxu0  ;;  %6866 = vmatmul.mubr.bf16.gmra.mrb[180].mxu1 %v6525_v39  ;;  %v6411_v50 = vmax.f32 %v6129_v44, 0.0 }
 0x709   : > { %v6135_v43 = vadd.f32 %v6134_v52, %v15164_v8  ;;  %v6412_v59 = vmax.f32 %v6131_v49, 0.0 }
 0x70a   : > { %v6413_v58 = vmax.f32 %v6133_v22, 0.0 }
 0x70b   : > { %v6414_v46 = vmax.f32 %v6135_v43, 0.0 }
 0x70c   : > { %v6527_v62 = vpack.c.bf16 %v6413_v58, %v6411_v50 }
 0x70d   : > { %v6138_v63 = vpop.f32.mrb[124].mxu0  ;;  %v6528_v27 = vpack.c.bf16 %v6414_v46, %v6412_v59 }
 0x70e   : > { %v6139_v2 = vadd.f32 %v6138_v63, %v15160_v7  ;;  %v6140_v3 = vpop.f32.mrb[125].mxu0 }
 0x70f   : > { %v6141_v4 = vadd.f32 %v6140_v3, %v15164_v8  ;;  %v6142_v33 = vpop.f32.mrb[126].mxu0  ;;  %6875 = vmatprep.mubr.bf16.mxu1 %v6528_v27 }
 0x710   : > { %v6143_v6 = vadd.f32 %v6142_v33, %v15160_v7  ;;  %v6144_v34 = vpop.f32.mrb[127].mxu0  ;;  %6876 = vmatmul.mubr.bf16.gmra.mrb[184].mxu1 %v6527_v62  ;;  %v6415_v13 = vmax.f32 %v6139_v2, 0.0  ;;  %v13191_v2 = vld [vmem:[%s17096_s7 + $0x8] sm:$0xff]  }
 0x711   : > { %v6145_v12 = vadd.f32 %v6144_v34, %v15164_v8  ;;  %v6416_v24 = vmax.f32 %v6141_v4, 0.0  ;;  %8215 = vmatpush1.bf16.msra.mxu1 %v13191_v2 }
 0x712   : > { %v6417_v60 = vmax.f32 %v6143_v6, 0.0  ;;  %8216 = vmatprep.subr.bf16.mxu1 %v13790_v1 }
 0x713   : > { %v6418_v61 = vmax.f32 %v6145_v12, 0.0 }
 0x714   : > { %v6529_v16 = vpack.c.bf16 %v6417_v60, %v6415_v13  ;;  %v13192_v13 = vld [vmem:[#allocation17 + $0xf0] ss:$8 sps:$4 sm:$0xff]   ;;  %v13194_v60 = vld [vmem:[#allocation17 + $0xf4] ss:$8 sps:$4 sm:$0xff]  }
 0x715   : > { %v6148_v5 = vpop.f32.mrb[128].mxu0  ;;  %v6530_v41 = vpack.c.bf16 %v6418_v61, %v6416_v24  ;;  %7562 = vmatprep.subr.bf16.mxu0 %v13194_v60  ;;  %8217 = vmatpush1.bf16.msra.mxu1 %v13195_v32 }
 0x716   : > { %v6149_v53 = vadd.f32 %v6148_v5, %v15160_v7  ;;  %v6150_v10 = vpop.f32.mrb[129].mxu0  ;;  %7563 = vmatpush1.bf16.msra.mxu0 %v13192_v13  ;;  %8218 = vmatprep.subr.bf16.mxu1 %v13790_v1 }
 0x717   : > { %v6151_v14 = vadd.f32 %v6150_v10, %v15164_v8  ;;  %v6152_v56 = vpop.f32.mrb[130].mxu0  ;;  %6885 = vmatprep.mubr.bf16.mxu1 %v6530_v41 }
 0x718   : > { %v6153_v48 = vadd.f32 %v6152_v56, %v15160_v7  ;;  %v6154_v18 = vpop.f32.mrb[131].mxu0  ;;  %6886 = vmatmul.mubr.bf16.gmra.mrb[188].mxu1 %v6529_v16  ;;  %v6419_v40 = vmax.f32 %v6149_v53, 0.0 }
 0x719   : > { %v6155_v20 = vadd.f32 %v6154_v18, %v15164_v8  ;;  %v6420_v47 = vmax.f32 %v6151_v14, 0.0 }
 0x71a   : > { %v6421_v21 = vmax.f32 %v6153_v48, 0.0 }
 0x71b   : > { %v6422_v0 = vmax.f32 %v6155_v20, 0.0 }
 0x71c   : > { %v6531_v25 = vpack.c.bf16 %v6421_v21, %v6419_v40 }
 0x71d   : > { %v6158_v45 = vpop.f32.mrb[132].mxu0  ;;  %v6532_v19 = vpack.c.bf16 %v6422_v0, %v6420_v47 }
 0x71e   : > { %v6159_v28 = vadd.f32 %v6158_v45, %v15160_v7  ;;  %v6160_v23 = vpop.f32.mrb[133].mxu0 }
 0x71f   : > { %v6161_v29 = vadd.f32 %v6160_v23, %v15164_v8  ;;  %v6162_v30 = vpop.f32.mrb[134].mxu0  ;;  %6895 = vmatprep.mubr.bf16.mxu1 %v6532_v19 }
 0x720   : > { %v6163_v31 = vadd.f32 %v6162_v30, %v15160_v7  ;;  %v6164_v17 = vpop.f32.mrb[135].mxu0  ;;  %6896 = vmatmul.mubr.bf16.gmra.mrb[192].mxu1 %v6531_v25  ;;  %v6423_v35 = vmax.f32 %v6159_v28, 0.0 }
 0x721   : > { %v6165_v15 = vadd.f32 %v6164_v17, %v15164_v8  ;;  %v6424_v39 = vmax.f32 %v6161_v29, 0.0 }
 0x722   : > { %v6425_v36 = vmax.f32 %v6163_v31, 0.0 }
 0x723   : > { %v6426_v54 = vmax.f32 %v6165_v15, 0.0 }
 0x724   : > { %v6533_v38 = vpack.c.bf16 %v6425_v36, %v6423_v35 }
 0x725   : > { %v6168_v44 = vpop.f32.mrb[136].mxu0  ;;  %v6534_v42 = vpack.c.bf16 %v6426_v54, %v6424_v39 }
 0x726   : > { %v6169_v49 = vadd.f32 %v6168_v44, %v15160_v7  ;;  %v6170_v51 = vpop.f32.mrb[137].mxu0 }
 0x727   : > { %v6171_v22 = vadd.f32 %v6170_v51, %v15164_v8  ;;  %v6172_v52 = vpop.f32.mrb[138].mxu0  ;;  %6905 = vmatprep.mubr.bf16.mxu1 %v6534_v42 }
 0x728   : > { %v6173_v43 = vadd.f32 %v6172_v52, %v15160_v7  ;;  %v6174_v50 = vpop.f32.mrb[139].mxu0  ;;  %6906 = vmatmul.mubr.bf16.gmra.mrb[196].mxu1 %v6533_v38  ;;  %v6427_v59 = vmax.f32 %v6169_v49, 0.0 }
 0x729   : > { %v6175_v58 = vadd.f32 %v6174_v50, %v15164_v8  ;;  %v6428_v62 = vmax.f32 %v6171_v22, 0.0 }
 0x72a   : > { %v6429_v46 = vmax.f32 %v6173_v43, 0.0 }
 0x72b   : > { %v6430_v63 = vmax.f32 %v6175_v58, 0.0 }
 0x72c   : > { %v6535_v27 = vpack.c.bf16 %v6429_v46, %v6427_v59 }
 0x72d   : > { %v6178_v3 = vpop.f32.mrb[140].mxu0  ;;  %v6536_v4 = vpack.c.bf16 %v6430_v63, %v6428_v62 }
 0x72e   : > { %v6179_v33 = vadd.f32 %v6178_v3, %v15160_v7  ;;  %v6180_v6 = vpop.f32.mrb[141].mxu0 }
 0x72f   : > { %v6181_v34 = vadd.f32 %v6180_v6, %v15164_v8  ;;  %v6182_v9 = vpop.f32.mrb[142].mxu0  ;;  %6915 = vmatprep.mubr.bf16.mxu1 %v6536_v4 }
 0x730   : > { %v6183_v11 = vadd.f32 %v6182_v9, %v15160_v7  ;;  %v6184_v12 = vpop.f32.mrb[143].mxu0  ;;  %6916 = vmatmul.mubr.bf16.gmra.mrb[200].mxu1 %v6535_v27  ;;  %v6431_v61 = vmax.f32 %v6179_v33, 0.0 }
 0x731   : > { %v6185_v24 = vadd.f32 %v6184_v12, %v15164_v8  ;;  %v6432_v5 = vmax.f32 %v6181_v34, 0.0 }
 0x732   : > { %v6433_v16 = vmax.f32 %v6183_v11, 0.0  ;;  %v13196_v11 = vld [vmem:[%s17096_s7 + $0x18] sm:$0xff]  }
 0x733   : > { %v6434_v41 = vmax.f32 %v6185_v24, 0.0  ;;  %8219 = vmatpush1.bf16.msra.mxu1 %v13196_v11 }
 0x734   : > { %v6537_v53 = vpack.c.bf16 %v6433_v16, %v6431_v61  ;;  %8220 = vmatprep.subr.bf16.mxu1 %v13790_v1 }
 0x735   : > { %v6188_v10 = vpop.f32.mrb[144].mxu0  ;;  %v6538_v14 = vpack.c.bf16 %v6434_v41, %v6432_v5 }
 0x736   : > { %v6189_v56 = vadd.f32 %v6188_v10, %v15160_v7  ;;  %v6190_v48 = vpop.f32.mrb[145].mxu0 }
 0x737   : > { %v6191_v18 = vadd.f32 %v6190_v48, %v15164_v8  ;;  %v6192_v20 = vpop.f32.mrb[146].mxu0  ;;  %6925 = vmatprep.mubr.bf16.mxu1 %v6538_v14 }
 0x738   : > { %v6193_v40 = vadd.f32 %v6192_v20, %v15160_v7  ;;  %v6194_v21 = vpop.f32.mrb[147].mxu0  ;;  %6926 = vmatmul.mubr.bf16.gmra.mrb[204].mxu1 %v6537_v53  ;;  %v6435_v0 = vmax.f32 %v6189_v56, 0.0 }
 0x739   : > { %v6195_v47 = vadd.f32 %v6194_v21, %v15164_v8  ;;  %v6436_v26 = vmax.f32 %v6191_v18, 0.0 }
 0x73a   : > { %v6437_v25 = vmax.f32 %v6193_v40, 0.0 }
 0x73b   : > { %v6438_v45 = vmax.f32 %v6195_v47, 0.0 }
 0x73c   : > { %v6539_v19 = vpack.c.bf16 %v6437_v25, %v6435_v0 }
 0x73d   : > { %v6198_v28 = vpop.f32.mrb[148].mxu0  ;;  %v6540_v23 = vpack.c.bf16 %v6438_v45, %v6436_v26 }
 0x73e   : > { %v6199_v29 = vadd.f32 %v6198_v28, %v15160_v7  ;;  %v6200_v30 = vpop.f32.mrb[149].mxu0 }
 0x73f   : > { %v6201_v31 = vadd.f32 %v6200_v30, %v15164_v8  ;;  %v6202_v17 = vpop.f32.mrb[150].mxu0  ;;  %6935 = vmatprep.mubr.bf16.mxu1 %v6540_v23 }
 0x740   : > { %v6203_v37 = vadd.f32 %v6202_v17, %v15160_v7  ;;  %v6204_v15 = vpop.f32.mrb[151].mxu0  ;;  %6936 = vmatmul.mubr.bf16.gmra.mrb[208].mxu1 %v6539_v19  ;;  %v6439_v36 = vmax.f32 %v6199_v29, 0.0  ;;  %v13197_v17 = vld [vmem:[%s17096_s7 + $0x20] sm:$0xff]  }
 0x741   : > { %v6205_v35 = vadd.f32 %v6204_v15, %v15164_v8  ;;  %v6440_v54 = vmax.f32 %v6201_v31, 0.0  ;;  %8221 = vmatpush1.bf16.msra.mxu1 %v13197_v17 }
 0x742   : > { %v6441_v39 = vmax.f32 %v6203_v37, 0.0  ;;  %8222 = vmatprep.subr.bf16.mxu1 %v13790_v1 }
 0x743   : > { %v6442_v38 = vmax.f32 %v6205_v35, 0.0 }
 0x744   : > { %v6541_v44 = vpack.c.bf16 %v6441_v39, %v6439_v36 }
 0x745   : > { %v6208_v42 = vpop.f32.mrb[152].mxu0  ;;  %v6542_v49 = vpack.c.bf16 %v6442_v38, %v6440_v54 }
 0x746   : > { %v6209_v51 = vadd.f32 %v6208_v42, %v15160_v7  ;;  %v6210_v22 = vpop.f32.mrb[153].mxu0 }
 0x747   : > { %v6211_v52 = vadd.f32 %v6210_v22, %v15164_v8  ;;  %v6212_v43 = vpop.f32.mrb[154].mxu0  ;;  %6945 = vmatprep.mubr.bf16.mxu1 %v6542_v49 }
 0x748   : > { %v6213_v50 = vadd.f32 %v6212_v43, %v15160_v7  ;;  %v6214_v58 = vpop.f32.mrb[155].mxu0  ;;  %6946 = vmatmul.mubr.bf16.gmra.mrb[212].mxu1 %v6541_v44  ;;  %v6443_v46 = vmax.f32 %v6209_v51, 0.0 }
 0x749   : > { %v6215_v59 = vadd.f32 %v6214_v58, %v15164_v8  ;;  %v6444_v63 = vmax.f32 %v6211_v52, 0.0 }
 0x74a   : > { %v6445_v62 = vmax.f32 %v6213_v50, 0.0 }
 0x74b   : > { %v6446_v27 = vmax.f32 %v6215_v59, 0.0 }
 0x74c   : > { %v6543_v2 = vpack.c.bf16 %v6445_v62, %v6443_v46 }
 0x74d   : > { %v6218_v3 = vpop.f32.mrb[156].mxu0  ;;  %v6544_v4 = vpack.c.bf16 %v6446_v27, %v6444_v63 }
 0x74e   : > { %v6219_v33 = vadd.f32 %v6218_v3, %v15160_v7  ;;  %v6220_v6 = vpop.f32.mrb[157].mxu0 }
 0x74f   : > { %v6221_v34 = vadd.f32 %v6220_v6, %v15164_v8  ;;  %v6222_v9 = vpop.f32.mrb[158].mxu0  ;;  %6955 = vmatprep.mubr.bf16.mxu1 %v6544_v4 }
 0x750   : > { %v6223_v12 = vadd.f32 %v6222_v9, %v15160_v7  ;;  %v6224_v13 = vpop.f32.mrb[159].mxu0  ;;  %6956 = vmatmul.mubr.bf16.gmra.mrb[216].mxu1 %v6543_v2  ;;  %v6447_v24 = vmax.f32 %v6219_v33, 0.0  ;;  %v13198_v9 = vld [vmem:[%s17096_s7 + $0x28] sm:$0xff]  }
 0x751   : > { %v6225_v60 = vadd.f32 %v6224_v13, %v15164_v8  ;;  %v6448_v16 = vmax.f32 %v6221_v34, 0.0  ;;  %8223 = vmatpush1.bf16.msra.mxu1 %v13198_v9 }
 0x752   : > { %v6449_v61 = vmax.f32 %v6223_v12, 0.0  ;;  %8224 = vmatprep.subr.bf16.mxu1 %v13790_v1 }
 0x753   : > { %v6450_v5 = vmax.f32 %v6225_v60, 0.0 }
 0x754   : > { %v6545_v41 = vpack.c.bf16 %v6449_v61, %v6447_v24 }
 0x755   : > { %v6228_v53 = vpop.f32.mrb[160].mxu0  ;;  %v6546_v10 = vpack.c.bf16 %v6450_v5, %v6448_v16 }
 0x756   : > { %v6229_v14 = vadd.f32 %v6228_v53, %v15160_v7  ;;  %v6230_v56 = vpop.f32.mrb[161].mxu0 }
 0x757   : > { %v6231_v48 = vadd.f32 %v6230_v56, %v15164_v8  ;;  %v6232_v18 = vpop.f32.mrb[162].mxu0  ;;  %6965 = vmatprep.mubr.bf16.mxu1 %v6546_v10 }
 0x758   : > { %v6233_v20 = vadd.f32 %v6232_v18, %v15160_v7  ;;  %v6234_v40 = vpop.f32.mrb[163].mxu0  ;;  %6966 = vmatmul.mubr.bf16.gmra.mrb[220].mxu1 %v6545_v41  ;;  %v6451_v47 = vmax.f32 %v6229_v14, 0.0 }
 0x759   : > { %v6235_v21 = vadd.f32 %v6234_v40, %v15164_v8  ;;  %v6452_v25 = vmax.f32 %v6231_v48, 0.0 }
 0x75a   : > { %v6453_v0 = vmax.f32 %v6233_v20, 0.0 }
 0x75b   : > { %v6454_v26 = vmax.f32 %v6235_v21, 0.0 }
 0x75c   : > { %v6547_v45 = vpack.c.bf16 %v6453_v0, %v6451_v47 }
 0x75d   : > { %v6238_v19 = vpop.f32.mrb[164].mxu0  ;;  %v6548_v28 = vpack.c.bf16 %v6454_v26, %v6452_v25 }
 0x75e   : > { %v6239_v23 = vadd.f32 %v6238_v19, %v15160_v7  ;;  %v6240_v29 = vpop.f32.mrb[165].mxu0 }
 0x75f   : > { %v6241_v30 = vadd.f32 %v6240_v29, %v15164_v8  ;;  %v6242_v31 = vpop.f32.mrb[166].mxu0  ;;  %6975 = vmatprep.mubr.bf16.mxu1 %v6548_v28 }
 0x760   : > { %v6243_v32 = vadd.f32 %v6242_v31, %v15160_v7  ;;  %v6244_v37 = vpop.f32.mrb[167].mxu0  ;;  %6976 = vmatmul.mubr.bf16.gmra.mrb[224].mxu1 %v6547_v45  ;;  %v6455_v35 = vmax.f32 %v6239_v23, 0.0  ;;  %v13199_v31 = vld [vmem:[%s17096_s7 + $0x30] sm:$0xff]  }
 0x761   : > { %v6245_v15 = vadd.f32 %v6244_v37, %v15164_v8  ;;  %v6456_v39 = vmax.f32 %v6241_v30, 0.0  ;;  %8225 = vmatpush1.bf16.msra.mxu1 %v13199_v31 }
 0x762   : > { %v6457_v36 = vmax.f32 %v6243_v32, 0.0  ;;  %8226 = vmatprep.subr.bf16.mxu1 %v13790_v1 }
 0x763   : > { %v6458_v54 = vmax.f32 %v6245_v15, 0.0 }
 0x764   : > { %v6549_v38 = vpack.c.bf16 %v6457_v36, %v6455_v35 }
 0x765   : > { %v6248_v44 = vpop.f32.mrb[168].mxu0  ;;  %v6550_v42 = vpack.c.bf16 %v6458_v54, %v6456_v39 }
 0x766   : > { %v6249_v49 = vadd.f32 %v6248_v44, %v15160_v7  ;;  %v6250_v51 = vpop.f32.mrb[169].mxu0 }
 0x767   : > { %v6251_v22 = vadd.f32 %v6250_v51, %v15164_v8  ;;  %v6252_v52 = vpop.f32.mrb[170].mxu0  ;;  %6985 = vmatprep.mubr.bf16.mxu1 %v6550_v42 }
 0x768   : > { %v6253_v43 = vadd.f32 %v6252_v52, %v15160_v7  ;;  %v6254_v50 = vpop.f32.mrb[171].mxu0  ;;  %6986 = vmatmul.mubr.bf16.gmra.mrb[228].mxu1 %v6549_v38  ;;  %v6459_v59 = vmax.f32 %v6249_v49, 0.0 }
 0x769   : > { %v6255_v58 = vadd.f32 %v6254_v50, %v15164_v8  ;;  %v6460_v62 = vmax.f32 %v6251_v22, 0.0 }
 0x76a   : > { %v6461_v46 = vmax.f32 %v6253_v43, 0.0 }
 0x76b   : > { %v6462_v63 = vmax.f32 %v6255_v58, 0.0 }
 0x76c   : > { %v6551_v27 = vpack.c.bf16 %v6461_v46, %v6459_v59 }
 0x76d   : > { %v6258_v2 = vpop.f32.mrb[172].mxu0  ;;  %v6552_v3 = vpack.c.bf16 %v6462_v63, %v6460_v62 }
 0x76e   : > { %v6259_v4 = vadd.f32 %v6258_v2, %v15160_v7  ;;  %v6260_v33 = vpop.f32.mrb[173].mxu0 }
 0x76f   : > { %v6261_v6 = vadd.f32 %v6260_v33, %v15164_v8  ;;  %v6262_v34 = vpop.f32.mrb[174].mxu0  ;;  %6995 = vmatprep.mubr.bf16.mxu1 %v6552_v3 }
 0x770   : > { %v6263_v11 = vadd.f32 %v6262_v34, %v15160_v7  ;;  %v6264_v12 = vpop.f32.mrb[175].mxu0  ;;  %6996 = vmatmul.mubr.bf16.gmra.mrb[232].mxu1 %v6551_v27  ;;  %v6463_v60 = vmax.f32 %v6259_v4, 0.0  ;;  %v13200_v34 = vld [vmem:[%s17096_s7 + $0x38] sm:$0xff]  }
 0x771   : > { %v6265_v13 = vadd.f32 %v6264_v12, %v15164_v8  ;;  %v6464_v61 = vmax.f32 %v6261_v6, 0.0  ;;  %8227 = vmatpush1.bf16.msra.mxu1 %v13200_v34  ;;  %v13202_v34 = vld [vmem:[%s17096_s7 + $0x48] sm:$0xff]  }
 0x772   : > { %v6465_v24 = vmax.f32 %v6263_v11, 0.0  ;;  %8228 = vmatprep.subr.bf16.mxu1 %v13790_v1 }
 0x773   : > { %v6466_v16 = vmax.f32 %v6265_v13, 0.0 }
 0x774   : > { %v6553_v5 = vpack.c.bf16 %v6465_v24, %v6463_v60 }
 0x775   : > { %v6268_v41 = vpop.f32.mrb[176].mxu0  ;;  %v6554_v53 = vpack.c.bf16 %v6466_v16, %v6464_v61 }
 0x776   : > { %v6269_v10 = vadd.f32 %v6268_v41, %v15160_v7  ;;  %v6270_v14 = vpop.f32.mrb[177].mxu0 }
 0x777   : > { %v6271_v56 = vadd.f32 %v6270_v14, %v15164_v8  ;;  %v6272_v48 = vpop.f32.mrb[178].mxu0  ;;  %7005 = vmatprep.mubr.bf16.mxu1 %v6554_v53 }
 0x778   : > { %v6273_v18 = vadd.f32 %v6272_v48, %v15160_v7  ;;  %v6274_v20 = vpop.f32.mrb[179].mxu0  ;;  %7006 = vmatmul.mubr.bf16.gmra.mrb[236].mxu1 %v6553_v5  ;;  %v6467_v21 = vmax.f32 %v6269_v10, 0.0 }
 0x779   : > { %v6275_v40 = vadd.f32 %v6274_v20, %v15164_v8  ;;  %v6468_v0 = vmax.f32 %v6271_v56, 0.0 }
 0x77a   : > { %v6469_v47 = vmax.f32 %v6273_v18, 0.0 }
 0x77b   : > { %v6470_v25 = vmax.f32 %v6275_v40, 0.0 }
 0x77c   : > { %v6555_v26 = vpack.c.bf16 %v6469_v47, %v6467_v21 }
 0x77d   : > { %v6278_v45 = vpop.f32.mrb[180].mxu0  ;;  %v6556_v19 = vpack.c.bf16 %v6470_v25, %v6468_v0 }
 0x77e   : > { %v6279_v28 = vadd.f32 %v6278_v45, %v15160_v7  ;;  %v6280_v23 = vpop.f32.mrb[181].mxu0 }
 0x77f   : > { %v6281_v29 = vadd.f32 %v6280_v23, %v15164_v8  ;;  %v6282_v30 = vpop.f32.mrb[182].mxu0  ;;  %7015 = vmatprep.mubr.bf16.mxu1 %v6556_v19 }
 0x780   : > { %v6283_v17 = vadd.f32 %v6282_v30, %v15160_v7  ;;  %v6284_v32 = vpop.f32.mrb[183].mxu0  ;;  %7016 = vmatmul.mubr.bf16.gmra.mrb[240].mxu1 %v6555_v26  ;;  %v6471_v15 = vmax.f32 %v6279_v28, 0.0  ;;  %v13201_v30 = vld [vmem:[%s17096_s7 + $0x40] sm:$0xff]  }
 0x781   : > { %v6285_v37 = vadd.f32 %v6284_v32, %v15164_v8  ;;  %v6472_v36 = vmax.f32 %v6281_v29, 0.0  ;;  %8229 = vmatpush1.bf16.msra.mxu1 %v13201_v30 }
 0x782   : > { %v6473_v35 = vmax.f32 %v6283_v17, 0.0  ;;  %8230 = vmatprep.subr.bf16.mxu1 %v13790_v1 }
 0x783   : > { %v6474_v39 = vmax.f32 %v6285_v37, 0.0 }
 0x784   : > { %v6557_v54 = vpack.c.bf16 %v6473_v35, %v6471_v15 }
 0x785   : > { %v6288_v38 = vpop.f32.mrb[184].mxu0  ;;  %v6558_v44 = vpack.c.bf16 %v6474_v39, %v6472_v36  ;;  %8231 = vmatpush1.bf16.msra.mxu1 %v13202_v34 }
 0x786   : > { %v6289_v42 = vadd.f32 %v6288_v38, %v15160_v7  ;;  %v6290_v49 = vpop.f32.mrb[185].mxu0  ;;  %8232 = vmatprep.subr.bf16.mxu1 %v13790_v1 }
 0x787   : > { %v6291_v51 = vadd.f32 %v6290_v49, %v15164_v8  ;;  %v6292_v22 = vpop.f32.mrb[186].mxu0  ;;  %7025 = vmatprep.mubr.bf16.mxu1 %v6558_v44 }
 0x788   : > { %v6293_v52 = vadd.f32 %v6292_v22, %v15160_v7  ;;  %v6294_v43 = vpop.f32.mrb[187].mxu0  ;;  %7026 = vmatmul.mubr.bf16.gmra.mrb[244].mxu1 %v6557_v54  ;;  %v6475_v58 = vmax.f32 %v6289_v42, 0.0 }
 0x789   : > { %v6295_v50 = vadd.f32 %v6294_v43, %v15164_v8  ;;  %v6476_v46 = vmax.f32 %v6291_v51, 0.0 }
 0x78a   : > { %v6477_v59 = vmax.f32 %v6293_v52, 0.0 }
 0x78b   : > { %v6478_v62 = vmax.f32 %v6295_v50, 0.0 }
 0x78c   : > { %v6559_v63 = vpack.c.bf16 %v6477_v59, %v6475_v58 }
 0x78d   : > { %v6298_v27 = vpop.f32.mrb[188].mxu0  ;;  %v6560_v2 = vpack.c.bf16 %v6478_v62, %v6476_v46 }
 0x78e   : > { %v6299_v3 = vadd.f32 %v6298_v27, %v15160_v7  ;;  %v6300_v4 = vpop.f32.mrb[189].mxu0 }
 0x78f   : > { %v6301_v33 = vadd.f32 %v6300_v4, %v15164_v8  ;;  %v6302_v6 = vpop.f32.mrb[190].mxu0  ;;  %7035 = vmatprep.mubr.bf16.mxu1 %v6560_v2  ;;  %v6611_v2 = vld [vmem:[%s17097_s23] sm:$0x3] }
 0x790   : > { %v6303_v9 = vadd.f32 %v6302_v6, %v15160_v7  ;;  %v6304_v11 = vpop.f32.mrb[191].mxu0  ;;  %7036 = vmatmul.mubr.bf16.gmra.mrb[248].mxu1 %v6559_v63  ;;  %v6479_v13 = vmax.f32 %v6299_v3, 0.0 }
 0x791   : > { %v6305_v12 = vadd.f32 %v6304_v11, %v15164_v8  ;;  %v6480_v24 = vmax.f32 %v6301_v33, 0.0 }
 0x792   : > { %v6481_v60 = vmax.f32 %v6303_v9, 0.0 }
 0x793   : > { %v6482_v61 = vmax.f32 %v6305_v12, 0.0  ;;  %v15314_v12 = vrot.slane %v6611_v2, %v14419_v55 }
 0x794   : > { %v6561_v16 = vpack.c.bf16 %v6481_v60, %v6479_v13  ;;  %v15318_v60 = vrot.slane %v6611_v2, %v14422_v57 }
 0x795   : > { %v6308_v5 = vpop.f32.mrb[192].mxu0  ;;  %v6562_v41 = vpack.c.bf16 %v6482_v61, %v6480_v24 }
 0x796   : > { %v6309_v53 = vadd.f32 %v6308_v5, %v15160_v7  ;;  %v6310_v10 = vpop.f32.mrb[193].mxu0 }
 0x797   : > { %v6311_v14 = vadd.f32 %v6310_v10, %v15164_v8  ;;  %v6312_v56 = vpop.f32.mrb[194].mxu0  ;;  %7045 = vmatprep.mubr.bf16.mxu1 %v6562_v41 }
 0x798   : > { %v6313_v48 = vadd.f32 %v6312_v56, %v15160_v7  ;;  %v6314_v18 = vpop.f32.mrb[195].mxu0  ;;  %7046 = vmatmul.mubr.bf16.gmra.mrb[252].mxu1 %v6561_v16  ;;  %v6483_v40 = vmax.f32 %v6309_v53, 0.0 }
 0x799   : > { %v6315_v20 = vadd.f32 %v6314_v18, %v15164_v8  ;;  %v6484_v47 = vmax.f32 %v6311_v14, 0.0 }
 0x79a   : > { %v6485_v21 = vmax.f32 %v6313_v48, 0.0 }
 0x79b   : > { %v6486_v0 = vmax.f32 %v6315_v20, 0.0 }
 0x79c   : > { %v6563_v25 = vpack.c.bf16 %v6485_v21, %v6483_v40 }
 0x79d   : > { %v6318_v26 = vpop.f32.mrb[196].mxu0  ;;  %v6564_v45 = vpack.c.bf16 %v6486_v0, %v6484_v47 }
 0x79e   : > { %v6319_v19 = vadd.f32 %v6318_v26, %v15160_v7  ;;  %v6320_v28 = vpop.f32.mrb[197].mxu0 }
 0x79f   : > { %v6321_v23 = vadd.f32 %v6320_v28, %v15164_v8  ;;  %v6322_v29 = vpop.f32.mrb[198].mxu0  ;;  %7055 = vmatprep.mubr.bf16.mxu1 %v6564_v45 }
 0x7a0   : > { %v6323_v31 = vadd.f32 %v6322_v29, %v15160_v7  ;;  %v6324_v17 = vpop.f32.mrb[199].mxu0  ;;  %7056 = vmatmul.mubr.bf16.gmra.mrb[0].mxu1 %v6563_v25  ;;  %v6487_v37 = vmax.f32 %v6319_v19, 0.0 }
 0x7a1   : > { %v6325_v32 = vadd.f32 %v6324_v17, %v15164_v8  ;;  %v6488_v35 = vmax.f32 %v6321_v23, 0.0 }
 0x7a2   : > { %v6489_v15 = vmax.f32 %v6323_v31, 0.0 }
 0x7a3   : > { %v6490_v36 = vmax.f32 %v6325_v32, 0.0 }
 0x7a4   : > { %v6565_v39 = vpack.c.bf16 %v6489_v15, %v6487_v37 }
 0x7a5   : > { %v6328_v54 = vpop.f32.mrb[200].mxu0  ;;  %v6566_v38 = vpack.c.bf16 %v6490_v36, %v6488_v35 }
 0x7a6   : > { %v6329_v44 = vadd.f32 %v6328_v54, %v15160_v7  ;;  %v6330_v42 = vpop.f32.mrb[201].mxu0 }
 0x7a7   : > { %v6331_v49 = vadd.f32 %v6330_v42, %v15164_v8  ;;  %v6332_v51 = vpop.f32.mrb[202].mxu0  ;;  %7065 = vmatprep.mubr.bf16.mxu1 %v6566_v38 }
 0x7a8   : > { %v6333_v22 = vadd.f32 %v6332_v51, %v15160_v7  ;;  %v6334_v52 = vpop.f32.mrb[203].mxu0  ;;  %7066 = vmatmul.mubr.bf16.gmra.mrb[4].mxu1 %v6565_v39  ;;  %v6491_v50 = vmax.f32 %v6329_v44, 0.0 }
 0x7a9   : > { %v6335_v43 = vadd.f32 %v6334_v52, %v15164_v8  ;;  %v6492_v59 = vmax.f32 %v6331_v49, 0.0 }
 0x7aa   : > { %v6493_v58 = vmax.f32 %v6333_v22, 0.0 }
 0x7ab   : > { %v6494_v46 = vmax.f32 %v6335_v43, 0.0 }
 0x7ac   : > { %v6567_v62 = vpack.c.bf16 %v6493_v58, %v6491_v50 }
 0x7ad   : > { %v6338_v63 = vpop.f32.mrb[204].mxu0  ;;  %v6568_v27 = vpack.c.bf16 %v6494_v46, %v6492_v59 }
 0x7ae   : > { %v6339_v3 = vadd.f32 %v6338_v63, %v15160_v7  ;;  %v6340_v4 = vpop.f32.mrb[205].mxu0 }
 0x7af   : > { %v6341_v33 = vadd.f32 %v6340_v4, %v15164_v8  ;;  %v6342_v6 = vpop.f32.mrb[206].mxu0  ;;  %7075 = vmatprep.mubr.bf16.mxu1 %v6568_v27  ;;  %v13203_v27 = vld [vmem:[%s17096_s7 + $0x50] sm:$0xff]  }
 0x7b0   : > { %v6343_v9 = vadd.f32 %v6342_v6, %v15160_v7  ;;  %v6344_v11 = vpop.f32.mrb[207].mxu0  ;;  %7076 = vmatmul.mubr.bf16.gmra.mrb[8].mxu1 %v6567_v62  ;;  %v6495_v24 = vmax.f32 %v6339_v3, 0.0 }
 0x7b1   : > { %v6345_v13 = vadd.f32 %v6344_v11, %v15164_v8  ;;  %v6496_v16 = vmax.f32 %v6341_v33, 0.0  ;;  %8233 = vmatpush1.bf16.msra.mxu1 %v13203_v27 }
 0x7b2   : > { %v6497_v61 = vmax.f32 %v6343_v9, 0.0  ;;  %8234 = vmatprep.subr.bf16.mxu1 %v13790_v1 }
 0x7b3   : > { %v6498_v5 = vmax.f32 %v6345_v13, 0.0  ;;  %v6817_v41 = vpop.f32.mrb[160].mxu1 }
 0x7b4   : > { %v6569_v53 = vpack.c.bf16 %v6497_v61, %v6495_v24  ;;  %v6818_v10 = vadd.f32 %v6817_v41, %v15314_v12  ;;  %v6819_v14 = vpop.f32.mrb[161].mxu1  ;;  %v13204_v61 = vld [vmem:[#allocation19] ss:$8 sps:$4 sm:$0xff]  }
 0x7b5   : > { %v6820_v56 = vadd.f32 %v6819_v14, %v15318_v60  ;;  %v6348_v48 = vpop.f32.mrb[208].mxu0  ;;  %v6821_v18 = vpop.f32.mrb[162].mxu1  ;;  %v6570_v20 = vpack.c.bf16 %v6498_v5, %v6496_v16  ;;  %v13206_v16 = vld [vmem:[#allocation19 + $0x4] ss:$8 sps:$4 sm:$0xff]  }
 0x7b6   : > { %v6349_v40 = vadd.f32 %v6348_v48, %v15160_v7  ;;  %v6822_v21 = vadd.f32 %v6821_v18, %v15314_v12  ;;  %v6350_v47 = vpop.f32.mrb[209].mxu0  ;;  %v6823_v0 = vpop.f32.mrb[163].mxu1  ;;  %v7136_v19 = vmax.f32 %v6818_v10, 0.0  ;;  %8705 = vmatprep.subr.bf16.mxu0 %v13206_v16 }
 0x7b7   : > { %v6351_v25 = vadd.f32 %v6350_v47, %v15164_v8  ;;  %v6824_v26 = vadd.f32 %v6823_v0, %v15318_v60  ;;  %v6352_v45 = vpop.f32.mrb[210].mxu0  ;;  %7085 = vmatprep.mubr.bf16.mxu1 %v6570_v20  ;;  %v7137_v30 = vmax.f32 %v6820_v56, 0.0 }
 0x7b8   : > { %v7138_v28 = vmax.f32 %v6822_v21, 0.0  ;;  %v6353_v23 = vadd.f32 %v6352_v45, %v15160_v7  ;;  %v6354_v29 = vpop.f32.mrb[211].mxu0  ;;  %7086 = vmatmul.mubr.bf16.gmra.mrb[12].mxu1 %v6569_v53  ;;  %v6499_v32 = vmax.f32 %v6349_v40, 0.0 }
 0x7b9   : > { %v7139_v31 = vmax.f32 %v6824_v26, 0.0  ;;  %v6355_v17 = vadd.f32 %v6354_v29, %v15164_v8  ;;  %v6500_v35 = vmax.f32 %v6351_v25, 0.0 }
 0x7ba   : > { %v7264_v37 = vpack.c.bf16 %v7138_v28, %v7136_v19  ;;  %v6501_v15 = vmax.f32 %v6353_v23, 0.0 }
 0x7bb   : > { %v6502_v36 = vmax.f32 %v6355_v17, 0.0  ;;  %v6827_v39 = vpop.f32.mrb[164].mxu1  ;;  %v7265_v54 = vpack.c.bf16 %v7139_v31, %v7137_v30 }
 0x7bc   : > { %v6571_v38 = vpack.c.bf16 %v6501_v15, %v6499_v32  ;;  %v6828_v44 = vadd.f32 %v6827_v39, %v15314_v12  ;;  %v6829_v42 = vpop.f32.mrb[165].mxu1 }
 0x7bd   : > { %v6830_v49 = vadd.f32 %v6829_v42, %v15318_v60  ;;  %v6358_v51 = vpop.f32.mrb[212].mxu0  ;;  %v6831_v22 = vpop.f32.mrb[166].mxu1  ;;  %7564 = vmatprep.mubr.bf16.mxu0 %v7265_v54  ;;  %v6572_v52 = vpack.c.bf16 %v6502_v36, %v6500_v35 }
 0x7be   : > { %v6359_v43 = vadd.f32 %v6358_v51, %v15160_v7  ;;  %v6832_v50 = vadd.f32 %v6831_v22, %v15314_v12  ;;  %v6360_v58 = vpop.f32.mrb[213].mxu0  ;;  %v6833_v59 = vpop.f32.mrb[167].mxu1  ;;  %7565 = vmatmul.mubr.bf16.vlgmr.msra.gmra.mrb[224].mxu0 %v7264_v37  ;;  %v7140_v2 = vmax.f32 %v6828_v44, 0.0 }
 0x7bf   : > { %v6361_v46 = vadd.f32 %v6360_v58, %v15164_v8  ;;  %v6834_v62 = vadd.f32 %v6833_v59, %v15318_v60  ;;  %v6362_v63 = vpop.f32.mrb[214].mxu0  ;;  %7095 = vmatprep.mubr.bf16.mxu1 %v6572_v52  ;;  %v7141_v6 = vmax.f32 %v6830_v49, 0.0  ;;  %8706 = vmatpush1.bf16.msra.mxu0 %v13204_v61 }
 0x7c0   : > { %v7142_v3 = vmax.f32 %v6832_v50, 0.0  ;;  %v6363_v4 = vadd.f32 %v6362_v63, %v15160_v7  ;;  %v6364_v33 = vpop.f32.mrb[215].mxu0  ;;  %7096 = vmatmul.mubr.bf16.gmra.mrb[16].mxu1 %v6571_v38  ;;  %v6503_v11 = vmax.f32 %v6359_v43, 0.0 }
 0x7c1   : > { %v7143_v34 = vmax.f32 %v6834_v62, 0.0  ;;  %v6365_v9 = vadd.f32 %v6364_v33, %v15164_v8  ;;  %v6504_v5 = vmax.f32 %v6361_v46, 0.0 }
 0x7c2   : > { %v7266_v13 = vpack.c.bf16 %v7142_v3, %v7140_v2  ;;  %v6505_v24 = vmax.f32 %v6363_v4, 0.0  ;;  %v13207_v3 = vld [vmem:[%s17096_s7 + $0x58] sm:$0xff]  }
 0x7c3   : > { %v6506_v41 = vmax.f32 %v6365_v9, 0.0  ;;  %v6837_v53 = vpop.f32.mrb[168].mxu1  ;;  %v7267_v10 = vpack.c.bf16 %v7143_v34, %v7141_v6  ;;  %8235 = vmatpush1.bf16.msra.mxu1 %v13207_v3 }
 0x7c4   : > { %v6573_v14 = vpack.c.bf16 %v6505_v24, %v6503_v11  ;;  %v6838_v56 = vadd.f32 %v6837_v53, %v15314_v12  ;;  %v6839_v48 = vpop.f32.mrb[169].mxu1  ;;  %8236 = vmatprep.subr.bf16.mxu1 %v13790_v1 }
 0x7c5   : > { %v6840_v18 = vadd.f32 %v6839_v48, %v15318_v60  ;;  %v6368_v20 = vpop.f32.mrb[216].mxu0  ;;  %v6841_v40 = vpop.f32.mrb[170].mxu1  ;;  %7574 = vmatprep.mubr.bf16.mxu0 %v7267_v10  ;;  %v6574_v21 = vpack.c.bf16 %v6506_v41, %v6504_v5  ;;  %v13208_v5 = vld [vmem:[#allocation19 + $0x10] ss:$8 sps:$4 sm:$0xff]   ;;  %v13210_v41 = vld [vmem:[#allocation19 + $0x14] ss:$8 sps:$4 sm:$0xff]  }
 0x7c6   : > { %v6369_v47 = vadd.f32 %v6368_v20, %v15160_v7  ;;  %v6842_v0 = vadd.f32 %v6841_v40, %v15314_v12  ;;  %v6370_v25 = vpop.f32.mrb[217].mxu0  ;;  %v6843_v26 = vpop.f32.mrb[171].mxu1  ;;  %7575 = vmatmul.mubr.bf16.gmra.mrb[228].mxu0 %v7266_v13  ;;  %v7144_v23 = vmax.f32 %v6838_v56, 0.0  ;;  %8707 = vmatprep.subr.bf16.mxu0 %v13210_v41  ;;  %v13215_v41 = vld [vmem:[%s17096_s7 + $0x68] sm:$0xff]  }
 0x7c7   : > { %v6371_v45 = vadd.f32 %v6370_v25, %v15164_v8  ;;  %v6844_v19 = vadd.f32 %v6843_v26, %v15318_v60  ;;  %v6372_v28 = vpop.f32.mrb[218].mxu0  ;;  %7105 = vmatprep.mubr.bf16.mxu1 %v6574_v21  ;;  %v7145_v17 = vmax.f32 %v6840_v18, 0.0  ;;  %8708 = vmatpush1.bf16.msra.mxu0 %v13208_v5 }
 0x7c8   : > { %v7146_v29 = vmax.f32 %v6842_v0, 0.0  ;;  %v6373_v30 = vadd.f32 %v6372_v28, %v15160_v7  ;;  %v6374_v31 = vpop.f32.mrb[219].mxu0  ;;  %7106 = vmatmul.mubr.bf16.gmra.mrb[20].mxu1 %v6573_v14  ;;  %v6507_v15 = vmax.f32 %v6369_v47, 0.0 }
 0x7c9   : > { %v7147_v32 = vmax.f32 %v6844_v19, 0.0  ;;  %v6375_v37 = vadd.f32 %v6374_v31, %v15164_v8  ;;  %v6508_v39 = vmax.f32 %v6371_v45, 0.0 }
 0x7ca   : > { %v7268_v35 = vpack.c.bf16 %v7146_v29, %v7144_v23  ;;  %v6509_v36 = vmax.f32 %v6373_v30, 0.0 }
 0x7cb   : > { %v6510_v54 = vmax.f32 %v6375_v37, 0.0  ;;  %v6847_v38 = vpop.f32.mrb[172].mxu1  ;;  %v7269_v44 = vpack.c.bf16 %v7147_v32, %v7145_v17 }
 0x7cc   : > { %v6575_v42 = vpack.c.bf16 %v6509_v36, %v6507_v15  ;;  %v6848_v49 = vadd.f32 %v6847_v38, %v15314_v12  ;;  %v6849_v51 = vpop.f32.mrb[173].mxu1  ;;  %v13211_v36 = vld [vmem:[%s17096_s7 + $0x60] sm:$0xff]  }
 0x7cd   : > { %v6850_v22 = vadd.f32 %v6849_v51, %v15318_v60  ;;  %v6378_v52 = vpop.f32.mrb[220].mxu0  ;;  %v6851_v43 = vpop.f32.mrb[174].mxu1  ;;  %7584 = vmatprep.mubr.bf16.mxu0 %v7269_v44  ;;  %v6576_v50 = vpack.c.bf16 %v6510_v54, %v6508_v39  ;;  %8237 = vmatpush1.bf16.msra.mxu1 %v13211_v36  ;;  %v13214_v51 = vld [vmem:[#allocation19 + $0x24] ss:$8 sps:$4 sm:$0xff]  }
 0x7ce   : > { %v6379_v58 = vadd.f32 %v6378_v52, %v15160_v7  ;;  %v6852_v59 = vadd.f32 %v6851_v43, %v15314_v12  ;;  %v6380_v46 = vpop.f32.mrb[221].mxu0  ;;  %v6853_v62 = vpop.f32.mrb[175].mxu1  ;;  %7585 = vmatmul.mubr.bf16.gmra.mrb[232].mxu0 %v7268_v35  ;;  %v7148_v4 = vmax.f32 %v6848_v49, 0.0  ;;  %v13212_v49 = vld [vmem:[#allocation19 + $0x20] ss:$8 sps:$4 sm:$0xff]   ;;  %8238 = vmatprep.subr.bf16.mxu1 %v13790_v1 }
 0x7cf   : > { %v6381_v63 = vadd.f32 %v6380_v46, %v15164_v8  ;;  %v6854_v27 = vadd.f32 %v6853_v62, %v15318_v60  ;;  %v6382_v2 = vpop.f32.mrb[222].mxu0  ;;  %7115 = vmatprep.mubr.bf16.mxu1 %v6576_v50  ;;  %v7149_v9 = vmax.f32 %v6850_v22, 0.0  ;;  %8709 = vmatprep.subr.bf16.mxu0 %v13214_v51 }
 0x7d0   : > { %v7150_v33 = vmax.f32 %v6852_v59, 0.0  ;;  %v6383_v6 = vadd.f32 %v6382_v2, %v15160_v7  ;;  %v6384_v34 = vpop.f32.mrb[223].mxu0  ;;  %7116 = vmatmul.mubr.bf16.gmra.mrb[24].mxu1 %v6575_v42  ;;  %v6511_v24 = vmax.f32 %v6379_v58, 0.0  ;;  %8710 = vmatpush1.bf16.msra.mxu0 %v13212_v49 }
 0x7d1   : > { %v7151_v11 = vmax.f32 %v6854_v27, 0.0  ;;  %v6385_v13 = vadd.f32 %v6384_v34, %v15164_v8  ;;  %v6512_v53 = vmax.f32 %v6381_v63, 0.0  ;;  %8239 = vmatpush1.bf16.msra.mxu1 %v13215_v41 }
 0x7d2   : > { %v7270_v61 = vpack.c.bf16 %v7150_v33, %v7148_v4  ;;  %v6513_v16 = vmax.f32 %v6383_v6, 0.0  ;;  %8240 = vmatprep.subr.bf16.mxu1 %v13790_v1 }
 0x7d3   : > { %v6514_v10 = vmax.f32 %v6385_v13, 0.0  ;;  %v6857_v14 = vpop.f32.mrb[176].mxu1  ;;  %v7271_v56 = vpack.c.bf16 %v7151_v11, %v7149_v9 }
 0x7d4   : > { %v6577_v48 = vpack.c.bf16 %v6513_v16, %v6511_v24  ;;  %v6858_v7 = vadd.f32 %v6857_v14, %v15314_v12  ;;  %v6859_v18 = vpop.f32.mrb[177].mxu1 }
 0x7d5   : > { %v6860_v20 = vadd.f32 %v6859_v18, %v15318_v60  ;;  %v6861_v8 = vpop.f32.mrb[178].mxu1  ;;  %7594 = vmatprep.mubr.bf16.mxu0 %v7271_v56  ;;  %v6578_v40 = vpack.c.bf16 %v6514_v10, %v6512_v53  ;;  %v13218_v18 = vld [vmem:[#allocation19 + $0x34] ss:$8 sps:$4 sm:$0xff]  }
 0x7d6   : > { %v6862_v21 = vadd.f32 %v6861_v8, %v15314_v12  ;;  %v6863_v47 = vpop.f32.mrb[179].mxu1  ;;  %7595 = vmatmul.mubr.bf16.gmra.mrb[236].mxu0 %v7270_v61  ;;  %v7152_v25 = vmax.f32 %v6858_v7, 0.0  ;;  %v13216_v7 = vld [vmem:[#allocation19 + $0x30] ss:$8 sps:$4 sm:$0xff]   ;;  %8711 = vmatprep.subr.bf16.mxu0 %v13218_v18 }
 0x7d7   : > { %v6864_v0 = vadd.f32 %v6863_v47, %v15318_v60  ;;  %7125 = vmatprep.mubr.bf16.mxu1 %v6578_v40  ;;  %v7153_v45 = vmax.f32 %v6860_v20, 0.0  ;;  %8712 = vmatpush1.bf16.msra.mxu0 %v13216_v7  ;;  %v13226_v7 = vld [vmem:[#allocation19 + $0x54] ss:$8 sps:$4 sm:$0xff]  }
 0x7d8   : > { %v7154_v26 = vmax.f32 %v6862_v21, 0.0  ;;  %7126 = vmatmul.mubr.bf16.gmra.mrb[28].mxu1 %v6577_v48 }
 0x7d9   : > { %v7155_v19 = vmax.f32 %v6864_v0, 0.0 }
 0x7da   : > { %v7272_v28 = vpack.c.bf16 %v7154_v26, %v7152_v25 }
 0x7db   : > { %v6867_v23 = vpop.f32.mrb[180].mxu1  ;;  %v7273_v29 = vpack.c.bf16 %v7155_v19, %v7153_v45 }
 0x7dc   : > { %v6868_v30 = vadd.f32 %v6867_v23, %v15314_v12  ;;  %v6869_v31 = vpop.f32.mrb[181].mxu1 }
 0x7dd   : > { %v6870_v17 = vadd.f32 %v6869_v31, %v15318_v60  ;;  %v6871_v32 = vpop.f32.mrb[182].mxu1  ;;  %7604 = vmatprep.mubr.bf16.mxu0 %v7273_v29 }
 0x7de   : > { %v6872_v37 = vadd.f32 %v6871_v32, %v15314_v12  ;;  %v6873_v15 = vpop.f32.mrb[183].mxu1  ;;  %7605 = vmatmul.mubr.bf16.gmra.mrb[240].mxu0 %v7272_v28  ;;  %v7156_v39 = vmax.f32 %v6868_v30, 0.0 }
 0x7df   : > { %v6874_v35 = vadd.f32 %v6873_v15, %v15318_v60  ;;  %v7157_v38 = vmax.f32 %v6870_v17, 0.0 }
 0x7e0   : > { %v7158_v54 = vmax.f32 %v6872_v37, 0.0 }
 0x7e1   : > { %v7159_v44 = vmax.f32 %v6874_v35, 0.0 }
 0x7e2   : > { %v7274_v42 = vpack.c.bf16 %v7158_v54, %v7156_v39 }
 0x7e3   : > { %v6877_v22 = vpop.f32.mrb[184].mxu1  ;;  %v7275_v52 = vpack.c.bf16 %v7159_v44, %v7157_v38  ;;  %v13219_v38 = vld [vmem:[%s17096_s7 + $0x70] sm:$0xff]  }
 0x7e4   : > { %v6878_v43 = vadd.f32 %v6877_v22, %v15314_v12  ;;  %v6879_v50 = vpop.f32.mrb[185].mxu1  ;;  %8241 = vmatpush1.bf16.msra.mxu1 %v13219_v38 }
 0x7e5   : > { %v6880_v58 = vadd.f32 %v6879_v50, %v15318_v60  ;;  %v6881_v59 = vpop.f32.mrb[186].mxu1  ;;  %7614 = vmatprep.mubr.bf16.mxu0 %v7275_v52  ;;  %v13220_v52 = vld [vmem:[#allocation19 + $0x40] ss:$8 sps:$4 sm:$0xff]   ;;  %8242 = vmatprep.subr.bf16.mxu1 %v13790_v1 }
 0x7e6   : > { %v6882_v46 = vadd.f32 %v6881_v59, %v15314_v12  ;;  %v6883_v62 = vpop.f32.mrb[187].mxu1  ;;  %7615 = vmatmul.mubr.bf16.gmra.mrb[244].mxu0 %v7274_v42  ;;  %v7160_v27 = vmax.f32 %v6878_v43, 0.0  ;;  %v13222_v43 = vld [vmem:[#allocation19 + $0x44] ss:$8 sps:$4 sm:$0xff]  }
 0x7e7   : > { %v6884_v63 = vadd.f32 %v6883_v62, %v15318_v60  ;;  %v7161_v3 = vmax.f32 %v6880_v58, 0.0  ;;  %8713 = vmatprep.subr.bf16.mxu0 %v13222_v43 }
 0x7e8   : > { %v7162_v2 = vmax.f32 %v6882_v46, 0.0  ;;  %8714 = vmatpush1.bf16.msra.mxu0 %v13220_v52 }
 0x7e9   : > { %v7163_v4 = vmax.f32 %v6884_v63, 0.0  ;;  %8715 = vmatprep.subr.bf16.mxu0 %v13226_v7 }
 0x7ea   : > { %v7276_v33 = vpack.c.bf16 %v7162_v2, %v7160_v27 }
 0x7eb   : > { %v6887_v6 = vpop.f32.mrb[188].mxu1  ;;  %v7277_v34 = vpack.c.bf16 %v7163_v4, %v7161_v3 }
 0x7ec   : > { %v6888_v9 = vadd.f32 %v6887_v6, %v15314_v12  ;;  %v6889_v11 = vpop.f32.mrb[189].mxu1 }
 0x7ed   : > { %v6890_v13 = vadd.f32 %v6889_v11, %v15318_v60  ;;  %v6891_v24 = vpop.f32.mrb[190].mxu1  ;;  %7624 = vmatprep.mubr.bf16.mxu0 %v7277_v34 }
 0x7ee   : > { %v6892_v61 = vadd.f32 %v6891_v24, %v15314_v12  ;;  %v6893_v16 = vpop.f32.mrb[191].mxu1  ;;  %7625 = vmatmul.mubr.bf16.gmra.mrb[248].mxu0 %v7276_v33  ;;  %v7164_v53 = vmax.f32 %v6888_v9, 0.0 }
 0x7ef   : > { %v6894_v5 = vadd.f32 %v6893_v16, %v15318_v60  ;;  %v7165_v14 = vmax.f32 %v6890_v13, 0.0 }
 0x7f0   : > { %v7166_v10 = vmax.f32 %v6892_v61, 0.0 }
 0x7f1   : > { %v7167_v56 = vmax.f32 %v6894_v5, 0.0 }
 0x7f2   : > { %v7278_v48 = vpack.c.bf16 %v7166_v10, %v7164_v53 }
 0x7f3   : > { %v6897_v20 = vpop.f32.mrb[192].mxu1  ;;  %v7279_v8 = vpack.c.bf16 %v7167_v56, %v7165_v14  ;;  %v13223_v14 = vld [vmem:[%s17096_s7 + $0x78] sm:$0xff]  }
 0x7f4   : > { %v6898_v40 = vadd.f32 %v6897_v20, %v15314_v12  ;;  %v6899_v21 = vpop.f32.mrb[193].mxu1  ;;  %8243 = vmatpush1.bf16.msra.mxu1 %v13223_v14 }
 0x7f5   : > { %v6900_v47 = vadd.f32 %v6899_v21, %v15318_v60  ;;  %v6901_v0 = vpop.f32.mrb[194].mxu1  ;;  %7634 = vmatprep.mubr.bf16.mxu0 %v7279_v8  ;;  %v13224_v8 = vld [vmem:[#allocation19 + $0x50] ss:$8 sps:$4 sm:$0xff]  }
 0x7f6   : > { %v6902_v25 = vadd.f32 %v6901_v0, %v15314_v12  ;;  %v6903_v26 = vpop.f32.mrb[195].mxu1  ;;  %7635 = vmatmul.mubr.bf16.gmra.mrb[252].mxu0 %v7278_v48  ;;  %v7168_v19 = vmax.f32 %v6898_v40, 0.0 }
 0x7f7   : > { %v6904_v45 = vadd.f32 %v6903_v26, %v15318_v60  ;;  %v7169_v23 = vmax.f32 %v6900_v47, 0.0  ;;  %8716 = vmatpush1.bf16.msra.mxu0 %v13224_v8  ;;  %v13229_v26 = vld [vmem:[#allocation19 + $0x64] ss:$8 sps:$4 sm:$0xff]  }
 0x7f8   : > { %v7170_v28 = vmax.f32 %v6902_v25, 0.0  ;;  %8717 = vmatprep.subr.bf16.mxu0 %v13229_v26 }
 0x7f9   : > { %v7171_v29 = vmax.f32 %v6904_v45, 0.0 }
 0x7fa   : > { %v7280_v30 = vpack.c.bf16 %v7170_v28, %v7168_v19  ;;  %v13227_v28 = vld [vmem:[#allocation19 + $0x60] ss:$8 sps:$4 sm:$0xff]  }
 0x7fb   : > { %v6907_v31 = vpop.f32.mrb[196].mxu1  ;;  %v7281_v17 = vpack.c.bf16 %v7171_v29, %v7169_v23  ;;  %8718 = vmatpush1.bf16.msra.mxu0 %v13227_v28 }
 0x7fc   : > { %v6908_v32 = vadd.f32 %v6907_v31, %v15314_v12  ;;  %v6909_v37 = vpop.f32.mrb[197].mxu1 }
 0x7fd   : > { %v6910_v15 = vadd.f32 %v6909_v37, %v15318_v60  ;;  %v6911_v35 = vpop.f32.mrb[198].mxu1  ;;  %7644 = vmatprep.mubr.bf16.mxu0 %v7281_v17 }
 0x7fe   : > { %v6912_v36 = vadd.f32 %v6911_v35, %v15314_v12  ;;  %v6913_v39 = vpop.f32.mrb[199].mxu1  ;;  %7645 = vmatmul.mubr.bf16.gmra.mrb[0].mxu0 %v7280_v30  ;;  %v7172_v44 = vmax.f32 %v6908_v32, 0.0  ;;  %v13232_v32 = vld [vmem:[#allocation19 + $0x74] ss:$8 sps:$4 sm:$0xff]   ;;  %v13230_v35 = vld [vmem:[#allocation19 + $0x70] ss:$8 sps:$4 sm:$0xff]  }
 0x7ff   : > { %v6914_v54 = vadd.f32 %v6913_v39, %v15318_v60  ;;  %v7173_v49 = vmax.f32 %v6910_v15, 0.0  ;;  %8719 = vmatprep.subr.bf16.mxu0 %v13232_v32 }
 0x800   : > { %v7174_v42 = vmax.f32 %v6912_v36, 0.0  ;;  %8720 = vmatpush1.bf16.msra.mxu0 %v13230_v35 }
 0x801   : > { %v7175_v51 = vmax.f32 %v6914_v54, 0.0 }
 0x802   : > { %v7282_v22 = vpack.c.bf16 %v7174_v42, %v7172_v44  ;;  %v13236_v42 = vld [vmem:[#allocation19 + $0x84] ss:$8 sps:$4 sm:$0xff]  }
 0x803   : > { %v6917_v50 = vpop.f32.mrb[200].mxu1  ;;  %v7283_v58 = vpack.c.bf16 %v7175_v51, %v7173_v49  ;;  %8721 = vmatprep.subr.bf16.mxu0 %v13236_v42 }
 0x804   : > { %v6918_v59 = vadd.f32 %v6917_v50, %v15314_v12  ;;  %v6919_v46 = vpop.f32.mrb[201].mxu1 }
 0x805   : > { %v6920_v62 = vadd.f32 %v6919_v46, %v15318_v60  ;;  %v6921_v63 = vpop.f32.mrb[202].mxu1  ;;  %7654 = vmatprep.mubr.bf16.mxu0 %v7283_v58  ;;  %v15405_v46 = vld [vmem:[%s17098_s0] sm:$0xff]  }
 0x806   : > { %v6922_v27 = vadd.f32 %v6921_v63, %v15314_v12  ;;  %v6923_v2 = vpop.f32.mrb[203].mxu1  ;;  %7655 = vmatmul.mubr.bf16.gmra.mrb[4].mxu0 %v7282_v22  ;;  %v7176_v4 = vmax.f32 %v6918_v59, 0.0  ;;  %v13234_v22 = vld [vmem:[#allocation19 + $0x80] ss:$8 sps:$4 sm:$0xff]   ;;  %12211 = vmatprep.subr.bf16.mxu1 %v15405_v46 }
 0x807   : > { %v6924_v3 = vadd.f32 %v6923_v2, %v15318_v60  ;;  %v7177_v6 = vmax.f32 %v6920_v62, 0.0  ;;  %8722 = vmatpush1.bf16.msra.mxu0 %v13234_v22  ;;  %v13239_v62 = vld [vmem:[#allocation19 + $0x94] ss:$8 sps:$4 sm:$0xff]   ;;  %v13237_v2 = vld [vmem:[#allocation19 + $0x90] ss:$8 sps:$4 sm:$0xff]  }
 0x808   : > { %v7178_v33 = vmax.f32 %v6922_v27, 0.0  ;;  %8723 = vmatprep.subr.bf16.mxu0 %v13239_v62 }
 0x809   : > { %v7179_v34 = vmax.f32 %v6924_v3, 0.0 }
 0x80a   : > { %v7284_v9 = vpack.c.bf16 %v7178_v33, %v7176_v4 }
 0x80b   : > { %v6927_v11 = vpop.f32.mrb[204].mxu1  ;;  %v7285_v13 = vpack.c.bf16 %v7179_v34, %v7177_v6  ;;  %8724 = vmatpush1.bf16.msra.mxu0 %v13237_v2 }
 0x80c   : > { %v6928_v24 = vadd.f32 %v6927_v11, %v15314_v12  ;;  %v6929_v61 = vpop.f32.mrb[205].mxu1 }
 0x80d   : > { %v6930_v16 = vadd.f32 %v6929_v61, %v15318_v60  ;;  %v6931_v5 = vpop.f32.mrb[206].mxu1  ;;  %7664 = vmatprep.mubr.bf16.mxu0 %v7285_v13 }
 0x80e   : > { %v6932_v41 = vadd.f32 %v6931_v5, %v15314_v12  ;;  %v6933_v53 = vpop.f32.mrb[207].mxu1  ;;  %7665 = vmatmul.mubr.bf16.gmra.mrb[8].mxu0 %v7284_v9  ;;  %v7180_v56 = vmax.f32 %v6928_v24, 0.0  ;;  %v13242_v9 = vld [vmem:[#allocation19 + $0xa4] ss:$8 sps:$4 sm:$0xff]   ;;  %v13240_v24 = vld [vmem:[#allocation19 + $0xa0] ss:$8 sps:$4 sm:$0xff]  }
 0x80f   : > { %v6934_v10 = vadd.f32 %v6933_v53, %v15318_v60  ;;  %v7181_v18 = vmax.f32 %v6930_v16, 0.0  ;;  %8725 = vmatprep.subr.bf16.mxu0 %v13242_v9 }
 0x810   : > { %v7182_v48 = vmax.f32 %v6932_v41, 0.0  ;;  %8726 = vmatpush1.bf16.msra.mxu0 %v13240_v24 }
 0x811   : > { %v7183_v20 = vmax.f32 %v6934_v10, 0.0  ;;  %v13245_v10 = vld [vmem:[#allocation19 + $0xb4] ss:$8 sps:$4 sm:$0xff]  }
 0x812   : > { %v7286_v40 = vpack.c.bf16 %v7182_v48, %v7180_v56  ;;  %v13243_v48 = vld [vmem:[#allocation19 + $0xb0] ss:$8 sps:$4 sm:$0xff]   ;;  %8727 = vmatprep.subr.bf16.mxu0 %v13245_v10 }
 0x813   : > { %v6937_v21 = vpop.f32.mrb[208].mxu1  ;;  %v7287_v47 = vpack.c.bf16 %v7183_v20, %v7181_v18 }
 0x814   : > { %v6938_v0 = vadd.f32 %v6937_v21, %v15314_v12  ;;  %v6939_v25 = vpop.f32.mrb[209].mxu1  ;;  %8728 = vmatpush1.bf16.msra.mxu0 %v13243_v48  ;;  %v13248_v21 = vld [vmem:[#allocation19 + $0xc4] ss:$8 sps:$4 sm:$0xff]  }
 0x815   : > { %v6940_v45 = vadd.f32 %v6939_v25, %v15318_v60  ;;  %v6941_v19 = vpop.f32.mrb[210].mxu1  ;;  %7674 = vmatprep.mubr.bf16.mxu0 %v7287_v47  ;;  %v13246_v25 = vld [vmem:[#allocation19 + $0xc0] ss:$8 sps:$4 sm:$0xff]   ;;  %8729 = vmatprep.subr.bf16.mxu0 %v13248_v21 }
 0x816   : > { %v6942_v23 = vadd.f32 %v6941_v19, %v15314_v12  ;;  %v6943_v29 = vpop.f32.mrb[211].mxu1  ;;  %7675 = vmatmul.mubr.bf16.gmra.mrb[12].mxu0 %v7286_v40  ;;  %v7184_v31 = vmax.f32 %v6938_v0, 0.0 }
 0x817   : > { %v6944_v30 = vadd.f32 %v6943_v29, %v15318_v60  ;;  %v7185_v37 = vmax.f32 %v6940_v45, 0.0  ;;  %v13251_v29 = vld [vmem:[#allocation19 + $0xd4] ss:$8 sps:$4 sm:$0xff]  }
 0x818   : > { %v7186_v17 = vmax.f32 %v6942_v23, 0.0  ;;  %8730 = vmatpush1.bf16.msra.mxu0 %v13246_v25 }
 0x819   : > { %v7187_v15 = vmax.f32 %v6944_v30, 0.0  ;;  %8731 = vmatprep.subr.bf16.mxu0 %v13251_v29 }
 0x81a   : > { %v7288_v36 = vpack.c.bf16 %v7186_v17, %v7184_v31  ;;  %v13249_v17 = vld [vmem:[#allocation19 + $0xd0] ss:$8 sps:$4 sm:$0xff]  }
 0x81b   : > { %v6947_v39 = vpop.f32.mrb[212].mxu1  ;;  %v7289_v54 = vpack.c.bf16 %v7187_v15, %v7185_v37 }
 0x81c   : > { %v6948_v38 = vadd.f32 %v6947_v39, %v15314_v12  ;;  %v6949_v44 = vpop.f32.mrb[213].mxu1  ;;  %8732 = vmatpush1.bf16.msra.mxu0 %v13249_v17  ;;  %v13254_v39 = vld [vmem:[#allocation19 + $0xe4] ss:$8 sps:$4 sm:$0xff]  }
 0x81d   : > { %v6950_v49 = vadd.f32 %v6949_v44, %v15318_v60  ;;  %v6951_v51 = vpop.f32.mrb[214].mxu1  ;;  %7684 = vmatprep.mubr.bf16.mxu0 %v7289_v54  ;;  %v13252_v44 = vld [vmem:[#allocation19 + $0xe0] ss:$8 sps:$4 sm:$0xff]   ;;  %8733 = vmatprep.subr.bf16.mxu0 %v13254_v39 }
 0x81e   : > { %v6952_v52 = vadd.f32 %v6951_v51, %v15314_v12  ;;  %v6953_v43 = vpop.f32.mrb[215].mxu1  ;;  %7685 = vmatmul.mubr.bf16.gmra.mrb[16].mxu0 %v7288_v36  ;;  %v7188_v58 = vmax.f32 %v6948_v38, 0.0 }
 0x81f   : > { %v6954_v50 = vadd.f32 %v6953_v43, %v15318_v60  ;;  %v7189_v63 = vmax.f32 %v6950_v49, 0.0  ;;  %v13257_v43 = vld [vmem:[#allocation19 + $0xf4] ss:$8 sps:$4 sm:$0xff]  }
 0x820   : > { %v7190_v59 = vmax.f32 %v6952_v52, 0.0  ;;  %8734 = vmatpush1.bf16.msra.mxu0 %v13252_v44 }
 0x821   : > { %v7191_v27 = vmax.f32 %v6954_v50, 0.0  ;;  %8735 = vmatprep.subr.bf16.mxu0 %v13257_v43 }
 0x822   : > { %v7290_v3 = vpack.c.bf16 %v7190_v59, %v7188_v58  ;;  %v13255_v59 = vld [vmem:[#allocation19 + $0xf0] ss:$8 sps:$4 sm:$0xff]  }
 0x823   : > { %v6957_v4 = vpop.f32.mrb[216].mxu1  ;;  %v7291_v33 = vpack.c.bf16 %v7191_v27, %v7189_v63 }
 0x824   : > { %v6958_v6 = vadd.f32 %v6957_v4, %v15314_v12  ;;  %v6959_v34 = vpop.f32.mrb[217].mxu1  ;;  %8736 = vmatpush1.bf16.msra.mxu0 %v13255_v59 }
 0x825   : > { %v6960_v11 = vadd.f32 %v6959_v34, %v15318_v60  ;;  %v6961_v13 = vpop.f32.mrb[218].mxu1  ;;  %7694 = vmatprep.mubr.bf16.mxu0 %v7291_v33 }
 0x826   : > { %v6962_v61 = vadd.f32 %v6961_v13, %v15314_v12  ;;  %v6963_v16 = vpop.f32.mrb[219].mxu1  ;;  %7695 = vmatmul.mubr.bf16.gmra.mrb[20].mxu0 %v7290_v3  ;;  %v7192_v41 = vmax.f32 %v6958_v6, 0.0 }
 0x827   : > { %v6964_v5 = vadd.f32 %v6963_v16, %v15318_v60  ;;  %v7193_v14 = vmax.f32 %v6960_v11, 0.0 }
 0x828   : > { %v7194_v53 = vmax.f32 %v6962_v61, 0.0 }
 0x829   : > { %v7195_v56 = vmax.f32 %v6964_v5, 0.0 }
 0x82a   : > { %v7292_v7 = vpack.c.bf16 %v7194_v53, %v7192_v41 }
 0x82b   : > { %v6967_v18 = vpop.f32.mrb[220].mxu1  ;;  %v7293_v20 = vpack.c.bf16 %v7195_v56, %v7193_v14 }
 0x82c   : > { %v6968_v8 = vadd.f32 %v6967_v18, %v15314_v12  ;;  %v6969_v40 = vpop.f32.mrb[221].mxu1 }
 0x82d   : > { %v6970_v47 = vadd.f32 %v6969_v40, %v15318_v60  ;;  %v6971_v0 = vpop.f32.mrb[222].mxu1  ;;  %7704 = vmatprep.mubr.bf16.mxu0 %v7293_v20 }
 0x82e   : > { %v6972_v26 = vadd.f32 %v6971_v0, %v15314_v12  ;;  %v6973_v45 = vpop.f32.mrb[223].mxu1  ;;  %7705 = vmatmul.mubr.bf16.gmra.mrb[24].mxu0 %v7292_v7  ;;  %v7196_v28 = vmax.f32 %v6968_v8, 0.0 }
 0x82f   : > { %v6974_v19 = vadd.f32 %v6973_v45, %v15318_v60  ;;  %v7197_v30 = vmax.f32 %v6970_v47, 0.0 }
 0x830   : > { %v7198_v23 = vmax.f32 %v6972_v26, 0.0 }
 0x831   : > { %v7199_v31 = vmax.f32 %v6974_v19, 0.0 }
 0x832   : > { %v7294_v32 = vpack.c.bf16 %v7198_v23, %v7196_v28 }
 0x833   : > { %v6977_v37 = vpop.f32.mrb[224].mxu1  ;;  %v7295_v15 = vpack.c.bf16 %v7199_v31, %v7197_v30 }
 0x834   : > { %v6978_v35 = vadd.f32 %v6977_v37, %v15314_v12  ;;  %v6979_v36 = vpop.f32.mrb[225].mxu1 }
 0x835   : > { %v6980_v54 = vadd.f32 %v6979_v36, %v15318_v60  ;;  %v6981_v38 = vpop.f32.mrb[226].mxu1  ;;  %7714 = vmatprep.mubr.bf16.mxu0 %v7295_v15 }
 0x836   : > { %v6982_v42 = vadd.f32 %v6981_v38, %v15314_v12  ;;  %v6983_v49 = vpop.f32.mrb[227].mxu1  ;;  %7715 = vmatmul.mubr.bf16.gmra.mrb[28].mxu0 %v7294_v32  ;;  %v7200_v22 = vmax.f32 %v6978_v35, 0.0 }
 0x837   : > { %v6984_v51 = vadd.f32 %v6983_v49, %v15318_v60  ;;  %v7201_v50 = vmax.f32 %v6980_v54, 0.0 }
 0x838   : > { %v7202_v52 = vmax.f32 %v6982_v42, 0.0 }
 0x839   : > { %v7203_v58 = vmax.f32 %v6984_v51, 0.0 }
 0x83a   : > { %v7296_v62 = vpack.c.bf16 %v7202_v52, %v7200_v22 }
 0x83b   : > { %v6987_v63 = vpop.f32.mrb[228].mxu1  ;;  %v7297_v27 = vpack.c.bf16 %v7203_v58, %v7201_v50 }
 0x83c   : > { %v6988_v2 = vadd.f32 %v6987_v63, %v15314_v12  ;;  %v6989_v3 = vpop.f32.mrb[229].mxu1 }
 0x83d   : > { %v6990_v4 = vadd.f32 %v6989_v3, %v15318_v60  ;;  %v6991_v33 = vpop.f32.mrb[230].mxu1  ;;  %7724 = vmatprep.mubr.bf16.mxu0 %v7297_v27 }
 0x83e   : > { %v6992_v6 = vadd.f32 %v6991_v33, %v15314_v12  ;;  %v6993_v34 = vpop.f32.mrb[231].mxu1  ;;  %7725 = vmatmul.mubr.bf16.gmra.mrb[32].mxu0 %v7296_v62  ;;  %v7204_v11 = vmax.f32 %v6988_v2, 0.0 }
 0x83f   : > { %v6994_v9 = vadd.f32 %v6993_v34, %v15318_v60  ;;  %v7205_v24 = vmax.f32 %v6990_v4, 0.0 }
 0x840   : > { %v7206_v13 = vmax.f32 %v6992_v6, 0.0 }
 0x841   : > { %v7207_v61 = vmax.f32 %v6994_v9, 0.0 }
 0x842   : > { %v7298_v16 = vpack.c.bf16 %v7206_v13, %v7204_v11 }
 0x843   : > { %v6997_v5 = vpop.f32.mrb[232].mxu1  ;;  %v7299_v41 = vpack.c.bf16 %v7207_v61, %v7205_v24 }
 0x844   : > { %v6998_v53 = vadd.f32 %v6997_v5, %v15314_v12  ;;  %v6999_v10 = vpop.f32.mrb[233].mxu1 }
 0x845   : > { %v7000_v14 = vadd.f32 %v6999_v10, %v15318_v60  ;;  %v7001_v56 = vpop.f32.mrb[234].mxu1  ;;  %7734 = vmatprep.mubr.bf16.mxu0 %v7299_v41 }
 0x846   : > { %v7002_v48 = vadd.f32 %v7001_v56, %v15314_v12  ;;  %v7003_v7 = vpop.f32.mrb[235].mxu1  ;;  %7735 = vmatmul.mubr.bf16.gmra.mrb[36].mxu0 %v7298_v16  ;;  %v7208_v20 = vmax.f32 %v6998_v53, 0.0 }
 0x847   : > { %v7004_v18 = vadd.f32 %v7003_v7, %v15318_v60  ;;  %v7209_v40 = vmax.f32 %v7000_v14, 0.0 }
 0x848   : > { %v7210_v8 = vmax.f32 %v7002_v48, 0.0 }
 0x849   : > { %v7211_v21 = vmax.f32 %v7004_v18, 0.0 }
 0x84a   : > { %v7300_v47 = vpack.c.bf16 %v7210_v8, %v7208_v20 }
 0x84b   : > { %v7007_v0 = vpop.f32.mrb[236].mxu1  ;;  %v7301_v25 = vpack.c.bf16 %v7211_v21, %v7209_v40 }
 0x84c   : > { %v7008_v26 = vadd.f32 %v7007_v0, %v15314_v12  ;;  %v7009_v45 = vpop.f32.mrb[237].mxu1 }
 0x84d   : > { %v7010_v19 = vadd.f32 %v7009_v45, %v15318_v60  ;;  %v7011_v28 = vpop.f32.mrb[238].mxu1  ;;  %7744 = vmatprep.mubr.bf16.mxu0 %v7301_v25 }
 0x84e   : > { %v7012_v23 = vadd.f32 %v7011_v28, %v15314_v12  ;;  %v7013_v29 = vpop.f32.mrb[239].mxu1  ;;  %7745 = vmatmul.mubr.bf16.gmra.mrb[40].mxu0 %v7300_v47  ;;  %v7212_v31 = vmax.f32 %v7008_v26, 0.0 }
 0x84f   : > { %v7014_v30 = vadd.f32 %v7013_v29, %v15318_v60  ;;  %v7213_v32 = vmax.f32 %v7010_v19, 0.0 }
 0x850   : > { %v7214_v17 = vmax.f32 %v7012_v23, 0.0 }
 0x851   : > { %v7215_v37 = vmax.f32 %v7014_v30, 0.0 }
 0x852   : > { %v7302_v15 = vpack.c.bf16 %v7214_v17, %v7212_v31 }
 0x853   : > { %v7017_v35 = vpop.f32.mrb[240].mxu1  ;;  %v7303_v36 = vpack.c.bf16 %v7215_v37, %v7213_v32 }
 0x854   : > { %v7018_v39 = vadd.f32 %v7017_v35, %v15314_v12  ;;  %v7019_v54 = vpop.f32.mrb[241].mxu1 }
 0x855   : > { %v7020_v38 = vadd.f32 %v7019_v54, %v15318_v60  ;;  %v7021_v44 = vpop.f32.mrb[242].mxu1  ;;  %7754 = vmatprep.mubr.bf16.mxu0 %v7303_v36 }
 0x856   : > { %v7022_v42 = vadd.f32 %v7021_v44, %v15314_v12  ;;  %v7023_v49 = vpop.f32.mrb[243].mxu1  ;;  %7755 = vmatmul.mubr.bf16.gmra.mrb[44].mxu0 %v7302_v15  ;;  %v7216_v22 = vmax.f32 %v7018_v39, 0.0 }
 0x857   : > { %v7024_v51 = vadd.f32 %v7023_v49, %v15318_v60  ;;  %v7217_v43 = vmax.f32 %v7020_v38, 0.0 }
 0x858   : > { %v7218_v52 = vmax.f32 %v7022_v42, 0.0 }
 0x859   : > { %v7219_v50 = vmax.f32 %v7024_v51, 0.0 }
 0x85a   : > { %v7304_v58 = vpack.c.bf16 %v7218_v52, %v7216_v22 }
 0x85b   : > { %v7027_v59 = vpop.f32.mrb[244].mxu1  ;;  %v7305_v62 = vpack.c.bf16 %v7219_v50, %v7217_v43 }
 0x85c   : > { %v7028_v63 = vadd.f32 %v7027_v59, %v15314_v12  ;;  %v7029_v27 = vpop.f32.mrb[245].mxu1 }
 0x85d   : > { %v7030_v2 = vadd.f32 %v7029_v27, %v15318_v60  ;;  %v7031_v3 = vpop.f32.mrb[246].mxu1  ;;  %7764 = vmatprep.mubr.bf16.mxu0 %v7305_v62 }
 0x85e   : > { %v7032_v4 = vadd.f32 %v7031_v3, %v15314_v12  ;;  %v7033_v33 = vpop.f32.mrb[247].mxu1  ;;  %7765 = vmatmul.mubr.bf16.gmra.mrb[48].mxu0 %v7304_v58  ;;  %v7220_v34 = vmax.f32 %v7028_v63, 0.0 }
 0x85f   : > { %v7034_v6 = vadd.f32 %v7033_v33, %v15318_v60  ;;  %v7221_v11 = vmax.f32 %v7030_v2, 0.0 }
 0x860   : > { %v7222_v9 = vmax.f32 %v7032_v4, 0.0 }
 0x861   : > { %v7223_v13 = vmax.f32 %v7034_v6, 0.0 }
 0x862   : > { %v7306_v24 = vpack.c.bf16 %v7222_v9, %v7220_v34 }
 0x863   : > { %v7037_v61 = vpop.f32.mrb[248].mxu1  ;;  %v7307_v16 = vpack.c.bf16 %v7223_v13, %v7221_v11 }
 0x864   : > { %v7038_v5 = vadd.f32 %v7037_v61, %v15314_v12  ;;  %v7039_v41 = vpop.f32.mrb[249].mxu1 }
 0x865   : > { %v7040_v53 = vadd.f32 %v7039_v41, %v15318_v60  ;;  %v7041_v10 = vpop.f32.mrb[250].mxu1  ;;  %7774 = vmatprep.mubr.bf16.mxu0 %v7307_v16 }
 0x866   : > { %v7042_v14 = vadd.f32 %v7041_v10, %v15314_v12  ;;  %v7043_v56 = vpop.f32.mrb[251].mxu1  ;;  %7775 = vmatmul.mubr.bf16.gmra.mrb[52].mxu0 %v7306_v24  ;;  %v7224_v7 = vmax.f32 %v7038_v5, 0.0 }
 0x867   : > { %v7044_v48 = vadd.f32 %v7043_v56, %v15318_v60  ;;  %v7225_v20 = vmax.f32 %v7040_v53, 0.0 }
 0x868   : > { %v7226_v18 = vmax.f32 %v7042_v14, 0.0 }
 0x869   : > { %v7227_v8 = vmax.f32 %v7044_v48, 0.0 }
 0x86a   : > { %v7308_v40 = vpack.c.bf16 %v7226_v18, %v7224_v7 }
 0x86b   : > { %v7047_v21 = vpop.f32.mrb[252].mxu1  ;;  %v7309_v47 = vpack.c.bf16 %v7227_v8, %v7225_v20 }
 0x86c   : > { %v7048_v0 = vadd.f32 %v7047_v21, %v15314_v12  ;;  %v7049_v25 = vpop.f32.mrb[253].mxu1  ;;  %v7360_v21 = vld [vmem:[%s17099_s13] sm:$0x3] }
 0x86d   : > { %v7050_v26 = vadd.f32 %v7049_v25, %v15318_v60  ;;  %v7051_v45 = vpop.f32.mrb[254].mxu1  ;;  %7784 = vmatprep.mubr.bf16.mxu0 %v7309_v47 }
 0x86e   : > { %v7052_v19 = vadd.f32 %v7051_v45, %v15314_v12  ;;  %v7053_v28 = vpop.f32.mrb[255].mxu1  ;;  %7785 = vmatmul.mubr.bf16.gmra.mrb[56].mxu0 %v7308_v40  ;;  %v7228_v29 = vmax.f32 %v7048_v0, 0.0 }
 0x86f   : > { %v7054_v23 = vadd.f32 %v7053_v28, %v15318_v60  ;;  %v7229_v31 = vmax.f32 %v7050_v26, 0.0  ;;  %v15465_v28 = vrot.slane %v7360_v21, %v14419_v55 }
 0x870   : > { %v7230_v30 = vmax.f32 %v7052_v19, 0.0 }
 0x871   : > { %v7231_v17 = vmax.f32 %v7054_v23, 0.0 }
 0x872   : > { %v7310_v32 = vpack.c.bf16 %v7230_v30, %v7228_v29  ;;  %v15469_v29 = vrot.slane %v7360_v21, %v14422_v57 }
 0x873   : > { %v7057_v37 = vpop.f32.mrb[0].mxu1  ;;  %v7311_v15 = vpack.c.bf16 %v7231_v17, %v7229_v31 }
 0x874   : > { %v7058_v35 = vadd.f32 %v7057_v37, %v15314_v12  ;;  %v7059_v36 = vpop.f32.mrb[1].mxu1 }
 0x875   : > { %v7060_v39 = vadd.f32 %v7059_v36, %v15318_v60  ;;  %v7061_v54 = vpop.f32.mrb[2].mxu1  ;;  %7794 = vmatprep.mubr.bf16.mxu0 %v7311_v15 }
 0x876   : > { %v7062_v38 = vadd.f32 %v7061_v54, %v15314_v12  ;;  %v7063_v44 = vpop.f32.mrb[3].mxu1  ;;  %7795 = vmatmul.mubr.bf16.gmra.mrb[60].mxu0 %v7310_v32  ;;  %v7232_v49 = vmax.f32 %v7058_v35, 0.0 }
 0x877   : > { %v7064_v42 = vadd.f32 %v7063_v44, %v15318_v60  ;;  %v7233_v22 = vmax.f32 %v7060_v39, 0.0 }
 0x878   : > { %v7234_v51 = vmax.f32 %v7062_v38, 0.0 }
 0x879   : > { %v7235_v52 = vmax.f32 %v7064_v42, 0.0 }
 0x87a   : > { %v7312_v43 = vpack.c.bf16 %v7234_v51, %v7232_v49 }
 0x87b   : > { %v7067_v50 = vpop.f32.mrb[4].mxu1  ;;  %v7313_v58 = vpack.c.bf16 %v7235_v52, %v7233_v22 }
 0x87c   : > { %v7068_v59 = vadd.f32 %v7067_v50, %v15314_v12  ;;  %v7069_v62 = vpop.f32.mrb[5].mxu1 }
 0x87d   : > { %v7070_v63 = vadd.f32 %v7069_v62, %v15318_v60  ;;  %v7071_v27 = vpop.f32.mrb[6].mxu1  ;;  %7804 = vmatprep.mubr.bf16.mxu0 %v7313_v58 }
 0x87e   : > { %v7072_v2 = vadd.f32 %v7071_v27, %v15314_v12  ;;  %v7073_v3 = vpop.f32.mrb[7].mxu1  ;;  %7805 = vmatmul.mubr.bf16.gmra.mrb[64].mxu0 %v7312_v43  ;;  %v7236_v33 = vmax.f32 %v7068_v59, 0.0 }
 0x87f   : > { %v7074_v4 = vadd.f32 %v7073_v3, %v15318_v60  ;;  %v7237_v34 = vmax.f32 %v7070_v63, 0.0 }
 0x880   : > { %v7238_v6 = vmax.f32 %v7072_v2, 0.0 }
 0x881   : > { %v7239_v9 = vmax.f32 %v7074_v4, 0.0 }
 0x882   : > { %v7314_v11 = vpack.c.bf16 %v7238_v6, %v7236_v33 }
 0x883   : > { %v7077_v13 = vpop.f32.mrb[8].mxu1  ;;  %v7315_v24 = vpack.c.bf16 %v7239_v9, %v7237_v34 }
 0x884   : > { %v7078_v61 = vadd.f32 %v7077_v13, %v15314_v12  ;;  %v7079_v16 = vpop.f32.mrb[9].mxu1 }
 0x885   : > { %v7080_v5 = vadd.f32 %v7079_v16, %v15318_v60  ;;  %v7081_v41 = vpop.f32.mrb[10].mxu1  ;;  %7814 = vmatprep.mubr.bf16.mxu0 %v7315_v24 }
 0x886   : > { %v7082_v53 = vadd.f32 %v7081_v41, %v15314_v12  ;;  %v7083_v10 = vpop.f32.mrb[11].mxu1  ;;  %7815 = vmatmul.mubr.bf16.gmra.mrb[68].mxu0 %v7314_v11  ;;  %v7240_v56 = vmax.f32 %v7078_v61, 0.0 }
 0x887   : > { %v7084_v14 = vadd.f32 %v7083_v10, %v15318_v60  ;;  %v7241_v7 = vmax.f32 %v7080_v5, 0.0  ;;  %v13258_v5 = vld [vmem:[%s17098_s0 + $0x8] sm:$0xff]  }
 0x888   : > { %v7242_v48 = vmax.f32 %v7082_v53, 0.0 }
 0x889   : > { %v7243_v18 = vmax.f32 %v7084_v14, 0.0 }
 0x88a   : > { %v7316_v20 = vpack.c.bf16 %v7242_v48, %v7240_v56 }
 0x88b   : > { %v7087_v8 = vpop.f32.mrb[12].mxu1  ;;  %v7317_v40 = vpack.c.bf16 %v7243_v18, %v7241_v7 }
 0x88c   : > { %v7088_v47 = vadd.f32 %v7087_v8, %v15314_v12  ;;  %v7089_v0 = vpop.f32.mrb[13].mxu1 }
 0x88d   : > { %v7090_v25 = vadd.f32 %v7089_v0, %v15318_v60  ;;  %v7091_v26 = vpop.f32.mrb[14].mxu1  ;;  %7824 = vmatprep.mubr.bf16.mxu0 %v7317_v40 }
 0x88e   : > { %v7092_v45 = vadd.f32 %v7091_v26, %v15314_v12  ;;  %v7093_v19 = vpop.f32.mrb[15].mxu1  ;;  %7825 = vmatmul.mubr.bf16.gmra.mrb[72].mxu0 %v7316_v20  ;;  %v7244_v30 = vmax.f32 %v7088_v47, 0.0  ;;  %v13259_v26 = vld [vmem:[%s17098_s0 + $0x10] sm:$0xff]  }
 0x88f   : > { %v7094_v23 = vadd.f32 %v7093_v19, %v15318_v60  ;;  %v7245_v17 = vmax.f32 %v7090_v25, 0.0 }
 0x890   : > { %v7246_v31 = vmax.f32 %v7092_v45, 0.0 }
 0x891   : > { %v7247_v32 = vmax.f32 %v7094_v23, 0.0  ;;  %v7566_v37 = vpop.f32.mrb[224].mxu0 }
 0x892   : > { %v7318_v15 = vpack.c.bf16 %v7246_v31, %v7244_v30  ;;  %v7567_v35 = vadd.f32 %v7566_v37, %v15465_v28  ;;  %v7568_v36 = vpop.f32.mrb[225].mxu0 }
 0x893   : > { %v7569_v39 = vadd.f32 %v7568_v36, %v15469_v29  ;;  %v7097_v54 = vpop.f32.mrb[16].mxu1  ;;  %v7570_v38 = vpop.f32.mrb[226].mxu0  ;;  %v7319_v44 = vpack.c.bf16 %v7247_v32, %v7245_v17 }
 0x894   : > { %v7098_v42 = vadd.f32 %v7097_v54, %v15314_v12  ;;  %v7571_v49 = vadd.f32 %v7570_v38, %v15465_v28  ;;  %v7099_v51 = vpop.f32.mrb[17].mxu1  ;;  %v7572_v22 = vpop.f32.mrb[227].mxu0  ;;  %v7885_v58 = vmax.f32 %v7567_v35, 0.0  ;;  %v13260_v54 = vld [vmem:[%s17098_s0 + $0x18] sm:$0xff]  }
 0x895   : > { %v7100_v52 = vadd.f32 %v7099_v51, %v15318_v60  ;;  %v7573_v43 = vadd.f32 %v7572_v22, %v15469_v29  ;;  %v7101_v50 = vpop.f32.mrb[18].mxu1  ;;  %7834 = vmatprep.mubr.bf16.mxu0 %v7319_v44  ;;  %v7886_v27 = vmax.f32 %v7569_v39, 0.0 }
 0x896   : > { %v7887_v59 = vmax.f32 %v7571_v49, 0.0  ;;  %v7102_v62 = vadd.f32 %v7101_v50, %v15314_v12  ;;  %v7103_v63 = vpop.f32.mrb[19].mxu1  ;;  %7835 = vmatmul.mubr.bf16.gmra.mrb[76].mxu0 %v7318_v15  ;;  %v7248_v4 = vmax.f32 %v7098_v42, 0.0 }
 0x897   : > { %v7888_v2 = vmax.f32 %v7573_v43, 0.0  ;;  %v7104_v3 = vadd.f32 %v7103_v63, %v15318_v60  ;;  %v7249_v34 = vmax.f32 %v7100_v52, 0.0 }
 0x898   : > { %v15479_v33 = vpack.c.bf16 %v7887_v59, %v7885_v58  ;;  %v7250_v6 = vmax.f32 %v7102_v62, 0.0 }
 0x899   : > { %v7251_v9 = vmax.f32 %v7104_v3, 0.0  ;;  %v7576_v11 = vpop.f32.mrb[228].mxu0  ;;  %v15481_v13 = vpack.c.bf16 %v7888_v2, %v7886_v27  ;;  %v13261_v3 = vld [vmem:[%s17098_s0 + $0x20] sm:$0xff]  }
 0x89a   : > { %v7320_v24 = vpack.c.bf16 %v7250_v6, %v7248_v4  ;;  %v7577_v61 = vadd.f32 %v7576_v11, %v15465_v28  ;;  %v7578_v16 = vpop.f32.mrb[229].mxu0 }
 0x89b   : > { %v7579_v41 = vadd.f32 %v7578_v16, %v15469_v29  ;;  %v7107_v53 = vpop.f32.mrb[20].mxu1  ;;  %v7580_v10 = vpop.f32.mrb[230].mxu0  ;;  %8244 = vmatprep.mubr.bf16.mxu1 %v15481_v13  ;;  %v7321_v14 = vpack.c.bf16 %v7251_v9, %v7249_v34 }
 0x89c   : > { %v7108_v56 = vadd.f32 %v7107_v53, %v15314_v12  ;;  %v7581_v48 = vadd.f32 %v7580_v10, %v15465_v28  ;;  %v7109_v7 = vpop.f32.mrb[21].mxu1  ;;  %v7582_v18 = vpop.f32.mrb[231].mxu0  ;;  %8245 = vmatmul.mubr.bf16.vlgmr.msra.gmra.mrb[32].mxu1 %v15479_v33  ;;  %v7889_v21 = vmax.f32 %v7577_v61, 0.0 }
 0x89d   : > { %v7110_v20 = vadd.f32 %v7109_v7, %v15318_v60  ;;  %v7583_v8 = vadd.f32 %v7582_v18, %v15469_v29  ;;  %12212 = vmatpush3.bf16.msra.mxu1 %v15405_v46  ;;  %v7111_v40 = vpop.f32.mrb[22].mxu1  ;;  %7844 = vmatprep.mubr.bf16.mxu0 %v7321_v14  ;;  %v7890_v45 = vmax.f32 %v7579_v41, 0.0 }
 0x89e   : > { %v7891_v47 = vmax.f32 %v7581_v48, 0.0  ;;  %v7112_v0 = vadd.f32 %v7111_v40, %v15314_v12  ;;  %v7113_v25 = vpop.f32.mrb[23].mxu1  ;;  %7845 = vmatmul.mubr.bf16.gmra.mrb[80].mxu0 %v7320_v24  ;;  %12213 = vmatprep.subr.bf16.mxu1 %v13258_v5  ;;  %v7252_v30 = vmax.f32 %v7108_v56, 0.0 }
 0x89f   : > { %v7892_v19 = vmax.f32 %v7583_v8, 0.0  ;;  %v7114_v23 = vadd.f32 %v7113_v25, %v15318_v60  ;;  %v7253_v46 = vmax.f32 %v7110_v20, 0.0 }
 0x8a0   : > { %v15496_v31 = vpack.c.bf16 %v7891_v47, %v7889_v21  ;;  %v7254_v17 = vmax.f32 %v7112_v0, 0.0 }
 0x8a1   : > { %v7255_v32 = vmax.f32 %v7114_v23, 0.0  ;;  %v7586_v37 = vpop.f32.mrb[232].mxu0  ;;  %v15498_v15 = vpack.c.bf16 %v7892_v19, %v7890_v45  ;;  %12214 = vmatpush3.bf16.msra.mxu1 %v13258_v5 }
 0x8a2   : > { %v7322_v35 = vpack.c.bf16 %v7254_v17, %v7252_v30  ;;  %v7587_v36 = vadd.f32 %v7586_v37, %v15465_v28  ;;  %v7588_v39 = vpop.f32.mrb[233].mxu0  ;;  %12215 = vmatprep.subr.bf16.mxu1 %v13259_v26 }
 0x8a3   : > { %v7589_v38 = vadd.f32 %v7588_v39, %v15469_v29  ;;  %v7117_v44 = vpop.f32.mrb[24].mxu1  ;;  %v7590_v42 = vpop.f32.mrb[234].mxu0  ;;  %8252 = vmatprep.mubr.bf16.mxu1 %v15498_v15  ;;  %v7323_v49 = vpack.c.bf16 %v7255_v32, %v7253_v46 }
 0x8a4   : > { %v7118_v51 = vadd.f32 %v7117_v44, %v15314_v12  ;;  %v7591_v22 = vadd.f32 %v7590_v42, %v15465_v28  ;;  %v7119_v52 = vpop.f32.mrb[25].mxu1  ;;  %v7592_v43 = vpop.f32.mrb[235].mxu0  ;;  %8253 = vmatmul.mubr.bf16.gmra.mrb[36].mxu1 %v15496_v31  ;;  %v7893_v62 = vmax.f32 %v7587_v36, 0.0 }
 0x8a5   : > { %v7120_v50 = vadd.f32 %v7119_v52, %v15318_v60  ;;  %v7593_v58 = vadd.f32 %v7592_v43, %v15469_v29  ;;  %v7121_v59 = vpop.f32.mrb[26].mxu1  ;;  %7854 = vmatprep.mubr.bf16.mxu0 %v7323_v49  ;;  %12216 = vmatpush3.bf16.msra.mxu1 %v13259_v26  ;;  %v7894_v4 = vmax.f32 %v7589_v38, 0.0 }
 0x8a6   : > { %v7895_v63 = vmax.f32 %v7591_v22, 0.0  ;;  %v7122_v27 = vadd.f32 %v7121_v59, %v15314_v12  ;;  %v7123_v2 = vpop.f32.mrb[27].mxu1  ;;  %7855 = vmatmul.mubr.bf16.gmra.mrb[84].mxu0 %v7322_v35  ;;  %12217 = vmatprep.subr.bf16.mxu1 %v13260_v54  ;;  %v7256_v9 = vmax.f32 %v7118_v51, 0.0 }
 0x8a7   : > { %v7896_v6 = vmax.f32 %v7593_v58, 0.0  ;;  %v7124_v34 = vadd.f32 %v7123_v2, %v15318_v60  ;;  %v7257_v61 = vmax.f32 %v7120_v50, 0.0 }
 0x8a8   : > { %v15512_v11 = vpack.c.bf16 %v7895_v63, %v7893_v62  ;;  %v7258_v24 = vmax.f32 %v7122_v27, 0.0 }
 0x8a9   : > { %v7259_v16 = vmax.f32 %v7124_v34, 0.0  ;;  %v7596_v5 = vpop.f32.mrb[236].mxu0  ;;  %v15514_v41 = vpack.c.bf16 %v7896_v6, %v7894_v4  ;;  %12218 = vmatpush3.bf16.msra.mxu1 %v13260_v54 }
 0x8aa   : > { %v7324_v53 = vpack.c.bf16 %v7258_v24, %v7256_v9  ;;  %v7597_v10 = vadd.f32 %v7596_v5, %v15465_v28  ;;  %v7598_v14 = vpop.f32.mrb[237].mxu0  ;;  %12219 = vmatprep.subr.bf16.mxu1 %v13261_v3 }
 0x8ab   : > { %v7599_v56 = vadd.f32 %v7598_v14, %v15469_v29  ;;  %v7127_v48 = vpop.f32.mrb[28].mxu1  ;;  %v7600_v7 = vpop.f32.mrb[238].mxu0  ;;  %8260 = vmatprep.mubr.bf16.mxu1 %v15514_v41  ;;  %v7325_v18 = vpack.c.bf16 %v7259_v16, %v7257_v61  ;;  %v13262_v14 = vld [vmem:[%s17098_s0 + $0x28] sm:$0xff]  }
 0x8ac   : > { %v7128_v20 = vadd.f32 %v7127_v48, %v15314_v12  ;;  %v7601_v8 = vadd.f32 %v7600_v7, %v15465_v28  ;;  %v7129_v40 = vpop.f32.mrb[29].mxu1  ;;  %v7602_v21 = vpop.f32.mrb[239].mxu0  ;;  %8261 = vmatmul.mubr.bf16.gmra.mrb[40].mxu1 %v15512_v11  ;;  %v7897_v26 = vmax.f32 %v7597_v10, 0.0 }
 0x8ad   : > { %v7130_v47 = vadd.f32 %v7129_v40, %v15318_v60  ;;  %v7603_v0 = vadd.f32 %v7602_v21, %v15469_v29  ;;  %v7131_v25 = vpop.f32.mrb[30].mxu1  ;;  %7864 = vmatprep.mubr.bf16.mxu0 %v7325_v18  ;;  %12220 = vmatpush3.bf16.msra.mxu1 %v13261_v3  ;;  %v7898_v30 = vmax.f32 %v7599_v56, 0.0 }
 0x8ae   : > { %v7899_v45 = vmax.f32 %v7601_v8, 0.0  ;;  %v7132_v19 = vadd.f32 %v7131_v25, %v15314_v12  ;;  %v7133_v23 = vpop.f32.mrb[31].mxu1  ;;  %7865 = vmatmul.mubr.bf16.gmra.mrb[88].mxu0 %v7324_v53  ;;  %v7260_v32 = vmax.f32 %v7128_v20, 0.0  ;;  %12221 = vmatprep.subr.bf16.mxu1 %v13262_v14 }
 0x8af   : > { %v7900_v17 = vmax.f32 %v7603_v0, 0.0  ;;  %v7134_v46 = vadd.f32 %v7133_v23, %v15318_v60  ;;  %v7261_v36 = vmax.f32 %v7130_v47, 0.0 }
 0x8b0   : > { %v15526_v37 = vpack.c.bf16 %v7899_v45, %v7897_v26  ;;  %v7262_v35 = vmax.f32 %v7132_v19, 0.0 }
 0x8b1   : > { %v7263_v39 = vmax.f32 %v7134_v46, 0.0  ;;  %v7606_v54 = vpop.f32.mrb[240].mxu0  ;;  %v15528_v38 = vpack.c.bf16 %v7900_v17, %v7898_v30  ;;  %12222 = vmatpush3.bf16.msra.mxu1 %v13262_v14  ;;  %v13263_v14 = vld [vmem:[%s17098_s0 + $0x30] sm:$0xff]  }
 0x8b2   : > { %v7326_v44 = vpack.c.bf16 %v7262_v35, %v7260_v32  ;;  %v7607_v42 = vadd.f32 %v7606_v54, %v15465_v28  ;;  %v7608_v49 = vpop.f32.mrb[241].mxu0  ;;  %12223 = vmatprep.subr.bf16.mxu1 %v13263_v14 }
 0x8b3   : > { %v7609_v12 = vadd.f32 %v7608_v49, %v15469_v29  ;;  %v7610_v51 = vpop.f32.mrb[242].mxu0  ;;  %8268 = vmatprep.mubr.bf16.mxu1 %v15528_v38  ;;  %v7327_v22 = vpack.c.bf16 %v7263_v39, %v7261_v36 }
 0x8b4   : > { %v7611_v60 = vadd.f32 %v7610_v51, %v15465_v28  ;;  %v7612_v52 = vpop.f32.mrb[243].mxu0  ;;  %8269 = vmatmul.mubr.bf16.gmra.mrb[44].mxu1 %v15526_v37  ;;  %v7901_v50 = vmax.f32 %v7607_v42, 0.0 }
 0x8b5   : > { %v7613_v43 = vadd.f32 %v7612_v52, %v15469_v29  ;;  %7874 = vmatprep.mubr.bf16.mxu0 %v7327_v22  ;;  %v7902_v59 = vmax.f32 %v7609_v12, 0.0  ;;  %12224 = vmatpush3.bf16.msra.mxu1 %v13263_v14  ;;  %v13264_v14 = vld [vmem:[%s17098_s0 + $0x38] sm:$0xff]  }
 0x8b6   : > { %v7903_v58 = vmax.f32 %v7611_v60, 0.0  ;;  %7875 = vmatmul.mubr.bf16.gmra.mrb[92].mxu0 %v7326_v44  ;;  %12225 = vmatprep.subr.bf16.mxu1 %v13264_v14 }
 0x8b7   : > { %v7904_v62 = vmax.f32 %v7613_v43, 0.0  ;;  %8737 = vmatprep.mubr.bf16.mxu0 %v15481_v13 }
 0x8b8   : > { %v15537_v63 = vpack.c.bf16 %v7903_v58, %v7901_v50 }
 0x8b9   : > { %v7616_v27 = vpop.f32.mrb[244].mxu0  ;;  %v15539_v2 = vpack.c.bf16 %v7904_v62, %v7902_v59  ;;  %12226 = vmatpush3.bf16.msra.mxu1 %v13264_v14 }
 0x8ba   : > { %v7617_v3 = vadd.f32 %v7616_v27, %v15465_v28  ;;  %v7618_v4 = vpop.f32.mrb[245].mxu0  ;;  %9923 = vmatprep.subr.bf16.mxu1 %v13790_v1 }
 0x8bb   : > { %v7619_v6 = vadd.f32 %v7618_v4, %v15469_v29  ;;  %v7620_v34 = vpop.f32.mrb[246].mxu0  ;;  %8276 = vmatprep.mubr.bf16.mxu1 %v15539_v2 }
 0x8bc   : > { %v7621_v9 = vadd.f32 %v7620_v34, %v15465_v28  ;;  %v7622_v24 = vpop.f32.mrb[247].mxu0  ;;  %8277 = vmatmul.mubr.bf16.gmra.mrb[48].mxu1 %v15537_v63  ;;  %v7905_v61 = vmax.f32 %v7617_v3, 0.0 }
 0x8bd   : > { %v7623_v13 = vadd.f32 %v7622_v24, %v15469_v29  ;;  %v7906_v5 = vmax.f32 %v7619_v6, 0.0 }
 0x8be   : > { %v7907_v16 = vmax.f32 %v7621_v9, 0.0  ;;  %8738 = vmatmul.mubr.bf16.vlgmr.msra.gmra.mrb[96].mxu0 %v15479_v33 }
 0x8bf   : > { %v7908_v53 = vmax.f32 %v7623_v13, 0.0  ;;  %8747 = vmatprep.mubr.bf16.mxu0 %v15498_v15 }
 0x8c0   : > { %v15549_v10 = vpack.c.bf16 %v7907_v16, %v7905_v61 }
 0x8c1   : > { %v7626_v56 = vpop.f32.mrb[248].mxu0  ;;  %v15552_v48 = vpack.c.bf16 %v7908_v53, %v7906_v5 }
 0x8c2   : > { %v7627_v7 = vadd.f32 %v7626_v56, %v15465_v28  ;;  %v7628_v18 = vpop.f32.mrb[249].mxu0 }
 0x8c3   : > { %v7629_v20 = vadd.f32 %v7628_v18, %v15469_v29  ;;  %v7630_v8 = vpop.f32.mrb[250].mxu0  ;;  %8284 = vmatprep.mubr.bf16.mxu1 %v15552_v48 }
 0x8c4   : > { %v7631_v33 = vadd.f32 %v7630_v8, %v15465_v28  ;;  %v7632_v40 = vpop.f32.mrb[251].mxu0  ;;  %8285 = vmatmul.mubr.bf16.gmra.mrb[52].mxu1 %v15549_v10  ;;  %v7909_v21 = vmax.f32 %v7627_v7, 0.0 }
 0x8c5   : > { %v7633_v15 = vadd.f32 %v7632_v40, %v15469_v29  ;;  %v7910_v0 = vmax.f32 %v7629_v20, 0.0 }
 0x8c6   : > { %v7911_v47 = vmax.f32 %v7631_v33, 0.0  ;;  %8748 = vmatmul.mubr.bf16.gmra.mrb[100].mxu0 %v15496_v31 }
 0x8c7   : > { %v7912_v25 = vmax.f32 %v7633_v15, 0.0  ;;  %8757 = vmatprep.mubr.bf16.mxu0 %v15514_v41 }
 0x8c8   : > { %v15562_v26 = vpack.c.bf16 %v7911_v47, %v7909_v21 }
 0x8c9   : > { %v7636_v45 = vpop.f32.mrb[252].mxu0  ;;  %v15564_v19 = vpack.c.bf16 %v7912_v25, %v7910_v0 }
 0x8ca   : > { %v7637_v23 = vadd.f32 %v7636_v45, %v15465_v28  ;;  %v7638_v30 = vpop.f32.mrb[253].mxu0 }
 0x8cb   : > { %v7639_v17 = vadd.f32 %v7638_v30, %v15469_v29  ;;  %v7640_v46 = vpop.f32.mrb[254].mxu0  ;;  %8292 = vmatprep.mubr.bf16.mxu1 %v15564_v19 }
 0x8cc   : > { %v7641_v32 = vadd.f32 %v7640_v46, %v15465_v28  ;;  %v7642_v31 = vpop.f32.mrb[255].mxu0  ;;  %8293 = vmatmul.mubr.bf16.gmra.mrb[56].mxu1 %v15562_v26  ;;  %v7913_v35 = vmax.f32 %v7637_v23, 0.0 }
 0x8cd   : > { %v7643_v41 = vadd.f32 %v7642_v31, %v15469_v29  ;;  %v7914_v39 = vmax.f32 %v7639_v17, 0.0 }
 0x8ce   : > { %v7915_v36 = vmax.f32 %v7641_v32, 0.0  ;;  %8758 = vmatmul.mubr.bf16.gmra.mrb[104].mxu0 %v15512_v11 }
 0x8cf   : > { %v7916_v54 = vmax.f32 %v7643_v41, 0.0  ;;  %8767 = vmatprep.mubr.bf16.mxu0 %v15528_v38 }
 0x8d0   : > { %v15574_v44 = vpack.c.bf16 %v7915_v36, %v7913_v35 }
 0x8d1   : > { %v7646_v42 = vpop.f32.mrb[0].mxu0  ;;  %v15576_v49 = vpack.c.bf16 %v7916_v54, %v7914_v39 }
 0x8d2   : > { %v7647_v12 = vadd.f32 %v7646_v42, %v15465_v28  ;;  %v7648_v51 = vpop.f32.mrb[1].mxu0 }
 0x8d3   : > { %v7649_v22 = vadd.f32 %v7648_v51, %v15469_v29  ;;  %v7650_v60 = vpop.f32.mrb[2].mxu0  ;;  %8300 = vmatprep.mubr.bf16.mxu1 %v15576_v49 }
 0x8d4   : > { %v7651_v52 = vadd.f32 %v7650_v60, %v15465_v28  ;;  %v7652_v11 = vpop.f32.mrb[3].mxu0  ;;  %8301 = vmatmul.mubr.bf16.gmra.mrb[60].mxu1 %v15574_v44  ;;  %v7917_v43 = vmax.f32 %v7647_v12, 0.0 }
 0x8d5   : > { %v7653_v38 = vadd.f32 %v7652_v11, %v15469_v29  ;;  %v7918_v58 = vmax.f32 %v7649_v22, 0.0 }
 0x8d6   : > { %v7919_v50 = vmax.f32 %v7651_v52, 0.0  ;;  %8768 = vmatmul.mubr.bf16.gmra.mrb[108].mxu0 %v15526_v37 }
 0x8d7   : > { %v7920_v59 = vmax.f32 %v7653_v38, 0.0  ;;  %8777 = vmatprep.mubr.bf16.mxu0 %v15539_v2 }
 0x8d8   : > { %v15586_v62 = vpack.c.bf16 %v7919_v50, %v7917_v43 }
 0x8d9   : > { %v7656_v27 = vpop.f32.mrb[4].mxu0  ;;  %v15588_v3 = vpack.c.bf16 %v7920_v59, %v7918_v58 }
 0x8da   : > { %v7657_v4 = vadd.f32 %v7656_v27, %v15465_v28  ;;  %v7658_v6 = vpop.f32.mrb[5].mxu0 }
 0x8db   : > { %v7659_v34 = vadd.f32 %v7658_v6, %v15469_v29  ;;  %v7660_v9 = vpop.f32.mrb[6].mxu0  ;;  %8308 = vmatprep.mubr.bf16.mxu1 %v15588_v3 }
 0x8dc   : > { %v7661_v37 = vadd.f32 %v7660_v9, %v15465_v28  ;;  %v7662_v24 = vpop.f32.mrb[7].mxu0  ;;  %8309 = vmatmul.mubr.bf16.gmra.mrb[64].mxu1 %v15586_v62  ;;  %v7921_v13 = vmax.f32 %v7657_v4, 0.0 }
 0x8dd   : > { %v7663_v2 = vadd.f32 %v7662_v24, %v15469_v29  ;;  %v7922_v16 = vmax.f32 %v7659_v34, 0.0 }
 0x8de   : > { %v7923_v61 = vmax.f32 %v7661_v37, 0.0  ;;  %8778 = vmatmul.mubr.bf16.gmra.mrb[112].mxu0 %v15537_v63 }
 0x8df   : > { %v7924_v5 = vmax.f32 %v7663_v2, 0.0  ;;  %8787 = vmatprep.mubr.bf16.mxu0 %v15552_v48 }
 0x8e0   : > { %v15598_v53 = vpack.c.bf16 %v7923_v61, %v7921_v13 }
 0x8e1   : > { %v7666_v56 = vpop.f32.mrb[8].mxu0  ;;  %v15601_v7 = vpack.c.bf16 %v7924_v5, %v7922_v16 }
 0x8e2   : > { %v7667_v18 = vadd.f32 %v7666_v56, %v15465_v28  ;;  %v7668_v20 = vpop.f32.mrb[9].mxu0 }
 0x8e3   : > { %v7669_v8 = vadd.f32 %v7668_v20, %v15469_v29  ;;  %v7670_v33 = vpop.f32.mrb[10].mxu0  ;;  %8316 = vmatprep.mubr.bf16.mxu1 %v15601_v7 }
 0x8e4   : > { %v7671_v63 = vadd.f32 %v7670_v33, %v15465_v28  ;;  %v7672_v40 = vpop.f32.mrb[11].mxu0  ;;  %8317 = vmatmul.mubr.bf16.gmra.mrb[68].mxu1 %v15598_v53  ;;  %v7925_v15 = vmax.f32 %v7667_v18, 0.0 }
 0x8e5   : > { %v7673_v48 = vadd.f32 %v7672_v40, %v15469_v29  ;;  %v7926_v47 = vmax.f32 %v7669_v8, 0.0 }
 0x8e6   : > { %v7927_v21 = vmax.f32 %v7671_v63, 0.0  ;;  %8788 = vmatmul.mubr.bf16.gmra.mrb[116].mxu0 %v15549_v10 }
 0x8e7   : > { %v7928_v0 = vmax.f32 %v7673_v48, 0.0  ;;  %8797 = vmatprep.mubr.bf16.mxu0 %v15564_v19 }
 0x8e8   : > { %v15611_v25 = vpack.c.bf16 %v7927_v21, %v7925_v15 }
 0x8e9   : > { %v7676_v45 = vpop.f32.mrb[12].mxu0  ;;  %v15613_v23 = vpack.c.bf16 %v7928_v0, %v7926_v47 }
 0x8ea   : > { %v7677_v30 = vadd.f32 %v7676_v45, %v15465_v28  ;;  %v7678_v17 = vpop.f32.mrb[13].mxu0 }
 0x8eb   : > { %v7679_v46 = vadd.f32 %v7678_v17, %v15469_v29  ;;  %v7680_v32 = vpop.f32.mrb[14].mxu0  ;;  %8324 = vmatprep.mubr.bf16.mxu1 %v15613_v23 }
 0x8ec   : > { %v7681_v31 = vadd.f32 %v7680_v32, %v15465_v28  ;;  %v7682_v10 = vpop.f32.mrb[15].mxu0  ;;  %8325 = vmatmul.mubr.bf16.gmra.mrb[72].mxu1 %v15611_v25  ;;  %v7929_v41 = vmax.f32 %v7677_v30, 0.0 }
 0x8ed   : > { %v7683_v19 = vadd.f32 %v7682_v10, %v15469_v29  ;;  %v7930_v36 = vmax.f32 %v7679_v46, 0.0 }
 0x8ee   : > { %v7931_v35 = vmax.f32 %v7681_v31, 0.0  ;;  %8798 = vmatmul.mubr.bf16.gmra.mrb[120].mxu0 %v15562_v26 }
 0x8ef   : > { %v7932_v39 = vmax.f32 %v7683_v19, 0.0  ;;  %8807 = vmatprep.mubr.bf16.mxu0 %v15576_v49 }
 0x8f0   : > { %v15623_v54 = vpack.c.bf16 %v7931_v35, %v7929_v41 }
 0x8f1   : > { %v7686_v42 = vpop.f32.mrb[16].mxu0  ;;  %v15625_v12 = vpack.c.bf16 %v7932_v39, %v7930_v36 }
 0x8f2   : > { %v7687_v51 = vadd.f32 %v7686_v42, %v15465_v28  ;;  %v7688_v22 = vpop.f32.mrb[17].mxu0 }
 0x8f3   : > { %v7689_v60 = vadd.f32 %v7688_v22, %v15469_v29  ;;  %v7690_v52 = vpop.f32.mrb[18].mxu0  ;;  %8332 = vmatprep.mubr.bf16.mxu1 %v15625_v12 }
 0x8f4   : > { %v7691_v11 = vadd.f32 %v7690_v52, %v15465_v28  ;;  %v7692_v26 = vpop.f32.mrb[19].mxu0  ;;  %8333 = vmatmul.mubr.bf16.gmra.mrb[76].mxu1 %v15623_v54  ;;  %v7933_v38 = vmax.f32 %v7687_v51, 0.0 }
 0x8f5   : > { %v7693_v49 = vadd.f32 %v7692_v26, %v15469_v29  ;;  %v7934_v50 = vmax.f32 %v7689_v60, 0.0 }
 0x8f6   : > { %v7935_v43 = vmax.f32 %v7691_v11, 0.0  ;;  %8808 = vmatmul.mubr.bf16.gmra.mrb[124].mxu0 %v15574_v44 }
 0x8f7   : > { %v7936_v58 = vmax.f32 %v7693_v49, 0.0  ;;  %8817 = vmatprep.mubr.bf16.mxu0 %v15588_v3 }
 0x8f8   : > { %v15635_v59 = vpack.c.bf16 %v7935_v43, %v7933_v38 }
 0x8f9   : > { %v7696_v27 = vpop.f32.mrb[20].mxu0  ;;  %v15637_v4 = vpack.c.bf16 %v7936_v58, %v7934_v50 }
 0x8fa   : > { %v7697_v6 = vadd.f32 %v7696_v27, %v15465_v28  ;;  %v7698_v34 = vpop.f32.mrb[21].mxu0 }
 0x8fb   : > { %v7699_v9 = vadd.f32 %v7698_v34, %v15469_v29  ;;  %v7700_v37 = vpop.f32.mrb[22].mxu0  ;;  %8340 = vmatprep.mubr.bf16.mxu1 %v15637_v4 }
 0x8fc   : > { %v7701_v44 = vadd.f32 %v7700_v37, %v15465_v28  ;;  %v7702_v24 = vpop.f32.mrb[23].mxu0  ;;  %8341 = vmatmul.mubr.bf16.gmra.mrb[80].mxu1 %v15635_v59  ;;  %v7937_v2 = vmax.f32 %v7697_v6, 0.0 }
 0x8fd   : > { %v7703_v3 = vadd.f32 %v7702_v24, %v15469_v29  ;;  %v7938_v61 = vmax.f32 %v7699_v9, 0.0 }
 0x8fe   : > { %v7939_v13 = vmax.f32 %v7701_v44, 0.0  ;;  %8818 = vmatmul.mubr.bf16.gmra.mrb[128].mxu0 %v15586_v62 }
 0x8ff   : > { %v7940_v16 = vmax.f32 %v7703_v3, 0.0  ;;  %8827 = vmatprep.mubr.bf16.mxu0 %v15601_v7 }
 0x900   : > { %v15647_v5 = vpack.c.bf16 %v7939_v13, %v7937_v2 }
 0x901   : > { %v7706_v56 = vpop.f32.mrb[24].mxu0  ;;  %v15650_v18 = vpack.c.bf16 %v7940_v16, %v7938_v61 }
 0x902   : > { %v7707_v20 = vadd.f32 %v7706_v56, %v15465_v28  ;;  %v7708_v8 = vpop.f32.mrb[25].mxu0 }
 0x903   : > { %v7709_v33 = vadd.f32 %v7708_v8, %v15469_v29  ;;  %v7710_v63 = vpop.f32.mrb[26].mxu0  ;;  %8348 = vmatprep.mubr.bf16.mxu1 %v15650_v18 }
 0x904   : > { %v7711_v62 = vadd.f32 %v7710_v63, %v15465_v28  ;;  %v7712_v40 = vpop.f32.mrb[27].mxu0  ;;  %8349 = vmatmul.mubr.bf16.gmra.mrb[84].mxu1 %v15647_v5  ;;  %v7941_v48 = vmax.f32 %v7707_v20, 0.0 }
 0x905   : > { %v7713_v7 = vadd.f32 %v7712_v40, %v15469_v29  ;;  %v7942_v21 = vmax.f32 %v7709_v33, 0.0 }
 0x906   : > { %v7943_v15 = vmax.f32 %v7711_v62, 0.0  ;;  %8828 = vmatmul.mubr.bf16.gmra.mrb[132].mxu0 %v15598_v53 }
 0x907   : > { %v7944_v47 = vmax.f32 %v7713_v7, 0.0  ;;  %8837 = vmatprep.mubr.bf16.mxu0 %v15613_v23 }
 0x908   : > { %v15661_v0 = vpack.c.bf16 %v7943_v15, %v7941_v48 }
 0x909   : > { %v7716_v45 = vpop.f32.mrb[28].mxu0  ;;  %v15663_v30 = vpack.c.bf16 %v7944_v47, %v7942_v21 }
 0x90a   : > { %v7717_v17 = vadd.f32 %v7716_v45, %v15465_v28  ;;  %v7718_v46 = vpop.f32.mrb[29].mxu0 }
 0x90b   : > { %v7719_v32 = vadd.f32 %v7718_v46, %v15469_v29  ;;  %v7720_v31 = vpop.f32.mrb[30].mxu0  ;;  %8356 = vmatprep.mubr.bf16.mxu1 %v15663_v30 }
 0x90c   : > { %v7721_v10 = vadd.f32 %v7720_v31, %v15465_v28  ;;  %v7722_v53 = vpop.f32.mrb[31].mxu0  ;;  %8357 = vmatmul.mubr.bf16.gmra.mrb[88].mxu1 %v15661_v0  ;;  %v7945_v19 = vmax.f32 %v7717_v17, 0.0 }
 0x90d   : > { %v7723_v23 = vadd.f32 %v7722_v53, %v15469_v29  ;;  %v7946_v35 = vmax.f32 %v7719_v32, 0.0 }
 0x90e   : > { %v7947_v41 = vmax.f32 %v7721_v10, 0.0  ;;  %8838 = vmatmul.mubr.bf16.gmra.mrb[136].mxu0 %v15611_v25 }
 0x90f   : > { %v7948_v36 = vmax.f32 %v7723_v23, 0.0  ;;  %8847 = vmatprep.mubr.bf16.mxu0 %v15625_v12 }
 0x910   : > { %v15673_v39 = vpack.c.bf16 %v7947_v41, %v7945_v19 }
 0x911   : > { %v7726_v42 = vpop.f32.mrb[32].mxu0  ;;  %v15675_v51 = vpack.c.bf16 %v7948_v36, %v7946_v35 }
 0x912   : > { %v7727_v22 = vadd.f32 %v7726_v42, %v15465_v28  ;;  %v7728_v60 = vpop.f32.mrb[33].mxu0 }
 0x913   : > { %v7729_v52 = vadd.f32 %v7728_v60, %v15469_v29  ;;  %v7730_v11 = vpop.f32.mrb[34].mxu0  ;;  %8364 = vmatprep.mubr.bf16.mxu1 %v15675_v51 }
 0x914   : > { %v7731_v26 = vadd.f32 %v7730_v11, %v15465_v28  ;;  %v7732_v25 = vpop.f32.mrb[35].mxu0  ;;  %8365 = vmatmul.mubr.bf16.gmra.mrb[92].mxu1 %v15673_v39  ;;  %v7949_v49 = vmax.f32 %v7727_v22, 0.0 }
 0x915   : > { %v7733_v12 = vadd.f32 %v7732_v25, %v15469_v29  ;;  %v7950_v43 = vmax.f32 %v7729_v52, 0.0 }
 0x916   : > { %v7951_v38 = vmax.f32 %v7731_v26, 0.0  ;;  %8848 = vmatmul.mubr.bf16.gmra.mrb[140].mxu0 %v15623_v54 }
 0x917   : > { %v7952_v50 = vmax.f32 %v7733_v12, 0.0  ;;  %8857 = vmatprep.mubr.bf16.mxu0 %v15637_v4 }
 0x918   : > { %v15685_v58 = vpack.c.bf16 %v7951_v38, %v7949_v49 }
 0x919   : > { %v7736_v27 = vpop.f32.mrb[36].mxu0  ;;  %v15687_v6 = vpack.c.bf16 %v7952_v50, %v7950_v43 }
 0x91a   : > { %v7737_v34 = vadd.f32 %v7736_v27, %v15465_v28  ;;  %v7738_v9 = vpop.f32.mrb[37].mxu0 }
 0x91b   : > { %v7739_v37 = vadd.f32 %v7738_v9, %v15469_v29  ;;  %v7740_v44 = vpop.f32.mrb[38].mxu0  ;;  %8372 = vmatprep.mubr.bf16.mxu1 %v15687_v6 }
 0x91c   : > { %v7741_v24 = vadd.f32 %v7740_v44, %v15465_v28  ;;  %v7742_v54 = vpop.f32.mrb[39].mxu0  ;;  %8373 = vmatmul.mubr.bf16.gmra.mrb[96].mxu1 %v15685_v58  ;;  %v7953_v3 = vmax.f32 %v7737_v34, 0.0 }
 0x91d   : > { %v7743_v4 = vadd.f32 %v7742_v54, %v15469_v29  ;;  %v7954_v13 = vmax.f32 %v7739_v37, 0.0 }
 0x91e   : > { %v7955_v2 = vmax.f32 %v7741_v24, 0.0  ;;  %8858 = vmatmul.mubr.bf16.gmra.mrb[144].mxu0 %v15635_v59 }
 0x91f   : > { %v7956_v61 = vmax.f32 %v7743_v4, 0.0  ;;  %8867 = vmatprep.mubr.bf16.mxu0 %v15650_v18 }
 0x920   : > { %v15697_v16 = vpack.c.bf16 %v7955_v2, %v7953_v3 }
 0x921   : > { %v7746_v14 = vpop.f32.mrb[40].mxu0  ;;  %v15699_v56 = vpack.c.bf16 %v7956_v61, %v7954_v13 }
 0x922   : > { %v7747_v20 = vadd.f32 %v7746_v14, %v15465_v28  ;;  %v7748_v8 = vpop.f32.mrb[41].mxu0 }
 0x923   : > { %v7749_v33 = vadd.f32 %v7748_v8, %v15469_v29  ;;  %v7750_v63 = vpop.f32.mrb[42].mxu0  ;;  %8380 = vmatprep.mubr.bf16.mxu1 %v15699_v56 }
 0x924   : > { %v7751_v62 = vadd.f32 %v7750_v63, %v15465_v28  ;;  %v7752_v59 = vpop.f32.mrb[43].mxu0  ;;  %8381 = vmatmul.mubr.bf16.gmra.mrb[100].mxu1 %v15697_v16  ;;  %v7957_v40 = vmax.f32 %v7747_v20, 0.0 }
 0x925   : > { %v7753_v18 = vadd.f32 %v7752_v59, %v15469_v29  ;;  %v7958_v48 = vmax.f32 %v7749_v33, 0.0 }
 0x926   : > { %v7959_v7 = vmax.f32 %v7751_v62, 0.0  ;;  %8868 = vmatmul.mubr.bf16.gmra.mrb[148].mxu0 %v15647_v5 }
 0x927   : > { %v7960_v15 = vmax.f32 %v7753_v18, 0.0  ;;  %8877 = vmatprep.mubr.bf16.mxu0 %v15663_v30 }
 0x928   : > { %v15709_v21 = vpack.c.bf16 %v7959_v7, %v7957_v40 }
 0x929   : > { %v7756_v47 = vpop.f32.mrb[44].mxu0  ;;  %v15711_v45 = vpack.c.bf16 %v7960_v15, %v7958_v48 }
 0x92a   : > { %v7757_v17 = vadd.f32 %v7756_v47, %v15465_v28  ;;  %v7758_v46 = vpop.f32.mrb[45].mxu0 }
 0x92b   : > { %v7759_v32 = vadd.f32 %v7758_v46, %v15469_v29  ;;  %v7760_v31 = vpop.f32.mrb[46].mxu0  ;;  %8388 = vmatprep.mubr.bf16.mxu1 %v15711_v45 }
 0x92c   : > { %v7761_v10 = vadd.f32 %v7760_v31, %v15465_v28  ;;  %v7762_v5 = vpop.f32.mrb[47].mxu0  ;;  %8389 = vmatmul.mubr.bf16.gmra.mrb[104].mxu1 %v15709_v21  ;;  %v7961_v53 = vmax.f32 %v7757_v17, 0.0 }
 0x92d   : > { %v7763_v30 = vadd.f32 %v7762_v5, %v15469_v29  ;;  %v7962_v19 = vmax.f32 %v7759_v32, 0.0 }
 0x92e   : > { %v7963_v23 = vmax.f32 %v7761_v10, 0.0  ;;  %8878 = vmatmul.mubr.bf16.gmra.mrb[152].mxu0 %v15661_v0 }
 0x92f   : > { %v7964_v41 = vmax.f32 %v7763_v30, 0.0  ;;  %8887 = vmatprep.mubr.bf16.mxu0 %v15675_v51 }
 0x930   : > { %v15721_v35 = vpack.c.bf16 %v7963_v23, %v7961_v53 }
 0x931   : > { %v7766_v36 = vpop.f32.mrb[48].mxu0  ;;  %v15723_v42 = vpack.c.bf16 %v7964_v41, %v7962_v19 }
 0x932   : > { %v7767_v22 = vadd.f32 %v7766_v36, %v15465_v28  ;;  %v7768_v60 = vpop.f32.mrb[49].mxu0 }
 0x933   : > { %v7769_v52 = vadd.f32 %v7768_v60, %v15469_v29  ;;  %v7770_v11 = vpop.f32.mrb[50].mxu0  ;;  %8396 = vmatprep.mubr.bf16.mxu1 %v15723_v42 }
 0x934   : > { %v7771_v26 = vadd.f32 %v7770_v11, %v15465_v28  ;;  %v7772_v0 = vpop.f32.mrb[51].mxu0  ;;  %8397 = vmatmul.mubr.bf16.gmra.mrb[108].mxu1 %v15721_v35  ;;  %v7965_v25 = vmax.f32 %v7767_v22, 0.0 }
 0x935   : > { %v7773_v51 = vadd.f32 %v7772_v0, %v15469_v29  ;;  %v7966_v49 = vmax.f32 %v7769_v52, 0.0 }
 0x936   : > { %v7967_v12 = vmax.f32 %v7771_v26, 0.0  ;;  %8888 = vmatmul.mubr.bf16.gmra.mrb[156].mxu0 %v15673_v39 }
 0x937   : > { %v7968_v38 = vmax.f32 %v7773_v51, 0.0  ;;  %8897 = vmatprep.mubr.bf16.mxu0 %v15687_v6 }
 0x938   : > { %v15733_v43 = vpack.c.bf16 %v7967_v12, %v7965_v25 }
 0x939   : > { %v7776_v50 = vpop.f32.mrb[52].mxu0  ;;  %v15735_v27 = vpack.c.bf16 %v7968_v38, %v7966_v49 }
 0x93a   : > { %v7777_v34 = vadd.f32 %v7776_v50, %v15465_v28  ;;  %v7778_v9 = vpop.f32.mrb[53].mxu0 }
 0x93b   : > { %v7779_v37 = vadd.f32 %v7778_v9, %v15469_v29  ;;  %v7780_v44 = vpop.f32.mrb[54].mxu0  ;;  %8404 = vmatprep.mubr.bf16.mxu1 %v15735_v27 }
 0x93c   : > { %v7781_v24 = vadd.f32 %v7780_v44, %v15465_v28  ;;  %v7782_v39 = vpop.f32.mrb[55].mxu0  ;;  %8405 = vmatmul.mubr.bf16.gmra.mrb[112].mxu1 %v15733_v43  ;;  %v7969_v54 = vmax.f32 %v7777_v34, 0.0 }
 0x93d   : > { %v7783_v6 = vadd.f32 %v7782_v39, %v15469_v29  ;;  %v7970_v3 = vmax.f32 %v7779_v37, 0.0 }
 0x93e   : > { %v7971_v4 = vmax.f32 %v7781_v24, 0.0  ;;  %8898 = vmatmul.mubr.bf16.gmra.mrb[160].mxu0 %v15685_v58 }
 0x93f   : > { %v7972_v2 = vmax.f32 %v7783_v6, 0.0  ;;  %8907 = vmatprep.mubr.bf16.mxu0 %v15699_v56 }
 0x940   : > { %v15745_v13 = vpack.c.bf16 %v7971_v4, %v7969_v54 }
 0x941   : > { %v7786_v61 = vpop.f32.mrb[56].mxu0  ;;  %v15747_v14 = vpack.c.bf16 %v7972_v2, %v7970_v3 }
 0x942   : > { %v7787_v20 = vadd.f32 %v7786_v61, %v15465_v28  ;;  %v7788_v8 = vpop.f32.mrb[57].mxu0 }
 0x943   : > { %v7789_v33 = vadd.f32 %v7788_v8, %v15469_v29  ;;  %v7790_v63 = vpop.f32.mrb[58].mxu0  ;;  %8412 = vmatprep.mubr.bf16.mxu1 %v15747_v14 }
 0x944   : > { %v7791_v62 = vadd.f32 %v7790_v63, %v15465_v28  ;;  %v7792_v58 = vpop.f32.mrb[59].mxu0  ;;  %8413 = vmatmul.mubr.bf16.gmra.mrb[116].mxu1 %v15745_v13  ;;  %v7973_v59 = vmax.f32 %v7787_v20, 0.0 }
 0x945   : > { %v7793_v56 = vadd.f32 %v7792_v58, %v15469_v29  ;;  %v7974_v40 = vmax.f32 %v7789_v33, 0.0 }
 0x946   : > { %v7975_v18 = vmax.f32 %v7791_v62, 0.0  ;;  %8908 = vmatmul.mubr.bf16.gmra.mrb[164].mxu0 %v15697_v16 }
 0x947   : > { %v7976_v7 = vmax.f32 %v7793_v56, 0.0  ;;  %8917 = vmatprep.mubr.bf16.mxu0 %v15711_v45 }
 0x948   : > { %v15757_v48 = vpack.c.bf16 %v7975_v18, %v7973_v59 }
 0x949   : > { %v7796_v15 = vpop.f32.mrb[60].mxu0  ;;  %v15759_v47 = vpack.c.bf16 %v7976_v7, %v7974_v40 }
 0x94a   : > { %v7797_v17 = vadd.f32 %v7796_v15, %v15465_v28  ;;  %v7798_v46 = vpop.f32.mrb[61].mxu0 }
 0x94b   : > { %v7799_v32 = vadd.f32 %v7798_v46, %v15469_v29  ;;  %v7800_v31 = vpop.f32.mrb[62].mxu0  ;;  %8420 = vmatprep.mubr.bf16.mxu1 %v15759_v47 }
 0x94c   : > { %v7801_v10 = vadd.f32 %v7800_v31, %v15465_v28  ;;  %v7802_v16 = vpop.f32.mrb[63].mxu0  ;;  %8421 = vmatmul.mubr.bf16.gmra.mrb[120].mxu1 %v15757_v48  ;;  %v7977_v5 = vmax.f32 %v7797_v17, 0.0 }
 0x94d   : > { %v7803_v45 = vadd.f32 %v7802_v16, %v15469_v29  ;;  %v7978_v53 = vmax.f32 %v7799_v32, 0.0  ;;  %v15819_v16 = vld [vmem:[#allocation2] ss:$0 sm:$0xff] }
 0x94e   : > { %v7979_v30 = vmax.f32 %v7801_v10, 0.0  ;;  %8918 = vmatmul.mubr.bf16.gmra.mrb[168].mxu0 %v15709_v21 }
 0x94f   : > { %v7980_v23 = vmax.f32 %v7803_v45, 0.0  ;;  %8927 = vmatprep.mubr.bf16.mxu0 %v15723_v42 }
 0x950   : > { %v15769_v19 = vpack.c.bf16 %v7979_v30, %v7977_v5 }
 0x951   : > { %v7806_v41 = vpop.f32.mrb[64].mxu0  ;;  %v15771_v36 = vpack.c.bf16 %v7980_v23, %v7978_v53 }
 0x952   : > { %v7807_v22 = vadd.f32 %v7806_v41, %v15465_v28  ;;  %v7808_v60 = vpop.f32.mrb[65].mxu0 }
 0x953   : > { %v7809_v52 = vadd.f32 %v7808_v60, %v15469_v29  ;;  %v7810_v11 = vpop.f32.mrb[66].mxu0  ;;  %8428 = vmatprep.mubr.bf16.mxu1 %v15771_v36 }
 0x954   : > { %v7811_v26 = vadd.f32 %v7810_v11, %v15465_v28  ;;  %v7812_v21 = vpop.f32.mrb[67].mxu0  ;;  %8429 = vmatmul.mubr.bf16.gmra.mrb[124].mxu1 %v15769_v19  ;;  %v7981_v0 = vmax.f32 %v7807_v22, 0.0 }
 0x955   : > { %v7813_v42 = vadd.f32 %v7812_v21, %v15469_v29  ;;  %v7982_v25 = vmax.f32 %v7809_v52, 0.0 }
 0x956   : > { %v7983_v51 = vmax.f32 %v7811_v26, 0.0  ;;  %8928 = vmatmul.mubr.bf16.gmra.mrb[172].mxu0 %v15721_v35 }
 0x957   : > { %v7984_v12 = vmax.f32 %v7813_v42, 0.0  ;;  %8937 = vmatprep.mubr.bf16.mxu0 %v15735_v27 }
 0x958   : > { %v15781_v49 = vpack.c.bf16 %v7983_v51, %v7981_v0 }
 0x959   : > { %v7816_v38 = vpop.f32.mrb[68].mxu0  ;;  %v15783_v50 = vpack.c.bf16 %v7984_v12, %v7982_v25 }
 0x95a   : > { %v7817_v34 = vadd.f32 %v7816_v38, %v15465_v28  ;;  %v7818_v9 = vpop.f32.mrb[69].mxu0 }
 0x95b   : > { %v7819_v37 = vadd.f32 %v7818_v9, %v15469_v29  ;;  %v7820_v44 = vpop.f32.mrb[70].mxu0  ;;  %8436 = vmatprep.mubr.bf16.mxu1 %v15783_v50 }
 0x95c   : > { %v7821_v35 = vadd.f32 %v7820_v44, %v15465_v28  ;;  %v7822_v24 = vpop.f32.mrb[71].mxu0  ;;  %8437 = vmatmul.mubr.bf16.gmra.mrb[128].mxu1 %v15781_v49  ;;  %v7985_v39 = vmax.f32 %v7817_v34, 0.0 }
 0x95d   : > { %v7823_v27 = vadd.f32 %v7822_v24, %v15469_v29  ;;  %v7986_v54 = vmax.f32 %v7819_v37, 0.0 }
 0x95e   : > { %v7987_v6 = vmax.f32 %v7821_v35, 0.0  ;;  %8938 = vmatmul.mubr.bf16.gmra.mrb[176].mxu0 %v15733_v43 }
 0x95f   : > { %v7988_v4 = vmax.f32 %v7823_v27, 0.0  ;;  %8947 = vmatprep.mubr.bf16.mxu0 %v15747_v14 }
 0x960   : > { %v15793_v3 = vpack.c.bf16 %v7987_v6, %v7985_v39 }
 0x961   : > { %v7826_v2 = vpop.f32.mrb[72].mxu0  ;;  %v15795_v61 = vpack.c.bf16 %v7988_v4, %v7986_v54 }
 0x962   : > { %v7827_v20 = vadd.f32 %v7826_v2, %v15465_v28  ;;  %v7828_v8 = vpop.f32.mrb[73].mxu0 }
 0x963   : > { %v7829_v33 = vadd.f32 %v7828_v8, %v15469_v29  ;;  %v7830_v63 = vpop.f32.mrb[74].mxu0  ;;  %8444 = vmatprep.mubr.bf16.mxu1 %v15795_v61 }
 0x964   : > { %v7831_v43 = vadd.f32 %v7830_v63, %v15465_v28  ;;  %v7832_v62 = vpop.f32.mrb[75].mxu0  ;;  %8445 = vmatmul.mubr.bf16.gmra.mrb[132].mxu1 %v15793_v3  ;;  %v7989_v58 = vmax.f32 %v7827_v20, 0.0 }
 0x965   : > { %v7833_v14 = vadd.f32 %v7832_v62, %v15469_v29  ;;  %v7990_v59 = vmax.f32 %v7829_v33, 0.0 }
 0x966   : > { %v7991_v56 = vmax.f32 %v7831_v43, 0.0  ;;  %8948 = vmatmul.mubr.bf16.gmra.mrb[180].mxu0 %v15745_v13 }
 0x967   : > { %v7992_v18 = vmax.f32 %v7833_v14, 0.0  ;;  %8957 = vmatprep.mubr.bf16.mxu0 %v15759_v47 }
 0x968   : > { %v15806_v40 = vpack.c.bf16 %v7991_v56, %v7989_v58 }
 0x969   : > { %v7836_v7 = vpop.f32.mrb[76].mxu0  ;;  %v15810_v15 = vpack.c.bf16 %v7992_v18, %v7990_v59 }
 0x96a   : > { %v7837_v17 = vadd.f32 %v7836_v7, %v15465_v28  ;;  %v7838_v46 = vpop.f32.mrb[77].mxu0 }
 0x96b   : > { %v7839_v32 = vadd.f32 %v7838_v46, %v15469_v29  ;;  %v7840_v13 = vpop.f32.mrb[78].mxu0  ;;  %8452 = vmatprep.mubr.bf16.mxu1 %v15810_v15 }
 0x96c   : > { %v7841_v47 = vadd.f32 %v7840_v13, %v15465_v28  ;;  %v7842_v31 = vpop.f32.mrb[79].mxu0  ;;  %8453 = vmatmul.mubr.bf16.gmra.mrb[136].mxu1 %v15806_v40  ;;  %v7993_v45 = vmax.f32 %v7837_v17, 0.0 }
 0x96d   : > { %v7843_v10 = vadd.f32 %v7842_v31, %v15469_v29  ;;  %v7994_v30 = vmax.f32 %v7839_v32, 0.0 }
 0x96e   : > { %v7995_v5 = vmax.f32 %v7841_v47, 0.0  ;;  %8958 = vmatmul.mubr.bf16.gmra.mrb[184].mxu0 %v15757_v48 }
 0x96f   : > { %v7996_v53 = vmax.f32 %v7843_v10, 0.0  ;;  %v8246_v23 = vpop.f32.mrb[32].mxu1  ;;  %8967 = vmatprep.mubr.bf16.mxu0 %v15771_v36 }
 0x970   : > { %v15828_v41 = vpack.c.bf16 %v7995_v5, %v7993_v45  ;;  %v8247_v22 = vadd.f32 %v15819_v16, %v8246_v23  ;;  %v8248_v60 = vpop.f32.mrb[33].mxu1 }
 0x971   : > { %v7846_v52 = vpop.f32.mrb[80].mxu0  ;;  %v8249_v11 = vpop.f32.mrb[34].mxu1  ;;  %v15831_v26 = vpack.c.bf16 %v7996_v53, %v7994_v30 }
 0x972   : > { %11325 = vst.msk [vmem:[%s15825_s14] sm:$0xff] %vm11324_vm0, %v8247_v22  ;;  %v7847_v48 = vadd.f32 %v7846_v52, %v15465_v28  ;;  %v8250_v21 = vadd.f32 %v15819_v16, %v8249_v11  ;;  %v7848_v42 = vpop.f32.mrb[81].mxu0  ;;  %v8251_v0 = vpop.f32.mrb[35].mxu1 }
 0x973   : > { %v7849_v51 = vadd.f32 %v7848_v42, %v15469_v29  ;;  %v7850_v36 = vpop.f32.mrb[82].mxu0  ;;  %8460 = vmatprep.mubr.bf16.mxu1 %v15831_v26 }
 0x974   : > { %11326 = vst.msk [vmem:[%s15825_s14 + $0x8] sm:$0xff] %vm11324_vm0, %v8250_v21  ;;  %v7851_v25 = vadd.f32 %v7850_v36, %v15465_v28  ;;  %v7852_v12 = vpop.f32.mrb[83].mxu0  ;;  %8461 = vmatmul.mubr.bf16.gmra.mrb[140].mxu1 %v15828_v41  ;;  %v7997_v34 = vmax.f32 %v7847_v48, 0.0 }
 0x975   : > { %v7853_v38 = vadd.f32 %v7852_v12, %v15469_v29  ;;  %v7998_v37 = vmax.f32 %v7849_v51, 0.0 }
 0x976   : > { %v7999_v9 = vmax.f32 %v7851_v25, 0.0  ;;  %8968 = vmatmul.mubr.bf16.gmra.mrb[188].mxu0 %v15769_v19 }
 0x977   : > { %v8000_v44 = vmax.f32 %v7853_v38, 0.0  ;;  %v8254_v35 = vpop.f32.mrb[36].mxu1  ;;  %8977 = vmatprep.mubr.bf16.mxu0 %v15783_v50 }
 0x978   : > { %v15846_v24 = vpack.c.bf16 %v7999_v9, %v7997_v34  ;;  %v8255_v27 = vadd.f32 %v15819_v16, %v8254_v35  ;;  %v8256_v39 = vpop.f32.mrb[37].mxu1 }
 0x979   : > { %v7856_v6 = vpop.f32.mrb[84].mxu0  ;;  %v8257_v54 = vpop.f32.mrb[38].mxu1  ;;  %v15849_v4 = vpack.c.bf16 %v8000_v44, %v7998_v37  ;;  %v8533_v37 = vld [vmem:[%s17100_s12] sm:$0x3] }
 0x97a   : > { %11327 = vst.msk [vmem:[%s15825_s14 + $0x10] sm:$0xff] %vm11324_vm0, %v8255_v27  ;;  %v7857_v2 = vadd.f32 %v7856_v6, %v15465_v28  ;;  %v8258_v19 = vadd.f32 %v15819_v16, %v8257_v54  ;;  %v7858_v20 = vpop.f32.mrb[85].mxu0  ;;  %v8259_v8 = vpop.f32.mrb[39].mxu1  ;;  %v15901_v54 = vrot.slane %v8533_v37, %v14419_v55  ;;  %v13265_v55 = vld [vmem:[%s14241_s6] sm:$0xff]  }
 0x97b   : > { %v7859_v33 = vadd.f32 %v7858_v20, %v15469_v29  ;;  %v7860_v50 = vpop.f32.mrb[86].mxu0  ;;  %8468 = vmatprep.mubr.bf16.mxu1 %v15849_v4 }
 0x97c   : > { %11328 = vst.msk [vmem:[%s15825_s14 + $0x18] sm:$0xff] %vm11324_vm0, %v8258_v19  ;;  %v7861_v63 = vadd.f32 %v7860_v50, %v15465_v28  ;;  %v7862_v43 = vpop.f32.mrb[87].mxu0  ;;  %8469 = vmatmul.mubr.bf16.gmra.mrb[144].mxu1 %v15846_v24  ;;  %v8001_v14 = vmax.f32 %v7857_v2, 0.0 }
 0x97d   : > { %v7863_v62 = vadd.f32 %v7862_v43, %v15469_v29  ;;  %v8002_v56 = vmax.f32 %v7859_v33, 0.0 }
 0x97e   : > { %v8003_v58 = vmax.f32 %v7861_v63, 0.0  ;;  %8978 = vmatmul.mubr.bf16.gmra.mrb[192].mxu0 %v15781_v49 }
 0x97f   : > { %v8004_v59 = vmax.f32 %v7863_v62, 0.0  ;;  %v8262_v18 = vpop.f32.mrb[40].mxu1  ;;  %8987 = vmatprep.mubr.bf16.mxu0 %v15795_v61 }
 0x980   : > { %v15864_v7 = vpack.c.bf16 %v8003_v58, %v8001_v14  ;;  %v8263_v17 = vadd.f32 %v15819_v16, %v8262_v18  ;;  %v8264_v46 = vpop.f32.mrb[41].mxu1 }
 0x981   : > { %v7866_v32 = vpop.f32.mrb[88].mxu0  ;;  %v8265_v13 = vpop.f32.mrb[42].mxu1  ;;  %v15867_v47 = vpack.c.bf16 %v8004_v59, %v8002_v56 }
 0x982   : > { %11329 = vst.msk [vmem:[%s15825_s14 + $0x20] sm:$0xff] %vm11324_vm0, %v8263_v17  ;;  %v7867_v31 = vadd.f32 %v7866_v32, %v15465_v28  ;;  %v8266_v49 = vadd.f32 %v15819_v16, %v8265_v13  ;;  %v7868_v10 = vpop.f32.mrb[89].mxu0  ;;  %v8267_v45 = vpop.f32.mrb[43].mxu1 }
 0x983   : > { %v7869_v5 = vadd.f32 %v7868_v10, %v15469_v29  ;;  %v7870_v61 = vpop.f32.mrb[90].mxu0  ;;  %8476 = vmatprep.mubr.bf16.mxu1 %v15867_v47 }
 0x984   : > { %11330 = vst.msk [vmem:[%s15825_s14 + $0x28] sm:$0xff] %vm11324_vm0, %v8266_v49  ;;  %v7871_v30 = vadd.f32 %v7870_v61, %v15465_v28  ;;  %v7872_v53 = vpop.f32.mrb[91].mxu0  ;;  %8477 = vmatmul.mubr.bf16.gmra.mrb[148].mxu1 %v15864_v7  ;;  %v8005_v22 = vmax.f32 %v7867_v31, 0.0 }
 0x985   : > { %v7873_v23 = vadd.f32 %v7872_v53, %v15469_v29  ;;  %v8006_v52 = vmax.f32 %v7869_v5, 0.0  ;;  %v13266_v5 = vld [vmem:[%s14241_s6 + $0x8] sm:$0xff]  }
 0x986   : > { %v8007_v60 = vmax.f32 %v7871_v30, 0.0  ;;  %8988 = vmatmul.mubr.bf16.gmra.mrb[196].mxu0 %v15793_v3 }
 0x987   : > { %v8008_v11 = vmax.f32 %v7873_v23, 0.0  ;;  %v8270_v48 = vpop.f32.mrb[44].mxu1  ;;  %8997 = vmatprep.mubr.bf16.mxu0 %v15810_v15  ;;  %v13267_v23 = vld [vmem:[%s17101_s17] sm:$0xff]  }
 0x988   : > { %v15882_v21 = vpack.c.bf16 %v8007_v60, %v8005_v22  ;;  %v8271_v42 = vadd.f32 %v15819_v16, %v8270_v48  ;;  %v8272_v0 = vpop.f32.mrb[45].mxu1  ;;  %v13268_v22 = vld [vmem:[%s14241_s6 + $0x10] sm:$0xff]  }
 0x989   : > { %v7876_v51 = vpop.f32.mrb[92].mxu0  ;;  %v8273_v36 = vpop.f32.mrb[46].mxu1  ;;  %v15885_v25 = vpack.c.bf16 %v8008_v11, %v8006_v52 }
 0x98a   : > { %11331 = vst.msk [vmem:[%s15825_s14 + $0x30] sm:$0xff] %vm11324_vm0, %v8271_v42  ;;  %v7877_v3 = vadd.f32 %v7876_v51, %v15465_v28  ;;  %v8274_v12 = vadd.f32 %v15819_v16, %v8273_v36  ;;  %v7878_v38 = vpop.f32.mrb[93].mxu0  ;;  %v8275_v34 = vpop.f32.mrb[47].mxu1  ;;  %v13270_v36 = vld [vmem:[%s17101_s17 + $0x8] sm:$0xff]  }
 0x98b   : > { %v7879_v15 = vadd.f32 %v7878_v38, %v15469_v29  ;;  %v7880_v9 = vpop.f32.mrb[94].mxu0  ;;  %8484 = vmatprep.mubr.bf16.mxu1 %v15885_v25 }
 0x98c   : > { %11332 = vst.msk [vmem:[%s15825_s14 + $0x38] sm:$0xff] %vm11324_vm0, %v8274_v12  ;;  %v7881_v44 = vadd.f32 %v7880_v9, %v15465_v28  ;;  %v7882_v35 = vpop.f32.mrb[95].mxu0  ;;  %8485 = vmatmul.mubr.bf16.gmra.mrb[152].mxu1 %v15882_v21  ;;  %v8009_v39 = vmax.f32 %v7877_v3, 0.0  ;;  %v15905_v28 = vrot.slane %v8533_v37, %v14422_v57 }
 0x98d   : > { %v7883_v27 = vadd.f32 %v7882_v35, %v15469_v29  ;;  %v8010_v2 = vmax.f32 %v7879_v15, 0.0  ;;  %v13269_v35 = vld [vmem:[%s14241_s6 + $0x18] sm:$0xff]  }
 0x98e   : > { %v8011_v6 = vmax.f32 %v7881_v44, 0.0  ;;  %8998 = vmatmul.mubr.bf16.gmra.mrb[200].mxu0 %v15806_v40 }
 0x98f   : > { %v8012_v19 = vmax.f32 %v7883_v27, 0.0  ;;  %v8278_v20 = vpop.f32.mrb[48].mxu1  ;;  %9007 = vmatprep.mubr.bf16.mxu0 %v15831_v26 }
 0x990   : > { %v15907_v8 = vpack.c.bf16 %v8011_v6, %v8009_v39  ;;  %v8279_v29 = vadd.f32 %v15819_v16, %v8278_v20  ;;  %v8280_v33 = vpop.f32.mrb[49].mxu1 }
 0x991   : > { %v8281_v50 = vpop.f32.mrb[50].mxu1  ;;  %v8739_v63 = vpop.f32.mrb[96].mxu0  ;;  %v15910_v40 = vpack.c.bf16 %v8012_v19, %v8010_v2  ;;  %v13273_v2 = vld [vmem:[%s17101_s17 + $0x10] sm:$0xff]  }
 0x992   : > { %11333 = vst.msk [vmem:[%s15825_s14 + $0x40] sm:$0xff] %vm11324_vm0, %v8279_v29  ;;  %v8282_v43 = vadd.f32 %v15819_v16, %v8281_v50  ;;  %v8740_v26 = vadd.f32 %v8739_v63, %v15901_v54  ;;  %v8283_v62 = vpop.f32.mrb[51].mxu1  ;;  %v8741_v57 = vpop.f32.mrb[97].mxu0 }
 0x993   : > { %v8742_v14 = vadd.f32 %v8741_v57, %v15905_v28  ;;  %8492 = vmatprep.mubr.bf16.mxu1 %v15910_v40  ;;  %v8743_v58 = vpop.f32.mrb[98].mxu0 }
 0x994   : > { %11334 = vst.msk [vmem:[%s15825_s14 + $0x48] sm:$0xff] %vm11324_vm0, %v8282_v43  ;;  %v8744_v56 = vadd.f32 %v8743_v58, %v15901_v54  ;;  %8493 = vmatmul.mubr.bf16.gmra.mrb[156].mxu1 %v15907_v8  ;;  %v8745_v59 = vpop.f32.mrb[99].mxu0  ;;  %v9058_v17 = vmax.f32 %v8740_v26, 0.0  ;;  %v13276_v26 = vld [vmem:[%s17101_s17 + $0x18] sm:$0xff]  }
 0x995   : > { %v8746_v18 = vadd.f32 %v8745_v59, %v15905_v28  ;;  %12227 = vmatprep.mubr.bf16.mxu1 %v13265_v55  ;;  %v9059_v32 = vmax.f32 %v8742_v14, 0.0 }
 0x996   : > { %v9060_v46 = vmax.f32 %v8744_v56, 0.0  ;;  %9008 = vmatmul.mubr.bf16.gmra.mrb[204].mxu0 %v15828_v41 }
 0x997   : > { %v9061_v13 = vmax.f32 %v8746_v18, 0.0  ;;  %v8286_v31 = vpop.f32.mrb[52].mxu1  ;;  %9017 = vmatprep.mubr.bf16.mxu0 %v15849_v4 }
 0x998   : > { %v15926_v49 = vpack.c.bf16 %v9060_v46, %v9058_v17  ;;  %v8287_v10 = vadd.f32 %v15819_v16, %v8286_v31  ;;  %v8288_v45 = vpop.f32.mrb[53].mxu1  ;;  %v13272_v46 = vld [vmem:[%s14241_s6 + $0x28] sm:$0xff]  }
 0x999   : > { %v15930_v61 = vpack.c.bf16 %v9061_v13, %v9059_v32  ;;  %v8289_v30 = vpop.f32.mrb[54].mxu1  ;;  %v8749_v53 = vpop.f32.mrb[100].mxu0 }
 0x99a   : > { %11335 = vst.msk [vmem:[%s15825_s14 + $0x50] sm:$0xff] %vm11324_vm0, %v8287_v10  ;;  %v8290_v41 = vadd.f32 %v15819_v16, %v8289_v30  ;;  %v8750_v4 = vadd.f32 %v8749_v53, %v15901_v54  ;;  %v8291_v60 = vpop.f32.mrb[55].mxu1  ;;  %v8751_v52 = vpop.f32.mrb[101].mxu0  ;;  %v13279_v10 = vld [vmem:[%s17101_s17 + $0x20] sm:$0xff]  }
 0x99b   : > { %v8752_v11 = vadd.f32 %v8751_v52, %v15905_v28  ;;  %v8753_v48 = vpop.f32.mrb[102].mxu0  ;;  %v13282_v60 = vld [vmem:[%s17101_s17 + $0x28] sm:$0xff]  }
 0x99c   : > { %11336 = vst.msk [vmem:[%s15825_s14 + $0x58] sm:$0xff] %vm11324_vm0, %v8290_v41  ;;  %v8754_v42 = vadd.f32 %v8753_v48, %v15901_v54  ;;  %v8755_v0 = vpop.f32.mrb[103].mxu0  ;;  %12228 = vmatmul.mubr.bf16.vlgmr.msra.gmra.mrb[160].mxu1 %v13266_v5  ;;  %v9062_v3 = vmax.f32 %v8750_v4, 0.0 }
 0x99d   : > { %v8756_v51 = vadd.f32 %v8755_v0, %v15905_v28  ;;  %9924 = vmatpush1.bf16.msra.mxu1 %v13267_v23  ;;  %12231 = vmatprep.mubr.bf16.mxu1 %v13268_v22  ;;  %v9063_v38 = vmax.f32 %v8752_v11, 0.0 }
 0x99e   : > { %v9064_v12 = vmax.f32 %v8754_v42, 0.0  ;;  %9018 = vmatmul.mubr.bf16.gmra.mrb[208].mxu0 %v15846_v24  ;;  %9925 = vmatprep.subr.bf16.mxu1 %v13790_v1  ;;  %v13271_v24 = vld [vmem:[%s14241_s6 + $0x20] sm:$0xff]  }
 0x99f   : > { %v9065_v34 = vmax.f32 %v8756_v51, 0.0  ;;  %v8294_v15 = vpop.f32.mrb[56].mxu1  ;;  %9027 = vmatprep.mubr.bf16.mxu0 %v15867_v47 }
 0x9a0   : > { %v15947_v9 = vpack.c.bf16 %v9064_v12, %v9062_v3  ;;  %v8295_v37 = vadd.f32 %v15819_v16, %v8294_v15  ;;  %v8296_v44 = vpop.f32.mrb[57].mxu1  ;;  %v13275_v12 = vld [vmem:[%s14241_s6 + $0x38] sm:$0xff]  }
 0x9a1   : > { %v15951_v27 = vpack.c.bf16 %v9065_v34, %v9063_v38  ;;  %v8297_v39 = vpop.f32.mrb[58].mxu1  ;;  %v8759_v6 = vpop.f32.mrb[104].mxu0  ;;  %9926 = vmatpush1.bf16.msra.mxu1 %v13270_v36 }
 0x9a2   : > { %11337 = vst.msk [vmem:[%s15825_s14 + $0x60] sm:$0xff] %vm11324_vm0, %v8295_v37  ;;  %v8298_v19 = vadd.f32 %v15819_v16, %v8297_v39  ;;  %v8760_v47 = vadd.f32 %v8759_v6, %v15901_v54  ;;  %v8299_v20 = vpop.f32.mrb[59].mxu1  ;;  %v8761_v29 = vpop.f32.mrb[105].mxu0  ;;  %9927 = vmatprep.subr.bf16.mxu1 %v13790_v1  ;;  %v13285_v37 = vld [vmem:[%s17101_s17 + $0x30] sm:$0xff]  }
 0x9a3   : > { %v8762_v33 = vadd.f32 %v8761_v29, %v15905_v28  ;;  %v8763_v50 = vpop.f32.mrb[106].mxu0  ;;  %v13288_v20 = vld [vmem:[%s17101_s17 + $0x38] sm:$0xff]  }
 0x9a4   : > { %11338 = vst.msk [vmem:[%s15825_s14 + $0x68] sm:$0xff] %vm11324_vm0, %v8298_v19  ;;  %v8764_v63 = vadd.f32 %v8763_v50, %v15901_v54  ;;  %v8765_v55 = vpop.f32.mrb[107].mxu0  ;;  %12232 = vmatmul.mubr.bf16.gmra.mrb[164].mxu1 %v13269_v35  ;;  %v9066_v62 = vmax.f32 %v8760_v47, 0.0 }
 0x9a5   : > { %v8766_v43 = vadd.f32 %v8765_v55, %v15905_v28  ;;  %12235 = vmatprep.mubr.bf16.mxu1 %v13271_v24  ;;  %9928 = vmatpush1.bf16.msra.mxu1 %v13273_v2  ;;  %v9067_v14 = vmax.f32 %v8762_v33, 0.0 }
 0x9a6   : > { %v9068_v57 = vmax.f32 %v8764_v63, 0.0  ;;  %9028 = vmatmul.mubr.bf16.gmra.mrb[212].mxu0 %v15864_v7  ;;  %9929 = vmatprep.subr.bf16.mxu1 %v13790_v1  ;;  %v13274_v7 = vld [vmem:[%s14241_s6 + $0x30] sm:$0xff]  }
 0x9a7   : > { %v9069_v58 = vmax.f32 %v8766_v43, 0.0  ;;  %v8302_v56 = vpop.f32.mrb[60].mxu1  ;;  %9037 = vmatprep.mubr.bf16.mxu0 %v15885_v25 }
 0x9a8   : > { %v15969_v59 = vpack.c.bf16 %v9068_v57, %v9066_v62  ;;  %v8303_v18 = vadd.f32 %v15819_v16, %v8302_v56  ;;  %v8304_v17 = vpop.f32.mrb[61].mxu1  ;;  %v13278_v57 = vld [vmem:[%s14241_s6 + $0x48] sm:$0xff]  }
 0x9a9   : > { %v15973_v32 = vpack.c.bf16 %v9069_v58, %v9067_v14  ;;  %v8305_v13 = vpop.f32.mrb[62].mxu1  ;;  %v8769_v31 = vpop.f32.mrb[108].mxu0  ;;  %9930 = vmatpush1.bf16.msra.mxu1 %v13276_v26  ;;  %v13291_v17 = vld [vmem:[%s17101_s17 + $0x40] sm:$0xff]  }
 0x9aa   : > { %11339 = vst.msk [vmem:[%s15825_s14 + $0x70] sm:$0xff] %vm11324_vm0, %v8303_v18  ;;  %v8306_v45 = vadd.f32 %v15819_v16, %v8305_v13  ;;  %v8770_v25 = vadd.f32 %v8769_v31, %v15901_v54  ;;  %v8307_v5 = vpop.f32.mrb[63].mxu1  ;;  %v8771_v30 = vpop.f32.mrb[109].mxu0  ;;  %9931 = vmatprep.subr.bf16.mxu1 %v13790_v1  ;;  %v13280_v18 = vld [vmem:[%s14241_s6 + $0x50] sm:$0xff]  }
 0x9ab   : > { %v8772_v53 = vadd.f32 %v8771_v30, %v15905_v28  ;;  %v8773_v23 = vpop.f32.mrb[110].mxu0  ;;  %v13294_v30 = vld [vmem:[%s17101_s17 + $0x48] sm:$0xff]  }
 0x9ac   : > { %11340 = vst.msk [vmem:[%s15825_s14 + $0x78] sm:$0xff] %vm11324_vm0, %v8306_v45  ;;  %v8774_v22 = vadd.f32 %v8773_v23, %v15901_v54  ;;  %v8775_v41 = vpop.f32.mrb[111].mxu0  ;;  %12236 = vmatmul.mubr.bf16.gmra.mrb[168].mxu1 %v13272_v46  ;;  %v9070_v52 = vmax.f32 %v8770_v25, 0.0 }
 0x9ad   : > { %v8776_v4 = vadd.f32 %v8775_v41, %v15905_v28  ;;  %12239 = vmatprep.mubr.bf16.mxu1 %v13274_v7  ;;  %9932 = vmatpush1.bf16.msra.mxu1 %v13279_v10  ;;  %v9071_v48 = vmax.f32 %v8772_v53, 0.0 }
 0x9ae   : > { %v9072_v11 = vmax.f32 %v8774_v22, 0.0  ;;  %9038 = vmatmul.mubr.bf16.gmra.mrb[216].mxu0 %v15882_v21  ;;  %9933 = vmatprep.subr.bf16.mxu1 %v13790_v1  ;;  %v13277_v21 = vld [vmem:[%s14241_s6 + $0x40] sm:$0xff]  }
 0x9af   : > { %v9073_v42 = vmax.f32 %v8776_v4, 0.0  ;;  %v8310_v0 = vpop.f32.mrb[64].mxu1  ;;  %9047 = vmatprep.mubr.bf16.mxu0 %v15910_v40 }
 0x9b0   : > { %v15991_v51 = vpack.c.bf16 %v9072_v11, %v9070_v52  ;;  %v8311_v36 = vadd.f32 %v15819_v16, %v8310_v0  ;;  %v8312_v3 = vpop.f32.mrb[65].mxu1 }
 0x9b1   : > { %v15995_v38 = vpack.c.bf16 %v9073_v42, %v9071_v48  ;;  %v8313_v34 = vpop.f32.mrb[66].mxu1  ;;  %v8779_v15 = vpop.f32.mrb[112].mxu0  ;;  %9934 = vmatpush1.bf16.msra.mxu1 %v13282_v60  ;;  %v13281_v48 = vld [vmem:[%s14241_s6 + $0x58] sm:$0xff]   ;;  %v13283_v3 = vld [vmem:[%s14241_s6 + $0x60] sm:$0xff]  }
 0x9b2   : > { %11341 = vst.msk [vmem:[%s15825_s14 + $0x80] sm:$0xff] %vm11324_vm0, %v8311_v36  ;;  %v8314_v44 = vadd.f32 %v15819_v16, %v8313_v34  ;;  %v8780_v40 = vadd.f32 %v8779_v15, %v15901_v54  ;;  %v8315_v35 = vpop.f32.mrb[67].mxu1  ;;  %v8781_v39 = vpop.f32.mrb[113].mxu0  ;;  %9935 = vmatprep.subr.bf16.mxu1 %v13790_v1 }
 0x9b3   : > { %v8782_v6 = vadd.f32 %v8781_v39, %v15905_v28  ;;  %v8783_v24 = vpop.f32.mrb[114].mxu0 }
 0x9b4   : > { %11342 = vst.msk [vmem:[%s15825_s14 + $0x88] sm:$0xff] %vm11324_vm0, %v8314_v44  ;;  %v8784_v2 = vadd.f32 %v8783_v24, %v15901_v54  ;;  %v8785_v19 = vpop.f32.mrb[115].mxu0  ;;  %12240 = vmatmul.mubr.bf16.gmra.mrb[172].mxu1 %v13275_v12  ;;  %v9074_v29 = vmax.f32 %v8780_v40, 0.0  ;;  %v13297_v12 = vld [vmem:[%s17101_s17 + $0x50] sm:$0xff]   ;;  %v13300_v24 = vld [vmem:[%s17101_s17 + $0x58] sm:$0xff]  }
 0x9b5   : > { %v8786_v47 = vadd.f32 %v8785_v19, %v15905_v28  ;;  %12243 = vmatprep.mubr.bf16.mxu1 %v13277_v21  ;;  %9936 = vmatpush1.bf16.msra.mxu1 %v13285_v37  ;;  %v9075_v50 = vmax.f32 %v8782_v6, 0.0 }
 0x9b6   : > { %v9076_v33 = vmax.f32 %v8784_v2, 0.0  ;;  %9048 = vmatmul.mubr.bf16.gmra.mrb[220].mxu0 %v15907_v8  ;;  %9937 = vmatprep.subr.bf16.mxu1 %v13790_v1 }
 0x9b7   : > { %v9077_v63 = vmax.f32 %v8786_v47, 0.0  ;;  %v8318_v55 = vpop.f32.mrb[68].mxu1 }
 0x9b8   : > { %v16012_v43 = vpack.c.bf16 %v9076_v33, %v9074_v29  ;;  %v8319_v26 = vadd.f32 %v15819_v16, %v8318_v55  ;;  %v8320_v62 = vpop.f32.mrb[69].mxu1  ;;  %v13284_v55 = vld [vmem:[%s14241_s6 + $0x68] sm:$0xff]  }
 0x9b9   : > { %v16016_v14 = vpack.c.bf16 %v9077_v63, %v9075_v50  ;;  %v8321_v58 = vpop.f32.mrb[70].mxu1  ;;  %v8789_v56 = vpop.f32.mrb[116].mxu0  ;;  %9938 = vmatpush1.bf16.msra.mxu1 %v13288_v20 }
 0x9ba   : > { %11343 = vst.msk [vmem:[%s15825_s14 + $0x90] sm:$0xff] %vm11324_vm0, %v8319_v26  ;;  %v8322_v8 = vadd.f32 %v15819_v16, %v8321_v58  ;;  %v8790_v46 = vadd.f32 %v8789_v56, %v15901_v54  ;;  %v8323_v13 = vpop.f32.mrb[71].mxu1  ;;  %v8791_v31 = vpop.f32.mrb[117].mxu0  ;;  %9939 = vmatprep.subr.bf16.mxu1 %v13790_v1  ;;  %v13286_v58 = vld [vmem:[%s14241_s6 + $0x70] sm:$0xff]   ;;  %v13303_v56 = vld [vmem:[%s17101_s17 + $0x60] sm:$0xff]  }
 0x9bb   : > { %v8792_v7 = vadd.f32 %v8791_v31, %v15905_v28  ;;  %v8793_v10 = vpop.f32.mrb[118].mxu0 }
 0x9bc   : > { %11344 = vst.msk [vmem:[%s15825_s14 + $0x98] sm:$0xff] %vm11324_vm0, %v8322_v8  ;;  %v8794_v45 = vadd.f32 %v8793_v10, %v15901_v54  ;;  %v8795_v25 = vpop.f32.mrb[119].mxu0  ;;  %12244 = vmatmul.mubr.bf16.gmra.mrb[176].mxu1 %v13278_v57  ;;  %v9078_v53 = vmax.f32 %v8790_v46, 0.0 }
 0x9bd   : > { %v8796_v5 = vadd.f32 %v8795_v25, %v15905_v28  ;;  %12247 = vmatprep.mubr.bf16.mxu1 %v13280_v18  ;;  %9940 = vmatpush1.bf16.msra.mxu1 %v13291_v17  ;;  %v9079_v22 = vmax.f32 %v8792_v7, 0.0  ;;  %v13306_v25 = vld [vmem:[%s17101_s17 + $0x68] sm:$0xff]  }
 0x9be   : > { %v9080_v23 = vmax.f32 %v8794_v45, 0.0  ;;  %9941 = vmatprep.subr.bf16.mxu1 %v13790_v1 }
 0x9bf   : > { %v9081_v41 = vmax.f32 %v8796_v5, 0.0  ;;  %v8326_v4 = vpop.f32.mrb[72].mxu1 }
 0x9c0   : > { %v16032_v60 = vpack.c.bf16 %v9080_v23, %v9078_v53  ;;  %v8327_v52 = vadd.f32 %v15819_v16, %v8326_v4  ;;  %v8328_v11 = vpop.f32.mrb[73].mxu1 }
 0x9c1   : > { %v16036_v42 = vpack.c.bf16 %v9081_v41, %v9079_v22  ;;  %v8329_v0 = vpop.f32.mrb[74].mxu1  ;;  %v8799_v36 = vpop.f32.mrb[120].mxu0  ;;  %9942 = vmatpush1.bf16.msra.mxu1 %v13294_v30  ;;  %v13287_v11 = vld [vmem:[%s14241_s6 + $0x78] sm:$0xff]  }
 0x9c2   : > { %11345 = vst.msk [vmem:[%s15825_s14 + $0xa0] sm:$0xff] %vm11324_vm0, %v8327_v52  ;;  %v8330_v34 = vadd.f32 %v15819_v16, %v8329_v0  ;;  %v8800_v15 = vadd.f32 %v8799_v36, %v15901_v54  ;;  %v8331_v21 = vpop.f32.mrb[75].mxu1  ;;  %v8801_v37 = vpop.f32.mrb[121].mxu0  ;;  %9943 = vmatprep.subr.bf16.mxu1 %v13790_v1 }
 0x9c3   : > { %v8802_v44 = vadd.f32 %v8801_v37, %v15905_v28  ;;  %v8803_v40 = vpop.f32.mrb[122].mxu0 }
 0x9c4   : > { %11346 = vst.msk [vmem:[%s15825_s14 + $0xa8] sm:$0xff] %vm11324_vm0, %v8330_v34  ;;  %v8804_v35 = vadd.f32 %v8803_v40, %v15901_v54  ;;  %v8805_v39 = vpop.f32.mrb[123].mxu0  ;;  %12248 = vmatmul.mubr.bf16.gmra.mrb[180].mxu1 %v13281_v48  ;;  %v9082_v2 = vmax.f32 %v8800_v15, 0.0 }
 0x9c5   : > { %v8806_v6 = vadd.f32 %v8805_v39, %v15905_v28  ;;  %12251 = vmatprep.mubr.bf16.mxu1 %v13283_v3  ;;  %9944 = vmatpush1.bf16.msra.mxu1 %v13297_v12  ;;  %v9083_v47 = vmax.f32 %v8802_v44, 0.0  ;;  %v13289_v3 = vld [vmem:[%s14241_s6 + $0x80] sm:$0xff]   ;;  %v13309_v12 = vld [vmem:[%s17101_s17 + $0x70] sm:$0xff]  }
 0x9c6   : > { %v9084_v19 = vmax.f32 %v8804_v35, 0.0  ;;  %9945 = vmatprep.subr.bf16.mxu1 %v13790_v1 }
 0x9c7   : > { %v9085_v20 = vmax.f32 %v8806_v6, 0.0  ;;  %v8334_v29 = vpop.f32.mrb[76].mxu1 }
 0x9c8   : > { %v16052_v33 = vpack.c.bf16 %v9084_v19, %v9082_v2  ;;  %v8335_v50 = vadd.f32 %v15819_v16, %v8334_v29  ;;  %v8336_v63 = vpop.f32.mrb[77].mxu1 }
 0x9c9   : > { %v16056_v26 = vpack.c.bf16 %v9085_v20, %v9083_v47  ;;  %v8337_v62 = vpop.f32.mrb[78].mxu1  ;;  %v8809_v57 = vpop.f32.mrb[124].mxu0  ;;  %9946 = vmatpush1.bf16.msra.mxu1 %v13300_v24  ;;  %v13312_v24 = vld [vmem:[%s17101_s17 + $0x78] sm:$0xff]  }
 0x9ca   : > { %11347 = vst.msk [vmem:[%s15825_s14 + $0xb0] sm:$0xff] %vm11324_vm0, %v8335_v50  ;;  %v8338_v18 = vadd.f32 %v15819_v16, %v8337_v62  ;;  %v8810_v17 = vadd.f32 %v8809_v57, %v15901_v54  ;;  %v8339_v8 = vpop.f32.mrb[79].mxu1  ;;  %v8811_v46 = vpop.f32.mrb[125].mxu0  ;;  %9947 = vmatprep.subr.bf16.mxu1 %v13790_v1  ;;  %v13290_v62 = vld [vmem:[%s14241_s6 + $0x88] sm:$0xff]  }
 0x9cb   : > { %v8812_v13 = vadd.f32 %v8811_v46, %v15905_v28  ;;  %v8813_v31 = vpop.f32.mrb[126].mxu0 }
 0x9cc   : > { %11348 = vst.msk [vmem:[%s15825_s14 + $0xb8] sm:$0xff] %vm11324_vm0, %v8338_v18  ;;  %v8814_v7 = vadd.f32 %v8813_v31, %v15901_v54  ;;  %v8815_v10 = vpop.f32.mrb[127].mxu0  ;;  %12252 = vmatmul.mubr.bf16.gmra.mrb[184].mxu1 %v13284_v55  ;;  %v9086_v5 = vmax.f32 %v8810_v17, 0.0  ;;  %v13292_v18 = vld [vmem:[%s14241_s6 + $0x90] sm:$0xff]  }
 0x9cd   : > { %v8816_v45 = vadd.f32 %v8815_v10, %v15905_v28  ;;  %12255 = vmatprep.mubr.bf16.mxu1 %v13286_v58  ;;  %9948 = vmatpush1.bf16.msra.mxu1 %v13303_v56  ;;  %v9087_v53 = vmax.f32 %v8812_v13, 0.0 }
 0x9ce   : > { %v9088_v30 = vmax.f32 %v8814_v7, 0.0  ;;  %9949 = vmatprep.subr.bf16.mxu1 %v13790_v1 }
 0x9cf   : > { %v9089_v23 = vmax.f32 %v8816_v45, 0.0  ;;  %v8342_v22 = vpop.f32.mrb[80].mxu1 }
 0x9d0   : > { %v16072_v41 = vpack.c.bf16 %v9088_v30, %v9086_v5  ;;  %v8343_v4 = vadd.f32 %v15819_v16, %v8342_v22  ;;  %v8344_v52 = vpop.f32.mrb[81].mxu1 }
 0x9d1   : > { %v16076_v48 = vpack.c.bf16 %v9089_v23, %v9087_v53  ;;  %v8345_v0 = vpop.f32.mrb[82].mxu1  ;;  %v8819_v36 = vpop.f32.mrb[128].mxu0  ;;  %9950 = vmatpush1.bf16.msra.mxu1 %v13306_v25 }
 0x9d2   : > { %11349 = vst.msk [vmem:[%s15825_s14 + $0xc0] sm:$0xff] %vm11324_vm0, %v8343_v4  ;;  %v8346_v34 = vadd.f32 %v15819_v16, %v8345_v0  ;;  %v8820_v15 = vadd.f32 %v8819_v36, %v15901_v54  ;;  %v8347_v21 = vpop.f32.mrb[83].mxu1  ;;  %v8821_v37 = vpop.f32.mrb[129].mxu0  ;;  %9951 = vmatprep.subr.bf16.mxu1 %v13790_v1 }
 0x9d3   : > { %v8822_v44 = vadd.f32 %v8821_v37, %v15905_v28  ;;  %v8823_v40 = vpop.f32.mrb[130].mxu0 }
 0x9d4   : > { %11350 = vst.msk [vmem:[%s15825_s14 + $0xc8] sm:$0xff] %vm11324_vm0, %v8346_v34  ;;  %v8824_v35 = vadd.f32 %v8823_v40, %v15901_v54  ;;  %v8825_v39 = vpop.f32.mrb[131].mxu0  ;;  %12256 = vmatmul.mubr.bf16.gmra.mrb[188].mxu1 %v13287_v11  ;;  %v9090_v2 = vmax.f32 %v8820_v15, 0.0  ;;  %v13293_v11 = vld [vmem:[%s14241_s6 + $0x98] sm:$0xff]  }
 0x9d5   : > { %v8826_v6 = vadd.f32 %v8825_v39, %v15905_v28  ;;  %12259 = vmatprep.mubr.bf16.mxu1 %v13289_v3  ;;  %9952 = vmatpush1.bf16.msra.mxu1 %v13309_v12  ;;  %v9091_v47 = vmax.f32 %v8822_v44, 0.0  ;;  %v13295_v12 = vld [vmem:[%s14241_s6 + $0xa0] sm:$0xff]  }
 0x9d6   : > { %v9092_v19 = vmax.f32 %v8824_v35, 0.0  ;;  %9953 = vmatprep.subr.bf16.mxu1 %v13790_v1 }
 0x9d7   : > { %v9093_v20 = vmax.f32 %v8826_v6, 0.0  ;;  %v8350_v29 = vpop.f32.mrb[84].mxu1 }
 0x9d8   : > { %v16092_v50 = vpack.c.bf16 %v9092_v19, %v9090_v2  ;;  %v8351_v63 = vadd.f32 %v15819_v16, %v8350_v29  ;;  %v8352_v55 = vpop.f32.mrb[85].mxu1 }
 0x9d9   : > { %v16096_v57 = vpack.c.bf16 %v9093_v20, %v9091_v47  ;;  %v8353_v58 = vpop.f32.mrb[86].mxu1  ;;  %v8829_v56 = vpop.f32.mrb[132].mxu0  ;;  %9954 = vmatpush1.bf16.msra.mxu1 %v13312_v24 }
 0x9da   : > { %11351 = vst.msk [vmem:[%s15825_s14 + $0xd0] sm:$0xff] %vm11324_vm0, %v8351_v63  ;;  %v8354_v1 = vadd.f32 %v15819_v16, %v8353_v58  ;;  %v8830_v17 = vadd.f32 %v8829_v56, %v15901_v54  ;;  %v8355_v8 = vpop.f32.mrb[87].mxu1  ;;  %v8831_v46 = vpop.f32.mrb[133].mxu0 }
 0x9db   : > { %v8832_v13 = vadd.f32 %v8831_v46, %v15905_v28  ;;  %v8833_v31 = vpop.f32.mrb[134].mxu0 }
 0x9dc   : > { %11352 = vst.msk [vmem:[%s15825_s14 + $0xd8] sm:$0xff] %vm11324_vm0, %v8354_v1  ;;  %v8834_v7 = vadd.f32 %v8833_v31, %v15901_v54  ;;  %v8835_v10 = vpop.f32.mrb[135].mxu0  ;;  %12260 = vmatmul.mubr.bf16.gmra.mrb[192].mxu1 %v13290_v62  ;;  %v9094_v25 = vmax.f32 %v8830_v17, 0.0  ;;  %v13296_v62 = vld [vmem:[%s14241_s6 + $0xa8] sm:$0xff]   ;;  %v13298_v1 = vld [vmem:[%s14241_s6 + $0xb0] sm:$0xff]  }
 0x9dd   : > { %v8836_v45 = vadd.f32 %v8835_v10, %v15905_v28  ;;  %12263 = vmatprep.mubr.bf16.mxu1 %v13292_v18  ;;  %v9095_v30 = vmax.f32 %v8832_v13, 0.0 }
 0x9de   : > { %v9096_v5 = vmax.f32 %v8834_v7, 0.0 }
 0x9df   : > { %v9097_v53 = vmax.f32 %v8836_v45, 0.0  ;;  %v8358_v23 = vpop.f32.mrb[88].mxu1 }
 0x9e0   : > { %v16108_v22 = vpack.c.bf16 %v9096_v5, %v9094_v25  ;;  %v8359_v4 = vadd.f32 %v15819_v16, %v8358_v23  ;;  %v8360_v52 = vpop.f32.mrb[89].mxu1 }
 0x9e1   : > { %v16112_v0 = vpack.c.bf16 %v9097_v53, %v9095_v30  ;;  %v8361_v36 = vpop.f32.mrb[90].mxu1  ;;  %v8839_v3 = vpop.f32.mrb[136].mxu0 }
 0x9e2   : > { %11353 = vst.msk [vmem:[%s15825_s14 + $0xe0] sm:$0xff] %vm11324_vm0, %v8359_v4  ;;  %v8362_v34 = vadd.f32 %v15819_v16, %v8361_v36  ;;  %v8840_v15 = vadd.f32 %v8839_v3, %v15901_v54  ;;  %v8363_v21 = vpop.f32.mrb[91].mxu1  ;;  %v8841_v37 = vpop.f32.mrb[137].mxu0  ;;  %v13299_v3 = vld [vmem:[%s14241_s6 + $0xb8] sm:$0xff]  }
 0x9e3   : > { %v8842_v44 = vadd.f32 %v8841_v37, %v15905_v28  ;;  %v8843_v40 = vpop.f32.mrb[138].mxu0  ;;  %v13301_v21 = vld [vmem:[%s14241_s6 + $0xc0] sm:$0xff]  }
 0x9e4   : > { %11354 = vst.msk [vmem:[%s15825_s14 + $0xe8] sm:$0xff] %vm11324_vm0, %v8362_v34  ;;  %v8844_v35 = vadd.f32 %v8843_v40, %v15901_v54  ;;  %v8845_v39 = vpop.f32.mrb[139].mxu0  ;;  %12264 = vmatmul.mubr.bf16.gmra.mrb[196].mxu1 %v13293_v11  ;;  %v9098_v24 = vmax.f32 %v8840_v15, 0.0 }
 0x9e5   : > { %v8846_v6 = vadd.f32 %v8845_v39, %v15905_v28  ;;  %12267 = vmatprep.mubr.bf16.mxu1 %v13295_v12  ;;  %v9099_v19 = vmax.f32 %v8842_v44, 0.0 }
 0x9e6   : > { %v9100_v2 = vmax.f32 %v8844_v35, 0.0 }
 0x9e7   : > { %v9101_v47 = vmax.f32 %v8846_v6, 0.0  ;;  %v8366_v20 = vpop.f32.mrb[92].mxu1 }
 0x9e8   : > { %v16124_v29 = vpack.c.bf16 %v9100_v2, %v9098_v24  ;;  %v8367_v63 = vadd.f32 %v15819_v16, %v8366_v20  ;;  %v8368_v55 = vpop.f32.mrb[93].mxu1 }
 0x9e9   : > { %v16128_v58 = vpack.c.bf16 %v9101_v47, %v9099_v19  ;;  %v8369_v56 = vpop.f32.mrb[94].mxu1  ;;  %v8849_v18 = vpop.f32.mrb[140].mxu0 }
 0x9ea   : > { %11355 = vst.msk [vmem:[%s15825_s14 + $0xf0] sm:$0xff] %vm11324_vm0, %v8367_v63  ;;  %v8370_v17 = vadd.f32 %v15819_v16, %v8369_v56  ;;  %v8850_v8 = vadd.f32 %v8849_v18, %v15901_v54  ;;  %v8371_v46 = vpop.f32.mrb[95].mxu1  ;;  %v8851_v13 = vpop.f32.mrb[141].mxu0  ;;  %v16158_v56 = vld [vmem:[#allocation2] ss:$0 sm:$0xff] }
 0x9eb   : > { %v8852_v31 = vadd.f32 %v8851_v13, %v15905_v28  ;;  %v8853_v7 = vpop.f32.mrb[142].mxu0 }
 0x9ec   : > { %11356 = vst.msk [vmem:[%s15825_s14 + $0xf8] sm:$0xff] %vm11324_vm0, %v8370_v17  ;;  %v8854_v10 = vadd.f32 %v8853_v7, %v15901_v54  ;;  %v8855_v45 = vpop.f32.mrb[143].mxu0  ;;  %12268 = vmatmul.mubr.bf16.gmra.mrb[200].mxu1 %v13296_v62  ;;  %v9102_v5 = vmax.f32 %v8850_v8, 0.0  ;;  %v13302_v17 = vld [vmem:[%s14241_s6 + $0xc8] sm:$0xff]  }
 0x9ed   : > { %v8856_v25 = vadd.f32 %v8855_v45, %v15905_v28  ;;  %12271 = vmatprep.mubr.bf16.mxu1 %v13298_v1  ;;  %v9103_v53 = vmax.f32 %v8852_v31, 0.0  ;;  %v13304_v31 = vld [vmem:[%s14241_s6 + $0xd0] sm:$0xff]  }
 0x9ee   : > { %v9104_v30 = vmax.f32 %v8854_v10, 0.0 }
 0x9ef   : > { %v9105_v23 = vmax.f32 %v8856_v25, 0.0  ;;  %v8374_v4 = vpop.f32.mrb[96].mxu1 }
 0x9f0   : > { %v16140_v52 = vpack.c.bf16 %v9104_v30, %v9102_v5  ;;  %v8375_v11 = vadd.f32 %v15819_v16, %v8374_v4  ;;  %v8376_v36 = vpop.f32.mrb[97].mxu1  ;;  %v13313_v4 = vld [vmem:[#allocation20] sm:$0xff]  }
 0x9f1   : > { %v16144_v12 = vpack.c.bf16 %v9105_v23, %v9103_v53  ;;  %v8377_v34 = vpop.f32.mrb[98].mxu1  ;;  %v8859_v15 = vpop.f32.mrb[144].mxu0  ;;  %12291 = vmatprep.subr.bf16.mxu0 %v13313_v4 }
 0x9f2   : > { %11357 = vst.msk [vmem:[%s15825_s14 + $0x100] sm:$0xff] %vm11324_vm0, %v8375_v11  ;;  %v8378_v37 = vadd.f32 %v15819_v16, %v8377_v34  ;;  %v8860_v44 = vadd.f32 %v8859_v15, %v15901_v54  ;;  %v8379_v40 = vpop.f32.mrb[99].mxu1  ;;  %v8861_v35 = vpop.f32.mrb[145].mxu0  ;;  %12292 = vmatpush3.bf16.msra.mxu0 %v13313_v4 }
 0x9f3   : > { %v8862_v39 = vadd.f32 %v8861_v35, %v15905_v28  ;;  %v8863_v6 = vpop.f32.mrb[146].mxu0  ;;  %v13305_v35 = vld [vmem:[%s14241_s6 + $0xd8] sm:$0xff]  }
 0x9f4   : > { %11358 = vst.msk [vmem:[%s15825_s14 + $0x108] sm:$0xff] %vm11324_vm0, %v8378_v37  ;;  %v8864_v24 = vadd.f32 %v8863_v6, %v15901_v54  ;;  %v8865_v2 = vpop.f32.mrb[147].mxu0  ;;  %12272 = vmatmul.mubr.bf16.gmra.mrb[204].mxu1 %v13299_v3  ;;  %v9106_v16 = vmax.f32 %v8860_v44, 0.0 }
 0x9f5   : > { %v8866_v19 = vadd.f32 %v8865_v2, %v15905_v28  ;;  %12275 = vmatprep.mubr.bf16.mxu1 %v13301_v21  ;;  %v9107_v20 = vmax.f32 %v8862_v39, 0.0  ;;  %v13307_v2 = vld [vmem:[%s14241_s6 + $0xe0] sm:$0xff]  }
 0x9f6   : > { %v9108_v47 = vmax.f32 %v8864_v24, 0.0 }
 0x9f7   : > { %v9109_v63 = vmax.f32 %v8866_v19, 0.0  ;;  %v8382_v55 = vpop.f32.mrb[100].mxu1 }
 0x9f8   : > { %v16156_v62 = vpack.c.bf16 %v9108_v47, %v9106_v16  ;;  %v8383_v18 = vadd.f32 %v16158_v56, %v8382_v55  ;;  %v8384_v1 = vpop.f32.mrb[101].mxu1 }
 0x9f9   : > { %v16162_v8 = vpack.c.bf16 %v9109_v63, %v9107_v20  ;;  %v8385_v46 = vpop.f32.mrb[102].mxu1  ;;  %v8869_v13 = vpop.f32.mrb[148].mxu0 }
 0x9fa   : > { %11359 = vst.msk [vmem:[%s15825_s14 + $0x110] sm:$0xff] %vm11324_vm0, %v8383_v18  ;;  %v8386_v7 = vadd.f32 %v16158_v56, %v8385_v46  ;;  %v8870_v10 = vadd.f32 %v8869_v13, %v15901_v54  ;;  %v8387_v45 = vpop.f32.mrb[103].mxu1  ;;  %v8871_v25 = vpop.f32.mrb[149].mxu0 }
 0x9fb   : > { %v8872_v5 = vadd.f32 %v8871_v25, %v15905_v28  ;;  %v8873_v30 = vpop.f32.mrb[150].mxu0 }
 0x9fc   : > { %11360 = vst.msk [vmem:[%s15825_s14 + $0x118] sm:$0xff] %vm11324_vm0, %v8386_v7  ;;  %v8874_v53 = vadd.f32 %v8873_v30, %v15901_v54  ;;  %v8875_v23 = vpop.f32.mrb[151].mxu0  ;;  %12276 = vmatmul.mubr.bf16.gmra.mrb[208].mxu1 %v13302_v17  ;;  %v9110_v36 = vmax.f32 %v8870_v10, 0.0  ;;  %v13308_v30 = vld [vmem:[%s14241_s6 + $0xe8] sm:$0xff]  }
 0x9fd   : > { %v8876_v11 = vadd.f32 %v8875_v23, %v15905_v28  ;;  %12279 = vmatprep.mubr.bf16.mxu1 %v13304_v31  ;;  %v9111_v34 = vmax.f32 %v8872_v5, 0.0 }
 0x9fe   : > { %v9112_v3 = vmax.f32 %v8874_v53, 0.0 }
 0x9ff   : > { %v9113_v15 = vmax.f32 %v8876_v11, 0.0  ;;  %v8390_v21 = vpop.f32.mrb[104].mxu1  ;;  %v13310_v11 = vld [vmem:[%s14241_s6 + $0xf0] sm:$0xff]  }
 0xa00   : > { %v16174_v37 = vpack.c.bf16 %v9112_v3, %v9110_v36  ;;  %v8391_v44 = vadd.f32 %v16158_v56, %v8390_v21  ;;  %v8392_v40 = vpop.f32.mrb[105].mxu1 }
 0xa01   : > { %v16178_v39 = vpack.c.bf16 %v9113_v15, %v9111_v34  ;;  %v8393_v6 = vpop.f32.mrb[106].mxu1  ;;  %v8879_v24 = vpop.f32.mrb[152].mxu0 }
 0xa02   : > { %11361 = vst.msk [vmem:[%s15825_s14 + $0x120] sm:$0xff] %vm11324_vm0, %v8391_v44  ;;  %v8394_v19 = vadd.f32 %v16158_v56, %v8393_v6  ;;  %v8880_v16 = vadd.f32 %v8879_v24, %v15901_v54  ;;  %v8395_v47 = vpop.f32.mrb[107].mxu1  ;;  %v8881_v20 = vpop.f32.mrb[153].mxu0 }
 0xa03   : > { %v8882_v63 = vadd.f32 %v8881_v20, %v15905_v28  ;;  %v8883_v55 = vpop.f32.mrb[154].mxu0 }
 0xa04   : > { %11362 = vst.msk [vmem:[%s15825_s14 + $0x128] sm:$0xff] %vm11324_vm0, %v8394_v19  ;;  %v8884_v18 = vadd.f32 %v8883_v55, %v15901_v54  ;;  %v8885_v1 = vpop.f32.mrb[155].mxu0  ;;  %12280 = vmatmul.mubr.bf16.gmra.mrb[212].mxu1 %v13305_v35  ;;  %v9114_v46 = vmax.f32 %v8880_v16, 0.0 }
 0xa05   : > { %v8886_v17 = vadd.f32 %v8885_v1, %v15905_v28  ;;  %12283 = vmatprep.mubr.bf16.mxu1 %v13307_v2  ;;  %v9115_v31 = vmax.f32 %v8882_v63, 0.0 }
 0xa06   : > { %v9116_v13 = vmax.f32 %v8884_v18, 0.0  ;;  %v13311_v18 = vld [vmem:[%s14241_s6 + $0xf8] sm:$0xff]   ;;  %s16816_s6 = scalar_lea.vmem %s17150_s10, %s11672_s22 }
 0xa07   : > { %v9117_v7 = vmax.f32 %v8886_v17, 0.0  ;;  %v8398_v10 = vpop.f32.mrb[108].mxu1 }
 0xa08   : > { %v16190_v45 = vpack.c.bf16 %v9116_v13, %v9114_v46  ;;  %v8399_v25 = vadd.f32 %v16158_v56, %v8398_v10  ;;  %v8400_v5 = vpop.f32.mrb[109].mxu1 }
 0xa09   : > { %v16194_v53 = vpack.c.bf16 %v9117_v7, %v9115_v31  ;;  %v8401_v23 = vpop.f32.mrb[110].mxu1  ;;  %v8889_v4 = vpop.f32.mrb[156].mxu0 }
 0xa0a   : > { %11363 = vst.msk [vmem:[%s15825_s14 + $0x130] sm:$0xff] %vm11324_vm0, %v8399_v25  ;;  %v8402_v36 = vadd.f32 %v16158_v56, %v8401_v23  ;;  %v8890_v3 = vadd.f32 %v8889_v4, %v15901_v54  ;;  %v8403_v34 = vpop.f32.mrb[111].mxu1  ;;  %v8891_v15 = vpop.f32.mrb[157].mxu0 }
 0xa0b   : > { %v8892_v21 = vadd.f32 %v8891_v15, %v15905_v28  ;;  %v8893_v44 = vpop.f32.mrb[158].mxu0 }
 0xa0c   : > { %11364 = vst.msk [vmem:[%s15825_s14 + $0x138] sm:$0xff] %vm11324_vm0, %v8402_v36  ;;  %v8894_v40 = vadd.f32 %v8893_v44, %v15901_v54  ;;  %v8895_v35 = vpop.f32.mrb[159].mxu0  ;;  %12284 = vmatmul.mubr.bf16.gmra.mrb[216].mxu1 %v13308_v30  ;;  %v9118_v24 = vmax.f32 %v8890_v3, 0.0 }
 0xa0d   : > { %v8896_v6 = vadd.f32 %v8895_v35, %v15905_v28  ;;  %12287 = vmatprep.mubr.bf16.mxu1 %v13310_v11  ;;  %v9119_v19 = vmax.f32 %v8892_v21, 0.0 }
 0xa0e   : > { %v9120_v2 = vmax.f32 %v8894_v40, 0.0 }
 0xa0f   : > { %v9121_v16 = vmax.f32 %v8896_v6, 0.0  ;;  %v8406_v47 = vpop.f32.mrb[112].mxu1 }
 0xa10   : > { %v16206_v20 = vpack.c.bf16 %v9120_v2, %v9118_v24  ;;  %v8407_v63 = vadd.f32 %v16158_v56, %v8406_v47  ;;  %v8408_v55 = vpop.f32.mrb[113].mxu1  ;;  %v13314_v2 = vld [vmem:[#allocation20 + $0x8] sm:$0xff]  }
 0xa11   : > { %v16210_v1 = vpack.c.bf16 %v9121_v16, %v9119_v19  ;;  %v8409_v17 = vpop.f32.mrb[114].mxu1  ;;  %v8899_v46 = vpop.f32.mrb[160].mxu0  ;;  %12293 = vmatprep.subr.bf16.mxu0 %v13314_v2 }
 0xa12   : > { %11365 = vst.msk [vmem:[%s15825_s14 + $0x140] sm:$0xff] %vm11324_vm0, %v8407_v63  ;;  %v8410_v13 = vadd.f32 %v16158_v56, %v8409_v17  ;;  %v8900_v31 = vadd.f32 %v8899_v46, %v15901_v54  ;;  %v8411_v7 = vpop.f32.mrb[115].mxu1  ;;  %v8901_v10 = vpop.f32.mrb[161].mxu0  ;;  %12294 = vmatpush3.bf16.msra.mxu0 %v13314_v2 }
 0xa13   : > { %v8902_v25 = vadd.f32 %v8901_v10, %v15905_v28  ;;  %v8903_v5 = vpop.f32.mrb[162].mxu0 }
 0xa14   : > { %11366 = vst.msk [vmem:[%s15825_s14 + $0x148] sm:$0xff] %vm11324_vm0, %v8410_v13  ;;  %v8904_v30 = vadd.f32 %v8903_v5, %v15901_v54  ;;  %v8905_v23 = vpop.f32.mrb[163].mxu0  ;;  %12288 = vmatmul.mubr.bf16.gmra.mrb[220].mxu1 %v13311_v18  ;;  %v9122_v11 = vmax.f32 %v8900_v31, 0.0 }
 0xa15   : > { %v8906_v4 = vadd.f32 %v8905_v23, %v15905_v28  ;;  %9955 = vmatprep.mubr.bf16.mxu1 %v15930_v61  ;;  %v9123_v3 = vmax.f32 %v8902_v25, 0.0 }
 0xa16   : > { %v9124_v36 = vmax.f32 %v8904_v30, 0.0 }
 0xa17   : > { %v9125_v34 = vmax.f32 %v8906_v4, 0.0  ;;  %v8414_v15 = vpop.f32.mrb[116].mxu1 }
 0xa18   : > { %v16222_v21 = vpack.c.bf16 %v9124_v36, %v9122_v11  ;;  %v8415_v44 = vadd.f32 %v16158_v56, %v8414_v15  ;;  %v8416_v40 = vpop.f32.mrb[117].mxu1 }
 0xa19   : > { %v16225_v35 = vpack.c.bf16 %v9125_v34, %v9123_v3  ;;  %v8417_v6 = vpop.f32.mrb[118].mxu1  ;;  %v8909_v24 = vpop.f32.mrb[164].mxu0 }
 0xa1a   : > { %11367 = vst.msk [vmem:[%s15825_s14 + $0x150] sm:$0xff] %vm11324_vm0, %v8415_v44  ;;  %v8418_v61 = vadd.f32 %v16158_v56, %v8417_v6  ;;  %v8910_v19 = vadd.f32 %v8909_v24, %v15901_v54  ;;  %v8419_v16 = vpop.f32.mrb[119].mxu1  ;;  %v8911_v47 = vpop.f32.mrb[165].mxu0 }
 0xa1b   : > { %v8912_v63 = vadd.f32 %v8911_v47, %v15905_v28  ;;  %v8913_v55 = vpop.f32.mrb[166].mxu0 }
 0xa1c   : > { %11368 = vst.msk [vmem:[%s15825_s14 + $0x158] sm:$0xff] %vm11324_vm0, %v8418_v61  ;;  %v8914_v18 = vadd.f32 %v8913_v55, %v15901_v54  ;;  %v8915_v17 = vpop.f32.mrb[167].mxu0  ;;  %9956 = vmatmul.mubr.bf16.vlgmr.msra.gmra.mrb[224].mxu1 %v15926_v49  ;;  %v9126_v13 = vmax.f32 %v8910_v19, 0.0 }
 0xa1d   : > { %v8916_v46 = vadd.f32 %v8915_v17, %v15905_v28  ;;  %9963 = vmatprep.mubr.bf16.mxu1 %v15951_v27  ;;  %v9127_v7 = vmax.f32 %v8912_v63, 0.0 }
 0xa1e   : > { %v9128_v31 = vmax.f32 %v8914_v18, 0.0 }
 0xa1f   : > { %v9129_v10 = vmax.f32 %v8916_v46, 0.0  ;;  %v8422_v25 = vpop.f32.mrb[120].mxu1 }
 0xa20   : > { %v16238_v5 = vpack.c.bf16 %v9128_v31, %v9126_v13  ;;  %v8423_v30 = vadd.f32 %v16158_v56, %v8422_v25  ;;  %v8424_v23 = vpop.f32.mrb[121].mxu1 }
 0xa21   : > { %v16241_v4 = vpack.c.bf16 %v9129_v10, %v9127_v7  ;;  %v8425_v11 = vpop.f32.mrb[122].mxu1  ;;  %v8919_v49 = vpop.f32.mrb[168].mxu0 }
 0xa22   : > { %11369 = vst.msk [vmem:[%s15825_s14 + $0x160] sm:$0xff] %vm11324_vm0, %v8423_v30  ;;  %v8426_v36 = vadd.f32 %v16158_v56, %v8425_v11  ;;  %v8920_v27 = vadd.f32 %v8919_v49, %v15901_v54  ;;  %v8427_v3 = vpop.f32.mrb[123].mxu1  ;;  %v8921_v34 = vpop.f32.mrb[169].mxu0 }
 0xa23   : > { %v8922_v15 = vadd.f32 %v8921_v34, %v15905_v28  ;;  %v8923_v44 = vpop.f32.mrb[170].mxu0 }
 0xa24   : > { %11370 = vst.msk [vmem:[%s15825_s14 + $0x168] sm:$0xff] %vm11324_vm0, %v8426_v36  ;;  %v8924_v40 = vadd.f32 %v8923_v44, %v15901_v54  ;;  %v8925_v6 = vpop.f32.mrb[171].mxu0  ;;  %9964 = vmatmul.mubr.bf16.gmra.mrb[228].mxu1 %v15947_v9  ;;  %v9130_v2 = vmax.f32 %v8920_v27, 0.0 }
 0xa25   : > { %v8926_v24 = vadd.f32 %v8925_v6, %v15905_v28  ;;  %9971 = vmatprep.mubr.bf16.mxu1 %v15973_v32  ;;  %v9131_v19 = vmax.f32 %v8922_v15, 0.0 }
 0xa26   : > { %v9132_v61 = vmax.f32 %v8924_v40, 0.0 }
 0xa27   : > { %v9133_v16 = vmax.f32 %v8926_v24, 0.0  ;;  %v8430_v47 = vpop.f32.mrb[124].mxu1 }
 0xa28   : > { %v16254_v63 = vpack.c.bf16 %v9132_v61, %v9130_v2  ;;  %v8431_v55 = vadd.f32 %v16158_v56, %v8430_v47  ;;  %v8432_v18 = vpop.f32.mrb[125].mxu1 }
 0xa29   : > { %v16257_v17 = vpack.c.bf16 %v9133_v16, %v9131_v19  ;;  %v8433_v46 = vpop.f32.mrb[126].mxu1  ;;  %v8929_v13 = vpop.f32.mrb[172].mxu0 }
 0xa2a   : > { %11371 = vst.msk [vmem:[%s15825_s14 + $0x170] sm:$0xff] %vm11324_vm0, %v8431_v55  ;;  %v8434_v9 = vadd.f32 %v16158_v56, %v8433_v46  ;;  %v8930_v32 = vadd.f32 %v8929_v13, %v15901_v54  ;;  %v8435_v31 = vpop.f32.mrb[127].mxu1  ;;  %v8931_v7 = vpop.f32.mrb[173].mxu0 }
 0xa2b   : > { %v8932_v10 = vadd.f32 %v8931_v7, %v15905_v28  ;;  %v8933_v25 = vpop.f32.mrb[174].mxu0 }
 0xa2c   : > { %11372 = vst.msk [vmem:[%s15825_s14 + $0x178] sm:$0xff] %vm11324_vm0, %v8434_v9  ;;  %v8934_v30 = vadd.f32 %v8933_v25, %v15901_v54  ;;  %v8935_v23 = vpop.f32.mrb[175].mxu0  ;;  %9972 = vmatmul.mubr.bf16.gmra.mrb[232].mxu1 %v15969_v59  ;;  %v9134_v49 = vmax.f32 %v8930_v32, 0.0 }
 0xa2d   : > { %v8936_v11 = vadd.f32 %v8935_v23, %v15905_v28  ;;  %9979 = vmatprep.mubr.bf16.mxu1 %v15995_v38  ;;  %v9135_v27 = vmax.f32 %v8932_v10, 0.0 }
 0xa2e   : > { %v9136_v36 = vmax.f32 %v8934_v30, 0.0 }
 0xa2f   : > { %v9137_v3 = vmax.f32 %v8936_v11, 0.0  ;;  %v8438_v34 = vpop.f32.mrb[128].mxu1 }
 0xa30   : > { %v16270_v15 = vpack.c.bf16 %v9136_v36, %v9134_v49  ;;  %v8439_v44 = vadd.f32 %v16158_v56, %v8438_v34  ;;  %v8440_v40 = vpop.f32.mrb[129].mxu1 }
 0xa31   : > { %v16273_v6 = vpack.c.bf16 %v9137_v3, %v9135_v27  ;;  %v8441_v24 = vpop.f32.mrb[130].mxu1  ;;  %v8939_v2 = vpop.f32.mrb[176].mxu0 }
 0xa32   : > { %11373 = vst.msk [vmem:[%s15825_s14 + $0x180] sm:$0xff] %vm11324_vm0, %v8439_v44  ;;  %v8442_v59 = vadd.f32 %v16158_v56, %v8441_v24  ;;  %v8940_v38 = vadd.f32 %v8939_v2, %v15901_v54  ;;  %v8443_v61 = vpop.f32.mrb[131].mxu1  ;;  %v8941_v19 = vpop.f32.mrb[177].mxu0 }
 0xa33   : > { %v8942_v16 = vadd.f32 %v8941_v19, %v15905_v28  ;;  %v8943_v47 = vpop.f32.mrb[178].mxu0 }
 0xa34   : > { %11374 = vst.msk [vmem:[%s15825_s14 + $0x188] sm:$0xff] %vm11324_vm0, %v8442_v59  ;;  %v8944_v55 = vadd.f32 %v8943_v47, %v15901_v54  ;;  %v8945_v18 = vpop.f32.mrb[179].mxu0  ;;  %9980 = vmatmul.mubr.bf16.gmra.mrb[236].mxu1 %v15991_v51  ;;  %v9138_v13 = vmax.f32 %v8940_v38, 0.0  ;;  %v13315_v51 = vld [vmem:[#allocation20 + $0x10] sm:$0xff]  }
 0xa35   : > { %v8946_v46 = vadd.f32 %v8945_v18, %v15905_v28  ;;  %9987 = vmatprep.mubr.bf16.mxu1 %v16016_v14  ;;  %v9139_v32 = vmax.f32 %v8942_v16, 0.0  ;;  %12295 = vmatprep.subr.bf16.mxu0 %v13315_v51 }
 0xa36   : > { %v9140_v9 = vmax.f32 %v8944_v55, 0.0  ;;  %12296 = vmatpush3.bf16.msra.mxu0 %v13315_v51 }
 0xa37   : > { %v9141_v31 = vmax.f32 %v8946_v46, 0.0  ;;  %v8446_v7 = vpop.f32.mrb[132].mxu1 }
 0xa38   : > { %v16286_v10 = vpack.c.bf16 %v9140_v9, %v9138_v13  ;;  %v8447_v25 = vadd.f32 %v16158_v56, %v8446_v7  ;;  %v8448_v30 = vpop.f32.mrb[133].mxu1 }
 0xa39   : > { %v16289_v23 = vpack.c.bf16 %v9141_v31, %v9139_v32  ;;  %v8449_v11 = vpop.f32.mrb[134].mxu1  ;;  %v8949_v49 = vpop.f32.mrb[180].mxu0 }
 0xa3a   : > { %11375 = vst.msk [vmem:[%s15825_s14 + $0x190] sm:$0xff] %vm11324_vm0, %v8447_v25  ;;  %v8450_v14 = vadd.f32 %v16158_v56, %v8449_v11  ;;  %v8950_v36 = vadd.f32 %v8949_v49, %v15901_v54  ;;  %v8451_v27 = vpop.f32.mrb[135].mxu1  ;;  %v8951_v3 = vpop.f32.mrb[181].mxu0 }
 0xa3b   : > { %v8952_v34 = vadd.f32 %v8951_v3, %v15905_v28  ;;  %v8953_v44 = vpop.f32.mrb[182].mxu0 }
 0xa3c   : > { %11376 = vst.msk [vmem:[%s15825_s14 + $0x198] sm:$0xff] %vm11324_vm0, %v8450_v14  ;;  %v8954_v40 = vadd.f32 %v8953_v44, %v15901_v54  ;;  %v8955_v24 = vpop.f32.mrb[183].mxu0  ;;  %9988 = vmatmul.mubr.bf16.gmra.mrb[240].mxu1 %v16012_v43  ;;  %v9142_v59 = vmax.f32 %v8950_v36, 0.0 }
 0xa3d   : > { %v8956_v2 = vadd.f32 %v8955_v24, %v15905_v28  ;;  %9995 = vmatprep.mubr.bf16.mxu1 %v16036_v42  ;;  %v9143_v61 = vmax.f32 %v8952_v34, 0.0 }
 0xa3e   : > { %v9144_v38 = vmax.f32 %v8954_v40, 0.0 }
 0xa3f   : > { %v9145_v19 = vmax.f32 %v8956_v2, 0.0  ;;  %v8454_v16 = vpop.f32.mrb[136].mxu1 }
 0xa40   : > { %v16302_v47 = vpack.c.bf16 %v9144_v38, %v9142_v59  ;;  %v8455_v55 = vadd.f32 %v16158_v56, %v8454_v16  ;;  %v8456_v18 = vpop.f32.mrb[137].mxu1 }
 0xa41   : > { %v16305_v46 = vpack.c.bf16 %v9145_v19, %v9143_v61  ;;  %v8457_v13 = vpop.f32.mrb[138].mxu1  ;;  %v8959_v43 = vpop.f32.mrb[184].mxu0 }
 0xa42   : > { %11377 = vst.msk [vmem:[%s15825_s14 + $0x1a0] sm:$0xff] %vm11324_vm0, %v8455_v55  ;;  %v8458_v9 = vadd.f32 %v16158_v56, %v8457_v13  ;;  %v8960_v42 = vadd.f32 %v8959_v43, %v15901_v54  ;;  %v8459_v32 = vpop.f32.mrb[139].mxu1  ;;  %v8961_v31 = vpop.f32.mrb[185].mxu0 }
 0xa43   : > { %v8962_v7 = vadd.f32 %v8961_v31, %v15905_v28  ;;  %v8963_v25 = vpop.f32.mrb[186].mxu0 }
 0xa44   : > { %11378 = vst.msk [vmem:[%s15825_s14 + $0x1a8] sm:$0xff] %vm11324_vm0, %v8458_v9  ;;  %v8964_v30 = vadd.f32 %v8963_v25, %v15901_v54  ;;  %v8965_v11 = vpop.f32.mrb[187].mxu0  ;;  %9996 = vmatmul.mubr.bf16.gmra.mrb[244].mxu1 %v16032_v60  ;;  %v9146_v51 = vmax.f32 %v8960_v42, 0.0 }
 0xa45   : > { %v8966_v49 = vadd.f32 %v8965_v11, %v15905_v28  ;;  %10003 = vmatprep.mubr.bf16.mxu1 %v16056_v26  ;;  %v9147_v36 = vmax.f32 %v8962_v7, 0.0 }
 0xa46   : > { %v9148_v14 = vmax.f32 %v8964_v30, 0.0 }
 0xa47   : > { %v9149_v27 = vmax.f32 %v8966_v49, 0.0  ;;  %v8462_v3 = vpop.f32.mrb[140].mxu1 }
 0xa48   : > { %v16318_v34 = vpack.c.bf16 %v9148_v14, %v9146_v51  ;;  %v8463_v44 = vadd.f32 %v16158_v56, %v8462_v3  ;;  %v8464_v40 = vpop.f32.mrb[141].mxu1 }
 0xa49   : > { %v16321_v24 = vpack.c.bf16 %v9149_v27, %v9147_v36  ;;  %v8465_v2 = vpop.f32.mrb[142].mxu1  ;;  %v8969_v59 = vpop.f32.mrb[188].mxu0 }
 0xa4a   : > { %11379 = vst.msk [vmem:[%s15825_s14 + $0x1b0] sm:$0xff] %vm11324_vm0, %v8463_v44  ;;  %v8466_v60 = vadd.f32 %v16158_v56, %v8465_v2  ;;  %v8970_v26 = vadd.f32 %v8969_v59, %v15901_v54  ;;  %v8467_v38 = vpop.f32.mrb[143].mxu1  ;;  %v8971_v61 = vpop.f32.mrb[189].mxu0 }
 0xa4b   : > { %v8972_v19 = vadd.f32 %v8971_v61, %v15905_v28  ;;  %v8973_v16 = vpop.f32.mrb[190].mxu0 }
 0xa4c   : > { %11380 = vst.msk [vmem:[%s15825_s14 + $0x1b8] sm:$0xff] %vm11324_vm0, %v8466_v60  ;;  %v8974_v55 = vadd.f32 %v8973_v16, %v15901_v54  ;;  %v8975_v18 = vpop.f32.mrb[191].mxu0  ;;  %10004 = vmatmul.mubr.bf16.gmra.mrb[248].mxu1 %v16052_v33  ;;  %v9150_v43 = vmax.f32 %v8970_v26, 0.0 }
 0xa4d   : > { %v8976_v13 = vadd.f32 %v8975_v18, %v15905_v28  ;;  %10011 = vmatprep.mubr.bf16.mxu1 %v16076_v48  ;;  %v9151_v42 = vmax.f32 %v8972_v19, 0.0 }
 0xa4e   : > { %v9152_v9 = vmax.f32 %v8974_v55, 0.0 }
 0xa4f   : > { %v9153_v32 = vmax.f32 %v8976_v13, 0.0  ;;  %v8470_v31 = vpop.f32.mrb[144].mxu1 }
 0xa50   : > { %v16334_v7 = vpack.c.bf16 %v9152_v9, %v9150_v43  ;;  %v8471_v25 = vadd.f32 %v16158_v56, %v8470_v31  ;;  %v8472_v30 = vpop.f32.mrb[145].mxu1 }
 0xa51   : > { %v16337_v11 = vpack.c.bf16 %v9153_v32, %v9151_v42  ;;  %v8473_v49 = vpop.f32.mrb[146].mxu1  ;;  %v8979_v51 = vpop.f32.mrb[192].mxu0 }
 0xa52   : > { %11381 = vst.msk [vmem:[%s15825_s14 + $0x1c0] sm:$0xff] %vm11324_vm0, %v8471_v25  ;;  %v8474_v33 = vadd.f32 %v16158_v56, %v8473_v49  ;;  %v8980_v48 = vadd.f32 %v8979_v51, %v15901_v54  ;;  %v8475_v14 = vpop.f32.mrb[147].mxu1  ;;  %v8981_v36 = vpop.f32.mrb[193].mxu0 }
 0xa53   : > { %v8982_v27 = vadd.f32 %v8981_v36, %v15905_v28  ;;  %v8983_v3 = vpop.f32.mrb[194].mxu0 }
 0xa54   : > { %11382 = vst.msk [vmem:[%s15825_s14 + $0x1c8] sm:$0xff] %vm11324_vm0, %v8474_v33  ;;  %v8984_v44 = vadd.f32 %v8983_v3, %v15901_v54  ;;  %v8985_v40 = vpop.f32.mrb[195].mxu0  ;;  %10012 = vmatmul.mubr.bf16.gmra.mrb[252].mxu1 %v16072_v41  ;;  %v9154_v59 = vmax.f32 %v8980_v48, 0.0  ;;  %v13316_v41 = vld [vmem:[#allocation20 + $0x18] sm:$0xff]  }
 0xa55   : > { %v8986_v2 = vadd.f32 %v8985_v40, %v15905_v28  ;;  %10019 = vmatprep.mubr.bf16.mxu1 %v16096_v57  ;;  %v9155_v26 = vmax.f32 %v8982_v27, 0.0  ;;  %12297 = vmatprep.subr.bf16.mxu0 %v13316_v41 }
 0xa56   : > { %v9156_v60 = vmax.f32 %v8984_v44, 0.0  ;;  %12298 = vmatpush3.bf16.msra.mxu0 %v13316_v41 }
 0xa57   : > { %v9157_v38 = vmax.f32 %v8986_v2, 0.0  ;;  %v8478_v61 = vpop.f32.mrb[148].mxu1 }
 0xa58   : > { %v16350_v19 = vpack.c.bf16 %v9156_v60, %v9154_v59  ;;  %v8479_v16 = vadd.f32 %v16158_v56, %v8478_v61  ;;  %v8480_v55 = vpop.f32.mrb[149].mxu1 }
 0xa59   : > { %v16353_v18 = vpack.c.bf16 %v9157_v38, %v9155_v26  ;;  %v8481_v13 = vpop.f32.mrb[150].mxu1  ;;  %v8989_v43 = vpop.f32.mrb[196].mxu0 }
 0xa5a   : > { %11383 = vst.msk [vmem:[%s15825_s14 + $0x1d0] sm:$0xff] %vm11324_vm0, %v8479_v16  ;;  %v8482_v57 = vadd.f32 %v16158_v56, %v8481_v13  ;;  %v8990_v9 = vadd.f32 %v8989_v43, %v15901_v54  ;;  %v8483_v42 = vpop.f32.mrb[151].mxu1  ;;  %v8991_v32 = vpop.f32.mrb[197].mxu0 }
 0xa5b   : > { %v8992_v31 = vadd.f32 %v8991_v32, %v15905_v28  ;;  %v8993_v25 = vpop.f32.mrb[198].mxu0 }
 0xa5c   : > { %11384 = vst.msk [vmem:[%s15825_s14 + $0x1d8] sm:$0xff] %vm11324_vm0, %v8482_v57  ;;  %v8994_v30 = vadd.f32 %v8993_v25, %v15901_v54  ;;  %v8995_v49 = vpop.f32.mrb[199].mxu0  ;;  %10020 = vmatmul.mubr.bf16.gmra.mrb[0].mxu1 %v16092_v50  ;;  %v9158_v33 = vmax.f32 %v8990_v9, 0.0 }
 0xa5d   : > { %v8996_v51 = vadd.f32 %v8995_v49, %v15905_v28  ;;  %10027 = vmatprep.mubr.bf16.mxu1 %v16112_v0  ;;  %v9159_v14 = vmax.f32 %v8992_v31, 0.0 }
 0xa5e   : > { %v9160_v48 = vmax.f32 %v8994_v30, 0.0 }
 0xa5f   : > { %v9161_v36 = vmax.f32 %v8996_v51, 0.0  ;;  %v8486_v27 = vpop.f32.mrb[152].mxu1 }
 0xa60   : > { %v16366_v3 = vpack.c.bf16 %v9160_v48, %v9158_v33  ;;  %v8487_v44 = vadd.f32 %v16158_v56, %v8486_v27  ;;  %v8488_v40 = vpop.f32.mrb[153].mxu1 }
 0xa61   : > { %v16369_v2 = vpack.c.bf16 %v9161_v36, %v9159_v14  ;;  %v8489_v59 = vpop.f32.mrb[154].mxu1  ;;  %v8999_v50 = vpop.f32.mrb[200].mxu0 }
 0xa62   : > { %11385 = vst.msk [vmem:[%s15825_s14 + $0x1e0] sm:$0xff] %vm11324_vm0, %v8487_v44  ;;  %v8490_v60 = vadd.f32 %v16158_v56, %v8489_v59  ;;  %v9000_v0 = vadd.f32 %v8999_v50, %v15901_v54  ;;  %v8491_v26 = vpop.f32.mrb[155].mxu1  ;;  %v9001_v38 = vpop.f32.mrb[201].mxu0 }
 0xa63   : > { %v9002_v61 = vadd.f32 %v9001_v38, %v15905_v28  ;;  %v9003_v16 = vpop.f32.mrb[202].mxu0 }
 0xa64   : > { %11386 = vst.msk [vmem:[%s15825_s14 + $0x1e8] sm:$0xff] %vm11324_vm0, %v8490_v60  ;;  %v9004_v55 = vadd.f32 %v9003_v16, %v15901_v54  ;;  %v9005_v13 = vpop.f32.mrb[203].mxu0  ;;  %10028 = vmatmul.mubr.bf16.gmra.mrb[4].mxu1 %v16108_v22  ;;  %v9162_v41 = vmax.f32 %v9000_v0, 0.0  ;;  %v13317_v16 = vld [vmem:[#allocation20 + $0x20] sm:$0xff]  }
 0xa65   : > { %v9006_v43 = vadd.f32 %v9005_v13, %v15905_v28  ;;  %10035 = vmatprep.mubr.bf16.mxu1 %v16128_v58  ;;  %v9163_v9 = vmax.f32 %v9002_v61, 0.0  ;;  %12299 = vmatprep.subr.bf16.mxu0 %v13317_v16 }
 0xa66   : > { %v9164_v57 = vmax.f32 %v9004_v55, 0.0  ;;  %12300 = vmatpush3.bf16.msra.mxu0 %v13317_v16 }
 0xa67   : > { %v9165_v42 = vmax.f32 %v9006_v43, 0.0  ;;  %v8494_v32 = vpop.f32.mrb[156].mxu1 }
 0xa68   : > { %v16382_v31 = vpack.c.bf16 %v9164_v57, %v9162_v41  ;;  %v8495_v25 = vadd.f32 %v16158_v56, %v8494_v32  ;;  %v8496_v30 = vpop.f32.mrb[157].mxu1 }
 0xa69   : > { %v16385_v49 = vpack.c.bf16 %v9165_v42, %v9163_v9  ;;  %v8497_v51 = vpop.f32.mrb[158].mxu1  ;;  %v9009_v33 = vpop.f32.mrb[204].mxu0 }
 0xa6a   : > { %11387 = vst.msk [vmem:[%s15825_s14 + $0x1f0] sm:$0xff] %vm11324_vm0, %v8495_v25  ;;  %v8498_v22 = vadd.f32 %v16158_v56, %v8497_v51  ;;  %v9010_v58 = vadd.f32 %v9009_v33, %v15901_v54  ;;  %v8499_v48 = vpop.f32.mrb[159].mxu1  ;;  %v9011_v14 = vpop.f32.mrb[205].mxu0  ;;  %v13318_v25 = vld [vmem:[#allocation20 + $0x28] sm:$0xff]  }
 0xa6b   : > { %v9012_v36 = vadd.f32 %v9011_v14, %v15905_v28  ;;  %v9013_v27 = vpop.f32.mrb[206].mxu0  ;;  %12301 = vmatprep.subr.bf16.mxu0 %v13318_v25 }
 0xa6c   : > { %11388 = vst.msk [vmem:[%s15825_s14 + $0x1f8] sm:$0xff] %vm11324_vm0, %v8498_v22  ;;  %v9014_v44 = vadd.f32 %v9013_v27, %v15901_v54  ;;  %v9015_v40 = vpop.f32.mrb[207].mxu0  ;;  %10036 = vmatmul.mubr.bf16.gmra.mrb[8].mxu1 %v16124_v29  ;;  %v9166_v50 = vmax.f32 %v9010_v58, 0.0  ;;  %12302 = vmatpush3.bf16.msra.mxu0 %v13318_v25  ;;  %v13319_v27 = vld [vmem:[#allocation20 + $0x30] sm:$0xff]  }
 0xa6d   : > { %v9016_v59 = vadd.f32 %v9015_v40, %v15905_v28  ;;  %10043 = vmatprep.mubr.bf16.mxu1 %v16144_v12  ;;  %v9167_v60 = vmax.f32 %v9012_v36, 0.0  ;;  %12303 = vmatprep.subr.bf16.mxu0 %v13319_v27 }
 0xa6e   : > { %v9168_v56 = vmax.f32 %v9014_v44, 0.0 }
 0xa6f   : > { %v9169_v0 = vmax.f32 %v9016_v59, 0.0  ;;  %v16398_v26 = vpop.f32.mrb[160].mxu1 }
 0xa70   : > { %v16400_v38 = vpack.c.bf16 %v9168_v56, %v9166_v50  ;;  %v16402_v61 = vpop.f32.mrb[161].mxu1  ;;  %12304 = vmatpush3.bf16.msra.mxu0 %v13319_v27 }
 0xa71   : > { %v16404_v55 = vpack.c.bf16 %v9169_v0, %v9167_v60  ;;  %v9019_v13 = vpop.f32.mrb[208].mxu0  ;;  %v16406_v43 = vpop.f32.mrb[162].mxu1 }
 0xa72   : > { %v9020_v29 = vadd.f32 %v9019_v13, %v15901_v54  ;;  %v9021_v41 = vpop.f32.mrb[209].mxu0  ;;  %v16409_v12 = vpop.f32.mrb[163].mxu1  ;;  %v13320_v13 = vld [vmem:[#allocation20 + $0x38] sm:$0xff]  }
 0xa73   : > { %v9022_v57 = vadd.f32 %v9021_v41, %v15905_v28  ;;  %v9023_v9 = vpop.f32.mrb[210].mxu0  ;;  %12305 = vmatprep.subr.bf16.mxu0 %v13320_v13 }
 0xa74   : > { %v9024_v42 = vadd.f32 %v9023_v9, %v15901_v54  ;;  %v9025_v32 = vpop.f32.mrb[211].mxu0  ;;  %10044 = vmatmul.mubr.bf16.gmra.mrb[12].mxu1 %v16140_v52  ;;  %v9170_v51 = vmax.f32 %v9020_v29, 0.0  ;;  %12306 = vmatpush3.bf16.msra.mxu0 %v13320_v13 }
 0xa75   : > { %v9026_v30 = vadd.f32 %v9025_v32, %v15905_v28  ;;  %10051 = vmatprep.mubr.bf16.mxu1 %v16162_v8  ;;  %v9171_v22 = vmax.f32 %v9022_v57, 0.0 }
 0xa76   : > { %v9172_v33 = vmax.f32 %v9024_v42, 0.0 }
 0xa77   : > { %v9173_v58 = vmax.f32 %v9026_v30, 0.0  ;;  %v16416_v48 = vpop.f32.mrb[164].mxu1 }
 0xa78   : > { %v16418_v14 = vpack.c.bf16 %v9172_v33, %v9170_v51  ;;  %v16420_v36 = vpop.f32.mrb[165].mxu1 }
 0xa79   : > { %v16422_v44 = vpack.c.bf16 %v9173_v58, %v9171_v22  ;;  %v9029_v52 = vpop.f32.mrb[212].mxu0  ;;  %v16424_v40 = vpop.f32.mrb[166].mxu1 }
 0xa7a   : > { %v9030_v8 = vadd.f32 %v9029_v52, %v15901_v54  ;;  %v9031_v59 = vpop.f32.mrb[213].mxu0  ;;  %v16427_v50 = vpop.f32.mrb[167].mxu1 }
 0xa7b   : > { %v9032_v56 = vadd.f32 %v9031_v59, %v15905_v28  ;;  %v9033_v60 = vpop.f32.mrb[214].mxu0 }
 0xa7c   : > { %v9034_v0 = vadd.f32 %v9033_v60, %v15901_v54  ;;  %v9035_v16 = vpop.f32.mrb[215].mxu0  ;;  %10052 = vmatmul.mubr.bf16.gmra.mrb[16].mxu1 %v16156_v62  ;;  %v9174_v41 = vmax.f32 %v9030_v8, 0.0 }
 0xa7d   : > { %v9036_v29 = vadd.f32 %v9035_v16, %v15905_v28  ;;  %10059 = vmatprep.mubr.bf16.mxu1 %v16178_v39  ;;  %v9175_v9 = vmax.f32 %v9032_v56, 0.0 }
 0xa7e   : > { %v9176_v57 = vmax.f32 %v9034_v0, 0.0 }
 0xa7f   : > { %v9177_v42 = vmax.f32 %v9036_v29, 0.0  ;;  %v16434_v32 = vpop.f32.mrb[168].mxu1 }
 0xa80   : > { %v16436_v25 = vpack.c.bf16 %v9176_v57, %v9174_v41  ;;  %v16438_v30 = vpop.f32.mrb[169].mxu1 }
 0xa81   : > { %v16440_v51 = vpack.c.bf16 %v9177_v42, %v9175_v9  ;;  %v9039_v62 = vpop.f32.mrb[216].mxu0  ;;  %v16442_v33 = vpop.f32.mrb[170].mxu1 }
 0xa82   : > { %v9040_v22 = vadd.f32 %v9039_v62, %v15901_v54  ;;  %v9041_v39 = vpop.f32.mrb[217].mxu0  ;;  %v16445_v58 = vpop.f32.mrb[171].mxu1 }
 0xa83   : > { %v9042_v27 = vadd.f32 %v9041_v39, %v15905_v28  ;;  %v9043_v52 = vpop.f32.mrb[218].mxu0 }
 0xa84   : > { %v9044_v8 = vadd.f32 %v9043_v52, %v15901_v54  ;;  %v9045_v59 = vpop.f32.mrb[219].mxu0  ;;  %10060 = vmatmul.mubr.bf16.gmra.mrb[20].mxu1 %v16174_v37  ;;  %v9178_v60 = vmax.f32 %v9040_v22, 0.0 }
 0xa85   : > { %v9046_v56 = vadd.f32 %v9045_v59, %v15905_v28  ;;  %10067 = vmatprep.mubr.bf16.mxu1 %v16194_v53  ;;  %v9179_v16 = vmax.f32 %v9042_v27, 0.0 }
 0xa86   : > { %v9180_v0 = vmax.f32 %v9044_v8, 0.0 }
 0xa87   : > { %v9181_v13 = vmax.f32 %v9046_v56, 0.0  ;;  %v16452_v29 = vpop.f32.mrb[172].mxu1 }
 0xa88   : > { %v16454_v41 = vpack.c.bf16 %v9180_v0, %v9178_v60  ;;  %v16456_v57 = vpop.f32.mrb[173].mxu1 }
 0xa89   : > { %v16458_v9 = vpack.c.bf16 %v9181_v13, %v9179_v16  ;;  %v9049_v42 = vpop.f32.mrb[220].mxu0  ;;  %v16460_v62 = vpop.f32.mrb[174].mxu1 }
 0xa8a   : > { %17102 = vst [vmem:[#allocation51_spill] sm:$0xff] %v16460_v62  ;;  %v9050_v37 = vadd.f32 %v9049_v42, %v15901_v54  ;;  %v9051_v39 = vpop.f32.mrb[221].mxu0  ;;  %v16463_v52 = vpop.f32.mrb[175].mxu1 }
 0xa8b   : > { %v9052_v53 = vadd.f32 %v9051_v39, %v15905_v28  ;;  %v9053_v22 = vpop.f32.mrb[222].mxu0 }
 0xa8c   : > { %v9054_v27 = vadd.f32 %v9053_v22, %v15901_v54  ;;  %v9055_v8 = vpop.f32.mrb[223].mxu0  ;;  %10068 = vmatmul.mubr.bf16.gmra.mrb[24].mxu1 %v16190_v45  ;;  %v9182_v56 = vmax.f32 %v9050_v37, 0.0 }
 0xa8d   : > { %v9056_v59 = vadd.f32 %v9055_v8, %v15905_v28  ;;  %10075 = vmatprep.mubr.bf16.mxu1 %v16210_v1  ;;  %v9183_v0 = vmax.f32 %v9052_v53, 0.0 }
 0xa8e   : > { %v9184_v60 = vmax.f32 %v9054_v27, 0.0 }
 0xa8f   : > { %v9185_v16 = vmax.f32 %v9056_v59, 0.0  ;;  %v16470_v13 = vpop.f32.mrb[176].mxu1 }
 0xa90   : > { %v16472_v42 = vpack.c.bf16 %v9184_v60, %v9182_v56  ;;  %v16474_v62 = vpop.f32.mrb[177].mxu1 }
 0xa91   : > { %v16476_v39 = vpack.c.bf16 %v9185_v16, %v9183_v0  ;;  %v16478_v54 = vpop.f32.mrb[178].mxu1 }
 0xa92   : > { %v16480_v22 = vpop.f32.mrb[179].mxu1 }
 0xa94   : > { %10076 = vmatmul.mubr.bf16.gmra.mrb[28].mxu1 %v16206_v20 }
 0xa95   : > { %10083 = vmatprep.mubr.bf16.mxu1 %v16225_v35 }
 0xa97   : > { %v16484_v28 = vpop.f32.mrb[180].mxu1 }
 0xa98   : > { %v16486_v45 = vpop.f32.mrb[181].mxu1 }
 0xa99   : > { %v16488_v1 = vpop.f32.mrb[182].mxu1 }
 0xa9a   : > { %v16490_v37 = vpop.f32.mrb[183].mxu1 }
 0xa9c   : > { %10084 = vmatmul.mubr.bf16.gmra.mrb[32].mxu1 %v16222_v21 }
 0xa9d   : > { %10091 = vmatprep.mubr.bf16.mxu1 %v16241_v4 }
 0xa9f   : > { %v16494_v53 = vpop.f32.mrb[184].mxu1 }
 0xaa0   : > { %v16496_v27 = vpop.f32.mrb[185].mxu1 }
 0xaa1   : > { %v16498_v8 = vpop.f32.mrb[186].mxu1 }
 0xaa2   : > { %v16500_v20 = vpop.f32.mrb[187].mxu1 }
 0xaa4   : > { %10092 = vmatmul.mubr.bf16.gmra.mrb[36].mxu1 %v16238_v5 }
 0xaa5   : > { %10099 = vmatprep.mubr.bf16.mxu1 %v16257_v17 }
 0xaa7   : > { %v16504_v35 = vpop.f32.mrb[188].mxu1 }
 0xaa8   : > { %v16506_v59 = vpop.f32.mrb[189].mxu1 }
 0xaa9   : > { %v16508_v56 = vpop.f32.mrb[190].mxu1 }
 0xaaa   : > { %17103 = vst [vmem:[#allocation52_spill] sm:$0xff] %v16508_v56  ;;  %v16510_v21 = vpop.f32.mrb[191].mxu1 }
 0xaac   : > { %10100 = vmatmul.mubr.bf16.gmra.mrb[40].mxu1 %v16254_v63 }
 0xaad   : > { %10107 = vmatprep.mubr.bf16.mxu1 %v16273_v6 }
 0xaaf   : > { %v16514_v4 = vpop.f32.mrb[192].mxu1 }
 0xab0   : > { %17104 = vst [vmem:[#allocation53_spill] sm:$0xff] %v16514_v4  ;;  %v16516_v60 = vpop.f32.mrb[193].mxu1 }
 0xab1   : > { %v16518_v0 = vpop.f32.mrb[194].mxu1 }
 0xab2   : > { %17105 = vst [vmem:[#allocation54_spill] sm:$0xff] %v16518_v0  ;;  %v16520_v5 = vpop.f32.mrb[195].mxu1 }
 0xab4   : > { %10108 = vmatmul.mubr.bf16.gmra.mrb[44].mxu1 %v16270_v15 }
 0xab5   : > { %10115 = vmatprep.mubr.bf16.mxu1 %v16289_v23 }
 0xab7   : > { %v16524_v17 = vpop.f32.mrb[196].mxu1 }
 0xab8   : > { %17106 = vst [vmem:[#allocation55_spill] sm:$0xff] %v16524_v17  ;;  %v16526_v16 = vpop.f32.mrb[197].mxu1 }
 0xab9   : > { %v16528_v56 = vpop.f32.mrb[198].mxu1 }
 0xaba   : > { %17107 = vst [vmem:[#allocation56_spill] sm:$0xff] %v16528_v56  ;;  %v16530_v63 = vpop.f32.mrb[199].mxu1 }
 0xabc   : > { %10116 = vmatmul.mubr.bf16.gmra.mrb[48].mxu1 %v16286_v10 }
 0xabd   : > { %10123 = vmatprep.mubr.bf16.mxu1 %v16305_v46 }
 0xabf   : > { %v16534_v6 = vpop.f32.mrb[200].mxu1 }
 0xac0   : > { %17108 = vst [vmem:[#allocation57_spill] sm:$0xff] %v16534_v6  ;;  %v16536_v0 = vpop.f32.mrb[201].mxu1 }
 0xac1   : > { %v16538_v4 = vpop.f32.mrb[202].mxu1 }
 0xac2   : > { %17109 = vst [vmem:[#allocation58_spill] sm:$0xff] %v16538_v4  ;;  %v16540_v15 = vpop.f32.mrb[203].mxu1 }
 0xac4   : > { %10124 = vmatmul.mubr.bf16.gmra.mrb[52].mxu1 %v16302_v47 }
 0xac5   : > { %10131 = vmatprep.mubr.bf16.mxu1 %v16321_v24 }
 0xac7   : > { %v16544_v23 = vpop.f32.mrb[204].mxu1 }
 0xac8   : > { %17110 = vst [vmem:[#allocation59_spill] sm:$0xff] %v16544_v23  ;;  %v16546_v56 = vpop.f32.mrb[205].mxu1 }
 0xac9   : > { %v16548_v17 = vpop.f32.mrb[206].mxu1 }
 0xaca   : > { %17111 = vst [vmem:[#allocation60_spill] sm:$0xff] %v16548_v17  ;;  %v16550_v10 = vpop.f32.mrb[207].mxu1 }
 0xacc   : > { %10132 = vmatmul.mubr.bf16.gmra.mrb[56].mxu1 %v16318_v34 }
 0xacd   : > { %10139 = vmatprep.mubr.bf16.mxu1 %v16337_v11 }
 0xacf   : > { %v16554_v46 = vpop.f32.mrb[208].mxu1 }
 0xad0   : > { %v16556_v4 = vpop.f32.mrb[209].mxu1 }
 0xad1   : > { %v16558_v6 = vpop.f32.mrb[210].mxu1 }
 0xad2   : > { %17112 = vst [vmem:[#allocation61_spill] sm:$0xff] %v16558_v6  ;;  %v16560_v47 = vpop.f32.mrb[211].mxu1 }
 0xad4   : > { %10140 = vmatmul.mubr.bf16.gmra.mrb[60].mxu1 %v16334_v7 }
 0xad5   : > { %10147 = vmatprep.mubr.bf16.mxu1 %v16353_v18 }
 0xad7   : > { %v16564_v24 = vpop.f32.mrb[212].mxu1 }
 0xad8   : > { %17113 = vst [vmem:[#allocation62_spill] sm:$0xff] %v16564_v24  ;;  %v16566_v17 = vpop.f32.mrb[213].mxu1 }
 0xad9   : > { %17114 = vst [vmem:[#allocation63_spill] sm:$0xff] %v16566_v17  ;;  %v16568_v23 = vpop.f32.mrb[214].mxu1 }
 0xada   : > { %17115 = vst [vmem:[#allocation64_spill] sm:$0xff] %v16568_v23  ;;  %v16570_v34 = vpop.f32.mrb[215].mxu1 }
 0xadb   : > { %17116 = vst [vmem:[#allocation65_spill] sm:$0xff] %v16570_v34 }
 0xadc   : > { %10148 = vmatmul.mubr.bf16.gmra.mrb[64].mxu1 %v16350_v19 }
 0xadd   : > { %10155 = vmatprep.mubr.bf16.mxu1 %v16369_v2 }
 0xadf   : > { %v16574_v11 = vpop.f32.mrb[216].mxu1 }
 0xae0   : > { %17118 = vst [vmem:[#allocation66_spill] sm:$0xff] %v16574_v11  ;;  %v16576_v6 = vpop.f32.mrb[217].mxu1 }
 0xae1   : > { %17119 = vst [vmem:[#allocation67_spill] sm:$0xff] %v16576_v6  ;;  %v16578_v7 = vpop.f32.mrb[218].mxu1 }
 0xae2   : > { %17120 = vst [vmem:[#allocation68_spill] sm:$0xff] %v16578_v7  ;;  %v16580_v18 = vpop.f32.mrb[219].mxu1  ;;  %v16595_v7 = vld [vmem:[%s17117_s5] ss:$0 sm:$0xff] }
 0xae3   : > { %17121 = vst [vmem:[#allocation69_spill] sm:$0xff] %v16580_v18 }
 0xae4   : > { %10156 = vmatmul.mubr.bf16.gmra.mrb[68].mxu1 %v16366_v3 }
 0xae5   : > { %10163 = vmatprep.mubr.bf16.mxu1 %v16385_v49 }
 0xae7   : > { %v16584_v23 = vpop.f32.mrb[220].mxu1 }
 0xae8   : > { %17122 = vst [vmem:[#allocation70_spill] sm:$0xff] %v16584_v23  ;;  %v16586_v24 = vpop.f32.mrb[221].mxu1 }
 0xae9   : > { %17123 = vst [vmem:[#allocation71_spill] sm:$0xff] %v16586_v24  ;;  %v16588_v34 = vpop.f32.mrb[222].mxu1 }
 0xaea   : > { %17124 = vst [vmem:[#allocation72_spill] sm:$0xff] %v16588_v34  ;;  %v16590_v19 = vpop.f32.mrb[223].mxu1 }
 0xaeb   : > { %17125 = vst [vmem:[#allocation73_spill] sm:$0xff] %v16590_v19 }
 0xaec   : > { %10164 = vmatmul.mubr.bf16.gmra.mrb[72].mxu1 %v16382_v31 }
 0xaed   : > { %10171 = vmatprep.mubr.bf16.mxu1 %v16404_v55 }
 0xaef   : > { %v9957_v2 = vpop.f32.mrb[224].mxu1 }
 0xaf0   : > { %v9958_v11 = vadd.f32 %v9957_v2, %v16402_v61  ;;  %v9959_v3 = vpop.f32.mrb[225].mxu1 }
 0xaf1   : > { %v9960_v18 = vpop.f32.mrb[226].mxu1 }
 0xaf2   : > { %v10219_v49 = vadd.f32 %v16595_v7, %v9958_v11  ;;  %v9961_v23 = vadd.f32 %v9960_v18, %v16409_v12  ;;  %v9962_v24 = vpop.f32.mrb[227].mxu1 }
 0xaf4   : > { %v10220_v34 = vadd.f32 %v16595_v7, %v9961_v23  ;;  %10172 = vmatmul.mubr.bf16.gmra.mrb[76].mxu1 %v16400_v38  ;;  %v10283_v31 = vmax.f32 %v10219_v49, 0.0 }
 0xaf5   : > { %10179 = vmatprep.mubr.bf16.mxu1 %v16422_v44 }
 0xaf6   : > { %v10284_v55 = vmax.f32 %v10220_v34, 0.0 }
 0xaf7   : > { %v9965_v19 = vpop.f32.mrb[228].mxu1 }
 0xaf8   : > { %v9966_v6 = vadd.f32 %v16398_v26, %v9965_v19  ;;  %v9967_v17 = vpop.f32.mrb[229].mxu1  ;;  %v10347_v61 = vpack.c.bf16 %v10284_v55, %v10283_v31 }
 0xaf9   : > { %v9968_v2 = vpop.f32.mrb[230].mxu1 }
 0xafa   : > { %v10221_v3 = vadd.f32 %v16595_v7, %v9966_v6  ;;  %v9969_v11 = vadd.f32 %v16406_v43, %v9968_v2  ;;  %v9970_v12 = vpop.f32.mrb[231].mxu1  ;;  %12307 = vmatprep.mubr.bf16.mxu0 %v10347_v61 }
 0xafc   : > { %v10222_v23 = vadd.f32 %v16595_v7, %v9969_v11  ;;  %10180 = vmatmul.mubr.bf16.gmra.mrb[80].mxu1 %v16418_v14  ;;  %v10285_v38 = vmax.f32 %v10221_v3, 0.0 }
 0xafd   : > { %10187 = vmatprep.mubr.bf16.mxu1 %v16440_v51 }
 0xafe   : > { %v10286_v44 = vmax.f32 %v10222_v23, 0.0 }
 0xaff   : > { %v9973_v24 = vpop.f32.mrb[232].mxu1 }
 0xb00   : > { %v10348_v34 = vpack.c.bf16 %v10286_v44, %v10285_v38  ;;  %v9974_v26 = vadd.f32 %v9973_v24, %v16420_v36  ;;  %v9975_v17 = vpop.f32.mrb[233].mxu1 }
 0xb01   : > { %v9976_v18 = vpop.f32.mrb[234].mxu1 }
 0xb02   : > { %v10223_v6 = vadd.f32 %v16595_v7, %v9974_v26  ;;  %v9977_v43 = vadd.f32 %v9976_v18, %v16427_v50  ;;  %v9978_v19 = vpop.f32.mrb[235].mxu1  ;;  %12308 = vmatmul.mubr.bf16.vlgmr.msra.gmra.mrb[224].mxu0 %v10348_v34 }
 0xb04   : > { %v10224_v49 = vadd.f32 %v16595_v7, %v9977_v43  ;;  %10188 = vmatmul.mubr.bf16.gmra.mrb[84].mxu1 %v16436_v25  ;;  %v10287_v14 = vmax.f32 %v10223_v6, 0.0 }
 0xb05   : > { %10195 = vmatprep.mubr.bf16.mxu1 %v16458_v9 }
 0xb06   : > { %v10288_v51 = vmax.f32 %v10224_v49, 0.0 }
 0xb07   : > { %v9981_v31 = vpop.f32.mrb[236].mxu1 }
 0xb08   : > { %v9982_v55 = vadd.f32 %v16416_v48, %v9981_v31  ;;  %v9983_v36 = vpop.f32.mrb[237].mxu1  ;;  %v10349_v61 = vpack.c.bf16 %v10288_v51, %v10287_v14 }
 0xb09   : > { %v9984_v2 = vpop.f32.mrb[238].mxu1 }
 0xb0a   : > { %v10225_v3 = vadd.f32 %v16595_v7, %v9982_v55  ;;  %v9985_v50 = vadd.f32 %v16424_v40, %v9984_v2  ;;  %v9986_v11 = vpop.f32.mrb[239].mxu1  ;;  %12311 = vmatprep.mubr.bf16.mxu0 %v10349_v61 }
 0xb0c   : > { %v10226_v12 = vadd.f32 %v16595_v7, %v9985_v50  ;;  %10196 = vmatmul.mubr.bf16.gmra.mrb[88].mxu1 %v16454_v41  ;;  %v10289_v25 = vmax.f32 %v10225_v3, 0.0 }
 0xb0d   : > { %10203 = vmatprep.mubr.bf16.mxu1 %v16476_v39 }
 0xb0e   : > { %v10290_v9 = vmax.f32 %v10226_v12, 0.0 }
 0xb0f   : > { %v9989_v23 = vpop.f32.mrb[240].mxu1 }
 0xb10   : > { %v10350_v38 = vpack.c.bf16 %v10290_v9, %v10289_v25  ;;  %v9990_v48 = vadd.f32 %v9989_v23, %v16438_v30  ;;  %v9991_v44 = vpop.f32.mrb[241].mxu1 }
 0xb11   : > { %v9992_v24 = vpop.f32.mrb[242].mxu1 }
 0xb12   : > { %v10227_v34 = vadd.f32 %v16595_v7, %v9990_v48  ;;  %v9993_v40 = vadd.f32 %v9992_v24, %v16445_v58  ;;  %v9994_v26 = vpop.f32.mrb[243].mxu1  ;;  %12312 = vmatmul.mubr.bf16.gmra.mrb[228].mxu0 %v10350_v38  ;;  %v17126_v24 = vld [vmem:[#allocation51_spill] sm:$0xff] }
 0xb14   : > { %v10228_v17 = vadd.f32 %v16595_v7, %v9993_v40  ;;  %10204 = vmatmul.mubr.bf16.gmra.mrb[92].mxu1 %v16472_v42  ;;  %v10291_v41 = vmax.f32 %v10227_v34, 0.0 }
 0xb16   : > { %v10292_v39 = vmax.f32 %v10228_v17, 0.0 }
 0xb17   : > { %v9997_v18 = vpop.f32.mrb[244].mxu1 }
 0xb18   : > { %v9998_v6 = vadd.f32 %v16434_v32, %v9997_v18  ;;  %v9999_v43 = vpop.f32.mrb[245].mxu1  ;;  %v10351_v19 = vpack.c.bf16 %v10292_v39, %v10291_v41 }
 0xb19   : > { %v10000_v30 = vpop.f32.mrb[246].mxu1 }
 0xb1a   : > { %v10229_v49 = vadd.f32 %v16595_v7, %v9998_v6  ;;  %v10001_v14 = vadd.f32 %v16442_v33, %v10000_v30  ;;  %v10002_v51 = vpop.f32.mrb[247].mxu1  ;;  %12315 = vmatprep.mubr.bf16.mxu0 %v10351_v19 }
 0xb1c   : > { %v10230_v58 = vadd.f32 %v16595_v7, %v10001_v14  ;;  %v10293_v31 = vmax.f32 %v10229_v49, 0.0 }
 0xb1e   : > { %v10294_v55 = vmax.f32 %v10230_v58, 0.0 }
 0xb1f   : > { %v10005_v36 = vpop.f32.mrb[248].mxu1 }
 0xb20   : > { %v10352_v42 = vpack.c.bf16 %v10294_v55, %v10293_v31  ;;  %v10006_v61 = vadd.f32 %v10005_v36, %v16456_v57  ;;  %v10007_v2 = vpop.f32.mrb[249].mxu1 }
 0xb21   : > { %v10008_v3 = vpop.f32.mrb[250].mxu1 }
 0xb22   : > { %v10231_v32 = vadd.f32 %v16595_v7, %v10006_v61  ;;  %v10009_v50 = vadd.f32 %v10008_v3, %v16463_v52  ;;  %v10010_v11 = vpop.f32.mrb[251].mxu1  ;;  %12316 = vmatmul.mubr.bf16.gmra.mrb[232].mxu0 %v10352_v42 }
 0xb24   : > { %v10232_v33 = vadd.f32 %v16595_v7, %v10009_v50  ;;  %v10295_v12 = vmax.f32 %v10231_v32, 0.0 }
 0xb26   : > { %v10296_v25 = vmax.f32 %v10232_v33, 0.0 }
 0xb27   : > { %v10013_v9 = vpop.f32.mrb[252].mxu1 }
 0xb28   : > { %v10014_v23 = vadd.f32 %v16452_v29, %v10013_v9  ;;  %v10015_v38 = vpop.f32.mrb[253].mxu1  ;;  %v10353_v48 = vpack.c.bf16 %v10296_v25, %v10295_v12 }
 0xb29   : > { %v10016_v44 = vpop.f32.mrb[254].mxu1 }
 0xb2a   : > { %v10233_v57 = vadd.f32 %v16595_v7, %v10014_v23  ;;  %v10017_v34 = vadd.f32 %v17126_v24, %v10016_v44  ;;  %v10018_v40 = vpop.f32.mrb[255].mxu1  ;;  %12319 = vmatprep.mubr.bf16.mxu0 %v10353_v48 }
 0xb2c   : > { %v10234_v52 = vadd.f32 %v16595_v7, %v10017_v34  ;;  %v10297_v26 = vmax.f32 %v10233_v57, 0.0 }
 0xb2e   : > { %v10298_v17 = vmax.f32 %v10234_v52, 0.0 }
 0xb2f   : > { %v10021_v41 = vpop.f32.mrb[0].mxu1 }
 0xb30   : > { %v10354_v39 = vpack.c.bf16 %v10298_v17, %v10297_v26  ;;  %v10022_v18 = vadd.f32 %v10021_v41, %v16474_v62  ;;  %v10023_v6 = vpop.f32.mrb[1].mxu1 }
 0xb31   : > { %v10024_v43 = vpop.f32.mrb[2].mxu1 }
 0xb32   : > { %v10235_v29 = vadd.f32 %v16595_v7, %v10022_v18  ;;  %v10025_v19 = vadd.f32 %v10024_v43, %v16480_v22  ;;  %v10026_v30 = vpop.f32.mrb[3].mxu1  ;;  %12320 = vmatmul.mubr.bf16.gmra.mrb[236].mxu0 %v10354_v39 }
 0xb34   : > { %v10236_v49 = vadd.f32 %v16595_v7, %v10025_v19  ;;  %v10299_v14 = vmax.f32 %v10235_v29, 0.0 }
 0xb36   : > { %v10300_v51 = vmax.f32 %v10236_v49, 0.0 }
 0xb37   : > { %v10029_v58 = vpop.f32.mrb[4].mxu1 }
 0xb38   : > { %v10030_v31 = vadd.f32 %v16470_v13, %v10029_v58  ;;  %v10031_v55 = vpop.f32.mrb[5].mxu1  ;;  %v10355_v36 = vpack.c.bf16 %v10300_v51, %v10299_v14 }
 0xb39   : > { %v10032_v42 = vpop.f32.mrb[6].mxu1 }
 0xb3a   : > { %v10237_v62 = vadd.f32 %v16595_v7, %v10030_v31  ;;  %v10033_v61 = vadd.f32 %v16478_v54, %v10032_v42  ;;  %v10034_v2 = vpop.f32.mrb[7].mxu1  ;;  %12323 = vmatprep.mubr.bf16.mxu0 %v10355_v36  ;;  %v13321_v36 = vld [vmem:[%s17127_s11] sm:$0xff]  }
 0xb3b   : > { %12371 = vmatprep.subr.bf16.mxu0 %v13321_v36  ;;  %v13322_v2 = vld [vmem:[%s17127_s11 + $0x8] sm:$0xff]  }
 0xb3c   : > { %v10238_v22 = vadd.f32 %v16595_v7, %v10033_v61  ;;  %v10301_v3 = vmax.f32 %v10237_v62, 0.0  ;;  %12372 = vmatpush3.bf16.msra.mxu0 %v13321_v36 }
 0xb3d   : > { %12373 = vmatprep.subr.bf16.mxu0 %v13322_v2 }
 0xb3e   : > { %v10302_v32 = vmax.f32 %v10238_v22, 0.0 }
 0xb3f   : > { %v10037_v50 = vpop.f32.mrb[8].mxu1 }
 0xb40   : > { %v10356_v11 = vpack.c.bf16 %v10302_v32, %v10301_v3  ;;  %v10038_v33 = vadd.f32 %v10037_v50, %v16486_v45  ;;  %v10039_v12 = vpop.f32.mrb[9].mxu1  ;;  %12374 = vmatpush3.bf16.msra.mxu0 %v13322_v2 }
 0xb41   : > { %v10040_v25 = vpop.f32.mrb[10].mxu1 }
 0xb42   : > { %v10239_v13 = vadd.f32 %v16595_v7, %v10038_v33  ;;  %v10041_v9 = vadd.f32 %v10040_v25, %v16490_v37  ;;  %v10042_v23 = vpop.f32.mrb[11].mxu1  ;;  %12324 = vmatmul.mubr.bf16.gmra.mrb[240].mxu0 %v10356_v11  ;;  %v13323_v33 = vld [vmem:[%s17127_s11 + $0x10] sm:$0xff]  }
 0xb43   : > { %12375 = vmatprep.subr.bf16.mxu0 %v13323_v33  ;;  %v13324_v23 = vld [vmem:[%s17127_s11 + $0x18] sm:$0xff]  }
 0xb44   : > { %v10240_v54 = vadd.f32 %v16595_v7, %v10041_v9  ;;  %v10303_v38 = vmax.f32 %v10239_v13, 0.0  ;;  %12376 = vmatpush3.bf16.msra.mxu0 %v13323_v33 }
 0xb45   : > { %12377 = vmatprep.subr.bf16.mxu0 %v13324_v23 }
 0xb46   : > { %v10304_v48 = vmax.f32 %v10240_v54, 0.0 }
 0xb47   : > { %v10045_v44 = vpop.f32.mrb[12].mxu1 }
 0xb48   : > { %v10046_v57 = vadd.f32 %v16484_v28, %v10045_v44  ;;  %v10047_v24 = vpop.f32.mrb[13].mxu1  ;;  %v10357_v34 = vpack.c.bf16 %v10304_v48, %v10303_v38  ;;  %12378 = vmatpush3.bf16.msra.mxu0 %v13324_v23 }
 0xb49   : > { %v10048_v40 = vpop.f32.mrb[14].mxu1  ;;  %v13325_v24 = vld [vmem:[%s17127_s11 + $0x20] sm:$0xff]  }
 0xb4a   : > { %v10241_v45 = vadd.f32 %v16595_v7, %v10046_v57  ;;  %v10049_v52 = vadd.f32 %v16488_v1, %v10048_v40  ;;  %v10050_v26 = vpop.f32.mrb[15].mxu1  ;;  %12327 = vmatprep.mubr.bf16.mxu0 %v10357_v34  ;;  %v17128_v40 = vld [vmem:[#allocation52_spill] sm:$0xff]  ;;  %12379 = vmatprep.subr.bf16.mxu0 %v13325_v24 }
 0xb4c   : > { %v10242_v37 = vadd.f32 %v16595_v7, %v10049_v52  ;;  %v10305_v17 = vmax.f32 %v10241_v45, 0.0  ;;  %12380 = vmatpush3.bf16.msra.mxu0 %v13325_v24 }
 0xb4e   : > { %v10306_v41 = vmax.f32 %v10242_v37, 0.0  ;;  %v13326_v37 = vld [vmem:[%s17127_s11 + $0x28] sm:$0xff]  }
 0xb4f   : > { %v10053_v39 = vpop.f32.mrb[16].mxu1  ;;  %12381 = vmatprep.subr.bf16.mxu0 %v13326_v37 }
 0xb50   : > { %v10358_v18 = vpack.c.bf16 %v10306_v41, %v10305_v17  ;;  %v10054_v6 = vadd.f32 %v10053_v39, %v16496_v27  ;;  %v10055_v43 = vpop.f32.mrb[17].mxu1  ;;  %12382 = vmatpush3.bf16.msra.mxu0 %v13326_v37 }
 0xb51   : > { %v10056_v28 = vpop.f32.mrb[18].mxu1  ;;  %v13327_v43 = vld [vmem:[%s17127_s11 + $0x30] sm:$0xff]  }
 0xb52   : > { %v10243_v29 = vadd.f32 %v16595_v7, %v10054_v6  ;;  %v10057_v19 = vadd.f32 %v10056_v28, %v16500_v20  ;;  %v10058_v30 = vpop.f32.mrb[19].mxu1  ;;  %12328 = vmatmul.mubr.bf16.gmra.mrb[244].mxu0 %v10358_v18  ;;  %12383 = vmatprep.subr.bf16.mxu0 %v13327_v43 }
 0xb54   : > { %v10244_v1 = vadd.f32 %v16595_v7, %v10057_v19  ;;  %v10307_v49 = vmax.f32 %v10243_v29, 0.0  ;;  %12384 = vmatpush3.bf16.msra.mxu0 %v13327_v43 }
 0xb56   : > { %v10308_v14 = vmax.f32 %v10244_v1, 0.0 }
 0xb57   : > { %v10061_v51 = vpop.f32.mrb[20].mxu1 }
 0xb58   : > { %v10062_v58 = vadd.f32 %v16494_v53, %v10061_v51  ;;  %v10063_v31 = vpop.f32.mrb[21].mxu1  ;;  %v10359_v55 = vpack.c.bf16 %v10308_v14, %v10307_v49  ;;  %v13328_v49 = vld [vmem:[%s17127_s11 + $0x38] sm:$0xff]  }
 0xb59   : > { %v10064_v27 = vpop.f32.mrb[22].mxu1  ;;  %12385 = vmatprep.subr.bf16.mxu0 %v13328_v49 }
 0xb5a   : > { %v10245_v42 = vadd.f32 %v16595_v7, %v10062_v58  ;;  %v10065_v62 = vadd.f32 %v16498_v8, %v10064_v27  ;;  %v10066_v20 = vpop.f32.mrb[23].mxu1  ;;  %12331 = vmatprep.mubr.bf16.mxu0 %v10359_v55  ;;  %12386 = vmatpush3.bf16.msra.mxu0 %v13328_v49 }
 0xb5c   : > { %v10246_v61 = vadd.f32 %v16595_v7, %v10065_v62  ;;  %v10309_v22 = vmax.f32 %v10245_v42, 0.0 }
 0xb5e   : > { %v10310_v3 = vmax.f32 %v10246_v61, 0.0 }
 0xb5f   : > { %v10069_v53 = vpop.f32.mrb[24].mxu1 }
 0xb60   : > { %v10360_v32 = vpack.c.bf16 %v10310_v3, %v10309_v22  ;;  %v10070_v50 = vadd.f32 %v10069_v53, %v16506_v59  ;;  %v10071_v11 = vpop.f32.mrb[25].mxu1 }
 0xb61   : > { %v10072_v12 = vpop.f32.mrb[26].mxu1 }
 0xb62   : > { %v10247_v8 = vadd.f32 %v16595_v7, %v10070_v50  ;;  %v10073_v25 = vadd.f32 %v10072_v12, %v16510_v21  ;;  %v10074_v13 = vpop.f32.mrb[27].mxu1  ;;  %12332 = vmatmul.mubr.bf16.gmra.mrb[248].mxu0 %v10360_v32 }
 0xb64   : > { %v10248_v9 = vadd.f32 %v16595_v7, %v10073_v25  ;;  %v10311_v54 = vmax.f32 %v10247_v8, 0.0 }
 0xb66   : > { %v10312_v38 = vmax.f32 %v10248_v9, 0.0 }
 0xb67   : > { %v10077_v59 = vpop.f32.mrb[28].mxu1 }
 0xb68   : > { %v10078_v48 = vadd.f32 %v16504_v35, %v10077_v59  ;;  %v10079_v44 = vpop.f32.mrb[29].mxu1  ;;  %v10361_v57 = vpack.c.bf16 %v10312_v38, %v10311_v54  ;;  %v17131_v54 = vld [vmem:[#allocation55_spill] sm:$0xff] }
 0xb69   : > { %v10080_v34 = vpop.f32.mrb[30].mxu1 }
 0xb6a   : > { %v10249_v21 = vadd.f32 %v16595_v7, %v10078_v48  ;;  %v10081_v45 = vadd.f32 %v17128_v40, %v10080_v34  ;;  %v10082_v52 = vpop.f32.mrb[31].mxu1  ;;  %12335 = vmatprep.mubr.bf16.mxu0 %v10361_v57  ;;  %v17132_v57 = vld [vmem:[#allocation56_spill] sm:$0xff] }
 0xb6c   : > { %v10250_v26 = vadd.f32 %v16595_v7, %v10081_v45  ;;  %v10313_v17 = vmax.f32 %v10249_v21, 0.0 }
 0xb6e   : > { %v10314_v41 = vmax.f32 %v10250_v26, 0.0 }
 0xb6f   : > { %v10085_v35 = vpop.f32.mrb[32].mxu1 }
 0xb70   : > { %v10362_v39 = vpack.c.bf16 %v10314_v41, %v10313_v17  ;;  %v10086_v18 = vadd.f32 %v10085_v35, %v16516_v60  ;;  %v10087_v6 = vpop.f32.mrb[33].mxu1  ;;  %v17129_v60 = vld [vmem:[#allocation53_spill] sm:$0xff] }
 0xb71   : > { %v10088_v28 = vpop.f32.mrb[34].mxu1 }
 0xb72   : > { %v10251_v29 = vadd.f32 %v16595_v7, %v10086_v18  ;;  %v10089_v19 = vadd.f32 %v10088_v28, %v16520_v5  ;;  %v10090_v30 = vpop.f32.mrb[35].mxu1  ;;  %12336 = vmatmul.mubr.bf16.gmra.mrb[252].mxu0 %v10362_v39  ;;  %v17130_v5 = vld [vmem:[#allocation54_spill] sm:$0xff] }
 0xb74   : > { %v10252_v1 = vadd.f32 %v16595_v7, %v10089_v19  ;;  %v10315_v14 = vmax.f32 %v10251_v29, 0.0  ;;  %v17133_v29 = vld [vmem:[#allocation57_spill] sm:$0xff] }
 0xb76   : > { %v10316_v51 = vmax.f32 %v10252_v1, 0.0 }
 0xb77   : > { %v10093_v58 = vpop.f32.mrb[36].mxu1 }
 0xb78   : > { %v10094_v31 = vadd.f32 %v17129_v60, %v10093_v58  ;;  %v10095_v55 = vpop.f32.mrb[37].mxu1  ;;  %v10363_v36 = vpack.c.bf16 %v10316_v51, %v10315_v14  ;;  %v17134_v14 = vld [vmem:[#allocation58_spill] sm:$0xff] }
 0xb79   : > { %v10096_v27 = vpop.f32.mrb[38].mxu1 }
 0xb7a   : > { %v10253_v42 = vadd.f32 %v16595_v7, %v10094_v31  ;;  %v10097_v62 = vadd.f32 %v17130_v5, %v10096_v27  ;;  %v10098_v20 = vpop.f32.mrb[39].mxu1  ;;  %12339 = vmatprep.mubr.bf16.mxu0 %v10363_v36 }
 0xb7c   : > { %v10254_v61 = vadd.f32 %v16595_v7, %v10097_v62  ;;  %v10317_v2 = vmax.f32 %v10253_v42, 0.0 }
 0xb7e   : > { %v10318_v22 = vmax.f32 %v10254_v61, 0.0 }
 0xb7f   : > { %v10101_v3 = vpop.f32.mrb[40].mxu1 }
 0xb80   : > { %v10364_v53 = vpack.c.bf16 %v10318_v22, %v10317_v2  ;;  %v10102_v32 = vadd.f32 %v10101_v3, %v16526_v16  ;;  %v10103_v50 = vpop.f32.mrb[41].mxu1 }
 0xb81   : > { %v10104_v11 = vpop.f32.mrb[42].mxu1 }
 0xb82   : > { %v10255_v33 = vadd.f32 %v16595_v7, %v10102_v32  ;;  %v10105_v12 = vadd.f32 %v10104_v11, %v16530_v63  ;;  %v10106_v8 = vpop.f32.mrb[43].mxu1  ;;  %12340 = vmatmul.mubr.bf16.gmra.mrb[0].mxu0 %v10364_v53  ;;  %v17135_v32 = vld [vmem:[#allocation59_spill] sm:$0xff] }
 0xb83   : > { %v17136_v8 = vld [vmem:[#allocation60_spill] sm:$0xff] }
 0xb84   : > { %v10256_v25 = vadd.f32 %v16595_v7, %v10105_v12  ;;  %v10319_v13 = vmax.f32 %v10255_v33, 0.0 }
 0xb86   : > { %v10320_v9 = vmax.f32 %v10256_v25, 0.0 }
 0xb87   : > { %v10109_v23 = vpop.f32.mrb[44].mxu1 }
 0xb88   : > { %v10110_v38 = vadd.f32 %v17131_v54, %v10109_v23  ;;  %v10111_v59 = vpop.f32.mrb[45].mxu1  ;;  %v10365_v48 = vpack.c.bf16 %v10320_v9, %v10319_v13 }
 0xb89   : > { %v10112_v44 = vpop.f32.mrb[46].mxu1 }
 0xb8a   : > { %v10257_v16 = vadd.f32 %v16595_v7, %v10110_v38  ;;  %v10113_v24 = vadd.f32 %v17132_v57, %v10112_v44  ;;  %v10114_v34 = vpop.f32.mrb[47].mxu1  ;;  %12343 = vmatprep.mubr.bf16.mxu0 %v10365_v48 }
 0xb8c   : > { %v10258_v63 = vadd.f32 %v16595_v7, %v10113_v24  ;;  %v10321_v21 = vmax.f32 %v10257_v16, 0.0 }
 0xb8e   : > { %v10322_v40 = vmax.f32 %v10258_v63, 0.0 }
 0xb8f   : > { %v10117_v45 = vpop.f32.mrb[48].mxu1 }
 0xb90   : > { %v10366_v52 = vpack.c.bf16 %v10322_v40, %v10321_v21  ;;  %v10118_v26 = vadd.f32 %v10117_v45, %v16536_v0  ;;  %v10119_v37 = vpop.f32.mrb[49].mxu1 }
 0xb91   : > { %v10120_v17 = vpop.f32.mrb[50].mxu1 }
 0xb92   : > { %v10259_v41 = vadd.f32 %v16595_v7, %v10118_v26  ;;  %v10121_v35 = vadd.f32 %v10120_v17, %v16540_v15  ;;  %v10122_v39 = vpop.f32.mrb[51].mxu1  ;;  %12344 = vmatmul.mubr.bf16.gmra.mrb[4].mxu0 %v10366_v52  ;;  %v17137_v17 = vld [vmem:[#allocation61_spill] sm:$0xff] }
 0xb94   : > { %v10260_v18 = vadd.f32 %v16595_v7, %v10121_v35  ;;  %v10323_v6 = vmax.f32 %v10259_v41, 0.0 }
 0xb96   : > { %v10324_v43 = vmax.f32 %v10260_v18, 0.0 }
 0xb97   : > { %v10125_v28 = vpop.f32.mrb[52].mxu1 }
 0xb98   : > { %v10126_v19 = vadd.f32 %v17133_v29, %v10125_v28  ;;  %v10127_v30 = vpop.f32.mrb[53].mxu1  ;;  %v10367_v1 = vpack.c.bf16 %v10324_v43, %v10323_v6  ;;  %v17138_v28 = vld [vmem:[#allocation63_spill] sm:$0xff] }
 0xb99   : > { %v10128_v49 = vpop.f32.mrb[54].mxu1 }
 0xb9a   : > { %v10261_v0 = vadd.f32 %v16595_v7, %v10126_v19  ;;  %v10129_v51 = vadd.f32 %v17134_v14, %v10128_v49  ;;  %v10130_v58 = vpop.f32.mrb[55].mxu1  ;;  %12347 = vmatprep.mubr.bf16.mxu0 %v10367_v1  ;;  %v17139_v1 = vld [vmem:[#allocation65_spill] sm:$0xff] }
 0xb9c   : > { %v10262_v15 = vadd.f32 %v16595_v7, %v10129_v51  ;;  %v10325_v60 = vmax.f32 %v10261_v0, 0.0 }
 0xb9e   : > { %v10326_v31 = vmax.f32 %v10262_v15, 0.0 }
 0xb9f   : > { %v10133_v55 = vpop.f32.mrb[56].mxu1 }
 0xba0   : > { %v10368_v36 = vpack.c.bf16 %v10326_v31, %v10325_v60  ;;  %v10134_v27 = vadd.f32 %v10133_v55, %v16546_v56  ;;  %v10135_v42 = vpop.f32.mrb[57].mxu1  ;;  %v17140_v60 = vld [vmem:[#allocation62_spill] sm:$0xff] }
 0xba1   : > { %v10136_v5 = vpop.f32.mrb[58].mxu1 }
 0xba2   : > { %v10263_v62 = vadd.f32 %v16595_v7, %v10134_v27  ;;  %v10137_v20 = vadd.f32 %v10136_v5, %v16550_v10  ;;  %v10138_v61 = vpop.f32.mrb[59].mxu1  ;;  %12348 = vmatmul.mubr.bf16.gmra.mrb[8].mxu0 %v10368_v36  ;;  %v17141_v5 = vld [vmem:[#allocation64_spill] sm:$0xff] }
 0xba4   : > { %v10264_v2 = vadd.f32 %v16595_v7, %v10137_v20  ;;  %v10327_v22 = vmax.f32 %v10263_v62, 0.0 }
 0xba6   : > { %v10328_v3 = vmax.f32 %v10264_v2, 0.0 }
 0xba7   : > { %v10141_v53 = vpop.f32.mrb[60].mxu1 }
 0xba8   : > { %v10142_v50 = vadd.f32 %v17135_v32, %v10141_v53  ;;  %v10143_v11 = vpop.f32.mrb[61].mxu1  ;;  %v10369_v33 = vpack.c.bf16 %v10328_v3, %v10327_v22  ;;  %v17142_v32 = vld [vmem:[#allocation67_spill] sm:$0xff] }
 0xba9   : > { %v10144_v12 = vpop.f32.mrb[62].mxu1 }
 0xbaa   : > { %v10265_v56 = vadd.f32 %v16595_v7, %v10142_v50  ;;  %v10145_v25 = vadd.f32 %v17136_v8, %v10144_v12  ;;  %v10146_v13 = vpop.f32.mrb[63].mxu1  ;;  %12351 = vmatprep.mubr.bf16.mxu0 %v10369_v33 }
 0xbab   : > { %v16730_v13 = vld [vmem:[%s13932_s20] ss:$0 sm:$0xff] }
 0xbac   : > { %v10266_v10 = vadd.f32 %v16595_v7, %v10145_v25  ;;  %v10329_v9 = vmax.f32 %v10265_v56, 0.0  ;;  %v17143_v56 = vld [vmem:[#allocation69_spill] sm:$0xff] }
 0xbae   : > { %v10330_v23 = vmax.f32 %v10266_v10, 0.0 }
 0xbaf   : > { %v10149_v54 = vpop.f32.mrb[64].mxu1 }
 0xbb0   : > { %v10370_v38 = vpack.c.bf16 %v10330_v23, %v10329_v9  ;;  %v10150_v59 = vadd.f32 %v10149_v54, %v16556_v4  ;;  %v10151_v48 = vpop.f32.mrb[65].mxu1 }
 0xbb1   : > { %v10152_v44 = vpop.f32.mrb[66].mxu1 }
 0xbb2   : > { %v10267_v16 = vadd.f32 %v16595_v7, %v10150_v59  ;;  %v10153_v57 = vadd.f32 %v10152_v44, %v16560_v47  ;;  %v10154_v24 = vpop.f32.mrb[67].mxu1  ;;  %12352 = vmatmul.mubr.bf16.gmra.mrb[12].mxu0 %v10370_v38 }
 0xbb4   : > { %v10268_v34 = vadd.f32 %v16595_v7, %v10153_v57  ;;  %v10331_v63 = vmax.f32 %v10267_v16, 0.0  ;;  %v17144_v57 = vld [vmem:[#allocation66_spill] sm:$0xff] }
 0xbb6   : > { %v10332_v21 = vmax.f32 %v10268_v34, 0.0 }
 0xbb7   : > { %v10157_v40 = vpop.f32.mrb[68].mxu1 }
 0xbb8   : > { %v10158_v45 = vadd.f32 %v16554_v46, %v10157_v40  ;;  %v10159_v52 = vpop.f32.mrb[69].mxu1  ;;  %v10371_v26 = vpack.c.bf16 %v10332_v21, %v10331_v63 }
 0xbb9   : > { %v10160_v37 = vpop.f32.mrb[70].mxu1 }
 0xbba   : > { %v10269_v4 = vadd.f32 %v16595_v7, %v10158_v45  ;;  %v10161_v41 = vadd.f32 %v17137_v17, %v10160_v37  ;;  %v10162_v35 = vpop.f32.mrb[71].mxu1  ;;  %12355 = vmatprep.mubr.bf16.mxu0 %v10371_v26  ;;  %v17145_v17 = vld [vmem:[#allocation68_spill] sm:$0xff] }
 0xbbc   : > { %v10270_v47 = vadd.f32 %v16595_v7, %v10161_v41  ;;  %v10333_v39 = vmax.f32 %v10269_v4, 0.0 }
 0xbbe   : > { %v10334_v18 = vmax.f32 %v10270_v47, 0.0 }
 0xbbf   : > { %v10165_v6 = vpop.f32.mrb[72].mxu1 }
 0xbc0   : > { %v10372_v43 = vpack.c.bf16 %v10334_v18, %v10333_v39  ;;  %v10166_v29 = vadd.f32 %v10165_v6, %v17138_v28  ;;  %v10167_v19 = vpop.f32.mrb[73].mxu1 }
 0xbc1   : > { %v10168_v30 = vpop.f32.mrb[74].mxu1 }
 0xbc2   : > { %v10271_v46 = vadd.f32 %v16595_v7, %v10166_v29  ;;  %v10169_v49 = vadd.f32 %v10168_v30, %v17139_v1  ;;  %v10170_v0 = vpop.f32.mrb[75].mxu1  ;;  %12356 = vmatmul.mubr.bf16.gmra.mrb[16].mxu0 %v10372_v43 }
 0xbc4   : > { %v10272_v14 = vadd.f32 %v16595_v7, %v10169_v49  ;;  %v10335_v51 = vmax.f32 %v10271_v46, 0.0  ;;  %v17146_v46 = vld [vmem:[#allocation71_spill] sm:$0xff] }
 0xbc6   : > { %v10336_v58 = vmax.f32 %v10272_v14, 0.0 }
 0xbc7   : > { %v10173_v15 = vpop.f32.mrb[76].mxu1 }
 0xbc8   : > { %v10174_v31 = vadd.f32 %v17140_v60, %v10173_v15  ;;  %v10175_v55 = vpop.f32.mrb[77].mxu1  ;;  %v10373_v36 = vpack.c.bf16 %v10336_v58, %v10335_v51  ;;  %v17147_v51 = vld [vmem:[#allocation73_spill] sm:$0xff] }
 0xbc9   : > { %v10176_v27 = vpop.f32.mrb[78].mxu1 }
 0xbca   : > { %v10273_v42 = vadd.f32 %v16595_v7, %v10174_v31  ;;  %v10177_v62 = vadd.f32 %v17141_v5, %v10176_v27  ;;  %v10178_v20 = vpop.f32.mrb[79].mxu1  ;;  %12359 = vmatprep.mubr.bf16.mxu0 %v10373_v36 }
 0xbcc   : > { %v10274_v61 = vadd.f32 %v16595_v7, %v10177_v62  ;;  %v10337_v2 = vmax.f32 %v10273_v42, 0.0 }
 0xbce   : > { %v10338_v22 = vmax.f32 %v10274_v61, 0.0  ;;  %v17148_v61 = vld [vmem:[#allocation70_spill] sm:$0xff] }
 0xbcf   : > { %v10181_v3 = vpop.f32.mrb[80].mxu1 }
 0xbd0   : > { %v10374_v53 = vpack.c.bf16 %v10338_v22, %v10337_v2  ;;  %v10182_v50 = vadd.f32 %v10181_v3, %v17142_v32  ;;  %v10183_v11 = vpop.f32.mrb[81].mxu1 }
 0xbd1   : > { %v10184_v33 = vpop.f32.mrb[82].mxu1 }
 0xbd2   : > { %v10275_v12 = vadd.f32 %v16595_v7, %v10182_v50  ;;  %v10185_v8 = vadd.f32 %v10184_v33, %v17143_v56  ;;  %v10186_v25 = vpop.f32.mrb[83].mxu1  ;;  %12360 = vmatmul.mubr.bf16.gmra.mrb[20].mxu0 %v10374_v53 }
 0xbd4   : > { %v10276_v10 = vadd.f32 %v16595_v7, %v10185_v8  ;;  %v10339_v23 = vmax.f32 %v10275_v12, 0.0  ;;  %v17149_v8 = vld [vmem:[#allocation72_spill] sm:$0xff] }
 0xbd5   : > { %v12309_v9 = vpop.f32.mrb[224].mxu0 }
 0xbd6   : > { %v10340_v54 = vmax.f32 %v10276_v10, 0.0  ;;  %v10493_v38 = vadd.f32 %v12309_v9, %v16730_v13  ;;  %v10484_v59 = vpop.f32.mrb[225].mxu0 }
 0xbd7   : > { %v10485_v48 = vadd.f32 %v16730_v13, %v10484_v59  ;;  %v10189_v44 = vpop.f32.mrb[84].mxu1  ;;  %v12310_v16 = vpop.f32.mrb[226].mxu0 }
 0xbd8   : > { %v10190_v24 = vadd.f32 %v17144_v57, %v10189_v44  ;;  %v10496_v34 = vadd.f32 %v12310_v16, %v16730_v13  ;;  %v10191_v63 = vpop.f32.mrb[85].mxu1  ;;  %v10487_v21 = vpop.f32.mrb[227].mxu0  ;;  %v10375_v40 = vpack.c.bf16 %v10340_v54, %v10339_v23  ;;  %v10741_v26 = vmax.f32 %v10493_v38, 0.0 }
 0xbd9   : > { %v10488_v45 = vadd.f32 %v16730_v13, %v10487_v21  ;;  %v10192_v52 = vpop.f32.mrb[86].mxu1  ;;  %v10739_v47 = vmax.f32 %v10485_v48, 0.0 }
 0xbda   : > { %v10277_v37 = vadd.f32 %v16595_v7, %v10190_v24  ;;  %v10742_v4 = vmax.f32 %v10496_v34, 0.0  ;;  %v10193_v41 = vadd.f32 %v17145_v17, %v10192_v52  ;;  %v10194_v35 = vpop.f32.mrb[87].mxu1  ;;  %12363 = vmatprep.mubr.bf16.mxu0 %v10375_v40 }
 0xbdb   : > { %v10740_v39 = vmax.f32 %v10488_v45, 0.0 }
 0xbdc   : > { %v10804_v18 = vpack.c.bf16 %v10742_v4, %v10741_v26  ;;  %v10278_v6 = vadd.f32 %v16595_v7, %v10193_v41  ;;  %v10341_v28 = vmax.f32 %v10277_v37, 0.0 }
 0xbdd   : > { %v10803_v43 = vpack.c.bf16 %v10740_v39, %v10739_v47 }
 0xbde   : > { %v10342_v29 = vmax.f32 %v10278_v6, 0.0 }
 0xbdf   : > { %v10197_v19 = vpop.f32.mrb[88].mxu1 }
 0xbe0   : > { %v10376_v30 = vpack.c.bf16 %v10342_v29, %v10341_v28  ;;  %v10198_v1 = vadd.f32 %v10197_v19, %v17146_v46  ;;  %v10199_v49 = vpop.f32.mrb[89].mxu1 }
 0xbe1   : > { %v10200_v0 = vpop.f32.mrb[90].mxu1 }
 0xbe2   : > { %v10279_v14 = vadd.f32 %v16595_v7, %v10198_v1  ;;  %v10201_v58 = vadd.f32 %v10200_v0, %v17147_v51  ;;  %v10202_v15 = vpop.f32.mrb[91].mxu1  ;;  %12364 = vmatmul.mubr.bf16.gmra.mrb[24].mxu0 %v10376_v30 }
 0xbe4   : > { %v10280_v60 = vadd.f32 %v16595_v7, %v10201_v58  ;;  %v10343_v55 = vmax.f32 %v10279_v14, 0.0 }
 0xbe5   : > { %v12313_v31 = vpop.f32.mrb[228].mxu0 }
 0xbe6   : > { %v10344_v36 = vmax.f32 %v10280_v60, 0.0  ;;  %v10509_v27 = vadd.f32 %v12313_v31, %v16730_v13  ;;  %v10500_v42 = vpop.f32.mrb[229].mxu0 }
 0xbe7   : > { %v10501_v5 = vadd.f32 %v16730_v13, %v10500_v42  ;;  %v10205_v62 = vpop.f32.mrb[92].mxu1  ;;  %v12314_v20 = vpop.f32.mrb[230].mxu0 }
 0xbe8   : > { %v10206_v2 = vadd.f32 %v17148_v61, %v10205_v62  ;;  %v10512_v22 = vadd.f32 %v12314_v20, %v16730_v13  ;;  %v10207_v3 = vpop.f32.mrb[93].mxu1  ;;  %v10503_v53 = vpop.f32.mrb[231].mxu0  ;;  %v10377_v32 = vpack.c.bf16 %v10344_v36, %v10343_v55  ;;  %v10745_v33 = vmax.f32 %v10509_v27, 0.0 }
 0xbe9   : > { %v10504_v50 = vadd.f32 %v16730_v13, %v10503_v53  ;;  %v10208_v11 = vpop.f32.mrb[94].mxu1  ;;  %v10743_v9 = vmax.f32 %v10501_v5, 0.0 }
 0xbea   : > { %v10281_v12 = vadd.f32 %v16595_v7, %v10206_v2  ;;  %v10746_v56 = vmax.f32 %v10512_v22, 0.0  ;;  %v10209_v25 = vadd.f32 %v17149_v8, %v10208_v11  ;;  %v10210_v10 = vpop.f32.mrb[95].mxu1  ;;  %12367 = vmatprep.mubr.bf16.mxu0 %v10377_v32 }
 0xbeb   : > { %v10744_v23 = vmax.f32 %v10504_v50, 0.0 }
 0xbec   : > { %v10806_v54 = vpack.c.bf16 %v10746_v56, %v10745_v33  ;;  %v10282_v38 = vadd.f32 %v16595_v7, %v10209_v25  ;;  %v10345_v48 = vmax.f32 %v10281_v12, 0.0 }
 0xbed   : > { %v10805_v59 = vpack.c.bf16 %v10744_v23, %v10743_v9 }
 0xbee   : > { %v10346_v44 = vmax.f32 %v10282_v38, 0.0 }
 0xbf0   : > { %v10378_v16 = vpack.c.bf16 %v10346_v44, %v10345_v48 }
 0xbf2   : > { %12368 = vmatmul.mubr.bf16.gmra.mrb[28].mxu0 %v10378_v16 }
 0xbf3   : > { %12387 = vmatprep.mubr.bf16.mxu0 %v10803_v43 }
 0xbf5   : > { %v12317_v57 = vpop.f32.mrb[232].mxu0 }
 0xbf6   : > { %v10525_v24 = vadd.f32 %v12317_v57, %v16730_v13  ;;  %v10516_v34 = vpop.f32.mrb[233].mxu0 }
 0xbf7   : > { %v10517_v63 = vadd.f32 %v16730_v13, %v10516_v34  ;;  %v12318_v21 = vpop.f32.mrb[234].mxu0 }
 0xbf8   : > { %v10528_v40 = vadd.f32 %v12318_v21, %v16730_v13  ;;  %v10519_v45 = vpop.f32.mrb[235].mxu0  ;;  %v10749_v26 = vmax.f32 %v10525_v24, 0.0 }
 0xbf9   : > { %v10520_v52 = vadd.f32 %v16730_v13, %v10519_v45  ;;  %v10747_v37 = vmax.f32 %v10517_v63, 0.0 }
 0xbfa   : > { %v10750_v7 = vmax.f32 %v10528_v40, 0.0  ;;  %12388 = vmatmul.mubr.bf16.vlgmr.msra.gmra.mrb[32].mxu0 %v10804_v18 }
 0xbfb   : > { %v10748_v4 = vmax.f32 %v10520_v52, 0.0  ;;  %12391 = vmatprep.mubr.bf16.mxu0 %v10805_v59 }
 0xbfc   : > { %v10808_v17 = vpack.c.bf16 %v10750_v7, %v10749_v26 }
 0xbfd   : > { %v10807_v41 = vpack.c.bf16 %v10748_v4, %v10747_v37 }
 0xc02   : > { %12392 = vmatmul.mubr.bf16.gmra.mrb[36].mxu0 %v10806_v54 }
 0xc03   : > { %12395 = vmatprep.mubr.bf16.mxu0 %v10807_v41 }
 0xc05   : > { %v12321_v35 = vpop.f32.mrb[236].mxu0 }
 0xc06   : > { %v10541_v47 = vadd.f32 %v12321_v35, %v16730_v13  ;;  %v10532_v39 = vpop.f32.mrb[237].mxu0 }
 0xc07   : > { %v10533_v6 = vadd.f32 %v16730_v13, %v10532_v39  ;;  %v12322_v43 = vpop.f32.mrb[238].mxu0 }
 0xc08   : > { %v10544_v28 = vadd.f32 %v12322_v43, %v16730_v13  ;;  %v10535_v29 = vpop.f32.mrb[239].mxu0  ;;  %v10753_v18 = vmax.f32 %v10541_v47, 0.0 }
 0xc09   : > { %v10536_v19 = vadd.f32 %v16730_v13, %v10535_v29  ;;  %v10751_v46 = vmax.f32 %v10533_v6, 0.0 }
 0xc0a   : > { %v10754_v30 = vmax.f32 %v10544_v28, 0.0  ;;  %12396 = vmatmul.mubr.bf16.gmra.mrb[40].mxu0 %v10808_v17 }
 0xc0b   : > { %v10752_v1 = vmax.f32 %v10536_v19, 0.0 }
 0xc0c   : > { %v10810_v49 = vpack.c.bf16 %v10754_v30, %v10753_v18 }
 0xc0d   : > { %v10809_v0 = vpack.c.bf16 %v10752_v1, %v10751_v46 }
 0xc0f   : > { %12399 = vmatprep.mubr.bf16.mxu0 %v10809_v0 }
 0xc12   : > { %12400 = vmatmul.mubr.bf16.gmra.mrb[44].mxu0 %v10810_v49 }
 0xc15   : > { %v12325_v14 = vpop.f32.mrb[240].mxu0 }
 0xc16   : > { %v10557_v51 = vadd.f32 %v12325_v14, %v16730_v13  ;;  %v10548_v58 = vpop.f32.mrb[241].mxu0 }
 0xc17   : > { %v10549_v15 = vadd.f32 %v16730_v13, %v10548_v58  ;;  %v12326_v60 = vpop.f32.mrb[242].mxu0 }
 0xc18   : > { %v10560_v31 = vadd.f32 %v12326_v60, %v16730_v13  ;;  %v10551_v55 = vpop.f32.mrb[243].mxu0  ;;  %v10757_v27 = vmax.f32 %v10557_v51, 0.0 }
 0xc19   : > { %v10552_v36 = vadd.f32 %v16730_v13, %v10551_v55  ;;  %v10755_v5 = vmax.f32 %v10549_v15, 0.0 }
 0xc1a   : > { %v10758_v42 = vmax.f32 %v10560_v31, 0.0 }
 0xc1b   : > { %v10756_v62 = vmax.f32 %v10552_v36, 0.0 }
 0xc1c   : > { %v10812_v20 = vpack.c.bf16 %v10758_v42, %v10757_v27 }
 0xc1d   : > { %v10811_v61 = vpack.c.bf16 %v10756_v62, %v10755_v5 }
 0xc1f   : > { %12403 = vmatprep.mubr.bf16.mxu0 %v10811_v61 }
 0xc20   : > { %12404 = vmatmul.mubr.bf16.gmra.mrb[48].mxu0 %v10812_v20 }
 0xc25   : > { %v12329_v2 = vpop.f32.mrb[244].mxu0 }
 0xc26   : > { %v10573_v22 = vadd.f32 %v12329_v2, %v16730_v13  ;;  %v10564_v3 = vpop.f32.mrb[245].mxu0 }
 0xc27   : > { %v10565_v53 = vadd.f32 %v16730_v13, %v10564_v3  ;;  %v12330_v32 = vpop.f32.mrb[246].mxu0 }
 0xc28   : > { %v10576_v50 = vadd.f32 %v12330_v32, %v16730_v13  ;;  %v10567_v11 = vpop.f32.mrb[247].mxu0  ;;  %v10761_v12 = vmax.f32 %v10573_v22, 0.0 }
 0xc29   : > { %v10568_v33 = vadd.f32 %v16730_v13, %v10567_v11  ;;  %v10759_v8 = vmax.f32 %v10565_v53, 0.0 }
 0xc2a   : > { %v10762_v56 = vmax.f32 %v10576_v50, 0.0 }
 0xc2b   : > { %v10760_v25 = vmax.f32 %v10568_v33, 0.0 }
 0xc2c   : > { %v10814_v10 = vpack.c.bf16 %v10762_v56, %v10761_v12 }
 0xc2d   : > { %v10813_v9 = vpack.c.bf16 %v10760_v25, %v10759_v8 }
 0xc2f   : > { %12407 = vmatprep.mubr.bf16.mxu0 %v10813_v9 }
 0xc30   : > { %12408 = vmatmul.mubr.bf16.gmra.mrb[52].mxu0 %v10814_v10 }
 0xc35   : > { %v12333_v23 = vpop.f32.mrb[248].mxu0 }
 0xc36   : > { %v10589_v54 = vadd.f32 %v12333_v23, %v16730_v13  ;;  %v10580_v38 = vpop.f32.mrb[249].mxu0 }
 0xc37   : > { %v10581_v59 = vadd.f32 %v16730_v13, %v10580_v38  ;;  %v12334_v48 = vpop.f32.mrb[250].mxu0 }
 0xc38   : > { %v10592_v44 = vadd.f32 %v12334_v48, %v16730_v13  ;;  %v10583_v16 = vpop.f32.mrb[251].mxu0  ;;  %v10765_v24 = vmax.f32 %v10589_v54, 0.0 }
 0xc39   : > { %v10584_v57 = vadd.f32 %v16730_v13, %v10583_v16  ;;  %v10763_v63 = vmax.f32 %v10581_v59, 0.0 }
 0xc3a   : > { %v10766_v34 = vmax.f32 %v10592_v44, 0.0 }
 0xc3b   : > { %v10764_v21 = vmax.f32 %v10584_v57, 0.0 }
 0xc3c   : > { %v10816_v40 = vpack.c.bf16 %v10766_v34, %v10765_v24 }
 0xc3d   : > { %v10815_v45 = vpack.c.bf16 %v10764_v21, %v10763_v63 }
 0xc3f   : > { %12411 = vmatprep.mubr.bf16.mxu0 %v10815_v45 }
 0xc40   : > { %12412 = vmatmul.mubr.bf16.gmra.mrb[56].mxu0 %v10816_v40 }
 0xc45   : > { %v12337_v52 = vpop.f32.mrb[252].mxu0 }
 0xc46   : > { %v10605_v26 = vadd.f32 %v12337_v52, %v16730_v13  ;;  %v10596_v7 = vpop.f32.mrb[253].mxu0 }
 0xc47   : > { %v10597_v37 = vadd.f32 %v16730_v13, %v10596_v7  ;;  %v12338_v4 = vpop.f32.mrb[254].mxu0 }
 0xc48   : > { %v10608_v17 = vadd.f32 %v12338_v4, %v16730_v13  ;;  %v10599_v41 = vpop.f32.mrb[255].mxu0  ;;  %v10769_v47 = vmax.f32 %v10605_v26, 0.0 }
 0xc49   : > { %v10600_v35 = vadd.f32 %v16730_v13, %v10599_v41  ;;  %v10767_v6 = vmax.f32 %v10597_v37, 0.0 }
 0xc4a   : > { %v10770_v39 = vmax.f32 %v10608_v17, 0.0 }
 0xc4b   : > { %v10768_v43 = vmax.f32 %v10600_v35, 0.0 }
 0xc4c   : > { %v10818_v28 = vpack.c.bf16 %v10770_v39, %v10769_v47 }
 0xc4d   : > { %v10817_v29 = vpack.c.bf16 %v10768_v43, %v10767_v6 }
 0xc4f   : > { %12415 = vmatprep.mubr.bf16.mxu0 %v10817_v29 }
 0xc50   : > { %12416 = vmatmul.mubr.bf16.gmra.mrb[60].mxu0 %v10818_v28 }
 0xc55   : > { %v12341_v19 = vpop.f32.mrb[0].mxu0 }
 0xc56   : > { %v10621_v18 = vadd.f32 %v12341_v19, %v16730_v13  ;;  %v10612_v30 = vpop.f32.mrb[1].mxu0 }
 0xc57   : > { %v10613_v46 = vadd.f32 %v16730_v13, %v10612_v30  ;;  %v12342_v1 = vpop.f32.mrb[2].mxu0 }
 0xc58   : > { %v10624_v49 = vadd.f32 %v12342_v1, %v16730_v13  ;;  %v10615_v0 = vpop.f32.mrb[3].mxu0  ;;  %v10773_v51 = vmax.f32 %v10621_v18, 0.0 }
 0xc59   : > { %v10616_v14 = vadd.f32 %v16730_v13, %v10615_v0  ;;  %v10771_v15 = vmax.f32 %v10613_v46, 0.0 }
 0xc5a   : > { %v10774_v58 = vmax.f32 %v10624_v49, 0.0 }
 0xc5b   : > { %v10772_v60 = vmax.f32 %v10616_v14, 0.0 }
 0xc5c   : > { %v10820_v31 = vpack.c.bf16 %v10774_v58, %v10773_v51 }
 0xc5d   : > { %v10819_v55 = vpack.c.bf16 %v10772_v60, %v10771_v15 }
 0xc5f   : > { %12419 = vmatprep.mubr.bf16.mxu0 %v10819_v55 }
 0xc60   : > { %12420 = vmatmul.mubr.bf16.gmra.mrb[64].mxu0 %v10820_v31 }
 0xc65   : > { %v12345_v36 = vpop.f32.mrb[4].mxu0 }
 0xc66   : > { %v10637_v27 = vadd.f32 %v12345_v36, %v16730_v13  ;;  %v10628_v42 = vpop.f32.mrb[5].mxu0 }
 0xc67   : > { %v10629_v5 = vadd.f32 %v16730_v13, %v10628_v42  ;;  %v12346_v62 = vpop.f32.mrb[6].mxu0 }
 0xc68   : > { %v10640_v20 = vadd.f32 %v12346_v62, %v16730_v13  ;;  %v10631_v61 = vpop.f32.mrb[7].mxu0  ;;  %v10777_v22 = vmax.f32 %v10637_v27, 0.0 }
 0xc69   : > { %v10632_v2 = vadd.f32 %v16730_v13, %v10631_v61  ;;  %v10775_v53 = vmax.f32 %v10629_v5, 0.0 }
 0xc6a   : > { %v10778_v3 = vmax.f32 %v10640_v20, 0.0 }
 0xc6b   : > { %v10776_v32 = vmax.f32 %v10632_v2, 0.0 }
 0xc6c   : > { %v10822_v50 = vpack.c.bf16 %v10778_v3, %v10777_v22 }
 0xc6d   : > { %v10821_v11 = vpack.c.bf16 %v10776_v32, %v10775_v53 }
 0xc6f   : > { %12423 = vmatprep.mubr.bf16.mxu0 %v10821_v11 }
 0xc70   : > { %12424 = vmatmul.mubr.bf16.gmra.mrb[68].mxu0 %v10822_v50 }
 0xc75   : > { %v12349_v33 = vpop.f32.mrb[8].mxu0 }
 0xc76   : > { %v10653_v12 = vadd.f32 %v12349_v33, %v16730_v13  ;;  %v10644_v56 = vpop.f32.mrb[9].mxu0 }
 0xc77   : > { %v10645_v8 = vadd.f32 %v16730_v13, %v10644_v56  ;;  %v12350_v25 = vpop.f32.mrb[10].mxu0 }
 0xc78   : > { %v10656_v10 = vadd.f32 %v12350_v25, %v16730_v13  ;;  %v10647_v9 = vpop.f32.mrb[11].mxu0  ;;  %v10781_v54 = vmax.f32 %v10653_v12, 0.0 }
 0xc79   : > { %v10648_v23 = vadd.f32 %v16730_v13, %v10647_v9  ;;  %v10779_v59 = vmax.f32 %v10645_v8, 0.0 }
 0xc7a   : > { %v10782_v38 = vmax.f32 %v10656_v10, 0.0 }
 0xc7b   : > { %v10780_v48 = vmax.f32 %v10648_v23, 0.0 }
 0xc7c   : > { %v10824_v44 = vpack.c.bf16 %v10782_v38, %v10781_v54 }
 0xc7d   : > { %v10823_v16 = vpack.c.bf16 %v10780_v48, %v10779_v59 }
 0xc7f   : > { %12427 = vmatprep.mubr.bf16.mxu0 %v10823_v16 }
 0xc80   : > { %12428 = vmatmul.mubr.bf16.gmra.mrb[72].mxu0 %v10824_v44 }
 0xc85   : > { %v12353_v57 = vpop.f32.mrb[12].mxu0 }
 0xc86   : > { %v10669_v24 = vadd.f32 %v12353_v57, %v16730_v13  ;;  %v10660_v34 = vpop.f32.mrb[13].mxu0 }
 0xc87   : > { %v10661_v63 = vadd.f32 %v16730_v13, %v10660_v34  ;;  %v12354_v21 = vpop.f32.mrb[14].mxu0 }
 0xc88   : > { %v10672_v40 = vadd.f32 %v12354_v21, %v16730_v13  ;;  %v10663_v45 = vpop.f32.mrb[15].mxu0  ;;  %v10785_v26 = vmax.f32 %v10669_v24, 0.0 }
 0xc89   : > { %v10664_v52 = vadd.f32 %v16730_v13, %v10663_v45  ;;  %v10783_v37 = vmax.f32 %v10661_v63, 0.0 }
 0xc8a   : > { %v10786_v7 = vmax.f32 %v10672_v40, 0.0  ;;  %v16810_v40 = vld [vmem:[%s13937_s4] ss:$0 sm:$0xff] }
 0xc8b   : > { %v10784_v4 = vmax.f32 %v10664_v52, 0.0 }
 0xc8c   : > { %v10826_v17 = vpack.c.bf16 %v10786_v7, %v10785_v26 }
 0xc8d   : > { %v10825_v41 = vpack.c.bf16 %v10784_v4, %v10783_v37 }
 0xc8f   : > { %12431 = vmatprep.mubr.bf16.mxu0 %v10825_v41 }
 0xc90   : > { %12432 = vmatmul.mubr.bf16.gmra.mrb[76].mxu0 %v10826_v17 }
 0xc95   : > { %v12357_v35 = vpop.f32.mrb[16].mxu0 }
 0xc96   : > { %v10685_v47 = vadd.f32 %v12357_v35, %v16730_v13  ;;  %v10676_v39 = vpop.f32.mrb[17].mxu0 }
 0xc97   : > { %v10677_v6 = vadd.f32 %v16730_v13, %v10676_v39  ;;  %v12358_v43 = vpop.f32.mrb[18].mxu0 }
 0xc98   : > { %v10688_v28 = vadd.f32 %v12358_v43, %v16730_v13  ;;  %v10679_v29 = vpop.f32.mrb[19].mxu0  ;;  %v10789_v18 = vmax.f32 %v10685_v47, 0.0 }
 0xc99   : > { %v10680_v19 = vadd.f32 %v16730_v13, %v10679_v29  ;;  %v10787_v46 = vmax.f32 %v10677_v6, 0.0 }
 0xc9a   : > { %v10790_v30 = vmax.f32 %v10688_v28, 0.0 }
 0xc9b   : > { %v10788_v1 = vmax.f32 %v10680_v19, 0.0 }
 0xc9c   : > { %v10828_v49 = vpack.c.bf16 %v10790_v30, %v10789_v18 }
 0xc9d   : > { %v10827_v0 = vpack.c.bf16 %v10788_v1, %v10787_v46 }
 0xc9f   : > { %12435 = vmatprep.mubr.bf16.mxu0 %v10827_v0 }
 0xca0   : > { %12436 = vmatmul.mubr.bf16.gmra.mrb[80].mxu0 %v10828_v49 }
 0xca5   : > { %v12361_v14 = vpop.f32.mrb[20].mxu0 }
 0xca6   : > { %v10701_v51 = vadd.f32 %v12361_v14, %v16730_v13  ;;  %v10692_v58 = vpop.f32.mrb[21].mxu0 }
 0xca7   : > { %v10693_v15 = vadd.f32 %v16730_v13, %v10692_v58  ;;  %v12362_v60 = vpop.f32.mrb[22].mxu0 }
 0xca8   : > { %v10704_v31 = vadd.f32 %v12362_v60, %v16730_v13  ;;  %v10695_v55 = vpop.f32.mrb[23].mxu0  ;;  %v10793_v27 = vmax.f32 %v10701_v51, 0.0 }
 0xca9   : > { %v10696_v36 = vadd.f32 %v16730_v13, %v10695_v55  ;;  %v10791_v5 = vmax.f32 %v10693_v15, 0.0 }
 0xcaa   : > { %v10794_v42 = vmax.f32 %v10704_v31, 0.0 }
 0xcab   : > { %v10792_v62 = vmax.f32 %v10696_v36, 0.0 }
 0xcac   : > { %v10830_v20 = vpack.c.bf16 %v10794_v42, %v10793_v27 }
 0xcad   : > { %v10829_v61 = vpack.c.bf16 %v10792_v62, %v10791_v5 }
 0xcaf   : > { %12439 = vmatprep.mubr.bf16.mxu0 %v10829_v61 }
 0xcb0   : > { %12440 = vmatmul.mubr.bf16.gmra.mrb[84].mxu0 %v10830_v20 }
 0xcb5   : > { %v12365_v2 = vpop.f32.mrb[24].mxu0 }
 0xcb6   : > { %v10717_v22 = vadd.f32 %v12365_v2, %v16730_v13  ;;  %v10708_v3 = vpop.f32.mrb[25].mxu0 }
 0xcb7   : > { %v10709_v53 = vadd.f32 %v16730_v13, %v10708_v3  ;;  %v12366_v32 = vpop.f32.mrb[26].mxu0 }
 0xcb8   : > { %v10720_v50 = vadd.f32 %v12366_v32, %v16730_v13  ;;  %v10711_v11 = vpop.f32.mrb[27].mxu0  ;;  %v10797_v12 = vmax.f32 %v10717_v22, 0.0 }
 0xcb9   : > { %v10712_v33 = vadd.f32 %v16730_v13, %v10711_v11  ;;  %v10795_v8 = vmax.f32 %v10709_v53, 0.0 }
 0xcba   : > { %v10798_v56 = vmax.f32 %v10720_v50, 0.0 }
 0xcbb   : > { %v10796_v25 = vmax.f32 %v10712_v33, 0.0 }
 0xcbc   : > { %v10832_v10 = vpack.c.bf16 %v10798_v56, %v10797_v12 }
 0xcbd   : > { %v10831_v9 = vpack.c.bf16 %v10796_v25, %v10795_v8 }
 0xcbf   : > { %12443 = vmatprep.mubr.bf16.mxu0 %v10831_v9 }
 0xcc0   : > { %12444 = vmatmul.mubr.bf16.gmra.mrb[88].mxu0 %v10832_v10 }
 0xcc5   : > { %v12369_v23 = vpop.f32.mrb[28].mxu0 }
 0xcc6   : > { %v10733_v54 = vadd.f32 %v12369_v23, %v16730_v13  ;;  %v10724_v38 = vpop.f32.mrb[29].mxu0 }
 0xcc7   : > { %v10725_v59 = vadd.f32 %v16730_v13, %v10724_v38  ;;  %v12370_v48 = vpop.f32.mrb[30].mxu0 }
 0xcc8   : > { %v10736_v44 = vadd.f32 %v12370_v48, %v16730_v13  ;;  %v10727_v16 = vpop.f32.mrb[31].mxu0  ;;  %v10801_v24 = vmax.f32 %v10733_v54, 0.0 }
 0xcc9   : > { %v10728_v57 = vadd.f32 %v16730_v13, %v10727_v16  ;;  %v10799_v63 = vmax.f32 %v10725_v59, 0.0 }
 0xcca   : > { %v10802_v34 = vmax.f32 %v10736_v44, 0.0 }
 0xccb   : > { %v10800_v21 = vmax.f32 %v10728_v57, 0.0 }
 0xccc   : > { %v10834_v45 = vpack.c.bf16 %v10802_v34, %v10801_v24 }
 0xccd   : > { %v10833_v52 = vpack.c.bf16 %v10800_v21, %v10799_v63  ;;  %v12389_v26 = vpop.f32.mrb[32].mxu0 }
 0xcce   : > { %v10949_v7 = vadd.f32 %v12389_v26, %v16810_v40  ;;  %v10940_v37 = vpop.f32.mrb[33].mxu0 }
 0xccf   : > { %v10941_v13 = vadd.f32 %v16810_v40, %v10940_v37  ;;  %v12390_v4 = vpop.f32.mrb[34].mxu0  ;;  %12447 = vmatprep.mubr.bf16.mxu0 %v10833_v52 }
 0xcd0   : > { %v11197_v17 = vmax.f32 %v10949_v7, 0.0  ;;  %v10952_v41 = vadd.f32 %v12390_v4, %v16810_v40  ;;  %v10943_v35 = vpop.f32.mrb[35].mxu0  ;;  %12448 = vmatmul.mubr.bf16.gmra.mrb[92].mxu0 %v10834_v45 }
 0xcd1   : > { %v11195_v47 = vmax.f32 %v10941_v13, 0.0  ;;  %v10944_v39 = vadd.f32 %v16810_v40, %v10943_v35 }
 0xcd2   : > { %11262 = vst.msk [vmem:[%s16816_s6 + $0x10] sm:$0xff] %vm11259_vm1, %v11197_v17  ;;  %v11198_v6 = vmax.f32 %v10952_v41, 0.0 }
 0xcd3   : > { %11260 = vst.msk [vmem:[%s16816_s6] sm:$0xff] %vm11259_vm1, %v11195_v47  ;;  %v11196_v43 = vmax.f32 %v10944_v39, 0.0 }
 0xcd4   : > { %11263 = vst.msk [vmem:[%s16816_s6 + $0x18] sm:$0xff] %vm11259_vm1, %v11198_v6 }
 0xcd5   : > { %11261 = vst.msk [vmem:[%s16816_s6 + $0x8] sm:$0xff] %vm11259_vm1, %v11196_v43  ;;  %v12393_v28 = vpop.f32.mrb[36].mxu0 }
 0xcd6   : > { %v10965_v29 = vadd.f32 %v12393_v28, %v16810_v40  ;;  %v10956_v19 = vpop.f32.mrb[37].mxu0 }
 0xcd7   : > { %v10957_v18 = vadd.f32 %v16810_v40, %v10956_v19  ;;  %v12394_v30 = vpop.f32.mrb[38].mxu0 }
 0xcd8   : > { %v11201_v46 = vmax.f32 %v10965_v29, 0.0  ;;  %v10968_v1 = vadd.f32 %v12394_v30, %v16810_v40  ;;  %v10959_v49 = vpop.f32.mrb[39].mxu0 }
 0xcd9   : > { %v11199_v0 = vmax.f32 %v10957_v18, 0.0  ;;  %v10960_v14 = vadd.f32 %v16810_v40, %v10959_v49 }
 0xcda   : > { %11266 = vst.msk [vmem:[%s16816_s6 + $0x30] sm:$0xff] %vm11259_vm1, %v11201_v46  ;;  %v11202_v51 = vmax.f32 %v10968_v1, 0.0 }
 0xcdb   : > { %11264 = vst.msk [vmem:[%s16816_s6 + $0x20] sm:$0xff] %vm11259_vm1, %v11199_v0  ;;  %v11200_v58 = vmax.f32 %v10960_v14, 0.0 }
 0xcdc   : > { %11267 = vst.msk [vmem:[%s16816_s6 + $0x38] sm:$0xff] %vm11259_vm1, %v11202_v51 }
 0xcdd   : > { %11265 = vst.msk [vmem:[%s16816_s6 + $0x28] sm:$0xff] %vm11259_vm1, %v11200_v58  ;;  %v12397_v15 = vpop.f32.mrb[40].mxu0 }
 0xcde   : > { %v10981_v60 = vadd.f32 %v12397_v15, %v16810_v40  ;;  %v10972_v31 = vpop.f32.mrb[41].mxu0 }
 0xcdf   : > { %v10973_v55 = vadd.f32 %v16810_v40, %v10972_v31  ;;  %v12398_v36 = vpop.f32.mrb[42].mxu0 }
 0xce0   : > { %v11205_v27 = vmax.f32 %v10981_v60, 0.0  ;;  %v10984_v42 = vadd.f32 %v12398_v36, %v16810_v40  ;;  %v10975_v5 = vpop.f32.mrb[43].mxu0 }
 0xce1   : > { %v11203_v62 = vmax.f32 %v10973_v55, 0.0  ;;  %v10976_v20 = vadd.f32 %v16810_v40, %v10975_v5 }
 0xce2   : > { %11270 = vst.msk [vmem:[%s16816_s6 + $0x50] sm:$0xff] %vm11259_vm1, %v11205_v27  ;;  %v11206_v61 = vmax.f32 %v10984_v42, 0.0 }
 0xce3   : > { %11268 = vst.msk [vmem:[%s16816_s6 + $0x40] sm:$0xff] %vm11259_vm1, %v11203_v62  ;;  %v11204_v2 = vmax.f32 %v10976_v20, 0.0 }
 0xce4   : > { %11271 = vst.msk [vmem:[%s16816_s6 + $0x58] sm:$0xff] %vm11259_vm1, %v11206_v61 }
 0xce5   : > { %11269 = vst.msk [vmem:[%s16816_s6 + $0x48] sm:$0xff] %vm11259_vm1, %v11204_v2  ;;  %v12401_v22 = vpop.f32.mrb[44].mxu0 }
 0xce6   : > { %v10997_v3 = vadd.f32 %v12401_v22, %v16810_v40  ;;  %v10988_v53 = vpop.f32.mrb[45].mxu0 }
 0xce7   : > { %v10989_v32 = vadd.f32 %v16810_v40, %v10988_v53  ;;  %v12402_v50 = vpop.f32.mrb[46].mxu0 }
 0xce8   : > { %v11209_v11 = vmax.f32 %v10997_v3, 0.0  ;;  %v11000_v33 = vadd.f32 %v12402_v50, %v16810_v40  ;;  %v10991_v12 = vpop.f32.mrb[47].mxu0 }
 0xce9   : > { %v11207_v56 = vmax.f32 %v10989_v32, 0.0  ;;  %v10992_v8 = vadd.f32 %v16810_v40, %v10991_v12 }
 0xcea   : > { %11274 = vst.msk [vmem:[%s16816_s6 + $0x70] sm:$0xff] %vm11259_vm1, %v11209_v11  ;;  %v11210_v25 = vmax.f32 %v11000_v33, 0.0 }
 0xceb   : > { %11272 = vst.msk [vmem:[%s16816_s6 + $0x60] sm:$0xff] %vm11259_vm1, %v11207_v56  ;;  %v11208_v10 = vmax.f32 %v10992_v8, 0.0 }
 0xcec   : > { %11275 = vst.msk [vmem:[%s16816_s6 + $0x78] sm:$0xff] %vm11259_vm1, %v11210_v25 }
 0xced   : > { %11273 = vst.msk [vmem:[%s16816_s6 + $0x68] sm:$0xff] %vm11259_vm1, %v11208_v10 }
 0xcf3   : > { %v12405_v9 = vpop.f32.mrb[48].mxu0 }
 0xcf4   : > { %v11013_v23 = vadd.f32 %v12405_v9, %v16810_v40  ;;  %v11004_v54 = vpop.f32.mrb[49].mxu0 }
 0xcf5   : > { %v11005_v38 = vadd.f32 %v16810_v40, %v11004_v54  ;;  %v12406_v59 = vpop.f32.mrb[50].mxu0 }
 0xcf6   : > { %v11213_v48 = vmax.f32 %v11013_v23, 0.0  ;;  %v11016_v44 = vadd.f32 %v12406_v59, %v16810_v40  ;;  %v11007_v16 = vpop.f32.mrb[51].mxu0 }
 0xcf7   : > { %v11211_v57 = vmax.f32 %v11005_v38, 0.0  ;;  %v11008_v24 = vadd.f32 %v16810_v40, %v11007_v16 }
 0xcf8   : > { %11278 = vst.msk [vmem:[%s16816_s6 + $0x90] sm:$0xff] %vm11259_vm1, %v11213_v48  ;;  %v11214_v34 = vmax.f32 %v11016_v44, 0.0 }
 0xcf9   : > { %11276 = vst.msk [vmem:[%s16816_s6 + $0x80] sm:$0xff] %vm11259_vm1, %v11211_v57  ;;  %v11212_v63 = vmax.f32 %v11008_v24, 0.0 }
 0xcfa   : > { %11279 = vst.msk [vmem:[%s16816_s6 + $0x98] sm:$0xff] %vm11259_vm1, %v11214_v34 }
 0xcfb   : > { %11277 = vst.msk [vmem:[%s16816_s6 + $0x88] sm:$0xff] %vm11259_vm1, %v11212_v63 }
 0xd03   : > { %v12409_v21 = vpop.f32.mrb[52].mxu0 }
 0xd04   : > { %v11029_v45 = vadd.f32 %v12409_v21, %v16810_v40  ;;  %v11020_v52 = vpop.f32.mrb[53].mxu0 }
 0xd05   : > { %v11021_v26 = vadd.f32 %v16810_v40, %v11020_v52  ;;  %v12410_v7 = vpop.f32.mrb[54].mxu0 }
 0xd06   : > { %v11217_v37 = vmax.f32 %v11029_v45, 0.0  ;;  %v11032_v13 = vadd.f32 %v12410_v7, %v16810_v40  ;;  %v11023_v4 = vpop.f32.mrb[55].mxu0 }
 0xd07   : > { %v11215_v17 = vmax.f32 %v11021_v26, 0.0  ;;  %v11024_v41 = vadd.f32 %v16810_v40, %v11023_v4 }
 0xd08   : > { %11282 = vst.msk [vmem:[%s16816_s6 + $0xb0] sm:$0xff] %vm11259_vm1, %v11217_v37  ;;  %v11218_v35 = vmax.f32 %v11032_v13, 0.0 }
 0xd09   : > { %11280 = vst.msk [vmem:[%s16816_s6 + $0xa0] sm:$0xff] %vm11259_vm1, %v11215_v17  ;;  %v11216_v47 = vmax.f32 %v11024_v41, 0.0 }
 0xd0a   : > { %11283 = vst.msk [vmem:[%s16816_s6 + $0xb8] sm:$0xff] %vm11259_vm1, %v11218_v35 }
 0xd0b   : > { %11281 = vst.msk [vmem:[%s16816_s6 + $0xa8] sm:$0xff] %vm11259_vm1, %v11216_v47 }
 0xd13   : > { %v12413_v39 = vpop.f32.mrb[56].mxu0 }
 0xd14   : > { %v11045_v6 = vadd.f32 %v12413_v39, %v16810_v40  ;;  %v11036_v43 = vpop.f32.mrb[57].mxu0 }
 0xd15   : > { %v11037_v28 = vadd.f32 %v16810_v40, %v11036_v43  ;;  %v12414_v29 = vpop.f32.mrb[58].mxu0 }
 0xd16   : > { %v11221_v19 = vmax.f32 %v11045_v6, 0.0  ;;  %v11048_v18 = vadd.f32 %v12414_v29, %v16810_v40  ;;  %v11039_v30 = vpop.f32.mrb[59].mxu0 }
 0xd17   : > { %v11219_v46 = vmax.f32 %v11037_v28, 0.0  ;;  %v11040_v1 = vadd.f32 %v16810_v40, %v11039_v30 }
 0xd18   : > { %11286 = vst.msk [vmem:[%s16816_s6 + $0xd0] sm:$0xff] %vm11259_vm1, %v11221_v19  ;;  %v11222_v49 = vmax.f32 %v11048_v18, 0.0 }
 0xd19   : > { %11284 = vst.msk [vmem:[%s16816_s6 + $0xc0] sm:$0xff] %vm11259_vm1, %v11219_v46  ;;  %v11220_v0 = vmax.f32 %v11040_v1, 0.0 }
 0xd1a   : > { %11287 = vst.msk [vmem:[%s16816_s6 + $0xd8] sm:$0xff] %vm11259_vm1, %v11222_v49 }
 0xd1b   : > { %11285 = vst.msk [vmem:[%s16816_s6 + $0xc8] sm:$0xff] %vm11259_vm1, %v11220_v0 }
 0xd23   : > { %v12417_v14 = vpop.f32.mrb[60].mxu0 }
 0xd24   : > { %v11061_v51 = vadd.f32 %v12417_v14, %v16810_v40  ;;  %v11052_v58 = vpop.f32.mrb[61].mxu0 }
 0xd25   : > { %v11053_v15 = vadd.f32 %v16810_v40, %v11052_v58  ;;  %v12418_v60 = vpop.f32.mrb[62].mxu0 }
 0xd26   : > { %v11225_v31 = vmax.f32 %v11061_v51, 0.0  ;;  %v11064_v55 = vadd.f32 %v12418_v60, %v16810_v40  ;;  %v11055_v36 = vpop.f32.mrb[63].mxu0 }
 0xd27   : > { %v11223_v27 = vmax.f32 %v11053_v15, 0.0  ;;  %v11056_v42 = vadd.f32 %v16810_v40, %v11055_v36 }
 0xd28   : > { %11290 = vst.msk [vmem:[%s16816_s6 + $0xf0] sm:$0xff] %vm11259_vm1, %v11225_v31  ;;  %v11226_v5 = vmax.f32 %v11064_v55, 0.0 }
 0xd29   : > { %11288 = vst.msk [vmem:[%s16816_s6 + $0xe0] sm:$0xff] %vm11259_vm1, %v11223_v27  ;;  %v11224_v62 = vmax.f32 %v11056_v42, 0.0 }
 0xd2a   : > { %11291 = vst.msk [vmem:[%s16816_s6 + $0xf8] sm:$0xff] %vm11259_vm1, %v11226_v5 }
 0xd2b   : > { %11289 = vst.msk [vmem:[%s16816_s6 + $0xe8] sm:$0xff] %vm11259_vm1, %v11224_v62 }
 0xd33   : > { %v12421_v20 = vpop.f32.mrb[64].mxu0 }
 0xd34   : > { %v11077_v61 = vadd.f32 %v12421_v20, %v16810_v40  ;;  %v11068_v2 = vpop.f32.mrb[65].mxu0 }
 0xd35   : > { %v11069_v22 = vadd.f32 %v16810_v40, %v11068_v2  ;;  %v12422_v3 = vpop.f32.mrb[66].mxu0 }
 0xd36   : > { %v11229_v53 = vmax.f32 %v11077_v61, 0.0  ;;  %v11080_v32 = vadd.f32 %v12422_v3, %v16810_v40  ;;  %v11071_v50 = vpop.f32.mrb[67].mxu0 }
 0xd37   : > { %v11227_v11 = vmax.f32 %v11069_v22, 0.0  ;;  %v11072_v33 = vadd.f32 %v16810_v40, %v11071_v50 }
 0xd38   : > { %11294 = vst.msk [vmem:[%s16816_s6 + $0x110] sm:$0xff] %vm11259_vm1, %v11229_v53  ;;  %v11230_v12 = vmax.f32 %v11080_v32, 0.0 }
 0xd39   : > { %11292 = vst.msk [vmem:[%s16816_s6 + $0x100] sm:$0xff] %vm11259_vm1, %v11227_v11  ;;  %v11228_v56 = vmax.f32 %v11072_v33, 0.0 }
 0xd3a   : > { %11295 = vst.msk [vmem:[%s16816_s6 + $0x118] sm:$0xff] %vm11259_vm1, %v11230_v12 }
 0xd3b   : > { %11293 = vst.msk [vmem:[%s16816_s6 + $0x108] sm:$0xff] %vm11259_vm1, %v11228_v56 }
 0xd43   : > { %v12425_v8 = vpop.f32.mrb[68].mxu0 }
 0xd44   : > { %v11093_v25 = vadd.f32 %v12425_v8, %v16810_v40  ;;  %v11084_v10 = vpop.f32.mrb[69].mxu0 }
 0xd45   : > { %v11085_v9 = vadd.f32 %v16810_v40, %v11084_v10  ;;  %v12426_v23 = vpop.f32.mrb[70].mxu0 }
 0xd46   : > { %v11233_v54 = vmax.f32 %v11093_v25, 0.0  ;;  %v11096_v38 = vadd.f32 %v12426_v23, %v16810_v40  ;;  %v11087_v59 = vpop.f32.mrb[71].mxu0 }
 0xd47   : > { %v11231_v48 = vmax.f32 %v11085_v9, 0.0  ;;  %v11088_v44 = vadd.f32 %v16810_v40, %v11087_v59 }
 0xd48   : > { %11298 = vst.msk [vmem:[%s16816_s6 + $0x130] sm:$0xff] %vm11259_vm1, %v11233_v54  ;;  %v11234_v16 = vmax.f32 %v11096_v38, 0.0 }
 0xd49   : > { %11296 = vst.msk [vmem:[%s16816_s6 + $0x120] sm:$0xff] %vm11259_vm1, %v11231_v48  ;;  %v11232_v57 = vmax.f32 %v11088_v44, 0.0 }
 0xd4a   : > { %11299 = vst.msk [vmem:[%s16816_s6 + $0x138] sm:$0xff] %vm11259_vm1, %v11234_v16 }
 0xd4b   : > { %11297 = vst.msk [vmem:[%s16816_s6 + $0x128] sm:$0xff] %vm11259_vm1, %v11232_v57 }
 0xd53   : > { %v12429_v24 = vpop.f32.mrb[72].mxu0 }
 0xd54   : > { %v11109_v34 = vadd.f32 %v12429_v24, %v16810_v40  ;;  %v11100_v63 = vpop.f32.mrb[73].mxu0 }
 0xd55   : > { %v11101_v21 = vadd.f32 %v16810_v40, %v11100_v63  ;;  %v12430_v45 = vpop.f32.mrb[74].mxu0 }
 0xd56   : > { %v11237_v52 = vmax.f32 %v11109_v34, 0.0  ;;  %v11112_v26 = vadd.f32 %v12430_v45, %v16810_v40  ;;  %v11103_v7 = vpop.f32.mrb[75].mxu0 }
 0xd57   : > { %v11235_v37 = vmax.f32 %v11101_v21, 0.0  ;;  %v11104_v13 = vadd.f32 %v16810_v40, %v11103_v7 }
 0xd58   : > { %11302 = vst.msk [vmem:[%s16816_s6 + $0x150] sm:$0xff] %vm11259_vm1, %v11237_v52  ;;  %v11238_v4 = vmax.f32 %v11112_v26, 0.0 }
 0xd59   : > { %11300 = vst.msk [vmem:[%s16816_s6 + $0x140] sm:$0xff] %vm11259_vm1, %v11235_v37  ;;  %v11236_v17 = vmax.f32 %v11104_v13, 0.0 }
 0xd5a   : > { %11303 = vst.msk [vmem:[%s16816_s6 + $0x158] sm:$0xff] %vm11259_vm1, %v11238_v4 }
 0xd5b   : > { %11301 = vst.msk [vmem:[%s16816_s6 + $0x148] sm:$0xff] %vm11259_vm1, %v11236_v17 }
 0xd63   : > { %v12433_v41 = vpop.f32.mrb[76].mxu0 }
 0xd64   : > { %v11125_v35 = vadd.f32 %v12433_v41, %v16810_v40  ;;  %v11116_v47 = vpop.f32.mrb[77].mxu0 }
 0xd65   : > { %v11117_v39 = vadd.f32 %v16810_v40, %v11116_v47  ;;  %v12434_v6 = vpop.f32.mrb[78].mxu0 }
 0xd66   : > { %v11241_v43 = vmax.f32 %v11125_v35, 0.0  ;;  %v11128_v28 = vadd.f32 %v12434_v6, %v16810_v40  ;;  %v11119_v29 = vpop.f32.mrb[79].mxu0 }
 0xd67   : > { %v11239_v19 = vmax.f32 %v11117_v39, 0.0  ;;  %v11120_v18 = vadd.f32 %v16810_v40, %v11119_v29 }
 0xd68   : > { %11306 = vst.msk [vmem:[%s16816_s6 + $0x170] sm:$0xff] %vm11259_vm1, %v11241_v43  ;;  %v11242_v30 = vmax.f32 %v11128_v28, 0.0 }
 0xd69   : > { %11304 = vst.msk [vmem:[%s16816_s6 + $0x160] sm:$0xff] %vm11259_vm1, %v11239_v19  ;;  %v11240_v46 = vmax.f32 %v11120_v18, 0.0 }
 0xd6a   : > { %11307 = vst.msk [vmem:[%s16816_s6 + $0x178] sm:$0xff] %vm11259_vm1, %v11242_v30 }
 0xd6b   : > { %11305 = vst.msk [vmem:[%s16816_s6 + $0x168] sm:$0xff] %vm11259_vm1, %v11240_v46 }
 0xd73   : > { %v12437_v1 = vpop.f32.mrb[80].mxu0 }
 0xd74   : > { %v11141_v49 = vadd.f32 %v12437_v1, %v16810_v40  ;;  %v11132_v0 = vpop.f32.mrb[81].mxu0 }
 0xd75   : > { %v11133_v14 = vadd.f32 %v16810_v40, %v11132_v0  ;;  %v12438_v51 = vpop.f32.mrb[82].mxu0 }
 0xd76   : > { %v11245_v58 = vmax.f32 %v11141_v49, 0.0  ;;  %v11144_v15 = vadd.f32 %v12438_v51, %v16810_v40  ;;  %v11135_v60 = vpop.f32.mrb[83].mxu0 }
 0xd77   : > { %v11243_v31 = vmax.f32 %v11133_v14, 0.0  ;;  %v11136_v55 = vadd.f32 %v16810_v40, %v11135_v60 }
 0xd78   : > { %11310 = vst.msk [vmem:[%s16816_s6 + $0x190] sm:$0xff] %vm11259_vm1, %v11245_v58  ;;  %v11246_v36 = vmax.f32 %v11144_v15, 0.0 }
 0xd79   : > { %11308 = vst.msk [vmem:[%s16816_s6 + $0x180] sm:$0xff] %vm11259_vm1, %v11243_v31  ;;  %v11244_v27 = vmax.f32 %v11136_v55, 0.0 }
 0xd7a   : > { %11311 = vst.msk [vmem:[%s16816_s6 + $0x198] sm:$0xff] %vm11259_vm1, %v11246_v36 }
 0xd7b   : > { %11309 = vst.msk [vmem:[%s16816_s6 + $0x188] sm:$0xff] %vm11259_vm1, %v11244_v27 }
 0xd83   : > { %v12441_v42 = vpop.f32.mrb[84].mxu0 }
 0xd84   : > { %v11157_v5 = vadd.f32 %v12441_v42, %v16810_v40  ;;  %v11148_v62 = vpop.f32.mrb[85].mxu0 }
 0xd85   : > { %v11149_v20 = vadd.f32 %v16810_v40, %v11148_v62  ;;  %v12442_v61 = vpop.f32.mrb[86].mxu0 }
 0xd86   : > { %v11249_v2 = vmax.f32 %v11157_v5, 0.0  ;;  %v11160_v22 = vadd.f32 %v12442_v61, %v16810_v40  ;;  %v11151_v3 = vpop.f32.mrb[87].mxu0 }
 0xd87   : > { %v11247_v53 = vmax.f32 %v11149_v20, 0.0  ;;  %v11152_v32 = vadd.f32 %v16810_v40, %v11151_v3 }
 0xd88   : > { %11314 = vst.msk [vmem:[%s16816_s6 + $0x1b0] sm:$0xff] %vm11259_vm1, %v11249_v2  ;;  %v11250_v50 = vmax.f32 %v11160_v22, 0.0 }
 0xd89   : > { %11312 = vst.msk [vmem:[%s16816_s6 + $0x1a0] sm:$0xff] %vm11259_vm1, %v11247_v53  ;;  %v11248_v11 = vmax.f32 %v11152_v32, 0.0 }
 0xd8a   : > { %11315 = vst.msk [vmem:[%s16816_s6 + $0x1b8] sm:$0xff] %vm11259_vm1, %v11250_v50 }
 0xd8b   : > { %11313 = vst.msk [vmem:[%s16816_s6 + $0x1a8] sm:$0xff] %vm11259_vm1, %v11248_v11 }
 0xd93   : > { %v12445_v33 = vpop.f32.mrb[88].mxu0 }
 0xd94   : > { %v11173_v12 = vadd.f32 %v12445_v33, %v16810_v40  ;;  %v11164_v56 = vpop.f32.mrb[89].mxu0 }
 0xd95   : > { %v11165_v8 = vadd.f32 %v16810_v40, %v11164_v56  ;;  %v12446_v25 = vpop.f32.mrb[90].mxu0 }
 0xd96   : > { %v11253_v10 = vmax.f32 %v11173_v12, 0.0  ;;  %v11176_v9 = vadd.f32 %v12446_v25, %v16810_v40  ;;  %v11167_v23 = vpop.f32.mrb[91].mxu0 }
 0xd97   : > { %v11251_v54 = vmax.f32 %v11165_v8, 0.0  ;;  %v11168_v38 = vadd.f32 %v16810_v40, %v11167_v23 }
 0xd98   : > { %11318 = vst.msk [vmem:[%s16816_s6 + $0x1d0] sm:$0xff] %vm11259_vm1, %v11253_v10  ;;  %v11254_v59 = vmax.f32 %v11176_v9, 0.0 }
 0xd99   : > { %11316 = vst.msk [vmem:[%s16816_s6 + $0x1c0] sm:$0xff] %vm11259_vm1, %v11251_v54  ;;  %v11252_v48 = vmax.f32 %v11168_v38, 0.0 }
 0xd9a   : > { %11319 = vst.msk [vmem:[%s16816_s6 + $0x1d8] sm:$0xff] %vm11259_vm1, %v11254_v59 }
 0xd9b   : > { %11317 = vst.msk [vmem:[%s16816_s6 + $0x1c8] sm:$0xff] %vm11259_vm1, %v11252_v48 }
 0xda3   : > { %v12449_v44 = vpop.f32.mrb[92].mxu0 }
 0xda4   : > { %v11189_v16 = vadd.f32 %v12449_v44, %v16810_v40  ;;  %v11180_v57 = vpop.f32.mrb[93].mxu0 }
 0xda5   : > { %v11181_v24 = vadd.f32 %v16810_v40, %v11180_v57  ;;  %v12450_v34 = vpop.f32.mrb[94].mxu0 }
 0xda6   : > { %v11257_v63 = vmax.f32 %v11189_v16, 0.0  ;;  %v11192_v21 = vadd.f32 %v12450_v34, %v16810_v40  ;;  %v11183_v45 = vpop.f32.mrb[95].mxu0 }
 0xda7   : > { %v11255_v52 = vmax.f32 %v11181_v24, 0.0  ;;  %v11184_v26 = vadd.f32 %v16810_v40, %v11183_v45 }
 0xda8   : > { %11322 = vst.msk [vmem:[%s16816_s6 + $0x1f0] sm:$0xff] %vm11259_vm1, %v11257_v63  ;;  %v11258_v7 = vmax.f32 %v11192_v21, 0.0 }
 0xda9   : > { %11320 = vst.msk [vmem:[%s16816_s6 + $0x1e0] sm:$0xff] %vm11259_vm1, %v11255_v52  ;;  %v11256_v37 = vmax.f32 %v11184_v26, 0.0 }
 0xdaa   : > { %11323 = vst.msk [vmem:[%s16816_s6 + $0x1f8] sm:$0xff] %vm11259_vm1, %v11258_v7 }
 0xdab   : > { %11321 = vst.msk [vmem:[%s16816_s6 + $0x1e8] sm:$0xff] %vm11259_vm1, %v11256_v37 }
 0xdac PF: > { %p82_p6 = scmp.ge.s32.totalorder %s14138_s19, 4   ;;  %s17151_s16 = smov %s13732_s15 }
 0xdad   : > { %s17152_s15 = smov %s13736_s18  ;;  %s17153_s18 = smov %s14150_s1 }
 0xdae   : > { %s17154_s23 = smov %s14138_s19  ;;  %84 = sbr.rel (!%p82_p6) target bundleno = 67 (0x43), region = 271 }
 0xdb5   :  { %11428 = vsyncpa [#allocation4], 1 }
 0xdb6   :  { %11430 = vsyncpa [#allocation4 + $0x1], 1 }
 0xdb7   :  { %11431 = vsyncpa [#allocation6], 1 }
 0xdb8   :  { %11433 = vsyncpa [#allocation6 + $0x1], 1 }
 0xdb9   :  { %11434 = vsyncpa [#allocation9], 1 }
 0xdba   :  { %11435 = vsyncpa [#allocation12], 1 }
 0xdbb   :  { %11436 = vsyncpa [#allocation15], 1 }
 0xdbc   :  { %11437 = vsyncpa [#allocation18], 1 }
 0xdbd   :  { %11438 = vsyncpa [#allocation21], 1 }

</bundles_post_ra>
